<compile_context>
chip_gen: v7x
topology: tpu7x:2x2x1
jax: 0.10.0
libtpu: 0.0.40
codegen_flags: <defaults>
</compile_context>

<pallas_src>
import functools

import jax
import jax.numpy as jnp
from jax.experimental import pallas as pl
from jax.experimental.pallas import tpu as pltpu

ALPHA = 0.2  # LeakyReLU negative slope of BatchGraphAttentionLayer


def _leaky_relu(x):
    return jnp.where(x > 0, x, ALPHA * x)


def _elu(x):
    # ELU(alpha=1); min() keeps the unselected branch finite.
    return jnp.where(x > 0, x, jnp.exp(jnp.minimum(x, 0.0)) - 1.0)


def gat1nn2_kernel(xb_ref, wfused_ref, adst_ref, w1r_ref, b1_ref,
                   w3a_ref, c3_ref, wo_ref, bo_ref, out_ref, *, nheads, nhid):
    # NOTE: all F.dropout calls (0.6 / 0.4 / 0.3 and the attention dropout) are
    # identity in eval mode and therefore omitted.
    K = nheads * nhid
    xb = xb_ref[...]                                                   # (TB, N, F)
    TB, N, F = xb.shape

    # Fused per-head projection + per-head src attention score: one batched MXU pass.
    wf = jnp.broadcast_to(wfused_ref[...][None], (TB, F, K + nheads))  # (TB, F, K+H)
    z = jnp.einsum("bnf,bfk->bnk", xb, wf,
                   preferred_element_type=jnp.float32)                 # (TB, N, K+H)

    # Per-head dst attention scores, already row (lane) oriented: d[b,h,j].
    ad = jnp.broadcast_to(adst_ref[...][None], (TB, nheads, F))        # (TB, H, F)
    d = jnp.einsum("bhf,bnf->bhn", ad, xb,
                   preferred_element_type=jnp.float32)                 # (TB, H, N)

    x1t = None                                       # linear1 accumulator, (C, TB)
    for h in range(nheads):                          # static unroll, nheads small
        wh = z[:, :, h * nhid:(h + 1) * nhid]        # (TB, N, nhid)
        src = z[:, :, K + h:K + h + 1]               # (TB, N, 1)
        dst = d[:, h:h + 1, :]                       # (TB, 1, N)
        e = _leaky_relu(src + dst)                   # (TB, N, N)
        e = e - jnp.max(e, axis=-1, keepdims=True)
        p = jnp.exp(e)
        att = p / jnp.sum(p, axis=-1, keepdims=True)  # exact softmax
        oh = _elu(jnp.einsum("bij,bjd->bid", att, wh,
                             preferred_element_type=jnp.float32))      # (TB, N, nhid)

        # linear1 contribution of this head, accumulated directly in transposed
        # (C, TB) layout (batch on lanes): no hcat concat, no in-kernel reshape.
        w1h = w1r_ref[h]                              # (C, N, nhid)
        prod = oh[None, :, :, :] * w1h[:, None, :, :]  # (C, TB, N, nhid)
        contrib = jnp.sum(jnp.sum(prod, axis=3), axis=2)  # (C, TB)
        x1t = contrib if x1t is None else x1t + contrib

    x1t = jnp.maximum(x1t + b1_ref[...], 0.0)         # relu(linear1), (C, TB)

    # linear3: only the x1 half; the y2 half (+ b3) was pre-folded into c3 (wrapper).
    z3t = jnp.dot(w3a_ref[...], x1t, preferred_element_type=jnp.float32)  # (32, TB)
    z3t = jnp.maximum(z3t + c3_ref[...], 0.0)

    # layer_out -> a single lane-dense (1, TB) store.
    outt = jnp.sum(z3t * wo_ref[...], axis=0, keepdims=True)              # (1, TB)
    out_ref[...] = outt + bo_ref[...]


@functools.partial(jax.jit, static_argnames=("block_b",))
def gat1nn2_forward(x, p, block_b=None):
    """x: (B, N, nfeat); p: dict of raw (PyTorch-layout) parameters."""
    B, N, F = x.shape
    H, _, nhid = p["W_heads"].shape
    K = H * nhid
    C = p["W1"].shape[0]
    hid3 = p["W3"].shape[0]

    # Batch block: sublane-aligned (multiple of 8), sized so the grid has >=2
    # steps when possible (dual-TC v7x); on single-TC v5e/v6e the grid is just
    # a short serial loop either way.
    if block_b is None:
        tb = max(8, ((-(-B // 2) + 7) // 8) * 8)
    else:
        tb = block_b
    G = -(-B // tb)
    Bp = G * tb

    # ---- one-time parameter refactoring / precompute (wrapper-side plumbing) ----
    with jax.default_matmul_precision("float32"):
        w_stk = jnp.transpose(p["W_heads"], (1, 0, 2)).reshape(F, K)   # [W_0|...|W_{H-1}]
        src_cols = jnp.einsum("hfd,hd->fh", p["W_heads"], p["a_src"])  # (F, H)
        wfused = jnp.concatenate([w_stk, src_cols], axis=1)            # (F, K+H)
        adst = jnp.einsum("hfd,hd->hf", p["W_heads"], p["a_dst"])      # (H, F)

        # linear1 weight rearranged per head for the transposed-(C, TB) accumulation.
        w1r = p["W1"].reshape(C, N, H, nhid).transpose(2, 0, 1, 3)     # (H, C, N, nhid)
        b1c = p["b1"].reshape(C, 1)

        # linear2 is independent of the GAT output -> hoist it out of the kernel
        # and pre-fold its linear3 contribution + bias:  c3 = y2 @ W3[:, C:]^T + b3.
        y2 = jax.nn.relu(jnp.dot(x.reshape(B, -1), p["W2"].T) + p["b2"])   # (B, 64)
        c3 = jnp.dot(y2, p["W3"][:, C:].T) + p["b3"]                       # (B, 32)

    w3a = p["W3"][:, :C]                                               # (32, C)
    wo_col = p["Wo"].reshape(hid3, 1)
    bo = p["bo"].reshape(1, 1)

    # Pad the batch to a multiple of tb; pre-tile c3 lane-dense as (G, 32, tb).
    pad = Bp - B
    xp = jnp.pad(x, ((0, pad), (0, 0), (0, 0)))
    c3t = jnp.pad(c3, ((0, pad), (0, 0))).reshape(G, tb, hid3).transpose(0, 2, 1)

    kernel = functools.partial(gat1nn2_kernel, nheads=H, nhid=nhid)

    out = pl.pallas_call(
        kernel,
        out_shape=jax.ShapeDtypeStruct((G, 1, tb), jnp.float32),
        grid=(G,),
        in_specs=[
            pl.BlockSpec((tb, N, F), lambda b: (b, 0, 0)),             # x, TB graphs/step
            pl.BlockSpec((F, K + H), lambda b: (0, 0)),                # fused [W | W a_src]
            pl.BlockSpec((H, F), lambda b: (0, 0)),                    # per-head W a_dst
            pl.BlockSpec((H, C, N, nhid), lambda b: (0, 0, 0, 0)),     # linear1 W (rearranged)
            pl.BlockSpec((C, 1), lambda b: (0, 0)),                    # linear1 b
            pl.BlockSpec((hid3, C), lambda b: (0, 0)),                 # linear3 W (x1 half)
            pl.BlockSpec((None, hid3, tb), lambda b: (b, 0, 0)),       # y2@W3b^T + b3 (precomp)
            pl.BlockSpec((hid3, 1), lambda b: (0, 0)),                 # layer_out W
            pl.BlockSpec((1, 1), lambda b: (0, 0)),                    # layer_out b
        ],
        out_specs=pl.BlockSpec((None, 1, tb), lambda b: (b, 0, 0)),    # lane-dense row
        compiler_params=pltpu.CompilerParams(
            dimension_semantics=("parallel",)),
    )(xp, wfused, adst, w1r, b1c, w3a, c3t, wo_col, bo)

    return out.reshape(Bp)[:B].reshape(B, 1)


# ----------------------------- pure-JAX reference ----------------------------- #
def reference(x, p):
    B, N, F = x.shape
    H = p["W_heads"].shape[0]

    def head(h):
        Wh = jnp.einsum("bnf,fd->bnd", x, p["W_heads"][h])
        s = jnp.einsum("bnd,d->bn", Wh, p["a_src"][h])
        t = jnp.einsum("bnd,d->bn", Wh, p["a_dst"][h])
        e = _leaky_relu(s[:, :, None] + t[:, None, :])
        att = jax.nn.softmax(e, axis=-1)
        return jax.nn.elu(jnp.einsum("bij,bjd->bid", att, Wh))

    hcat = jnp.concatenate([head(h) for h in range(H)], axis=2)
    x1 = jax.nn.relu(hcat.reshape(B, -1) @ p["W1"].T + p["b1"])
    y = jax.nn.relu(x.reshape(B, -1) @ p["W2"].T + p["b2"])
    xy = jnp.concatenate([x1, y], axis=1)
    xy = jax.nn.relu(xy @ p["W3"].T + p["b3"])
    return xy @ p["Wo"].T + p["bo"][None, :]


if __name__ == "__main__":
    # Small shapes consistent with the module's forward; batch=16 gives two
    # batch blocks of 8 graphs (dual-TensorCore friendly on v7x).
    batch_size = 16
    num_nodes = 16
    nfeat = 8
    nhid = 8
    nheads = 4
    out_channels = 4
    hid2, hid3 = 64, 32  # fixed by the module: linear2 -> 64, linear3 -> 32

    key = jax.random.PRNGKey(0)
    ks = jax.random.split(key, 12)

    params = {
        "W_heads": 0.3 * jax.random.normal(ks[0], (nheads, nfeat, nhid), jnp.float32),
        "a_src":   0.3 * jax.random.normal(ks[1], (nheads, nhid), jnp.float32),
        "a_dst":   0.3 * jax.random.normal(ks[2], (nheads, nhid), jnp.float32),
        "W1":      0.3 * jax.random.normal(ks[3], (out_channels, num_nodes * nheads * nhid), jnp.float32),
        "b1":      0.1 * jax.random.normal(ks[4], (out_channels,), jnp.float32),
        "W2":      0.3 * jax.random.normal(ks[5], (hid2, num_nodes * nfeat), jnp.float32),
        "b2":      0.1 * jax.random.normal(ks[6], (hid2,), jnp.float32),
        "W3":      0.3 * jax.random.normal(ks[7], (hid3, hid2 + out_channels), jnp.float32),
        "b3":      0.1 * jax.random.normal(ks[8], (hid3,), jnp.float32),
        "Wo":      0.3 * jax.random.normal(ks[9], (1, hid3), jnp.float32),
        "bo":      0.1 * jax.random.normal(ks[10], (1,), jnp.float32),
    }

    x = jax.random.normal(ks[11], (batch_size, num_nodes, nfeat), jnp.float32)

    out = jax.block_until_ready(gat1nn2_forward(x, params))
    with jax.default_matmul_precision("float32"):
        ref = jax.block_until_ready(reference(x, params))

    assert out.shape == (batch_size, 1), out.shape
    assert jnp.allclose(out, ref, atol=1e-3, rtol=1e-3), (out, ref)
    print("KERNEL_OK")
</pallas_src>

<mosaic_0001>
module attributes {stable_mosaic.version = 11 : i64} {
  func.func @gat1nn2_kernel(%arg0: i32, %arg1: memref<8x16x8xf32, #tpu.memory_space<vmem>>, %arg2: memref<8x36xf32, #tpu.memory_space<vmem>>, %arg3: memref<4x8xf32, #tpu.memory_space<vmem>>, %arg4: memref<4x4x16x8xf32, #tpu.memory_space<vmem>>, %arg5: memref<4x1xf32, #tpu.memory_space<vmem>>, %arg6: memref<32x4xf32, #tpu.memory_space<vmem>>, %arg7: memref<1x32x8xf32, #tpu.memory_space<vmem>>, %arg8: memref<32x1xf32, #tpu.memory_space<vmem>>, %arg9: memref<1x1xf32, #tpu.memory_space<vmem>>, %arg10: memref<1x1x8xf32, #tpu.memory_space<vmem>>) attributes {dimension_semantics = [#tpu.dimension_semantics<parallel>], iteration_bounds = array<i64: 2>, scalar_prefetch = 0 : i64, scratch_operands = 0 : i64, tpu.core_type = #tpu.core_type<tc>, window_params = [{transform_indices = @transform_0, window_bounds = array<i64: 8, 16, 8>}, {pipeline_mode = #tpu.pipeline_mode<synchronous>, transform_indices = @transform_1, window_bounds = array<i64: 8, 36>}, {pipeline_mode = #tpu.pipeline_mode<synchronous>, transform_indices = @transform_2, window_bounds = array<i64: 4, 8>}, {pipeline_mode = #tpu.pipeline_mode<synchronous>, transform_indices = @transform_3, window_bounds = array<i64: 4, 4, 16, 8>}, {pipeline_mode = #tpu.pipeline_mode<synchronous>, transform_indices = @transform_4, window_bounds = array<i64: 4, 1>}, {pipeline_mode = #tpu.pipeline_mode<synchronous>, transform_indices = @transform_5, window_bounds = array<i64: 32, 4>}, {transform_indices = @transform_6, window_bounds = array<i64: 1, 32, 8>}, {pipeline_mode = #tpu.pipeline_mode<synchronous>, transform_indices = @transform_7, window_bounds = array<i64: 32, 1>}, {pipeline_mode = #tpu.pipeline_mode<synchronous>, transform_indices = @transform_8, window_bounds = array<i64: 1, 1>}, {transform_indices = @transform_9, window_bounds = array<i64: 1, 1, 8>}]} {
    %c0 = arith.constant 0 : index
    %c0_0 = arith.constant 0 : index
    %c0_1 = arith.constant 0 : index
    %0 = vector.load %arg1[%c0, %c0_0, %c0_1] : memref<8x16x8xf32, #tpu.memory_space<vmem>>, vector<8x16x8xf32>
    %c0_2 = arith.constant 0 : index
    %c0_3 = arith.constant 0 : index
    %1 = vector.load %arg2[%c0_2, %c0_3] : memref<8x36xf32, #tpu.memory_space<vmem>>, vector<8x36xf32>
    %2 = vector.shape_cast %1 : vector<8x36xf32> to vector<1x8x36xf32>
    %3 = vector.shape_cast %2 : vector<1x8x36xf32> to vector<1x8x36xf32>
    %4 = vector.broadcast %3 : vector<1x8x36xf32> to vector<8x8x36xf32>
    "tpu.trace_start"() <{level = 10 : i32, message = "bnf,bfk->bnk"}> : () -> ()
    %cst = arith.constant dense<0.000000e+00> : vector<8x16x36xf32>
    %5 = tpu.matmul %0, %4, %cst {dimension_numbers = #tpu.dot_dimension_numbers<[2], [1], [1], [2], [0, 0, 0, 1, 1, 2], [0], [0]>} : vector<8x16x8xf32>, vector<8x8x36xf32>, vector<8x16x36xf32> -> vector<8x16x36xf32>
    "tpu.trace_stop"() : () -> ()
    %c0_4 = arith.constant 0 : index
    %c0_5 = arith.constant 0 : index
    %6 = vector.load %arg3[%c0_4, %c0_5] : memref<4x8xf32, #tpu.memory_space<vmem>>, vector<4x8xf32>
    %7 = vector.shape_cast %6 : vector<4x8xf32> to vector<1x4x8xf32>
    %8 = vector.shape_cast %7 : vector<1x4x8xf32> to vector<1x4x8xf32>
    %9 = vector.broadcast %8 : vector<1x4x8xf32> to vector<8x4x8xf32>
    "tpu.trace_start"() <{level = 10 : i32, message = "bhf,bnf->bhn"}> : () -> ()
    %cst_6 = arith.constant dense<0.000000e+00> : vector<8x4x16xf32>
    %10 = tpu.matmul %9, %0, %cst_6 {dimension_numbers = #tpu.dot_dimension_numbers<[2], [2], [1], [1], [0, 0, 0, 1, 1, 1], [0], [0]>} : vector<8x4x8xf32>, vector<8x16x8xf32>, vector<8x4x16xf32> -> vector<8x4x16xf32>
    "tpu.trace_stop"() : () -> ()
    %11 = vector.extract_strided_slice %5 {offsets = [0, 0, 0], sizes = [8, 16, 8], strides = [1, 1, 1]} : vector<8x16x36xf32> to vector<8x16x8xf32>
    %12 = vector.extract_strided_slice %5 {offsets = [0, 0, 32], sizes = [8, 16, 1], strides = [1, 1, 1]} : vector<8x16x36xf32> to vector<8x16x1xf32>
    %13 = vector.extract_strided_slice %10 {offsets = [0, 0, 0], sizes = [8, 1, 16], strides = [1, 1, 1]} : vector<8x4x16xf32> to vector<8x1x16xf32>
    %14 = vector.broadcast %12 : vector<8x16x1xf32> to vector<8x16x16xf32>
    %15 = vector.broadcast %13 : vector<8x1x16xf32> to vector<8x16x16xf32>
    %16 = arith.addf %14, %15 : vector<8x16x16xf32>
    %cst_7 = arith.constant 0.000000e+00 : f32
    %17 = vector.broadcast %cst_7 : f32 to vector<8x16x16xf32>
    %18 = arith.cmpf ogt, %16, %17 : vector<8x16x16xf32>
    %cst_8 = arith.constant 2.000000e-01 : f32
    %19 = vector.broadcast %cst_8 : f32 to vector<8x16x16xf32>
    %20 = arith.mulf %19, %16 : vector<8x16x16xf32>
    %21 = arith.select %18, %16, %20 : vector<8x16x16xi1>, vector<8x16x16xf32>
    %cst_9 = arith.constant dense<0xFF800000> : vector<8x16xf32>
    %22 = vector.multi_reduction <maximumf>, %21, %cst_9 [2] : vector<8x16x16xf32> to vector<8x16xf32>
    %23 = vector.shape_cast %22 : vector<8x16xf32> to vector<8x16x1xf32>
    %24 = vector.broadcast %23 : vector<8x16x1xf32> to vector<8x16x16xf32>
    %25 = arith.subf %21, %24 : vector<8x16x16xf32>
    %26 = math.exp %25 : vector<8x16x16xf32>
    %cst_10 = arith.constant dense<0.000000e+00> : vector<8x16xf32>
    %27 = vector.multi_reduction <add>, %26, %cst_10 [2] : vector<8x16x16xf32> to vector<8x16xf32>
    %28 = vector.shape_cast %27 : vector<8x16xf32> to vector<8x16x1xf32>
    %29 = vector.broadcast %28 : vector<8x16x1xf32> to vector<8x16x16xf32>
    %30 = arith.divf %26, %29 : vector<8x16x16xf32>
    "tpu.trace_start"() <{level = 10 : i32, message = "bij,bjd->bid"}> : () -> ()
    %cst_11 = arith.constant dense<0.000000e+00> : vector<8x16x8xf32>
    %31 = tpu.matmul %30, %11, %cst_11 {dimension_numbers = #tpu.dot_dimension_numbers<[2], [1], [1], [2], [0, 0, 0, 1, 1, 2], [0], [0]>} : vector<8x16x16xf32>, vector<8x16x8xf32>, vector<8x16x8xf32> -> vector<8x16x8xf32>
    %cst_12 = arith.constant 0.000000e+00 : f32
    "tpu.trace_stop"() : () -> ()
    %32 = vector.broadcast %cst_12 : f32 to vector<8x16x8xf32>
    %33 = arith.cmpf ogt, %31, %32 : vector<8x16x8xf32>
    %cst_13 = arith.constant 0.000000e+00 : f32
    %34 = vector.broadcast %cst_13 : f32 to vector<8x16x8xf32>
    %35 = arith.minimumf %31, %34 : vector<8x16x8xf32>
    %36 = math.exp %35 : vector<8x16x8xf32>
    %cst_14 = arith.constant 1.000000e+00 : f32
    %37 = vector.broadcast %cst_14 : f32 to vector<8x16x8xf32>
    %38 = arith.subf %36, %37 : vector<8x16x8xf32>
    %39 = arith.select %33, %31, %38 : vector<8x16x8xi1>, vector<8x16x8xf32>
    %c0_15 = arith.constant 0 : index
    %c0_16 = arith.constant 0 : index
    %c0_17 = arith.constant 0 : index
    %c0_18 = arith.constant 0 : index
    %40 = vector.load %arg4[%c0_15, %c0_16, %c0_17, %c0_18] : memref<4x4x16x8xf32, #tpu.memory_space<vmem>>, vector<1x4x16x8xf32>
    %41 = vector.shape_cast %40 : vector<1x4x16x8xf32> to vector<4x16x8xf32>
    %42 = vector.shape_cast %39 : vector<8x16x8xf32> to vector<1x8x16x8xf32>
    %43 = vector.shape_cast %41 : vector<4x16x8xf32> to vector<4x1x16x8xf32>
    %44 = vector.broadcast %42 : vector<1x8x16x8xf32> to vector<4x8x16x8xf32>
    %45 = vector.broadcast %43 : vector<4x1x16x8xf32> to vector<4x8x16x8xf32>
    %46 = arith.mulf %44, %45 : vector<4x8x16x8xf32>
    %cst_19 = arith.constant dense<0.000000e+00> : vector<4x8x16xf32>
    %47 = vector.multi_reduction <add>, %46, %cst_19 [3] : vector<4x8x16x8xf32> to vector<4x8x16xf32>
    %cst_20 = arith.constant dense<0.000000e+00> : vector<4x8xf32>
    %48 = vector.multi_reduction <add>, %47, %cst_20 [2] : vector<4x8x16xf32> to vector<4x8xf32>
    %49 = vector.extract_strided_slice %5 {offsets = [0, 0, 8], sizes = [8, 16, 8], strides = [1, 1, 1]} : vector<8x16x36xf32> to vector<8x16x8xf32>
    %50 = vector.extract_strided_slice %5 {offsets = [0, 0, 33], sizes = [8, 16, 1], strides = [1, 1, 1]} : vector<8x16x36xf32> to vector<8x16x1xf32>
    %51 = vector.extract_strided_slice %10 {offsets = [0, 1, 0], sizes = [8, 1, 16], strides = [1, 1, 1]} : vector<8x4x16xf32> to vector<8x1x16xf32>
    %52 = vector.broadcast %50 : vector<8x16x1xf32> to vector<8x16x16xf32>
    %53 = vector.broadcast %51 : vector<8x1x16xf32> to vector<8x16x16xf32>
    %54 = arith.addf %52, %53 : vector<8x16x16xf32>
    %cst_21 = arith.constant 0.000000e+00 : f32
    %55 = vector.broadcast %cst_21 : f32 to vector<8x16x16xf32>
    %56 = arith.cmpf ogt, %54, %55 : vector<8x16x16xf32>
    %cst_22 = arith.constant 2.000000e-01 : f32
    %57 = vector.broadcast %cst_22 : f32 to vector<8x16x16xf32>
    %58 = arith.mulf %57, %54 : vector<8x16x16xf32>
    %59 = arith.select %56, %54, %58 : vector<8x16x16xi1>, vector<8x16x16xf32>
    %cst_23 = arith.constant dense<0xFF800000> : vector<8x16xf32>
    %60 = vector.multi_reduction <maximumf>, %59, %cst_23 [2] : vector<8x16x16xf32> to vector<8x16xf32>
    %61 = vector.shape_cast %60 : vector<8x16xf32> to vector<8x16x1xf32>
    %62 = vector.broadcast %61 : vector<8x16x1xf32> to vector<8x16x16xf32>
    %63 = arith.subf %59, %62 : vector<8x16x16xf32>
    %64 = math.exp %63 : vector<8x16x16xf32>
    %cst_24 = arith.constant dense<0.000000e+00> : vector<8x16xf32>
    %65 = vector.multi_reduction <add>, %64, %cst_24 [2] : vector<8x16x16xf32> to vector<8x16xf32>
    %66 = vector.shape_cast %65 : vector<8x16xf32> to vector<8x16x1xf32>
    %67 = vector.broadcast %66 : vector<8x16x1xf32> to vector<8x16x16xf32>
    %68 = arith.divf %64, %67 : vector<8x16x16xf32>
    "tpu.trace_start"() <{level = 10 : i32, message = "bij,bjd->bid"}> : () -> ()
    %cst_25 = arith.constant dense<0.000000e+00> : vector<8x16x8xf32>
    %69 = tpu.matmul %68, %49, %cst_25 {dimension_numbers = #tpu.dot_dimension_numbers<[2], [1], [1], [2], [0, 0, 0, 1, 1, 2], [0], [0]>} : vector<8x16x16xf32>, vector<8x16x8xf32>, vector<8x16x8xf32> -> vector<8x16x8xf32>
    %cst_26 = arith.constant 0.000000e+00 : f32
    "tpu.trace_stop"() : () -> ()
    %70 = vector.broadcast %cst_26 : f32 to vector<8x16x8xf32>
    %71 = arith.cmpf ogt, %69, %70 : vector<8x16x8xf32>
    %cst_27 = arith.constant 0.000000e+00 : f32
    %72 = vector.broadcast %cst_27 : f32 to vector<8x16x8xf32>
    %73 = arith.minimumf %69, %72 : vector<8x16x8xf32>
    %74 = math.exp %73 : vector<8x16x8xf32>
    %cst_28 = arith.constant 1.000000e+00 : f32
    %75 = vector.broadcast %cst_28 : f32 to vector<8x16x8xf32>
    %76 = arith.subf %74, %75 : vector<8x16x8xf32>
    %77 = arith.select %71, %69, %76 : vector<8x16x8xi1>, vector<8x16x8xf32>
    %c1 = arith.constant 1 : index
    %c0_29 = arith.constant 0 : index
    %c0_30 = arith.constant 0 : index
    %c0_31 = arith.constant 0 : index
    %78 = vector.load %arg4[%c1, %c0_29, %c0_30, %c0_31] : memref<4x4x16x8xf32, #tpu.memory_space<vmem>>, vector<1x4x16x8xf32>
    %79 = vector.shape_cast %78 : vector<1x4x16x8xf32> to vector<4x16x8xf32>
    %80 = vector.shape_cast %77 : vector<8x16x8xf32> to vector<1x8x16x8xf32>
    %81 = vector.shape_cast %79 : vector<4x16x8xf32> to vector<4x1x16x8xf32>
    %82 = vector.broadcast %80 : vector<1x8x16x8xf32> to vector<4x8x16x8xf32>
    %83 = vector.broadcast %81 : vector<4x1x16x8xf32> to vector<4x8x16x8xf32>
    %84 = arith.mulf %82, %83 : vector<4x8x16x8xf32>
    %cst_32 = arith.constant dense<0.000000e+00> : vector<4x8x16xf32>
    %85 = vector.multi_reduction <add>, %84, %cst_32 [3] : vector<4x8x16x8xf32> to vector<4x8x16xf32>
    %cst_33 = arith.constant dense<0.000000e+00> : vector<4x8xf32>
    %86 = vector.multi_reduction <add>, %85, %cst_33 [2] : vector<4x8x16xf32> to vector<4x8xf32>
    %87 = arith.addf %48, %86 : vector<4x8xf32>
    %88 = vector.extract_strided_slice %5 {offsets = [0, 0, 16], sizes = [8, 16, 8], strides = [1, 1, 1]} : vector<8x16x36xf32> to vector<8x16x8xf32>
    %89 = vector.extract_strided_slice %5 {offsets = [0, 0, 34], sizes = [8, 16, 1], strides = [1, 1, 1]} : vector<8x16x36xf32> to vector<8x16x1xf32>
    %90 = vector.extract_strided_slice %10 {offsets = [0, 2, 0], sizes = [8, 1, 16], strides = [1, 1, 1]} : vector<8x4x16xf32> to vector<8x1x16xf32>
    %91 = vector.broadcast %89 : vector<8x16x1xf32> to vector<8x16x16xf32>
    %92 = vector.broadcast %90 : vector<8x1x16xf32> to vector<8x16x16xf32>
    %93 = arith.addf %91, %92 : vector<8x16x16xf32>
    %cst_34 = arith.constant 0.000000e+00 : f32
    %94 = vector.broadcast %cst_34 : f32 to vector<8x16x16xf32>
    %95 = arith.cmpf ogt, %93, %94 : vector<8x16x16xf32>
    %cst_35 = arith.constant 2.000000e-01 : f32
    %96 = vector.broadcast %cst_35 : f32 to vector<8x16x16xf32>
    %97 = arith.mulf %96, %93 : vector<8x16x16xf32>
    %98 = arith.select %95, %93, %97 : vector<8x16x16xi1>, vector<8x16x16xf32>
    %cst_36 = arith.constant dense<0xFF800000> : vector<8x16xf32>
    %99 = vector.multi_reduction <maximumf>, %98, %cst_36 [2] : vector<8x16x16xf32> to vector<8x16xf32>
    %100 = vector.shape_cast %99 : vector<8x16xf32> to vector<8x16x1xf32>
    %101 = vector.broadcast %100 : vector<8x16x1xf32> to vector<8x16x16xf32>
    %102 = arith.subf %98, %101 : vector<8x16x16xf32>
    %103 = math.exp %102 : vector<8x16x16xf32>
    %cst_37 = arith.constant dense<0.000000e+00> : vector<8x16xf32>
    %104 = vector.multi_reduction <add>, %103, %cst_37 [2] : vector<8x16x16xf32> to vector<8x16xf32>
    %105 = vector.shape_cast %104 : vector<8x16xf32> to vector<8x16x1xf32>
    %106 = vector.broadcast %105 : vector<8x16x1xf32> to vector<8x16x16xf32>
    %107 = arith.divf %103, %106 : vector<8x16x16xf32>
    "tpu.trace_start"() <{level = 10 : i32, message = "bij,bjd->bid"}> : () -> ()
    %cst_38 = arith.constant dense<0.000000e+00> : vector<8x16x8xf32>
    %108 = tpu.matmul %107, %88, %cst_38 {dimension_numbers = #tpu.dot_dimension_numbers<[2], [1], [1], [2], [0, 0, 0, 1, 1, 2], [0], [0]>} : vector<8x16x16xf32>, vector<8x16x8xf32>, vector<8x16x8xf32> -> vector<8x16x8xf32>
    %cst_39 = arith.constant 0.000000e+00 : f32
    "tpu.trace_stop"() : () -> ()
    %109 = vector.broadcast %cst_39 : f32 to vector<8x16x8xf32>
    %110 = arith.cmpf ogt, %108, %109 : vector<8x16x8xf32>
    %cst_40 = arith.constant 0.000000e+00 : f32
    %111 = vector.broadcast %cst_40 : f32 to vector<8x16x8xf32>
    %112 = arith.minimumf %108, %111 : vector<8x16x8xf32>
    %113 = math.exp %112 : vector<8x16x8xf32>
    %cst_41 = arith.constant 1.000000e+00 : f32
    %114 = vector.broadcast %cst_41 : f32 to vector<8x16x8xf32>
    %115 = arith.subf %113, %114 : vector<8x16x8xf32>
    %116 = arith.select %110, %108, %115 : vector<8x16x8xi1>, vector<8x16x8xf32>
    %c2 = arith.constant 2 : index
    %c0_42 = arith.constant 0 : index
    %c0_43 = arith.constant 0 : index
    %c0_44 = arith.constant 0 : index
    %117 = vector.load %arg4[%c2, %c0_42, %c0_43, %c0_44] : memref<4x4x16x8xf32, #tpu.memory_space<vmem>>, vector<1x4x16x8xf32>
    %118 = vector.shape_cast %117 : vector<1x4x16x8xf32> to vector<4x16x8xf32>
    %119 = vector.shape_cast %116 : vector<8x16x8xf32> to vector<1x8x16x8xf32>
    %120 = vector.shape_cast %118 : vector<4x16x8xf32> to vector<4x1x16x8xf32>
    %121 = vector.broadcast %119 : vector<1x8x16x8xf32> to vector<4x8x16x8xf32>
    %122 = vector.broadcast %120 : vector<4x1x16x8xf32> to vector<4x8x16x8xf32>
    %123 = arith.mulf %121, %122 : vector<4x8x16x8xf32>
    %cst_45 = arith.constant dense<0.000000e+00> : vector<4x8x16xf32>
    %124 = vector.multi_reduction <add>, %123, %cst_45 [3] : vector<4x8x16x8xf32> to vector<4x8x16xf32>
    %cst_46 = arith.constant dense<0.000000e+00> : vector<4x8xf32>
    %125 = vector.multi_reduction <add>, %124, %cst_46 [2] : vector<4x8x16xf32> to vector<4x8xf32>
    %126 = arith.addf %87, %125 : vector<4x8xf32>
    %127 = vector.extract_strided_slice %5 {offsets = [0, 0, 24], sizes = [8, 16, 8], strides = [1, 1, 1]} : vector<8x16x36xf32> to vector<8x16x8xf32>
    %128 = vector.extract_strided_slice %5 {offsets = [0, 0, 35], sizes = [8, 16, 1], strides = [1, 1, 1]} : vector<8x16x36xf32> to vector<8x16x1xf32>
    %129 = vector.extract_strided_slice %10 {offsets = [0, 3, 0], sizes = [8, 1, 16], strides = [1, 1, 1]} : vector<8x4x16xf32> to vector<8x1x16xf32>
    %130 = vector.broadcast %128 : vector<8x16x1xf32> to vector<8x16x16xf32>
    %131 = vector.broadcast %129 : vector<8x1x16xf32> to vector<8x16x16xf32>
    %132 = arith.addf %130, %131 : vector<8x16x16xf32>
    %cst_47 = arith.constant 0.000000e+00 : f32
    %133 = vector.broadcast %cst_47 : f32 to vector<8x16x16xf32>
    %134 = arith.cmpf ogt, %132, %133 : vector<8x16x16xf32>
    %cst_48 = arith.constant 2.000000e-01 : f32
    %135 = vector.broadcast %cst_48 : f32 to vector<8x16x16xf32>
    %136 = arith.mulf %135, %132 : vector<8x16x16xf32>
    %137 = arith.select %134, %132, %136 : vector<8x16x16xi1>, vector<8x16x16xf32>
    %cst_49 = arith.constant dense<0xFF800000> : vector<8x16xf32>
    %138 = vector.multi_reduction <maximumf>, %137, %cst_49 [2] : vector<8x16x16xf32> to vector<8x16xf32>
    %139 = vector.shape_cast %138 : vector<8x16xf32> to vector<8x16x1xf32>
    %140 = vector.broadcast %139 : vector<8x16x1xf32> to vector<8x16x16xf32>
    %141 = arith.subf %137, %140 : vector<8x16x16xf32>
    %142 = math.exp %141 : vector<8x16x16xf32>
    %cst_50 = arith.constant dense<0.000000e+00> : vector<8x16xf32>
    %143 = vector.multi_reduction <add>, %142, %cst_50 [2] : vector<8x16x16xf32> to vector<8x16xf32>
    %144 = vector.shape_cast %143 : vector<8x16xf32> to vector<8x16x1xf32>
    %145 = vector.broadcast %144 : vector<8x16x1xf32> to vector<8x16x16xf32>
    %146 = arith.divf %142, %145 : vector<8x16x16xf32>
    "tpu.trace_start"() <{level = 10 : i32, message = "bij,bjd->bid"}> : () -> ()
    %cst_51 = arith.constant dense<0.000000e+00> : vector<8x16x8xf32>
    %147 = tpu.matmul %146, %127, %cst_51 {dimension_numbers = #tpu.dot_dimension_numbers<[2], [1], [1], [2], [0, 0, 0, 1, 1, 2], [0], [0]>} : vector<8x16x16xf32>, vector<8x16x8xf32>, vector<8x16x8xf32> -> vector<8x16x8xf32>
    %cst_52 = arith.constant 0.000000e+00 : f32
    "tpu.trace_stop"() : () -> ()
    %148 = vector.broadcast %cst_52 : f32 to vector<8x16x8xf32>
    %149 = arith.cmpf ogt, %147, %148 : vector<8x16x8xf32>
    %cst_53 = arith.constant 0.000000e+00 : f32
    %150 = vector.broadcast %cst_53 : f32 to vector<8x16x8xf32>
    %151 = arith.minimumf %147, %150 : vector<8x16x8xf32>
    %152 = math.exp %151 : vector<8x16x8xf32>
    %cst_54 = arith.constant 1.000000e+00 : f32
    %153 = vector.broadcast %cst_54 : f32 to vector<8x16x8xf32>
    %154 = arith.subf %152, %153 : vector<8x16x8xf32>
    %155 = arith.select %149, %147, %154 : vector<8x16x8xi1>, vector<8x16x8xf32>
    %c3 = arith.constant 3 : index
    %c0_55 = arith.constant 0 : index
    %c0_56 = arith.constant 0 : index
    %c0_57 = arith.constant 0 : index
    %156 = vector.load %arg4[%c3, %c0_55, %c0_56, %c0_57] : memref<4x4x16x8xf32, #tpu.memory_space<vmem>>, vector<1x4x16x8xf32>
    %157 = vector.shape_cast %156 : vector<1x4x16x8xf32> to vector<4x16x8xf32>
    %158 = vector.shape_cast %155 : vector<8x16x8xf32> to vector<1x8x16x8xf32>
    %159 = vector.shape_cast %157 : vector<4x16x8xf32> to vector<4x1x16x8xf32>
    %160 = vector.broadcast %158 : vector<1x8x16x8xf32> to vector<4x8x16x8xf32>
    %161 = vector.broadcast %159 : vector<4x1x16x8xf32> to vector<4x8x16x8xf32>
    %162 = arith.mulf %160, %161 : vector<4x8x16x8xf32>
    %cst_58 = arith.constant dense<0.000000e+00> : vector<4x8x16xf32>
    %163 = vector.multi_reduction <add>, %162, %cst_58 [3] : vector<4x8x16x8xf32> to vector<4x8x16xf32>
    %cst_59 = arith.constant dense<0.000000e+00> : vector<4x8xf32>
    %164 = vector.multi_reduction <add>, %163, %cst_59 [2] : vector<4x8x16xf32> to vector<4x8xf32>
    %165 = arith.addf %126, %164 : vector<4x8xf32>
    %c0_60 = arith.constant 0 : index
    %c0_61 = arith.constant 0 : index
    %166 = vector.load %arg5[%c0_60, %c0_61] : memref<4x1xf32, #tpu.memory_space<vmem>>, vector<4x1xf32>
    %167 = vector.broadcast %166 : vector<4x1xf32> to vector<4x8xf32>
    %168 = arith.addf %165, %167 : vector<4x8xf32>
    %cst_62 = arith.constant 0.000000e+00 : f32
    %169 = vector.broadcast %cst_62 : f32 to vector<4x8xf32>
    %170 = arith.maximumf %168, %169 : vector<4x8xf32>
    %c0_63 = arith.constant 0 : index
    %c0_64 = arith.constant 0 : index
    %171 = vector.load %arg6[%c0_63, %c0_64] : memref<32x4xf32, #tpu.memory_space<vmem>>, vector<32x4xf32>
    %cst_65 = arith.constant dense<0.000000e+00> : vector<32x8xf32>
    %172 = tpu.matmul %171, %170, %cst_65 {dimension_numbers = #tpu.dot_dimension_numbers<[1], [0], [0], [1], [0, 0, 1, 1], [], []>} : vector<32x4xf32>, vector<4x8xf32>, vector<32x8xf32> -> vector<32x8xf32>
    %c0_66 = arith.constant 0 : index
    %c0_67 = arith.constant 0 : index
    %c0_68 = arith.constant 0 : index
    %173 = vector.load %arg7[%c0_66, %c0_67, %c0_68] : memref<1x32x8xf32, #tpu.memory_space<vmem>>, vector<1x32x8xf32>
    %174 = vector.shape_cast %173 : vector<1x32x8xf32> to vector<32x8xf32>
    %175 = arith.addf %172, %174 : vector<32x8xf32>
    %cst_69 = arith.constant 0.000000e+00 : f32
    %176 = vector.broadcast %cst_69 : f32 to vector<32x8xf32>
    %177 = arith.maximumf %175, %176 : vector<32x8xf32>
    %c0_70 = arith.constant 0 : index
    %c0_71 = arith.constant 0 : index
    %178 = vector.load %arg8[%c0_70, %c0_71] : memref<32x1xf32, #tpu.memory_space<vmem>>, vector<32x1xf32>
    %179 = vector.broadcast %178 : vector<32x1xf32> to vector<32x8xf32>
    %180 = arith.mulf %177, %179 : vector<32x8xf32>
    %cst_72 = arith.constant dense<0.000000e+00> : vector<8xf32>
    %181 = vector.multi_reduction <add>, %180, %cst_72 [0] : vector<32x8xf32> to vector<8xf32>
    %182 = vector.shape_cast %181 : vector<8xf32> to vector<1x8xf32>
    %c0_73 = arith.constant 0 : index
    %c0_74 = arith.constant 0 : index
    %183 = vector.load %arg9[%c0_73, %c0_74] : memref<1x1xf32, #tpu.memory_space<vmem>>, vector<1x1xf32>
    %184 = vector.broadcast %183 : vector<1x1xf32> to vector<1x8xf32>
    %185 = arith.addf %182, %184 : vector<1x8xf32>
    %c0_75 = arith.constant 0 : index
    %c0_76 = arith.constant 0 : index
    %c0_77 = arith.constant 0 : index
    %186 = vector.load %arg10[%c0_75, %c0_76, %c0_77] : memref<1x1x8xf32, #tpu.memory_space<vmem>>, vector<1x1x8xf32>
    %187 = vector.shape_cast %186 : vector<1x1x8xf32> to vector<1x8xf32>
    %188 = vector.shape_cast %185 : vector<1x8xf32> to vector<1x1x8xf32>
    tpu.vector_store %arg10[%c0_75, %c0_76, %c0_77], %188 {strides = array<i32>} : memref<1x1x8xf32, #tpu.memory_space<vmem>>, vector<1x1x8xf32>,
    return
  }
  func.func @transform_0(%arg0: i32) -> (i32, i32, i32) {
    %c0_i32 = arith.constant 0 : i32
    %c0_i32_0 = arith.constant 0 : i32
    %c0_i32_1 = arith.constant 0 : i32
    return %arg0, %c0_i32, %c0_i32_0 : i32, i32, i32
  }
  func.func @transform_1(%arg0: i32) -> (i32, i32) {
    %c0_i32 = arith.constant 0 : i32
    %c0_i32_0 = arith.constant 0 : i32
    %c0_i32_1 = arith.constant 0 : i32
    return %c0_i32, %c0_i32_0 : i32, i32
  }
  func.func @transform_2(%arg0: i32) -> (i32, i32) {
    %c0_i32 = arith.constant 0 : i32
    %c0_i32_0 = arith.constant 0 : i32
    %c0_i32_1 = arith.constant 0 : i32
    return %c0_i32, %c0_i32_0 : i32, i32
  }
  func.func @transform_3(%arg0: i32) -> (i32, i32, i32, i32) {
    %c0_i32 = arith.constant 0 : i32
    %c0_i32_0 = arith.constant 0 : i32
    %c0_i32_1 = arith.constant 0 : i32
    %c0_i32_2 = arith.constant 0 : i32
    %c0_i32_3 = arith.constant 0 : i32
    return %c0_i32, %c0_i32_0, %c0_i32_1, %c0_i32_2 : i32, i32, i32, i32
  }
  func.func @transform_4(%arg0: i32) -> (i32, i32) {
    %c0_i32 = arith.constant 0 : i32
    %c0_i32_0 = arith.constant 0 : i32
    %c0_i32_1 = arith.constant 0 : i32
    return %c0_i32, %c0_i32_0 : i32, i32
  }
  func.func @transform_5(%arg0: i32) -> (i32, i32) {
    %c0_i32 = arith.constant 0 : i32
    %c0_i32_0 = arith.constant 0 : i32
    %c0_i32_1 = arith.constant 0 : i32
    return %c0_i32, %c0_i32_0 : i32, i32
  }
  func.func @transform_6(%arg0: i32) -> (i32, i32, i32) {
    %c0_i32 = arith.constant 0 : i32
    %c0_i32_0 = arith.constant 0 : i32
    %c0_i32_1 = arith.constant 0 : i32
    return %arg0, %c0_i32, %c0_i32_0 : i32, i32, i32
  }
  func.func @transform_7(%arg0: i32) -> (i32, i32) {
    %c0_i32 = arith.constant 0 : i32
    %c0_i32_0 = arith.constant 0 : i32
    %c0_i32_1 = arith.constant 0 : i32
    return %c0_i32, %c0_i32_0 : i32, i32
  }
  func.func @transform_8(%arg0: i32) -> (i32, i32) {
    %c0_i32 = arith.constant 0 : i32
    %c0_i32_0 = arith.constant 0 : i32
    %c0_i32_1 = arith.constant 0 : i32
    return %c0_i32, %c0_i32_0 : i32, i32
  }
  func.func @transform_9(%arg0: i32) -> (i32, i32, i32) {
    %c0_i32 = arith.constant 0 : i32
    %c0_i32_0 = arith.constant 0 : i32
    %c0_i32_1 = arith.constant 0 : i32
    return %arg0, %c0_i32, %c0_i32_0 : i32, i32, i32
  }
}

</mosaic_0001>

<bundles_post_ra>
// kernel: gat1nn2_forward.1
= control target key start
LH: loop header
LB: loop body
LE: loop exit
PB: predicated region body
PF: predicated region fallthrough
CT: control target
= control target key end

     0   :  { %s10572_s11 = smov 0   ;;  %s14807_s0 = inlined_call_operand.vmem [shape: f32[16,16,8], index: 0, kind: input, shape index: {}]   ;;  %s14808_s1 = inlined_call_operand.vmem [shape: f32[8,36], index: 1, kind: input, shape index: {}]   ;;  %s14809_s2 = inlined_call_operand.vmem [shape: f32[4,8], index: 2, kind: input, shape index: {}]   ;;  %s14810_s3 = inlined_call_operand.vmem [shape: f32[4,4,16,8], index: 3, kind: input, shape index: {}]   ;;  %s14811_s4 = inlined_call_operand.vmem [shape: f32[4,1], index: 4, kind: input, shape index: {}]   ;;  %s14812_s5 = inlined_call_operand.vmem [shape: f32[32,4], index: 5, kind: input, shape index: {}]   ;;  %s14813_s6 = inlined_call_operand.vmem [shape: f32[2,32,8], index: 6, kind: input, shape index: {}]   ;;  %s14814_s7 = inlined_call_operand.vmem [shape: f32[32,1], index: 7, kind: input, shape index: {}]   ;;  %s14815_s8 = inlined_call_operand.<no memory space> [shape: f32[1,1], index: 8, kind: input, shape index: {}]   ;;  %s14816_s9 = inlined_call_operand.vmem [shape: f32[2,1,8], index: 9, kind: output, shape index: {}]  }
   0x1   :  { %v14_v0 = vstv %s14815_s8 }
   0x2   :  { %15 = vst [vmem:[#allocation2] sm:$0x1] %v14_v0 }
   0x3 LB: > { %s10578_s12 = sadd.s32 4294967295, %s10506_s11   ;;  %p9031_p0 = scmp.ge.s32.totalorder %s10506_s11, 1  ;;  %s10506_s11 = sphi %s10572_s11, %s21_s11  }
   0x4   : > { %p301_p1 = scmp.lt.s32.totalorder %s10506_s11, 3 }
   0x6   : > { %p302_p2 = pnand %p9031_p0, %p301_p1 }
   0x8   : > { %305 = sbr.rel (%p302_p2) target bundleno = 2479 (0x9af), region = 56 }
   0xf   : > { %v372_v1 = vld [vmem:[%s14808_s1] sm:$0xff]  ;;  %s9032_s8 = sshll.u32 %s10578_s12, 3  ;;  %v10508_v2 = vmov 32   ;;  %vm373_vm0 = vcmask 64512   ;;  %v10509_v16 = vmov 0.0|0.0   ;;  %vm10510_vm1 = vmmov 0  }
  0x10   : > { %9419 = vmatprep.subr.mxu1 %v372_v1  ;;  %9429 = vmatprep.subr.mxu0 %v372_v1  ;;  %p342_p3 = scmp.lt.s32.totalorder %s9032_s8, 15  ;;  %v10511_v20 = vmov 0.0   ;;  %vm10624_vm2 = vmpackc.low %vm373_vm0, %vm373_vm0  ;;  %v1022_v25 = vld [vmem:[%s14809_s2] sm:$0xf]  ;;  %v1666_v31 = vlaneseq  ;;  %v10512_v47 = vmov 33   ;;  %v10513_v58 = vmov 34  }
  0x11   : > { %9420 = vmatpush3.msra.mxu1 %v372_v1  ;;  %9430 = vmatpush3.msra.mxu0 %v372_v1  ;;  %v10514_v63 = vmov 35   ;;  %vm1762_vm4 = vcmask 130048   ;;  %s10515_s21 = smov 120   ;;  %s10516_s22 = smov 112  }
  0x12   : > { %s15411_s8 = smov (!%p342_p3, %s9032_s8), 15  ;;  %9424 = vmatprep.subr.mxu1 %v372_v1  ;;  %9439 = vmatprep.subr.mxu0 %v372_v1  ;;  %v10666_v32 = vshrl.u32 %v1666_v31, 7  ;;  %v3012_v33 = vand.u32 127, %v1666_v31  ;;  %s10517_s19 = smov 104  }
  0x13   : > { %9927 = vset.pattern.permute.xlu1 %v10508_v2  ;;  %9926 = vset.pattern.permute.xlu0 %v10508_v2  ;;  %s9236_s15 = sshll.u32 %s15411_s8, 4  ;;  %p348_p4 = scmp.lt.s32.totalorder %s10578_s12, 1 }
  0x14   : > { %s10591_s18 = scalar_lea.vmem %s14807_s0, %s9236_s15  ;;  %v10669_v36 = vsub.s32 %v3012_v33, %v10666_v32  ;;  %v3017_v37 = vadd.s32 4294967288, %v3012_v33  ;;  %v10846_v21 = vsub.s32 0, %v10666_v32 }
  0x15   : > { %v356_v3 = vld [vmem:[%s10591_s18] sm:$0xff]  ;;  %v357_v4 = vld [vmem:[%s10591_s18 + $0x8] sm:$0xff]  ;;  %v358_v7 = vld [vmem:[%s10591_s18 + $0x10] sm:$0xff]  ;;  %s15413_s12 = smov (!%p348_p4, %s10578_s12), 1 }
  0x16   : > { %v360_v5 = vld [vmem:[%s10591_s18 + $0x20] sm:$0xff]  ;;  %9421 = vmatprep.mubr.msk.f32.mxu1 %vm373_vm0, %v356_v3  ;;  %v361_v6 = vld [vmem:[%s10591_s18 + $0x28] sm:$0xff]  ;;  %v359_v9 = vld [vmem:[%s10591_s18 + $0x18] sm:$0xff]  ;;  %v9748_v18 = vpack.c.bf16 %v357_v4, %v356_v3  ;;  %14938 = vst [vmem:[#allocation3_spill] sm:$0xff] %v10669_v36  ;;  %v10677_v42 = vsub.s32 %v3017_v37, %v10666_v32  ;;  %s9237_s26 = sshll.u32 %s15413_s12, 5  ;;  %s355_s13 = scalar_lea.vmem %s14816_s9, %s15413_s12 }
  0x17   : > { %9431 = vmatprep.mubr.msk.f32.mxu0 %vm373_vm0, %v360_v5  ;;  %9422 = vmatmul.mubr.msk.f32.vlgmr.msra.gmra.mrb[0].mxu1 %vm373_vm0, %v357_v4  ;;  %v364_v8 = vld [vmem:[%s10591_s18 + $0x40] sm:$0xff]  ;;  %v365_v10 = vld [vmem:[%s10591_s18 + $0x48] sm:$0xff]  ;;  %v362_v11 = vld [vmem:[%s10591_s18 + $0x30] sm:$0xff]  ;;  %v9752_v23 = vpack.c.bf16 %v359_v9, %v358_v7  ;;  %v9756_v24 = vpack.c.bf16 %v361_v6, %v360_v5  ;;  %14953 = vst [vmem:[#allocation18_spill] sm:$0xff] %v10846_v21  ;;  %s352_s29 = scalar_lea.vmem %s14813_s6, %s9237_s26 }
  0x18   : > { %9432 = vmatmul.mubr.msk.f32.vlgmr.msra.gmra.mrb[0].mxu0 %vm373_vm0, %v361_v6  ;;  %9425 = vmatpush3.msra.mxu1 %v372_v1  ;;  %v368_v12 = vld [vmem:[%s10591_s18 + $0x60] sm:$0xff]  ;;  %v363_v13 = vld [vmem:[%s10591_s18 + $0x38] sm:$0xff]  ;;  %v369_v14 = vld [vmem:[%s10591_s18 + $0x68] sm:$0xff]  ;;  %v9764_v27 = vpack.c.bf16 %v365_v10, %v364_v8  ;;  %14940 = vst [vmem:[#allocation5_spill] sm:$0xff] %v10677_v42 }
  0x19   : > { %9426 = vmatprep.mubr.msk.f32.mxu1 %vm373_vm0, %v358_v7  ;;  %9440 = vmatpush3.msra.mxu0 %v372_v1  ;;  %v366_v15 = vld [vmem:[%s10591_s18 + $0x50] sm:$0xff]  ;;  %v367_v17 = vld [vmem:[%s10591_s18 + $0x58] sm:$0xff]  ;;  %v9760_v26 = vpack.c.bf16 %v363_v13, %v362_v11  ;;  %v9772_v29 = vpack.c.bf16 %v369_v14, %v368_v12 }
  0x1a   : > { %9441 = vmatprep.mubr.msk.f32.mxu0 %vm373_vm0, %v364_v8  ;;  %9434 = vmatprep.subr.mxu1 %v372_v1  ;;  %v370_v19 = vld [vmem:[%s10591_s18 + $0x70] sm:$0xff]  ;;  %v371_v22 = vld [vmem:[%s10591_s18 + $0x78] sm:$0xff]  ;;  %v9768_v28 = vpack.c.bf16 %v367_v17, %v366_v15 }
  0x1b   : > { %9449 = vmatprep.subr.mxu0 %v372_v1  ;;  %9427 = vmatmul.mubr.msk.f32.vlgmr.msra.gmra.mrb[2].mxu1 %vm373_vm0, %v359_v9  ;;  %v9776_v30 = vpack.c.bf16 %v371_v22, %v370_v19 }
  0x1c   : > { %9442 = vmatmul.mubr.msk.f32.vlgmr.msra.gmra.mrb[2].mxu0 %vm373_vm0, %v365_v10  ;;  %9435 = vmatpush3.msra.mxu1 %v372_v1 }
  0x1d   : > { %9436 = vmatprep.mubr.msk.f32.mxu1 %vm373_vm0, %v362_v11  ;;  %9450 = vmatpush3.msra.mxu0 %v372_v1 }
  0x1e   : > { %9451 = vmatprep.mubr.msk.f32.mxu0 %vm373_vm0, %v368_v12  ;;  %9444 = vmatprep.subr.mxu1 %v372_v1 }
  0x1f   : > { %9747 = vmatprep.subr.bf16.mxu0 %v10509_v16  ;;  %9437 = vmatmul.mubr.msk.f32.vlgmr.msra.gmra.mrb[4].mxu1 %vm373_vm0, %v363_v13 }
  0x20   : > { %9452 = vmatmul.mubr.msk.f32.vlgmr.msra.gmra.mrb[4].mxu0 %vm373_vm0, %v369_v14  ;;  %9445 = vmatpush3.msra.mxu1 %v372_v1 }
  0x21   : > { %9446 = vmatprep.mubr.msk.f32.mxu1 %vm373_vm0, %v366_v15  ;;  %9454 = vmatprep.subr.mxu1 %v372_v1 }
  0x22   : > { %9463 = vmatprep.mubr.msk.f32.mxu0 %vm10510_vm1, %v10511_v20 }
  0x23   : > { %9447 = vmatmul.mubr.msk.f32.vlgmr.msra.gmra.mrb[6].mxu1 %vm373_vm0, %v367_v17 }
  0x24   : > { %9455 = vmatpush3.msra.mxu1 %v372_v1  ;;  %9456 = vmatprep.mubr.msk.f32.mxu1 %vm373_vm0, %v370_v19 }
  0x25   : > { %9750 = vmatpush3.bf16.xpose.msk.msra.mxu0 %vm10624_vm2, %v9748_v18  ;;  %9751 = vmatprep.subr.bf16.mxu1 %v10509_v16 }
  0x26   : > { %9755 = vmatprep.subr.bf16.mxu0 %v10509_v16 }
  0x27   : > { %9457 = vmatmul.mubr.msk.f32.vlgmr.msra.gmra.mrb[8].mxu1 %vm373_vm0, %v371_v22 }
  0x28   : > { %9470 = vmatprep.mubr.msk.f32.mxu1 %vm10510_vm1, %v10511_v20 }
  0x2b   : > { %9754 = vmatpush3.bf16.xpose.msk.msra.mxu1 %vm10624_vm2, %v9752_v23 }
  0x2c   : > { %9464 = vmatmul.mubr.msk.f32.vlgmr.msra.gmra.mrb[6].mxu0 %vm373_vm0, %v1022_v25  ;;  %9759 = vmatprep.subr.bf16.mxu1 %v10509_v16 }
  0x2d   : > { %9758 = vmatpush3.bf16.xpose.msk.msra.mxu0 %vm10624_vm2, %v9756_v24  ;;  %9477 = vmatprep.mubr.msk.f32.mxu0 %vm10510_vm1, %v10511_v20 }
  0x2e   : > { %9763 = vmatprep.subr.bf16.mxu0 %v10509_v16 }
  0x32   : > { %9471 = vmatmul.mubr.msk.f32.vlgmr.msra.gmra.mrb[10].mxu1 %vm373_vm0, %v1022_v25 }
  0x33   : > { %9762 = vmatpush3.bf16.xpose.msk.msra.mxu1 %vm10624_vm2, %v9760_v26  ;;  %9484 = vmatprep.mubr.msk.f32.mxu1 %vm10510_vm1, %v10511_v20 }
  0x34   : > { %9478 = vmatmul.mubr.msk.f32.vlgmr.msra.gmra.mrb[8].mxu0 %vm373_vm0, %v1022_v25  ;;  %9767 = vmatprep.subr.bf16.mxu1 %v10509_v16 }
  0x35   : > { %9766 = vmatpush3.bf16.xpose.msk.msra.mxu0 %vm10624_vm2, %v9764_v27  ;;  %9491 = vmatprep.mubr.msk.f32.mxu0 %vm10510_vm1, %v10511_v20 }
  0x36   : > { %9771 = vmatprep.subr.bf16.mxu0 %v10509_v16 }
  0x3a   : > { %9485 = vmatmul.mubr.msk.f32.vlgmr.msra.gmra.mrb[12].mxu1 %vm373_vm0, %v1022_v25 }
  0x3b   : > { %9770 = vmatpush3.bf16.xpose.msk.msra.mxu1 %vm10624_vm2, %v9768_v28  ;;  %9498 = vmatprep.mubr.msk.f32.mxu1 %vm10510_vm1, %v10511_v20 }
  0x3c   : > { %9492 = vmatmul.mubr.msk.f32.vlgmr.msra.gmra.mrb[10].mxu0 %vm373_vm0, %v1022_v25  ;;  %9775 = vmatprep.subr.bf16.mxu1 %v10509_v16 }
  0x3d   : > { %9774 = vmatpush3.bf16.xpose.msk.msra.mxu0 %vm10624_vm2, %v9772_v29  ;;  %9505 = vmatprep.mubr.msk.f32.mxu0 %vm10510_vm1, %v10511_v20 }
  0x42   : > { %9499 = vmatmul.mubr.msk.f32.vlgmr.msra.gmra.mrb[14].mxu1 %vm373_vm0, %v1022_v25 }
  0x43   : > { %9778 = vmatpush3.bf16.xpose.msk.msra.mxu1 %vm10624_vm2, %v9776_v30  ;;  %9512 = vmatprep.mubr.msk.f32.mxu1 %vm10510_vm1, %v10511_v20  ;;  %v10869_v30 = vsub.s32 2, %v10666_v32 }
  0x44   : > { %9506 = vmatmul.mubr.msk.f32.vlgmr.msra.gmra.mrb[12].mxu0 %vm373_vm0, %v1022_v25 }
  0x45   : > { %14955 = vst [vmem:[#allocation20_spill] sm:$0xff] %v10869_v30 }
  0x4a   : > { %9513 = vmatmul.mubr.msk.f32.vlgmr.msra.gmra.mrb[16].mxu1 %vm373_vm0, %v1022_v25  ;;  %v10857_v25 = vsub.s32 1, %v10666_v32 }
  0x4c   : > { %14954 = vst [vmem:[#allocation19_spill] sm:$0xff] %v10857_v25 }
  0xea   : > { %v9423_v34 = vpop.f32.mrb[0].mxu1 }
  0xeb   : > { %v9433_v35 = vpop.f32.mrb[0].mxu0  ;;  %1593 = vperm.xlu0 %9926, %v9423_v34   ;;  %v446_v39 = vpop.f32.mrb[1].mxu1 }
  0xec   : > { %1613 = vperm.xlu1 %9927, %v9433_v35   ;;  %v10671_v38 = vpop.f32.mrb[1].mxu0  ;;  %v9779_v40 = vpack.c.bf16 %v9423_v34, %v446_v39  ;;  %v10679_v43 = vpack.i.bf16 %v9423_v34, %v446_v39 }
  0xed   : > { %v10674_v41 = vpack.c.bf16 %v9433_v35, %v10671_v38  ;;  %v10682_v44 = vpack.i.bf16 %v9433_v35, %v10671_v38 }
  0xee   : > { %9780 = vmatprep.subr.bf16.mxu0 %v9779_v40  ;;  %v10684_v45 = vpop.f32.mrb[2].mxu1 }
  0xef   : > { %14939 = vst [vmem:[#allocation4_spill] sm:$0xff] %v10674_v41  ;;  %14941 = vst [vmem:[#allocation6_spill] sm:$0xff] %v10682_v44  ;;  %v10686_v46 = vpop.f32.mrb[2].mxu0  ;;  %9928 = vset.pattern.permute.xlu0 %v10512_v47  ;;  %v10692_v49 = vpop.f32.mrb[3].mxu1  ;;  %9782 = vmatpush3.bf16.msra.mxu0 %v9779_v40 }
  0xf0   : > { %9929 = vset.pattern.permute.xlu1 %v10512_v47  ;;  %v10690_v48 = vpop.f32.mrb[3].mxu0  ;;  %v9783_v50 = vpack.c.bf16 %v10684_v45, %v10692_v49  ;;  %v10698_v51 = vpack.i.bf16 %v10684_v45, %v10692_v49  ;;  %3359 = vperm.xlu0 %9928, %v9423_v34  }
  0xf1   : > { %3375 = vperm.xlu1 %9929, %v9433_v35   ;;  %v10702_v52 = vpack.i.bf16 %v10686_v46, %v10690_v48  ;;  %9788 = vmatprep.subr.bf16.mxu0 %v10674_v41  ;;  %v10707_v53 = vpack.c.bf16 %v10686_v46, %v10690_v48 }
  0xf2   : > { %14942 = vst [vmem:[#allocation7_spill] sm:$0xff] %v10698_v51  ;;  %9784 = vmatprep.subr.bf16.mxu1 %v9783_v50  ;;  %v10709_v54 = vpop.f32.mrb[4].mxu1 }
  0xf3   : > { %14943 = vst [vmem:[#allocation8_spill] sm:$0xff] %v10702_v52  ;;  %14944 = vst [vmem:[#allocation9_spill] sm:$0xff] %v10707_v53  ;;  %v10711_v55 = vpop.f32.mrb[4].mxu0  ;;  %9786 = vmatpush3.bf16.msra.mxu1 %v9783_v50  ;;  %v10713_v56 = vpop.f32.mrb[5].mxu1 }
  0xf4   : > { %v10715_v57 = vpop.f32.mrb[5].mxu0  ;;  %v10720_v59 = vpack.c.bf16 %v10709_v54, %v10713_v56  ;;  %v10724_v60 = vpack.i.bf16 %v10709_v54, %v10713_v56  ;;  %9932 = vset.pattern.permute.xlu0 %v10514_v63 }
  0xf5   : > { %9930 = vset.pattern.permute.xlu1 %v10513_v58  ;;  %v10728_v61 = vpack.c.bf16 %v10711_v55, %v10715_v57  ;;  %v10732_v62 = vpack.i.bf16 %v10711_v55, %v10715_v57  ;;  %6961 = vperm.xlu0 %9932, %v9433_v35  }
  0xf6   : > { %14945 = vst [vmem:[#allocation10_spill] sm:$0xff] %v10720_v59  ;;  %14946 = vst [vmem:[#allocation11_spill] sm:$0xff] %v10724_v60  ;;  %5152 = vperm.xlu1 %9930, %v9423_v34   ;;  %v10735_v0 = vpop.f32.mrb[6].mxu1  ;;  %9792 = vmatprep.subr.bf16.mxu1 %v10720_v59 }
  0xf7   : > { %14947 = vst [vmem:[#allocation12_spill] sm:$0xff] %v10728_v61  ;;  %14948 = vst [vmem:[#allocation13_spill] sm:$0xff] %v10732_v62  ;;  %v10738_v1 = vpop.f32.mrb[7].mxu1 }
  0xf8   : > { %v10748_v5 = vpack.i.bf16 %v10735_v0, %v10738_v1  ;;  %v10752_v6 = vpack.c.bf16 %v10735_v0, %v10738_v1 }
  0xf9   : > { %9933 = vset.pattern.permute.xlu0 %v10508_v2 }
  0xfa   : > { %5168 = vperm.xlu1 %9930, %v9433_v35   ;;  %v10741_v3 = vpop.f32.mrb[8].mxu1  ;;  %1588 = vperm.xlu0 %9933, %v446_v39   ;;  %14949 = vst [vmem:[#allocation14_spill] sm:$0xff] %v10748_v5  ;;  %14950 = vst [vmem:[#allocation15_spill] sm:$0xff] %v10752_v6 }
  0xfb   : > { %v10743_v4 = vpop.f32.mrb[9].mxu1 }
  0xfc   : > { %v10771_v11 = vpack.c.bf16 %v10741_v3, %v10743_v4  ;;  %v10775_v12 = vpack.i.bf16 %v10741_v3, %v10743_v4 }
  0xfe   : > { %9931 = vset.pattern.permute.xlu1 %v10514_v63  ;;  %1608 = vperm.xlu0 %9933, %v10671_v38   ;;  %14951 = vst [vmem:[#allocation16_spill] sm:$0xff] %v10771_v11  ;;  %14952 = vst [vmem:[#allocation17_spill] sm:$0xff] %v10775_v12 }
  0xff   : > { %6945 = vperm.xlu1 %9931, %v9423_v34   ;;  %v10755_v7 = vpop.f32.mrb[6].mxu0 }
 0x100   : > { %v9465_v8 = vpop.f32.mrb[7].mxu0  ;;  %v10876_v35 = vrot.slane %v10755_v7, %v10869_v30  ;;  %v10890_v50 = vrot.slane %v10755_v7, %v10846_v21 }
 0x102   : > { %9935 = vset.pattern.permute.xlu0 %v10513_v58 }
 0x103   : > { %9934 = vset.pattern.permute.xlu1 %v10512_v47  ;;  %5148 = vperm.xlu0 %9935, %v446_v39  }
 0x104   : > { %3355 = vperm.xlu1 %9934, %v446_v39  }
 0x105   : > { %v10777_v13 = vpop.f32.mrb[10].mxu1 }
 0x106   : > { %v9472_v14 = vpop.f32.mrb[11].mxu1 }
 0x107   : > { %v10760_v9 = vpop.f32.mrb[8].mxu0  ;;  %9937 = vset.pattern.permute.xlu0 %v10514_v63  ;;  %v10905_v14 = vrot.slane %v10755_v7, %v10857_v25 }
 0x108   : > { %3371 = vperm.xlu1 %9934, %v10671_v38   ;;  %v9479_v10 = vpop.f32.mrb[9].mxu0  ;;  %6941 = vperm.xlu0 %9937, %v446_v39   ;;  %v10854_v24 = vrot.slane %v10760_v9, %v10846_v21  ;;  %v10865_v29 = vrot.slane %v10760_v9, %v10857_v25 }
 0x10c   : > { %9936 = vset.pattern.permute.xlu1 %v10513_v58  ;;  %6953 = vperm.xlu0 %9937, %v10684_v45  }
 0x10d   : > { %5164 = vperm.xlu1 %9936, %v10671_v38   ;;  %v10820_v17 = vpop.f32.mrb[12].mxu1 }
 0x10e   : > { %v9486_v19 = vpop.f32.mrb[13].mxu1 }
 0x10f   : > { %v10779_v15 = vpop.f32.mrb[10].mxu0 }
 0x110   : > { %6977 = vperm.xlu0 %9937, %v10686_v46   ;;  %v9493_v16 = vpop.f32.mrb[11].mxu0 }
 0x111   : > { %9938 = vset.pattern.permute.xlu1 %v10514_v63 }
 0x112   : > { %6957 = vperm.xlu1 %9938, %v10671_v38  }
 0x114   : > { %9943 = vset.pattern.permute.xlu0 %v10508_v2 }
 0x115   : > { %1628 = vperm.xlu0 %9943, %v10690_v48   ;;  %v10879_v38 = vpop.f32.mrb[14].mxu1 }
 0x116   : > { %9939 = vset.pattern.permute.xlu1 %v10508_v2  ;;  %v9500_v40 = vpop.f32.mrb[15].mxu1 }
 0x117   : > { %1603 = vperm.xlu1 %9939, %v10684_v45   ;;  %v10823_v18 = vpop.f32.mrb[12].mxu0 }
 0x118   : > { %v9507_v20 = vpop.f32.mrb[13].mxu0 }
 0x119   : > { %9946 = vset.pattern.permute.xlu0 %v10513_v58 }
 0x11a   : > { %5180 = vperm.xlu0 %9946, %v10690_v48  }
 0x11b   : > { %1633 = vperm.xlu1 %9939, %v10686_v46  }
 0x11e   : > { %9951 = vset.pattern.permute.xlu0 %v10514_v63 }
 0x11f   : > { %9940 = vset.pattern.permute.xlu1 %v10512_v47  ;;  %6969 = vperm.xlu0 %9951, %v10709_v54  }
 0x120   : > { %3367 = vperm.xlu1 %9940, %v10684_v45  }
 0x123   : > { %6993 = vperm.xlu0 %9951, %v10711_v55  }
 0x124   : > { %3391 = vperm.xlu1 %9940, %v10686_v46  }
 0x127   : > { %9952 = vset.pattern.permute.xlu0 %v10508_v2 }
 0x128   : > { %9941 = vset.pattern.permute.xlu1 %v10513_v58  ;;  %1618 = vperm.xlu0 %9952, %v10713_v56  }
 0x129   : > { %5160 = vperm.xlu1 %9941, %v10684_v45  }
 0x12c   : > { %1648 = vperm.xlu0 %9952, %v10715_v57  }
 0x12d   : > { %5184 = vperm.xlu1 %9941, %v10686_v46  }
 0x130   : > { %9954 = vset.pattern.permute.xlu0 %v10512_v47 }
 0x131   : > { %9942 = vset.pattern.permute.xlu1 %v10508_v2  ;;  %3403 = vperm.xlu0 %9954, %v10715_v57  }
 0x132   : > { %1598 = vperm.xlu1 %9942, %v10692_v49  }
 0x135   : > { %9956 = vset.pattern.permute.xlu0 %v10513_v58 }
 0x136   : > { %9944 = vset.pattern.permute.xlu1 %v10512_v47  ;;  %5196 = vperm.xlu0 %9956, %v10715_v57  }
 0x137   : > { %3363 = vperm.xlu1 %9944, %v10692_v49  }
 0x13a   : > { %9961 = vset.pattern.permute.xlu0 %v10514_v63 }
 0x13b   : > { %3387 = vperm.xlu1 %9944, %v10690_v48   ;;  %6985 = vperm.xlu0 %9961, %v10735_v0  }
 0x13f   : > { %9945 = vset.pattern.permute.xlu1 %v10513_v58  ;;  %9962 = vset.pattern.permute.xlu0 %v10508_v2 }
 0x140   : > { %5156 = vperm.xlu1 %9945, %v10692_v49   ;;  %1638 = vperm.xlu0 %9962, %v10738_v1  }
 0x144   : > { %9947 = vset.pattern.permute.xlu1 %v10514_v63  ;;  %9963 = vset.pattern.permute.xlu0 %v10512_v47 }
 0x145   : > { %6949 = vperm.xlu1 %9947, %v10692_v49   ;;  %3395 = vperm.xlu0 %9963, %v10738_v1  }
 0x149   : > { %6973 = vperm.xlu1 %9947, %v10690_v48   ;;  %9964 = vset.pattern.permute.xlu0 %v10513_v58 }
 0x14a   : > { %5188 = vperm.xlu0 %9964, %v10738_v1  }
 0x14d   : > { %9948 = vset.pattern.permute.xlu1 %v10508_v2 }
 0x14e   : > { %1623 = vperm.xlu1 %9948, %v10709_v54   ;;  %9969 = vset.pattern.permute.xlu0 %v10514_v63 }
 0x14f   : > { %7001 = vperm.xlu0 %9969, %v10741_v3  }
 0x152   : > { %1653 = vperm.xlu1 %9948, %v10711_v55  }
 0x153   : > { %9970 = vset.pattern.permute.xlu0 %v10508_v2 }
 0x154   : > { %1658 = vperm.xlu0 %9970, %v10743_v4  }
 0x156   : > { %9949 = vset.pattern.permute.xlu1 %v10512_v47 }
 0x157   : > { %3383 = vperm.xlu1 %9949, %v10709_v54  }
 0x158   : > { %9971 = vset.pattern.permute.xlu0 %v10512_v47 }
 0x159   : > { %3411 = vperm.xlu0 %9971, %v10743_v4  }
 0x15b   : > { %3407 = vperm.xlu1 %9949, %v10711_v55  }
 0x15d   : > { %9972 = vset.pattern.permute.xlu0 %v10513_v58 }
 0x15e   : > { %5204 = vperm.xlu0 %9972, %v10743_v4  }
 0x15f   : > { %9950 = vset.pattern.permute.xlu1 %v10513_v58 }
 0x160   : > { %5176 = vperm.xlu1 %9950, %v10709_v54  }
 0x164   : > { %5200 = vperm.xlu1 %9950, %v10711_v55  }
 0x168   : > { %9953 = vset.pattern.permute.xlu1 %v10512_v47 }
 0x169   : > { %3379 = vperm.xlu1 %9953, %v10713_v56  }
 0x16a   : > { %v10848_v23 = vpop.permute.xlu0 %1593 }
 0x16b   : > { %v1614_v22 = vpop.permute.xlu1 %1613 }
 0x16c   : > { %v1703_v28 = vadd.f32 %v10854_v24, %v1614_v22 }
 0x16d   : > { %9955 = vset.pattern.permute.xlu1 %v10513_v58 }
 0x16e   : > { %5172 = vperm.xlu1 %9955, %v10713_v56   ;;  %v1735_v37 = vmul.f32 0.2, %v1703_v28  ;;  %vm1719_vm3 = vcmp.gt.f32.partialorder %v1703_v28, 0.0 }
 0x16f   : > { %v10859_v27 = vpop.permute.xlu0 %3359 }
 0x170   : > { %v3376_v26 = vpop.permute.xlu1 %3375  ;;  %v10885_v48 = vsel %vm1719_vm3, %v1703_v28, %v1735_v37 }
 0x171   : > { %v3455_v34 = vadd.f32 %v10865_v29, %v3376_v26  ;;  %v1778_v55 = vsel %vm1762_vm4, %v10885_v48, -inf }
 0x172   : > { %9957 = vset.pattern.permute.xlu1 %v10514_v63 }
 0x173   : > { %6965 = vperm.xlu1 %9957, %v10713_v56   ;;  %v3487_v49 = vmul.f32 0.2, %v3455_v34  ;;  %vm3471_vm5 = vcmp.gt.f32.partialorder %v3455_v34, 0.0 }
 0x174   : > { %v10871_v33 = vpop.permute.xlu0 %6961 }
 0x175   : > { %v5153_v31 = vpop.permute.xlu1 %5152  ;;  %v10899_v8 = vsel %vm3471_vm5, %v3455_v34, %v3487_v49  ;;  %v10919_v34 = vsub.s32 3, %v10666_v32  ;;  %v10934_v32 = vrot.slane %v10760_v9, %v10869_v30 }
 0x176   : > { %v5244_v45 = vadd.f32 %v10876_v35, %v5153_v31  ;;  %v3529_v16 = vsel %vm1762_vm4, %v10899_v8, -inf }
 0x177   : > { %6989 = vperm.xlu1 %9957, %v10715_v57   ;;  %14956 = vst [vmem:[#allocation21_spill] sm:$0xff] %v10919_v34 }
 0x178   : > { %v5276_v10 = vmul.f32 0.2, %v5244_v45  ;;  %vm5260_vm6 = vcmp.gt.f32.partialorder %v5244_v45, 0.0 }
 0x179   : > { %v10881_v39 = vpop.permute.xlu1 %5168  ;;  %v1589_v46 = vpop.permute.xlu0 %1588 }
 0x17a   : > { %v1698_v56 = vadd.f32 %v10890_v50, %v1589_v46  ;;  %v10909_v20 = vsel %vm5260_vm6, %v5244_v45, %v5276_v10  ;;  %v10927_v46 = vrot.slane %v10755_v7, %v10919_v34  ;;  %v10940_v7 = vpop.f32.mrb[16].mxu1 }
 0x17b   : > { %9958 = vset.pattern.permute.xlu1 %v10508_v2  ;;  %v5310_v31 = vsel %vm1762_vm4, %v10909_v20, -inf }
 0x17c   : > { %1643 = vperm.xlu1 %9958, %v10735_v0   ;;  %v1730_v22 = vmul.f32 0.2, %v1698_v56  ;;  %vm1714_vm7 = vcmp.gt.f32.partialorder %v1698_v56, 0.0 }
 0x17d   : > { %v10897_v57 = vpop.permute.xlu0 %1608  ;;  %1779 = vmax.xlane.f32.xlu0 %v1778_v55 }
 0x17e   : > { %v10892_v54 = vpop.permute.xlu1 %6945  ;;  %v10923_v40 = vsel %vm1714_vm7, %v1698_v56, %v1730_v22 }
 0x180   : > { %9959 = vset.pattern.permute.xlu1 %v10512_v47 }
 0x181   : > { %3399 = vperm.xlu1 %9959, %v10735_v0   ;;  %3530 = vmax.xlane.f32.xlu0 %v3529_v16 }
 0x182   : > { %v10912_v28 = vpop.permute.xlu0 %5148 }
 0x183   : > { %v3356_v19 = vpop.permute.xlu1 %3355 }
 0x184   : > { %v3450_v26 = vadd.f32 %v10905_v14, %v3356_v19  ;;  %v9514_v19 = vpop.f32.mrb[17].mxu1 }
 0x185   : > { %9960 = vset.pattern.permute.xlu1 %v10513_v58  ;;  %5311 = vmax.xlane.f32.xlu0 %v5310_v31 }
 0x186   : > { %5192 = vperm.xlu1 %9960, %v10735_v0   ;;  %v3482_v45 = vmul.f32 0.2, %v3450_v26  ;;  %vm3466_vm8 = vcmp.gt.f32.partialorder %v3450_v26, 0.0  ;;  %v1763_v0 = vsel %vm1762_vm4, %v10923_v40, -inf }
 0x187   : > { %v10921_v37 = vpop.permute.xlu1 %3371  ;;  %v6942_v49 = vpop.permute.xlu0 %6941 }
 0x188   : > { %v7036_v55 = vadd.f32 %v10927_v46, %v6942_v49  ;;  %v10938_v56 = vsel %vm3466_vm8, %v3450_v26, %v3482_v45 }
 0x189   : > { %1764 = vmax.xlane.f32.xlu0 %v1763_v0  ;;  %v3514_v22 = vsel %vm1762_vm4, %v10938_v56, -inf  ;;  %v1673_v0 = vrot.slane %v10777_v13, %v10846_v21 }
 0x18a   : > { %9965 = vset.pattern.permute.xlu1 %v10514_v63  ;;  %v7068_v49 = vmul.f32 0.2, %v7036_v55  ;;  %vm7052_vm10 = vcmp.gt.f32.partialorder %v7036_v55, 0.0 }
 0x18b   : > { %6981 = vperm.xlu1 %9965, %v10738_v1   ;;  %v10993_v12 = vpop.permute.xlu0 %6953 }
 0x18c   : > { %v5165_v10 = vpop.permute.xlu1 %5164 }
 0x18d   : > { %v5247_v16 = vadd.f32 %v10934_v32, %v5165_v10  ;;  %3515 = vmax.xlane.f32.xlu0 %v3514_v22  ;;  %v10955_v10 = vsel %vm7052_vm10, %v7036_v55, %v7068_v49 }
 0x18e   : > { %14957 = vst [vmem:[#allocation22_spill] sm:$0xff] %v10955_v10  ;;  %v7100_v19 = vsel %vm1762_vm4, %v10955_v10, -inf }
 0x18f   : > { %9966 = vset.pattern.permute.xlu1 %v10508_v2  ;;  %vm5263_vm9 = vcmp.gt.f32.partialorder %v5247_v16, 0.0  ;;  %v5279_v31 = vmul.f32 0.2, %v5247_v16 }
 0x190   : > { %1663 = vperm.xlu1 %9966, %v10741_v3  }
 0x191   : > { %v10947_v1 = vpop.permute.xlu1 %6957  ;;  %v10949_v26 = vsel %vm5263_vm9, %v5247_v16, %v5279_v31  ;;  %v10963_v16 = vrot.slane %v10779_v15, %v10846_v21 }
 0x192   : > { %v5319_v45 = vsel %vm1762_vm4, %v10949_v26, -inf }
 0x193   : > { %5320 = vmax.xlane.f32.xlu0 %v5319_v45 }
 0x194   : > { %9967 = vset.pattern.permute.xlu1 %v10512_v47 }
 0x195   : > { %3415 = vperm.xlu1 %9967, %v10741_v3  }
 0x196   : > { %v1604_v2 = vpop.permute.xlu1 %1603 }
 0x197   : > { %v1701_v22 = vadd.f32 %v1673_v0, %v1604_v2  ;;  %7101 = vmax.xlane.f32.xlu0 %v7100_v19  ;;  %v3425_v2 = vrot.slane %v10777_v13, %v10857_v25 }
 0x199   : > { %9968 = vset.pattern.permute.xlu1 %v10513_v58  ;;  %vm1717_vm11 = vcmp.gt.f32.partialorder %v1701_v22, 0.0  ;;  %v1733_v31 = vmul.f32 0.2, %v1701_v22 }
 0x19a   : > { %v1634_v55 = vpop.permute.xlu1 %1633  ;;  %5208 = vperm.xlu1 %9968, %v10741_v3  }
 0x19b   : > { %v1707_v47 = vadd.f32 %v10963_v16, %v1634_v55  ;;  %v10968_v49 = vsel %vm1717_vm11, %v1701_v22, %v1733_v31  ;;  %v10982_v31 = vrot.slane %v10779_v15, %v10857_v25 }
 0x19c   : > { %v1772_v45 = vsel %vm1762_vm4, %v10968_v49, -inf }
 0x19d   : > { %1773 = vmax.xlane.f32.xlu0 %v1772_v45  ;;  %vm1723_vm12 = vcmp.gt.f32.partialorder %v1707_v47, 0.0  ;;  %v1739_v19 = vmul.f32 0.2, %v1707_v47 }
 0x19e   : > { %9973 = vset.pattern.permute.xlu1 %v10514_v63 }
 0x19f   : > { %v3368_v58 = vpop.permute.xlu1 %3367  ;;  %6997 = vperm.xlu1 %9973, %v10743_v4   ;;  %v10976_v36 = vsel %vm1723_vm12, %v1707_v47, %v1739_v19 }
 0x1a0   : > { %v3453_v3 = vadd.f32 %v3425_v2, %v3368_v58  ;;  %v1790_v22 = vsel %vm1762_vm4, %v10976_v36, -inf }
 0x1a1   : > { %1791 = vmax.xlane.f32.xlu0 %v1790_v22 }
 0x1a2   : > { %vm3469_vm13 = vcmp.gt.f32.partialorder %v3453_v3, 0.0  ;;  %v3485_v55 = vmul.f32 0.2, %v3453_v3 }
 0x1a3   : > { %v3392_v45 = vpop.permute.xlu1 %3391 }
 0x1a4   : > { %v3459_v42 = vadd.f32 %v10982_v31, %v3392_v45  ;;  %v10985_v63 = vsel %vm3469_vm13, %v3453_v3, %v3485_v55  ;;  %v10999_v3 = vpop.permute.xlu0 %6977 }
 0x1a5   : > { %v3523_v4 = vsel %vm1762_vm4, %v10985_v63, -inf }
 0x1a6   : > { %3524 = vmax.xlane.f32.xlu0 %v3523_v4  ;;  %vm3475_vm14 = vcmp.gt.f32.partialorder %v3459_v42, 0.0  ;;  %v3491_v47 = vmul.f32 0.2, %v3459_v42 }
 0x1a8   : > { %v10989_v19 = vpop.permute.xlu1 %5160  ;;  %v10991_v58 = vsel %vm3475_vm14, %v3459_v42, %v3491_v47  ;;  %v11001_v11 = vpop.permute.xlu0 %1628  ;;  %v1699_v42 = vadd.f32 %v10890_v50, %v10848_v23 }
 0x1a9   : > { %14958 = vst [vmem:[#allocation23_spill] sm:$0xff] %v10991_v58  ;;  %v3541_v22 = vsel %vm1762_vm4, %v10991_v58, -inf }
 0x1aa   : > { %3542 = vmax.xlane.f32.xlu0 %v3541_v22  ;;  %v1731_v23 = vmul.f32 0.2, %v1699_v42  ;;  %vm1715_vm2 = vcmp.gt.f32.partialorder %v1699_v42, 0.0 }
 0x1ac   : > { %v10997_v62 = vpop.permute.xlu1 %5184  ;;  %v11026_v41 = vsel %vm1715_vm2, %v1699_v42, %v1731_v23 }
 0x1b1   : > { %v1599_v55 = vpop.permute.xlu1 %1598 }
 0x1b2   : > { %v1700_v45 = vadd.f32 %v1673_v0, %v1599_v55  ;;  %v11011_v0 = vrot.slane %v10779_v15, %v10869_v30 }
 0x1b4   : > { %vm1716_vm15 = vcmp.gt.f32.partialorder %v1700_v45, 0.0  ;;  %v1732_v4 = vmul.f32 0.2, %v1700_v45 }
 0x1b6   : > { %v3364_v6 = vpop.permute.xlu1 %3363  ;;  %v11003_v59 = vsel %vm1716_vm15, %v1700_v45, %v1732_v4  ;;  %v3451_v45 = vadd.f32 %v10905_v14, %v10859_v27  ;;  %v5181_v4 = vpop.permute.xlu0 %5180  ;;  %v1766_v14 = vsel %vm1762_vm4, %v11026_v41, -inf }
 0x1b7   : > { %v3452_v47 = vadd.f32 %v3425_v2, %v3364_v6  ;;  %v1769_v22 = vsel %vm1762_vm4, %v11003_v59, -inf  ;;  %v5251_v50 = vadd.f32 %v11011_v0, %v5181_v4  ;;  %v5218_v2 = vrot.slane %v10777_v13, %v10869_v30 }
 0x1b8   : > { %1770 = vmax.xlane.f32.xlu0 %v1769_v22  ;;  %v5248_v22 = vadd.f32 %v10934_v32, %v10881_v39  ;;  %v3483_v27 = vmul.f32 0.2, %v3451_v45  ;;  %vm3467_vm3 = vcmp.gt.f32.partialorder %v3451_v45, 0.0  ;;  %v7037_v4 = vadd.f32 %v10927_v46, %v10892_v54 }
 0x1b9   : > { %vm3468_vm1 = vcmp.gt.f32.partialorder %v3452_v47, 0.0  ;;  %v3484_v5 = vmul.f32 0.2, %v3452_v47  ;;  %vm5267_vm6 = vcmp.gt.f32.partialorder %v5251_v50, 0.0  ;;  %v1702_v46 = vadd.f32 %v10854_v24, %v10897_v57 }
 0x1ba   : > { %v11013_v55 = vpop.permute.xlu1 %3387  ;;  %v11032_v10 = vsel %vm3467_vm3, %v3451_v45, %v3483_v27  ;;  %v5280_v39 = vmul.f32 0.2, %v5248_v22  ;;  %vm5264_vm7 = vcmp.gt.f32.partialorder %v5248_v22, 0.0  ;;  %v11040_v23 = vpop.permute.xlu0 %6969  ;;  %v7069_v27 = vmul.f32 0.2, %v7037_v4 }
 0x1bb   : > { %v11017_v61 = vsel %vm3468_vm1, %v3452_v47, %v3484_v5  ;;  %v3517_v52 = vsel %vm1762_vm4, %v11032_v10, -inf  ;;  %vm7053_vm8 = vcmp.gt.f32.partialorder %v7037_v4, 0.0  ;;  %v11064_v57 = vrot.slane %v10820_v17, %v10846_v21 }
 0x1bc   : > { %14959 = vst [vmem:[#allocation24_spill] sm:$0xff] %v11017_v61  ;;  %v3520_v6 = vsel %vm1762_vm4, %v11017_v61, -inf  ;;  %v11048_v45 = vsel %vm5264_vm7, %v5248_v22, %v5280_v39  ;;  %vm1718_vm9 = vcmp.gt.f32.partialorder %v1702_v46, 0.0  ;;  %v5243_v39 = vadd.f32 %v10876_v35, %v10912_v28 }
 0x1bd   : > { %3521 = vmax.xlane.f32.xlu0 %v3520_v6  ;;  %v5283_v6 = vmul.f32 0.2, %v5251_v50  ;;  %v11079_v35 = vrot.slane %v10820_v17, %v10857_v25 }
 0x1be   : > { %v11060_v24 = vpop.permute.xlu0 %6993  ;;  %vm5259_vm12 = vcmp.gt.f32.partialorder %v5243_v39, 0.0 }
 0x1bf   : > { %v5157_v53 = vpop.permute.xlu1 %5156  ;;  %v11044_v54 = vsel %vm5267_vm6, %v5251_v50, %v5283_v6  ;;  %v3454_v50 = vadd.f32 %v10865_v29, %v10921_v37  ;;  %v11058_v6 = vsel %vm7053_vm8, %v7037_v4, %v7069_v27  ;;  %v11075_v27 = vrot.slane %v10823_v18, %v10846_v21 }
 0x1c0   : > { %v5245_v5 = vadd.f32 %v5218_v2, %v5157_v53  ;;  %14961 = vst [vmem:[#allocation26_spill] sm:$0xff] %v11044_v54  ;;  %14962 = vst [vmem:[#allocation27_spill] sm:$0xff] %v11058_v6  ;;  %v7103_v29 = vsel %vm1762_vm4, %v11058_v6, -inf  ;;  %v5246_v6 = vadd.f32 %v5218_v2, %v10989_v19  ;;  %v5252_v19 = vadd.f32 %v11011_v0, %v10997_v62 }
 0x1c1   : > { %v3486_v4 = vmul.f32 0.2, %v3454_v50  ;;  %vm3470_vm11 = vcmp.gt.f32.partialorder %v3454_v50, 0.0 }
 0x1c2   : > { %vm5261_vm5 = vcmp.gt.f32.partialorder %v5245_v5, 0.0  ;;  %v5277_v47 = vmul.f32 0.2, %v5245_v5  ;;  %v11081_v28 = vpop.permute.xlu0 %1618  ;;  %vm5262_vm14 = vcmp.gt.f32.partialorder %v5246_v6, 0.0  ;;  %vm5268_vm1 = vcmp.gt.f32.partialorder %v5252_v19, 0.0 }
 0x1c3   : > { %1767 = vmax.xlane.f32.xlu1 %v1766_v14  ;;  %v5331_v14 = vsel %vm1762_vm4, %v11044_v54, -inf  ;;  %v11091_v44 = vsel %vm3470_vm11, %v3454_v50, %v3486_v4 }
 0x1c4   : > { %v11034_v32 = vpop.permute.xlu1 %6949  ;;  %v11036_v42 = vsel %vm5261_vm5, %v5245_v5, %v5277_v47  ;;  %v5322_v47 = vsel %vm1762_vm4, %v11048_v45, -inf }
 0x1c5   : > { %14960 = vst [vmem:[#allocation25_spill] sm:$0xff] %v11036_v42  ;;  %v5313_v53 = vsel %vm1762_vm4, %v11036_v42, -inf }
 0x1c6   : > { %5314 = vmax.xlane.f32.xlu0 %v5313_v53  ;;  %v1649_v4 = vpop.permute.xlu0 %1648 }
 0x1c7   : > { %3518 = vmax.xlane.f32.xlu1 %v3517_v52  ;;  %v1734_v52 = vmul.f32 0.2, %v1702_v46 }
 0x1c8   : > { %v11050_v5 = vpop.permute.xlu1 %6973 }
 0x1c9   : > { %v11071_v37 = vsel %vm1718_vm9, %v1702_v46, %v1734_v52 }
 0x1ca   : > { %5332 = vmax.xlane.f32.xlu0 %v5331_v14  ;;  %v1775_v46 = vsel %vm1762_vm4, %v11071_v37, -inf }
 0x1cb   : > { %5323 = vmax.xlane.f32.xlu1 %v5322_v47 }
 0x1cd   : > { %v1624_v22 = vpop.permute.xlu1 %1623 }
 0x1ce   : > { %v1705_v53 = vadd.f32 %v11064_v57, %v1624_v22 }
 0x1cf   : > { %7104 = vmax.xlane.f32.xlu1 %v7103_v29  ;;  %v5275_v29 = vmul.f32 0.2, %v5243_v39 }
 0x1d0   : > { %vm1721_vm10 = vcmp.gt.f32.partialorder %v1705_v53, 0.0  ;;  %v1737_v14 = vmul.f32 0.2, %v1705_v53 }
 0x1d1   : > { %v1654_v47 = vpop.permute.xlu1 %1653 }
 0x1d2   : > { %v1711_v22 = vadd.f32 %v11075_v27, %v1654_v47  ;;  %v11086_v52 = vsel %vm1721_vm10, %v1705_v53, %v1737_v14  ;;  %v3526_v47 = vsel %vm1762_vm4, %v11091_v44, -inf  ;;  %v11097_v53 = vsel %vm5259_vm12, %v5243_v39, %v5275_v29 }
 0x1d3   : > { %14963 = vst [vmem:[#allocation28_spill] sm:$0xff] %v11086_v52  ;;  %1776 = vmax.xlane.f32.xlu1 %v1775_v46  ;;  %v1784_v60 = vsel %vm1762_vm4, %v11086_v52, -inf  ;;  %v11106_v14 = vrot.slane %v10823_v18, %v10857_v25  ;;  %v1706_v39 = vadd.f32 %v10963_v16, %v11001_v11  ;;  %v5307_v0 = vsel %vm1762_vm4, %v11097_v53, -inf  ;;  %v11119_v11 = vpop.permute.xlu0 %3403 }
 0x1d4   : > { %1785 = vmax.xlane.f32.xlu0 %v1784_v60  ;;  %vm1727_vm13 = vcmp.gt.f32.partialorder %v1711_v22, 0.0  ;;  %v1743_v42 = vmul.f32 0.2, %v1711_v22  ;;  %v5278_v60 = vmul.f32 0.2, %v5246_v6  ;;  %v5226_v16 = vrot.slane %v10820_v17, %v10869_v30 }
 0x1d5   : > { %v5284_v29 = vmul.f32 0.2, %v5252_v19  ;;  %vm1722_vm3 = vcmp.gt.f32.partialorder %v1706_v39, 0.0 }
 0x1d6   : > { %v3384_v54 = vpop.permute.xlu1 %3383  ;;  %v11095_v61 = vsel %vm1727_vm13, %v1711_v22, %v1743_v42  ;;  %v11115_v46 = vsel %vm5262_vm14, %v5246_v6, %v5278_v60  ;;  %v3458_v6 = vadd.f32 %v10982_v31, %v11013_v55 }
 0x1d7   : > { %14964 = vst [vmem:[#allocation29_spill] sm:$0xff] %v11095_v61  ;;  %v3457_v2 = vadd.f32 %v11079_v35, %v3384_v54  ;;  %3527 = vmax.xlane.f32.xlu1 %v3526_v47  ;;  %v1802_v50 = vsel %vm1762_vm4, %v11095_v61, -inf  ;;  %14966 = vst [vmem:[#allocation31_spill] sm:$0xff] %v11115_v46  ;;  %v5197_v55 = vpop.permute.xlu0 %5196 }
 0x1d8   : > { %1803 = vmax.xlane.f32.xlu0 %v1802_v50  ;;  %v3490_v61 = vmul.f32 0.2, %v3458_v6  ;;  %vm3474_vm5 = vcmp.gt.f32.partialorder %v3458_v6, 0.0 }
 0x1d9   : > { %vm3473_vm15 = vcmp.gt.f32.partialorder %v3457_v2, 0.0  ;;  %v3489_v42 = vmul.f32 0.2, %v3457_v2 }
 0x1da   : > { %v3408_v62 = vpop.permute.xlu1 %3407 }
 0x1db   : > { %v3463_v54 = vadd.f32 %v11106_v14, %v3408_v62  ;;  %5308 = vmax.xlane.f32.xlu1 %v5307_v0  ;;  %v11113_v22 = vsel %vm3473_vm15, %v3457_v2, %v3489_v42  ;;  %v5316_v62 = vsel %vm1762_vm4, %v11115_v46, -inf  ;;  %v11129_v42 = vsel %vm5268_vm1, %v5252_v19, %v5284_v29 }
 0x1dc   : > { %14965 = vst [vmem:[#allocation30_spill] sm:$0xff] %v11113_v22  ;;  %v3535_v47 = vsel %vm1762_vm4, %v11113_v22, -inf  ;;  %14968 = vst [vmem:[#allocation33_spill] sm:$0xff] %v11129_v42  ;;  %v1738_v0 = vmul.f32 0.2, %v1706_v39  ;;  %v5334_v22 = vsel %vm1762_vm4, %v11129_v42, -inf  ;;  %v5238_v19 = vrot.slane %v10823_v18, %v10869_v30  ;;  %v11143_v42 = vpop.permute.xlu0 %6985 }
 0x1dd   : > { %3536 = vmax.xlane.f32.xlu0 %v3535_v47  ;;  %vm3479_vm2 = vcmp.gt.f32.partialorder %v3463_v54, 0.0  ;;  %v3495_v50 = vmul.f32 0.2, %v3463_v54 }
 0x1de   : > { %v11135_v31 = vsel %vm1722_vm3, %v1706_v39, %v1738_v0 }
 0x1df   : > { %v5177_v2 = vpop.permute.xlu1 %5176  ;;  %5317 = vmax.xlane.f32.xlu1 %v5316_v62  ;;  %v11127_v60 = vsel %vm3479_vm2, %v3463_v54, %v3495_v50  ;;  %14969 = vst [vmem:[#allocation34_spill] sm:$0xff] %v11135_v31  ;;  %v1787_v54 = vsel %vm1762_vm4, %v11135_v31, -inf  ;;  %v11141_v62 = vsel %vm3474_vm5, %v3458_v6, %v3490_v61  ;;  %v1710_v31 = vadd.f32 %v11075_v27, %v1649_v4 }
 0x1e0   : > { %14967 = vst [vmem:[#allocation32_spill] sm:$0xff] %v11127_v60  ;;  %v3553_v47 = vsel %vm1762_vm4, %v11127_v60, -inf  ;;  %v5250_v52 = vadd.f32 %v5226_v16, %v5177_v2  ;;  %14970 = vst [vmem:[#allocation35_spill] sm:$0xff] %v11141_v62  ;;  %v3538_v39 = vsel %vm1762_vm4, %v11141_v62, -inf  ;;  %v5255_v60 = vadd.f32 %v5238_v19, %v5197_v55  ;;  %v1639_v61 = vpop.permute.xlu0 %1638 }
 0x1e1   : > { %3554 = vmax.xlane.f32.xlu0 %v3553_v47  ;;  %vm1726_vm11 = vcmp.gt.f32.partialorder %v1710_v31, 0.0 }
 0x1e2   : > { %v5282_v29 = vmul.f32 0.2, %v5250_v52  ;;  %vm5266_vm6 = vcmp.gt.f32.partialorder %v5250_v52, 0.0  ;;  %vm5271_vm10 = vcmp.gt.f32.partialorder %v5255_v60, 0.0 }
 0x1e3   : > { %v5201_v46 = vpop.permute.xlu1 %5200  ;;  %5335 = vmax.xlane.f32.xlu1 %v5334_v22  ;;  %v1704_v22 = vadd.f32 %v11064_v57, %v11081_v28  ;;  %v5287_v28 = vmul.f32 0.2, %v5255_v60 }
 0x1e4   : > { %v5256_v50 = vadd.f32 %v5238_v19, %v5201_v46  ;;  %v11149_v0 = vsel %vm5266_vm6, %v5250_v52, %v5282_v29  ;;  %v1742_v29 = vmul.f32 0.2, %v1710_v31 }
 0x1e5   : > { %v5328_v6 = vsel %vm1762_vm4, %v11149_v0, -inf  ;;  %v1736_v62 = vmul.f32 0.2, %v1704_v22  ;;  %vm1720_vm9 = vcmp.gt.f32.partialorder %v1704_v22, 0.0 }
 0x1e6   : > { %v5288_v2 = vmul.f32 0.2, %v5256_v50  ;;  %vm5272_vm7 = vcmp.gt.f32.partialorder %v5256_v50, 0.0 }
 0x1e7   : > { %1788 = vmax.xlane.f32.xlu1 %v1787_v54  ;;  %v11165_v4 = vsel %vm1720_vm9, %v1704_v22, %v1736_v62  ;;  %v11177_v22 = vsel %vm1726_vm11, %v1710_v31, %v1742_v29  ;;  %v3441_v29 = vrot.slane %v10879_v38, %v10857_v25 }
 0x1e8   : > { %v3380_v47 = vpop.permute.xlu1 %3379  ;;  %v11154_v58 = vsel %vm5272_vm7, %v5256_v50, %v5288_v2  ;;  %v3396_v50 = vpop.permute.xlu0 %3395 }
 0x1e9   : > { %14971 = vst [vmem:[#allocation36_spill] sm:$0xff] %v11154_v58  ;;  %v3456_v19 = vadd.f32 %v11079_v35, %v3380_v47  ;;  %v3462_v35 = vadd.f32 %v11106_v14, %v11119_v11  ;;  %v5234_v11 = vrot.slane %v10879_v38, %v10869_v30 }
 0x1eb   : > { %3539 = vmax.xlane.f32.xlu1 %v3538_v39  ;;  %v11167_v39 = vsel %vm5271_vm10, %v5255_v60, %v5287_v28  ;;  %v3488_v47 = vmul.f32 0.2, %v3456_v19  ;;  %vm3472_vm12 = vcmp.gt.f32.partialorder %v3456_v19, 0.0  ;;  %v3494_v14 = vmul.f32 0.2, %v3462_v35 }
 0x1ec   : > { %14973 = vst [vmem:[#allocation38_spill] sm:$0xff] %v11167_v39  ;;  %v5343_v62 = vsel %vm1762_vm4, %v11167_v39, -inf  ;;  %v5189_v60 = vpop.permute.xlu0 %5188  ;;  %vm3478_vm13 = vcmp.gt.f32.partialorder %v3462_v35, 0.0 }
 0x1ed   : > { %v5173_v46 = vpop.permute.xlu1 %5172  ;;  %v11183_v28 = vsel %vm3472_vm12, %v3456_v19, %v3488_v47 }
 0x1ee   : > { %v5249_v54 = vadd.f32 %v5226_v16, %v5173_v46  ;;  %v5346_v16 = vsel %vm1762_vm4, %v11154_v58, -inf  ;;  %v1781_v46 = vsel %vm1762_vm4, %v11165_v4, -inf  ;;  %14974 = vst [vmem:[#allocation39_spill] sm:$0xff] %v11183_v28  ;;  %v3532_v31 = vsel %vm1762_vm4, %v11183_v28, -inf }
 0x1ef   : > { %5329 = vmax.xlane.f32.xlu1 %v5328_v6  ;;  %v1799_v6 = vsel %vm1762_vm4, %v11177_v22, -inf }
 0x1f0   : > { %vm5265_vm8 = vcmp.gt.f32.partialorder %v5249_v54, 0.0  ;;  %v5281_v57 = vmul.f32 0.2, %v5249_v54  ;;  %v11193_v19 = vpop.permute.xlu0 %7001 }
 0x1f2   : > { %v11156_v52 = vpop.permute.xlu1 %6965  ;;  %v11160_v55 = vsel %vm5265_vm8, %v5249_v54, %v5281_v57  ;;  %v1689_v54 = vrot.slane %v10879_v38, %v10846_v21 }
 0x1f3   : > { %14972 = vst [vmem:[#allocation37_spill] sm:$0xff] %v11160_v55  ;;  %5347 = vmax.xlane.f32.xlu1 %v5346_v16  ;;  %v5325_v27 = vsel %vm1762_vm4, %v11160_v55, -inf }
 0x1f4   : > { %5326 = vmax.xlane.f32.xlu0 %v5325_v27  ;;  %v1659_v28 = vpop.permute.xlu0 %1658 }
 0x1f6   : > { %v11169_v2 = vpop.permute.xlu1 %6989 }
 0x1f7   : > { %1782 = vmax.xlane.f32.xlu1 %v1781_v46  ;;  %v11191_v46 = vsel %vm3478_vm13, %v3462_v35, %v3494_v14  ;;  %v1708_v35 = vadd.f32 %v1689_v54, %v1639_v61 }
 0x1f8   : > { %5344 = vmax.xlane.f32.xlu0 %v5343_v62  ;;  %14975 = vst [vmem:[#allocation40_spill] sm:$0xff] %v11191_v46  ;;  %v5253_v62 = vadd.f32 %v5234_v11, %v5189_v60  ;;  %v3550_v39 = vsel %vm1762_vm4, %v11191_v46, -inf }
 0x1f9   : > { %vm1724_vm3 = vcmp.gt.f32.partialorder %v1708_v35, 0.0 }
 0x1fa   : > { %v5285_v55 = vmul.f32 0.2, %v5253_v62  ;;  %vm5269_vm1 = vcmp.gt.f32.partialorder %v5253_v62, 0.0 }
 0x1fb   : > { %v1644_v57 = vpop.permute.xlu1 %1643  ;;  %1800 = vmax.xlane.f32.xlu1 %v1799_v6 }
 0x1fc   : > { %v1709_v16 = vadd.f32 %v1689_v54, %v1644_v57 }
 0x1fe   : > { %vm1725_vm14 = vcmp.gt.f32.partialorder %v1709_v16, 0.0  ;;  %v1741_v27 = vmul.f32 0.2, %v1709_v16 }
 0x1ff   : > { %3533 = vmax.xlane.f32.xlu1 %v3532_v31 }
 0x200   : > { %v3400_v47 = vpop.permute.xlu1 %3399  ;;  %v11195_v6 = vsel %vm1725_vm14, %v1709_v16, %v1741_v27 }
 0x201   : > { %14976 = vst [vmem:[#allocation41_spill] sm:$0xff] %v11195_v6  ;;  %v3461_v58 = vadd.f32 %v3441_v29, %v3400_v47  ;;  %v1796_v57 = vsel %vm1762_vm4, %v11195_v6, -inf  ;;  %v11205_v47 = vsel %vm5269_vm1, %v5253_v62, %v5285_v55 }
 0x202   : > { %1797 = vmax.xlane.f32.xlu0 %v1796_v57  ;;  %14977 = vst [vmem:[#allocation42_spill] sm:$0xff] %v11205_v47  ;;  %v3460_v57 = vadd.f32 %v3441_v29, %v3396_v50  ;;  %v5337_v61 = vsel %vm1762_vm4, %v11205_v47, -inf  ;;  %v1697_v29 = vrot.slane %v10940_v7, %v10846_v21 }
 0x203   : > { %3551 = vmax.xlane.f32.xlu1 %v3550_v39  ;;  %vm3477_vm15 = vcmp.gt.f32.partialorder %v3461_v58, 0.0  ;;  %v3493_v31 = vmul.f32 0.2, %v3461_v58  ;;  %v1740_v39 = vmul.f32 0.2, %v1708_v35 }
 0x204   : > { %v3492_v50 = vmul.f32 0.2, %v3460_v57  ;;  %vm3476_vm5 = vcmp.gt.f32.partialorder %v3460_v57, 0.0  ;;  %v1712_v47 = vadd.f32 %v1697_v29, %v1659_v28 }
 0x205   : > { %v5193_v60 = vpop.permute.xlu1 %5192  ;;  %v11201_v14 = vsel %vm3477_vm15, %v3461_v58, %v3493_v31  ;;  %v11215_v55 = vsel %vm1724_vm3, %v1708_v35, %v1740_v39  ;;  %v3449_v35 = vrot.slane %v10940_v7, %v10857_v25 }
 0x206   : > { %v5254_v16 = vadd.f32 %v5234_v11, %v5193_v60  ;;  %v3547_v27 = vsel %vm1762_vm4, %v11201_v14, -inf  ;;  %v3412_v11 = vpop.permute.xlu0 %3411  ;;  %v1793_v31 = vsel %vm1762_vm4, %v11215_v55, -inf  ;;  %vm1728_vm11 = vcmp.gt.f32.partialorder %v1712_v47, 0.0 }
 0x207   : > { %3548 = vmax.xlane.f32.xlu0 %v3547_v27 }
 0x208   : > { %v5286_v6 = vmul.f32 0.2, %v5254_v16  ;;  %vm5270_vm2 = vcmp.gt.f32.partialorder %v5254_v16, 0.0 }
 0x20a   : > { %v11207_v46 = vpop.permute.xlu1 %6981  ;;  %v11211_v58 = vsel %vm5270_vm2, %v5254_v16, %v5286_v6  ;;  %v5242_v6 = vrot.slane %v10940_v7, %v10869_v30  ;;  %v11223_v16 = vsel %vm3476_vm5, %v3460_v57, %v3492_v50  ;;  %v5205_v27 = vpop.permute.xlu0 %5204 }
 0x20b   : > { %14978 = vst [vmem:[#allocation43_spill] sm:$0xff] %v11211_v58  ;;  %5338 = vmax.xlane.f32.xlu0 %v5337_v61  ;;  %v5340_v54 = vsel %vm1762_vm4, %v11211_v58, -inf  ;;  %14979 = vst [vmem:[#allocation44_spill] sm:$0xff] %v11223_v16  ;;  %v3544_v39 = vsel %vm1762_vm4, %v11223_v16, -inf  ;;  %v3464_v16 = vadd.f32 %v3449_v35, %v3412_v11 }
 0x20c   : > { %5341 = vmax.xlane.f32.xlu1 %v5340_v54  ;;  %v5257_v54 = vadd.f32 %v5242_v6, %v5205_v27  ;;  %v7015_v27 = vrot.slane %v10760_v9, %v10919_v34  ;;  %v7019_v9 = vrot.slane %v10820_v17, %v10919_v34 }
 0x20d   : > { %v3496_v17 = vmul.f32 0.2, %v3464_v16  ;;  %vm3480_vm13 = vcmp.gt.f32.partialorder %v3464_v16, 0.0 }
 0x20e   : > { %v5289_v25 = vmul.f32 0.2, %v5257_v54  ;;  %vm5273_vm8 = vcmp.gt.f32.partialorder %v5257_v54, 0.0 }
 0x20f   : > { %v1664_v62 = vpop.permute.xlu1 %1663 }
 0x210   : > { %v1713_v60 = vadd.f32 %v1697_v29, %v1664_v62  ;;  %1794 = vmax.xlane.f32.xlu1 %v1793_v31  ;;  %v7011_v62 = vrot.slane %v10777_v13, %v10919_v34  ;;  %v1744_v29 = vmul.f32 0.2, %v1712_v47 }
 0x212   : > { %v1745_v61 = vmul.f32 0.2, %v1713_v60  ;;  %vm1729_vm6 = vcmp.gt.f32.partialorder %v1713_v60, 0.0  ;;  %v7038_v50 = vadd.f32 %v7011_v62, %v11034_v32  ;;  %v11243_v32 = vsel %vm5273_vm8, %v5257_v54, %v5289_v25 }
 0x213   : > { %v11257_v54 = vsel %vm1728_vm11, %v1712_v47, %v1744_v29 }
 0x214   : > { %v3416_v21 = vpop.permute.xlu1 %3415  ;;  %3545 = vmax.xlane.f32.xlu1 %v3544_v39  ;;  %v11229_v58 = vsel %vm1729_vm6, %v1713_v60, %v1745_v61  ;;  %vm7054_vm9 = vcmp.gt.f32.partialorder %v7038_v50, 0.0 }
 0x215   : > { %v3465_v31 = vadd.f32 %v3449_v35, %v3416_v21  ;;  %v1808_v57 = vsel %vm1762_vm4, %v11229_v58, -inf  ;;  %v7040_v21 = vadd.f32 %v7015_v27, %v10947_v1  ;;  %v7042_v1 = vadd.f32 %v7019_v9, %v11156_v52 }
 0x216   : > { %1809 = vmax.xlane.f32.xlu0 %v1808_v57  ;;  %v7070_v57 = vmul.f32 0.2, %v7038_v50  ;;  %v7039_v35 = vadd.f32 %v7011_v62, %v10993_v12  ;;  %v1805_v12 = vsel %vm1762_vm4, %v11257_v54, -inf  ;;  %v7041_v62 = vadd.f32 %v7015_v27, %v10871_v33 }
 0x217   : > { %v3497_v30 = vmul.f32 0.2, %v3465_v31  ;;  %vm3481_vm7 = vcmp.gt.f32.partialorder %v3465_v31, 0.0  ;;  %vm7056_vm12 = vcmp.gt.f32.partialorder %v7040_v21, 0.0  ;;  %vm7058_vm14 = vcmp.gt.f32.partialorder %v7042_v1, 0.0 }
 0x218   : > { %v11254_v11 = vsel %vm7054_vm9, %v7038_v50, %v7070_v57  ;;  %v7074_v50 = vmul.f32 0.2, %v7042_v1  ;;  %v11271_v57 = vsel %vm3480_vm13, %v3464_v16, %v3496_v17  ;;  %vm7055_vm15 = vcmp.gt.f32.partialorder %v7039_v35, 0.0 }
 0x219   : > { %v5209_v60 = vpop.permute.xlu1 %5208  ;;  %v11238_v61 = vsel %vm3481_vm7, %v3465_v31, %v3497_v30  ;;  %v5349_v30 = vsel %vm1762_vm4, %v11243_v32, -inf  ;;  %v7072_v31 = vmul.f32 0.2, %v7040_v21  ;;  %v7106_v52 = vsel %vm1762_vm4, %v11254_v11, -inf }
 0x21a   : > { %v5258_v39 = vadd.f32 %v5242_v6, %v5209_v60  ;;  %v3559_v13 = vsel %vm1762_vm4, %v11238_v61, -inf  ;;  %v7023_v60 = vrot.slane %v10779_v15, %v10919_v34  ;;  %v7071_v15 = vmul.f32 0.2, %v7039_v35 }
 0x21b   : > { %3560 = vmax.xlane.f32.xlu0 %v3559_v13  ;;  %v11268_v47 = vsel %vm7056_vm12, %v7040_v21, %v7072_v31  ;;  %v3556_v33 = vsel %vm1762_vm4, %v11271_v57, -inf  ;;  %v11282_v16 = vsel %vm7058_vm14, %v7042_v1, %v7074_v50  ;;  %v7073_v27 = vmul.f32 0.2, %v7041_v62 }
 0x21c   : > { %v5290_v28 = vmul.f32 0.2, %v5258_v39  ;;  %vm5274_vm10 = vcmp.gt.f32.partialorder %v5258_v39, 0.0  ;;  %v7044_v13 = vadd.f32 %v7023_v60, %v11050_v5  ;;  %v7112_v5 = vsel %vm1762_vm4, %v11268_v47, -inf }
 0x21d   : > { %v7043_v21 = vadd.f32 %v7019_v9, %v11040_v23  ;;  %v7031_v31 = vrot.slane %v10823_v18, %v10919_v34  ;;  %vm7057_vm2 = vcmp.gt.f32.partialorder %v7041_v62, 0.0  ;;  %v7045_v23 = vadd.f32 %v7023_v60, %v10999_v3 }
 0x21e   : > { %v11249_v6 = vsel %vm5274_vm10, %v5258_v39, %v5290_v28  ;;  %v11261_v39 = vpop.xlane.xlu0 %1779  ;;  %v7027_v28 = vrot.slane %v10879_v38, %v10919_v34  ;;  %v7076_v29 = vmul.f32 0.2, %v7044_v13  ;;  %v11285_v38 = vsel %vm7055_vm15, %v7039_v35, %v7071_v15  ;;  %v6998_v9 = vpop.permute.xlu1 %6997 }
 0x21f   : > { %5350 = vmax.xlane.f32.xlu0 %v5349_v30  ;;  %v5352_v25 = vsel %vm1762_vm4, %v11249_v6, -inf  ;;  %vm7060_vm1 = vcmp.gt.f32.partialorder %v7044_v13, 0.0  ;;  %v7048_v17 = vadd.f32 %v7031_v31, %v11169_v2  ;;  %v7109_v1 = vsel %vm1762_vm4, %v11285_v38, -inf }
 0x220   : > { %5353 = vmax.xlane.f32.xlu1 %v5352_v25  ;;  %v7046_v30 = vadd.f32 %v7027_v28, %v11207_v46  ;;  %v7118_v46 = vsel %vm1762_vm4, %v11282_v16, -inf  ;;  %v11294_v50 = vsel %vm7060_vm1, %v7044_v13, %v7076_v29  ;;  %v11297_v35 = vsel %vm7057_vm2, %v7041_v62, %v7073_v27 }
 0x221   : > { %v7075_v18 = vmul.f32 0.2, %v7043_v21  ;;  %v7035_v2 = vrot.slane %v10940_v7, %v10919_v34  ;;  %vm7059_vm5 = vcmp.gt.f32.partialorder %v7043_v21, 0.0  ;;  %v7124_v15 = vsel %vm1762_vm4, %v11294_v50, -inf }
 0x222   : > { %v11278_v25 = vpop.xlane.xlu0 %3530  ;;  %vm7062_vm3 = vcmp.gt.f32.partialorder %v7046_v30, 0.0  ;;  %v7115_v3 = vsel %vm1762_vm4, %v11297_v35, -inf  ;;  %v7047_v62 = vadd.f32 %v7027_v28, %v11143_v42  ;;  %vm7064_vm6 = vcmp.gt.f32.partialorder %v7048_v17, 0.0 }
 0x223   : > { %7107 = vmax.xlane.f32.xlu0 %v7106_v52  ;;  %v7078_v52 = vmul.f32 0.2, %v7046_v30  ;;  %v7050_v13 = vadd.f32 %v7035_v2, %v6998_v9  ;;  %v11310_v29 = vsel %vm7059_vm5, %v7043_v21, %v7075_v18  ;;  %vm7061_vm7 = vcmp.gt.f32.partialorder %v7045_v23, 0.0 }
 0x224   : > { %1806 = vmax.xlane.f32.xlu1 %v1805_v12  ;;  %v7079_v28 = vmul.f32 0.2, %v7047_v62  ;;  %vm7063_vm9 = vcmp.gt.f32.partialorder %v7047_v62, 0.0 }
 0x225   : > { %v11307_v60 = vsel %vm7062_vm3, %v7046_v30, %v7078_v52  ;;  %v7049_v30 = vadd.f32 %v7031_v31, %v11060_v24  ;;  %vm7066_vm8 = vcmp.gt.f32.partialorder %v7050_v13, 0.0 }
 0x226   : > { %v11299_v12 = vpop.xlane.xlu0 %5311  ;;  %v7130_v7 = vsel %vm1762_vm4, %v11307_v60, -inf }
 0x227   : > { %7113 = vmax.xlane.f32.xlu0 %v7112_v5  ;;  %v7080_v5 = vmul.f32 0.2, %v7048_v17  ;;  %v7081_v24 = vmul.f32 0.2, %v7049_v30  ;;  %vm7065_vm10 = vcmp.gt.f32.partialorder %v7049_v30, 0.0 }
 0x228   : > { %3557 = vmax.xlane.f32.xlu1 %v3556_v33  ;;  %v7077_v33 = vmul.f32 0.2, %v7045_v23 }
 0x229   : > { %v11316_v9 = vsel %vm7064_vm6, %v7048_v17, %v7080_v5  ;;  %v7051_v17 = vadd.f32 %v7035_v2, %v11193_v19 }
 0x22a   : > { %v1765_v27 = vpop.xlane.xlu0 %1764  ;;  %14980 = vst [vmem:[#allocation45_spill] sm:$0xff] %v11316_v9  ;;  %v11319_v42 = vsel %vm7061_vm7, %v7045_v23, %v7077_v33  ;;  %v7136_v21 = vsel %vm1762_vm4, %v11316_v9, -inf }
 0x22b   : > { %7119 = vmax.xlane.f32.xlu0 %v7118_v46  ;;  %v7082_v46 = vmul.f32 0.2, %v7050_v13  ;;  %14981 = vst [vmem:[#allocation46_spill] sm:$0xff] %v11319_v42  ;;  %v7127_v52 = vsel %vm1762_vm4, %v11319_v42, -inf  ;;  %vm7067_vm11 = vcmp.gt.f32.partialorder %v7051_v17, 0.0 }
 0x22c   : > { %7110 = vmax.xlane.f32.xlu1 %v7109_v1  ;;  %v7121_v1 = vsel %vm1762_vm4, %v11310_v29, -inf }
 0x22d   : > { %v11325_v18 = vsel %vm7066_vm8, %v7050_v13, %v7082_v46  ;;  %v7083_v13 = vmul.f32 0.2, %v7051_v17 }
 0x22e   : > { %14982 = vst [vmem:[#allocation47_spill] sm:$0xff] %v11325_v18  ;;  %v3516_v31 = vpop.xlane.xlu0 %3515  ;;  %v7142_v23 = vsel %vm1762_vm4, %v11325_v18, -inf  ;;  %v1811_v18 = vsub.f32 %v10923_v40, %v1765_v27 }
 0x22f   : > { %7125 = vmax.xlane.f32.xlu0 %v7124_v15  ;;  %v11328_v15 = vsel %vm7063_vm9, %v7047_v62, %v7079_v28  ;;  %v11340_v2 = vsel %vm7067_vm11, %v7051_v17, %v7083_v13  ;;  %v3562_v40 = vsub.f32 %v10938_v56, %v3516_v31 }
 0x230   : > { %7116 = vmax.xlane.f32.xlu1 %v7115_v3  ;;  %14983 = vst [vmem:[#allocation48_spill] sm:$0xff] %v11328_v15  ;;  %v7133_v5 = vsel %vm1762_vm4, %v11328_v15, -inf  ;;  %v11334_v3 = vsel %vm7065_vm10, %v7049_v30, %v7081_v24  ;;  %14985 = vst [vmem:[#allocation50_spill] sm:$0xff] %v11340_v2  ;;  %v7145_v62 = vsel %vm1762_vm4, %v11340_v2, -inf  ;;  %v1827_v15 = vmul.f32 1.442695, %v1811_v18 }
 0x231   : > { %14984 = vst [vmem:[#allocation49_spill] sm:$0xff] %v11334_v3  ;;  %v7139_v19 = vsel %vm1762_vm4, %v11334_v3, -inf }
 0x232   : > { %v11336_v33 = vpop.xlane.xlu0 %5320 }
 0x233   : > { %7131 = vmax.xlane.f32.xlu0 %v7130_v7 }
 0x234   : > { %7122 = vmax.xlane.f32.xlu1 %v7121_v1 }
 0x236   : > { %v11344_v7 = vpop.xlane.xlu0 %7101 }
 0x237   : > { %7137 = vmax.xlane.f32.xlu0 %v7136_v21 }
 0x238   : > { %7128 = vmax.xlane.f32.xlu1 %v7127_v52 }
 0x23a   : > { %v1774_v46 = vpop.xlane.xlu0 %1773 }
 0x23b   : > { %7143 = vmax.xlane.f32.xlu0 %v7142_v23 }
 0x23c   : > { %7134 = vmax.xlane.f32.xlu1 %v7133_v5  ;;  %v1816_v5 = vsub.f32 %v10885_v48, %v11261_v39 }
 0x23e   : > { %v11346_v1 = vpop.xlane.xlu0 %1791  ;;  %v1837_v34 = vmul.f32 1.442695, %v1816_v5 }
 0x240   : > { %7140 = vmax.xlane.f32.xlu1 %v7139_v19 }
 0x242   : > { %v11350_v21 = vpop.xlane.xlu0 %3524 }
 0x244   : > { %7146 = vmax.xlane.f32.xlu1 %v7145_v62 }
 0x246   : > { %v11355_v24 = vpop.xlane.xlu0 %3542 }
 0x24a   : > { %v11361_v19 = vpop.xlane.xlu0 %1770 }
 0x24e   : > { %v11365_v9 = vpop.xlane.xlu0 %3521 }
 0x250   : > { %v1768_v30 = vpop.xlane.xlu1 %1767 }
 0x251   : > { %9975 = vrot.lane.b32.xlu0 %v10679_v43, %s10515_s21  ;;  %v1812_v17 = vsub.f32 %v11026_v41, %v1768_v30  ;;  %v3567_v41 = vsub.f32 %v10899_v8, %v11278_v25  ;;  %v3578_v25 = vmul.f32 1.442695, %v3562_v40 }
 0x253   : > { %v1829_v13 = vmul.f32 1.442695, %v1812_v17  ;;  %v11370_v17 = vpop.xlane.xlu0 %5314  ;;  %v3588_v5 = vmul.f32 1.442695, %v3567_v41 }
 0x254   : > { %v3519_v28 = vpop.xlane.xlu1 %3518 }
 0x255   : > { %9980 = vrot.lane.b32.xlu1 %v10698_v51, %s10515_s21  ;;  %10096 = vpow2.f32 %v1829_v13  ;;  %v3563_v2 = vsub.f32 %v11032_v10, %v3519_v28  ;;  %v5356_v10 = vsub.f32 %v10909_v20, %v11299_v12  ;;  %v15042_v51 = vld [vmem:[#allocation9_spill] sm:$0xff] }
 0x256   : > { %10098 = vpow2.f32 %v1837_v34 }
 0x257   : > { %v3580_v30 = vmul.f32 1.442695, %v3563_v2  ;;  %v5373_v8 = vmul.f32 1.442695, %v5356_v10  ;;  %v11380_v18 = vpop.xlane.xlu0 %5332 }
 0x258   : > { %v5324_v52 = vpop.xlane.xlu1 %5323 }
 0x259   : > { %10100 = vpow2.f32 %v3580_v30 }
 0x25a   : > { %10102 = vpow2.f32 %v1827_v15  ;;  %v1814_v15 = vsub.f32 %v10968_v49, %v1774_v46  ;;  %v1820_v49 = vsub.f32 %v10976_v36, %v11346_v1  ;;  %v5359_v46 = vsub.f32 %v10949_v26, %v11336_v33 }
 0x25b   : > { %10104 = vpow2.f32 %v3588_v5  ;;  %v3565_v33 = vsub.f32 %v10985_v63, %v11350_v21  ;;  %v14987_v21 = vld [vmem:[#allocation23_spill] sm:$0xff] }
 0x25c   : > { %v11357_v23 = vpop.xlane.xlu1 %7104  ;;  %v1833_v30 = vmul.f32 1.442695, %v1814_v15  ;;  %v1845_v26 = vmul.f32 1.442695, %v1820_v49  ;;  %v5379_v1 = vmul.f32 1.442695, %v5359_v46 }
 0x25d   : > { %v3584_v63 = vmul.f32 1.442695, %v3565_v33 }
 0x25f   : > { %v11375_v34 = vpop.eup %10096 }
 0x260   : > { %v1777_v62 = vpop.xlane.xlu1 %1776  ;;  %v1862_v20 = vsel %vm1762_vm4, %v11375_v34, 0.0  ;;  %v11385_v12 = vpop.eup %10098 }
 0x261   : > { %v1815_v48 = vsub.f32 %v11071_v37, %v1777_v62  ;;  %v5360_v37 = vsub.f32 %v11048_v45, %v5324_v52  ;;  %v11390_v45 = vpop.xlane.xlu0 %1785 }
 0x263   : > { %v1835_v27 = vmul.f32 1.442695, %v1815_v48  ;;  %v5381_v31 = vmul.f32 1.442695, %v5360_v37 }
 0x264   : > { %v3528_v3 = vpop.xlane.xlu1 %3527 }
 0x265   : > { %10106 = vpow2.f32 %v1835_v27  ;;  %v3566_v2 = vsub.f32 %v11091_v44, %v3528_v3  ;;  %v1874_v44 = vsel %vm1762_vm4, %v11385_v12, 0.0  ;;  %v11395_v3 = vpop.eup %10100  ;;  %v11413_v36 = vpop.xlane.xlu0 %1803  ;;  %v1813_v27 = vsub.f32 %v11003_v59, %v11361_v19 }
 0x266   : > { %10108 = vpow2.f32 %v5373_v8  ;;  %v11397_v41 = vpop.eup %10102  ;;  %v3571_v59 = vsub.f32 %v14987_v21, %v11355_v24 }
 0x267   : > { %10110 = vpow2.f32 %v3578_v25  ;;  %v3586_v52 = vmul.f32 1.442695, %v3566_v2  ;;  %v1859_v10 = vsel %vm1762_vm4, %v11397_v41, 0.0  ;;  %v1831_v19 = vmul.f32 1.442695, %v1813_v27 }
 0x268   : > { %v5309_v39 = vpop.xlane.xlu1 %5308  ;;  %10112 = vpow2.f32 %v5381_v31  ;;  %v14988_v31 = vld [vmem:[#allocation34_spill] sm:$0xff]  ;;  %v3596_v24 = vmul.f32 1.442695, %v3571_v59 }
 0x269   : > { %v5355_v13 = vsub.f32 %v11097_v53, %v5309_v39  ;;  %10114 = vpow2.f32 %v3586_v52  ;;  %v3613_v53 = vsel %vm1762_vm4, %v11395_v3, 0.0  ;;  %v11405_v39 = vpop.eup %10104 }
 0x26a   : > { %10116 = vpow2.f32 %v1833_v30  ;;  %v3625_v8 = vsel %vm1762_vm4, %v11405_v39, 0.0  ;;  %v11431_v15 = vpop.xlane.xlu0 %3536 }
 0x26b   : > { %v5371_v48 = vmul.f32 1.442695, %v5355_v13 }
 0x26c   : > { %v11377_v28 = vpop.xlane.xlu1 %5317 }
 0x26d   : > { %10118 = vpow2.f32 %v5371_v48  ;;  %v14990_v48 = vld [vmem:[#allocation31_spill] sm:$0xff] }
 0x26e   : > { %10120 = vpow2.f32 %v1845_v26 }
 0x26f   : > { %v11411_v40 = vpop.eup %10106  ;;  %10122 = vpow2.f32 %v5379_v1 }
 0x270   : > { %v11387_v56 = vpop.xlane.xlu1 %5335  ;;  %1863 = vadd.xlane.f32.xlu0 %v1862_v20  ;;  %v11421_v37 = vpop.eup %10108  ;;  %v1871_v2 = vsel %vm1762_vm4, %v11411_v40, 0.0  ;;  %10124 = vpow2.f32 %v3584_v63 }
 0x271   : > { %14986 = vst [vmem:[#allocation51_spill] sm:$0xff] %v11421_v37  ;;  %v11427_v20 = vpop.eup %10110  ;;  %v5406_v13 = vsel %vm1762_vm4, %v11421_v37, 0.0  ;;  %10126 = vpow2.f32 %v1831_v19  ;;  %v14994_v19 = vld [vmem:[#allocation35_spill] sm:$0xff] }
 0x272   : > { %v3610_v49 = vsel %vm1762_vm4, %v11427_v20, 0.0  ;;  %10128 = vpow2.f32 %v3596_v24 }
 0x274   : > { %v1789_v62 = vpop.xlane.xlu1 %1788  ;;  %1875 = vadd.xlane.f32.xlu0 %v1874_v44  ;;  %v11436_v44 = vpop.eup %10112 }
 0x275   : > { %v1819_v52 = vsub.f32 %v14988_v31, %v1789_v62  ;;  %14989 = vst [vmem:[#allocation23_spill] sm:$0xff] %v11436_v44  ;;  %v11442_v46 = vpop.eup %10114  ;;  %v14991_v62 = vld [vmem:[#allocation24_spill] sm:$0xff]  ;;  %v5418_v33 = vsel %vm1762_vm4, %v11436_v44, 0.0 }
 0x276   : > { %v11450_v1 = vpop.eup %10116  ;;  %v3622_v27 = vsel %vm1762_vm4, %v11442_v46, 0.0 }
 0x277   : > { %v1843_v26 = vmul.f32 1.442695, %v1819_v52  ;;  %v1868_v52 = vsel %vm1762_vm4, %v11450_v1, 0.0 }
 0x278   : > { %v11407_v5 = vpop.xlane.xlu1 %3539  ;;  %3614 = vadd.xlane.f32.xlu0 %v3613_v53  ;;  %v5358_v53 = vsub.f32 %v14990_v48, %v11377_v28  ;;  %v14993_v28 = vld [vmem:[#allocation26_spill] sm:$0xff] }
 0x279   : > { %1860 = vadd.xlane.f32.xlu1 %v1859_v10  ;;  %v3564_v10 = vsub.f32 %v14991_v62, %v11365_v9  ;;  %v5363_v63 = vsub.f32 %v14993_v28, %v11380_v18  ;;  %10130 = vpow2.f32 %v1843_v26  ;;  %v3570_v31 = vsub.f32 %v14994_v19, %v11407_v5  ;;  %v14997_v5 = vld [vmem:[#allocation25_spill] sm:$0xff] }
 0x27a   : > { %v5377_v9 = vmul.f32 1.442695, %v5358_v53  ;;  %v14996_v53 = vld [vmem:[#allocation28_spill] sm:$0xff] }
 0x27b   : > { %v3582_v59 = vmul.f32 1.442695, %v3564_v10  ;;  %v5387_v18 = vmul.f32 1.442695, %v5363_v63  ;;  %v1818_v62 = vsub.f32 %v14996_v53, %v11390_v45  ;;  %v5357_v10 = vsub.f32 %v14997_v5, %v11370_v17  ;;  %v15000_v5 = vld [vmem:[#allocation30_spill] sm:$0xff] }
 0x27c   : > { %v11423_v25 = vpop.xlane.xlu1 %5329  ;;  %3626 = vadd.xlane.f32.xlu0 %v3625_v8  ;;  %v11454_v8 = vpop.eup %10118  ;;  %10132 = vpow2.f32 %v5377_v9  ;;  %v3594_v26 = vmul.f32 1.442695, %v3570_v31  ;;  %v14998_v9 = vld [vmem:[#allocation29_spill] sm:$0xff] }
 0x27d   : > { %1872 = vadd.xlane.f32.xlu1 %v1871_v2  ;;  %14992 = vst [vmem:[#allocation34_spill] sm:$0xff] %v11454_v8  ;;  %v11456_v2 = vpop.xlane.xlu0 %3554  ;;  %10134 = vpow2.f32 %v3582_v59  ;;  %v1841_v45 = vmul.f32 1.442695, %v1818_v62  ;;  %v1824_v59 = vsub.f32 %v14998_v9, %v11413_v36  ;;  %v5375_v17 = vmul.f32 1.442695, %v5357_v10 }
 0x27e   : > { %10136 = vpow2.f32 %v5387_v18  ;;  %v5362_v31 = vsub.f32 %v11149_v0, %v11423_v25  ;;  %v3569_v10 = vsub.f32 %v15000_v5, %v11431_v15 }
 0x27f   : > { %10138 = vpow2.f32 %v3594_v26  ;;  %v1853_v36 = vmul.f32 1.442695, %v1824_v59  ;;  %v15002_v59 = vld [vmem:[#allocation32_spill] sm:$0xff] }
 0x280   : > { %v11438_v30 = vpop.xlane.xlu1 %5347  ;;  %5407 = vadd.xlane.f32.xlu0 %v5406_v13  ;;  %v11464_v13 = vpop.eup %10120  ;;  %10140 = vpow2.f32 %v1841_v45  ;;  %v5385_v25 = vmul.f32 1.442695, %v5362_v31  ;;  %v3575_v15 = vsub.f32 %v15002_v59, %v11456_v2 }
 0x281   : > { %3611 = vadd.xlane.f32.xlu1 %v3610_v49  ;;  %v5403_v49 = vsel %vm1762_vm4, %v11454_v8, 0.0  ;;  %v11468_v24 = vpop.eup %10122  ;;  %v11470_v48 = vpop.xlane.xlu0 %5326  ;;  %10142 = vpow2.f32 %v5375_v17  ;;  %v3592_v17 = vmul.f32 1.442695, %v3569_v10 }
 0x282   : > { %14995 = vst [vmem:[#allocation31_spill] sm:$0xff] %v11468_v24  ;;  %v5415_v19 = vsel %vm1762_vm4, %v11468_v24, 0.0  ;;  %10144 = vpow2.f32 %v1853_v36  ;;  %v3604_v2 = vmul.f32 1.442695, %v3575_v15  ;;  %v15004_v36 = vld [vmem:[#allocation41_spill] sm:$0xff] }
 0x283   : > { %10146 = vpow2.f32 %v5385_v25 }
 0x284   : > { %5419 = vadd.xlane.f32.xlu0 %v5418_v33  ;;  %v1783_v21 = vpop.xlane.xlu1 %1782  ;;  %v1886_v33 = vsel %vm1762_vm4, %v11464_v13, 0.0  ;;  %10148 = vpow2.f32 %v3592_v17 }
 0x285   : > { %3623 = vadd.xlane.f32.xlu1 %v3622_v27  ;;  %v11478_v27 = vpop.eup %10124  ;;  %v1817_v26 = vsub.f32 %v11165_v4, %v1783_v21 }
 0x286   : > { %v11482_v63 = vpop.eup %10126 }
 0x287   : > { %v11492_v53 = vpop.eup %10128  ;;  %v1865_v18 = vsel %vm1762_vm4, %v11482_v63, 0.0  ;;  %v1839_v4 = vmul.f32 1.442695, %v1817_v26 }
 0x288   : > { %1869 = vadd.xlane.f32.xlu0 %v1868_v52  ;;  %v1801_v28 = vpop.xlane.xlu1 %1800  ;;  %v11488_v52 = vpop.xlane.xlu0 %5344  ;;  %14999 = vst [vmem:[#allocation24_spill] sm:$0xff] %v11492_v53 }
 0x289   : > { %5404 = vadd.xlane.f32.xlu1 %v5403_v49  ;;  %v3619_v49 = vsel %vm1762_vm4, %v11478_v27, 0.0  ;;  %v11496_v62 = vpop.eup %10130  ;;  %v1823_v21 = vsub.f32 %v11177_v22, %v1801_v28  ;;  %10150 = vpow2.f32 %v1839_v4  ;;  %v15005_v28 = vld [vmem:[#allocation39_spill] sm:$0xff]  ;;  %v15007_v4 = vld [vmem:[#allocation40_spill] sm:$0xff] }
 0x28a   : > { %v11503_v9 = vpop.eup %10132  ;;  %10152 = vpow2.f32 %v3604_v2 }
 0x28b   : > { %15001 = vst [vmem:[#allocation26_spill] sm:$0xff] %v11503_v9  ;;  %v11507_v45 = vpop.eup %10134  ;;  %v5412_v31 = vsel %vm1762_vm4, %v11503_v9, 0.0  ;;  %v1851_v22 = vmul.f32 1.442695, %v1823_v21 }
 0x28c   : > { %1887 = vadd.xlane.f32.xlu0 %v1886_v33  ;;  %v3534_v0 = vpop.xlane.xlu1 %3533 }
 0x28d   : > { %5416 = vadd.xlane.f32.xlu1 %v5415_v19  ;;  %v3637_v19 = vsel %vm1762_vm4, %v11492_v53, 0.0  ;;  %v3568_v25 = vsub.f32 %v15005_v28, %v3534_v0  ;;  %10154 = vpow2.f32 %v1851_v22 }
 0x28f   : > { %v1798_v33 = vpop.xlane.xlu0 %1797  ;;  %v3590_v0 = vmul.f32 1.442695, %v3568_v25 }
 0x290   : > { %3620 = vadd.xlane.f32.xlu0 %v3619_v49  ;;  %v1883_v49 = vsel %vm1762_vm4, %v11496_v62, 0.0  ;;  %v3552_v5 = vpop.xlane.xlu1 %3551  ;;  %v1822_v10 = vsub.f32 %v15004_v36, %v1798_v33 }
 0x291   : > { %1866 = vadd.xlane.f32.xlu1 %v1865_v18  ;;  %v11514_v18 = vpop.eup %10136  ;;  %v3574_v21 = vsub.f32 %v15007_v4, %v3552_v5 }
 0x292   : > { %15003 = vst [vmem:[#allocation35_spill] sm:$0xff] %v11514_v18  ;;  %v11518_v44 = vpop.eup %10138  ;;  %v5427_v26 = vsel %vm1762_vm4, %v11514_v18, 0.0  ;;  %v1849_v33 = vmul.f32 1.442695, %v1822_v10 }
 0x293   : > { %v11524_v59 = vpop.eup %10140  ;;  %v3634_v15 = vsel %vm1762_vm4, %v11518_v44, 0.0  ;;  %v3602_v5 = vmul.f32 1.442695, %v3574_v21 }
 0x294   : > { %3638 = vadd.xlane.f32.xlu0 %v3637_v19  ;;  %v3616_v19 = vsel %vm1762_vm4, %v11507_v45, 0.0  ;;  %v11530_v9 = vpop.eup %10142  ;;  %v1880_v36 = vsel %vm1762_vm4, %v11524_v59, 0.0  ;;  %10156 = vpow2.f32 %v1849_v33 }
 0x295   : > { %1884 = vadd.xlane.f32.xlu1 %v1883_v49  ;;  %v3549_v49 = vpop.xlane.xlu0 %3548  ;;  %15006 = vst [vmem:[#allocation28_spill] sm:$0xff] %v11530_v9  ;;  %v11536_v28 = vpop.eup %10144  ;;  %10158 = vpow2.f32 %v3590_v0 }
 0x296   : > { %v3573_v17 = vsub.f32 %v11201_v14, %v3549_v49  ;;  %v11540_v18 = vpop.eup %10146  ;;  %v15009_v49 = vld [vmem:[#allocation37_spill] sm:$0xff]  ;;  %v1898_v25 = vsel %vm1762_vm4, %v11536_v28, 0.0 }
 0x297   : > { %15008 = vst [vmem:[#allocation25_spill] sm:$0xff] %v11540_v18  ;;  %v5361_v10 = vsub.f32 %v15009_v49, %v11470_v48 }
 0x298   : > { %5413 = vadd.xlane.f32.xlu0 %v5412_v31  ;;  %v3600_v2 = vmul.f32 1.442695, %v3573_v17 }
 0x299   : > { %3617 = vadd.xlane.f32.xlu1 %v3616_v19  ;;  %v11526_v31 = vpop.xlane.xlu1 %5341  ;;  %v5339_v19 = vpop.xlane.xlu0 %5338  ;;  %v5383_v0 = vmul.f32 1.442695, %v5361_v10  ;;  %v15012_v10 = vld [vmem:[#allocation44_spill] sm:$0xff] }
 0x29a   : > { %10160 = vpow2.f32 %v3600_v2 }
 0x29b   : > { %10162 = vpow2.f32 %v3602_v5 }
 0x29c   : > { %5428 = vadd.xlane.f32.xlu0 %v5427_v26  ;;  %v5409_v26 = vsel %vm1762_vm4, %v11530_v9, 0.0  ;;  %v15025_v9 = vld [vmem:[#allocation11_spill] sm:$0xff] }
 0x29d   : > { %3635 = vadd.xlane.f32.xlu1 %v3634_v15  ;;  %v1795_v14 = vpop.xlane.xlu1 %1794  ;;  %v11546_v15 = vpop.eup %10148 }
 0x29e   : > { %v11551_v33 = vpop.eup %10150  ;;  %v1821_v21 = vsub.f32 %v11215_v55, %v1795_v14 }
 0x29f   : > { %v11553_v48 = vpop.eup %10152 }
 0x2a0   : > { %1881 = vadd.xlane.f32.xlu0 %v1880_v36  ;;  %v5424_v36 = vsel %vm1762_vm4, %v11540_v18, 0.0  ;;  %15010 = vst [vmem:[#allocation29_spill] sm:$0xff] %v11553_v48  ;;  %v3649_v55 = vsel %vm1762_vm4, %v11553_v48, 0.0  ;;  %v1847_v14 = vmul.f32 1.442695, %v1821_v21 }
 0x2a1   : > { %5410 = vadd.xlane.f32.xlu1 %v5409_v26  ;;  %v3631_v26 = vsel %vm1762_vm4, %v11546_v15, 0.0  ;;  %v3546_v49 = vpop.xlane.xlu1 %3545 }
 0x2a2   : > { %v3572_v5 = vsub.f32 %v15012_v10, %v3546_v49 }
 0x2a3   : > { %v1810_v22 = vpop.xlane.xlu0 %1809 }
 0x2a4   : > { %v1826_v4 = vsub.f32 %v11229_v58, %v1810_v22  ;;  %1899 = vadd.xlane.f32.xlu0 %v1898_v25  ;;  %v1877_v22 = vsel %vm1762_vm4, %v11551_v33, 0.0  ;;  %v11560_v25 = vpop.eup %10154 }
 0x2a5   : > { %5425 = vadd.xlane.f32.xlu1 %v5424_v36  ;;  %v11567_v18 = vpop.eup %10156  ;;  %v1895_v24 = vsel %vm1762_vm4, %v11560_v25, 0.0 }
 0x2a6   : > { %v1857_v17 = vmul.f32 1.442695, %v1826_v4  ;;  %v15011_v4 = vld [vmem:[#allocation42_spill] sm:$0xff]  ;;  %v11571_v37 = vpop.eup %10158 }
 0x2a7   : > { %v5365_v36 = vsub.f32 %v15011_v4, %v5339_v19  ;;  %v11577_v21 = vpop.eup %10160  ;;  %v3628_v49 = vsel %vm1762_vm4, %v11571_v37, 0.0 }
 0x2a8   : > { %3632 = vadd.xlane.f32.xlu0 %v3631_v26  ;;  %v3561_v58 = vpop.xlane.xlu0 %3560  ;;  %10164 = vpow2.f32 %v1857_v17  ;;  %v3598_v17 = vmul.f32 1.442695, %v3572_v5  ;;  %15013 = vst [vmem:[#allocation30_spill] sm:$0xff] %v11577_v21 }
 0x2a9   : > { %v3577_v2 = vsub.f32 %v11238_v61, %v3561_v58  ;;  %1878 = vadd.xlane.f32.xlu1 %v1877_v22  ;;  %10166 = vpow2.f32 %v5383_v0  ;;  %v5391_v19 = vmul.f32 1.442695, %v5365_v36  ;;  %v1892_v0 = vsel %vm1762_vm4, %v11567_v18, 0.0  ;;  %v11581_v58 = vpop.eup %10162 }
 0x2aa   : > { %15014 = vst [vmem:[#allocation32_spill] sm:$0xff] %v11581_v58 }
 0x2ab   : > { %v3608_v26 = vmul.f32 1.442695, %v3577_v2  ;;  %v3643_v2 = vsel %vm1762_vm4, %v11577_v21, 0.0 }
 0x2ac   : > { %3650 = vadd.xlane.f32.xlu0 %v3649_v55  ;;  %v3646_v55 = vsel %vm1762_vm4, %v11581_v58, 0.0 }
 0x2ad   : > { %v11573_v61 = vpop.xlane.xlu1 %5353  ;;  %1896 = vadd.xlane.f32.xlu1 %v1895_v24  ;;  %10168 = vpow2.f32 %v3608_v26  ;;  %v15016_v26 = vld [vmem:[#allocation33_spill] sm:$0xff] }
 0x2ae   : > { %10170 = vpow2.f32 %v1847_v14 }
 0x2af   : > { %10172 = vpow2.f32 %v5391_v19 }
 0x2b0   : > { %1893 = vadd.xlane.f32.xlu0 %v1892_v0  ;;  %10174 = vpow2.f32 %v3598_v17 }
 0x2b1   : > { %3629 = vadd.xlane.f32.xlu1 %v3628_v49  ;;  %v1807_v22 = vpop.xlane.xlu1 %1806 }
 0x2b2   : > { %v1825_v24 = vsub.f32 %v11257_v54, %v1807_v22  ;;  %v11586_v4 = vpop.eup %10164  ;;  %v5364_v54 = vsub.f32 %v15016_v26, %v11387_v56 }
 0x2b3   : > { %v11590_v14 = vpop.eup %10166  ;;  %v1904_v19 = vsel %vm1762_vm4, %v11586_v4, 0.0 }
 0x2b4   : > { %v1855_v36 = vmul.f32 1.442695, %v1825_v24  ;;  %3644 = vadd.xlane.f32.xlu0 %v3643_v2  ;;  %15015 = vst [vmem:[#allocation41_spill] sm:$0xff] %v11590_v14  ;;  %v5421_v49 = vsel %vm1762_vm4, %v11590_v14, 0.0  ;;  %v5389_v24 = vmul.f32 1.442695, %v5364_v54 }
 0x2b5   : > { %3647 = vadd.xlane.f32.xlu1 %v3646_v55  ;;  %v3558_v10 = vpop.xlane.xlu1 %3557 }
 0x2b6   : > { %v3576_v5 = vsub.f32 %v11271_v57, %v3558_v10  ;;  %10176 = vpow2.f32 %v1855_v36  ;;  %v15018_v57 = vld [vmem:[#allocation43_spill] sm:$0xff] }
 0x2b7   : > { %v11597_v17 = vpop.eup %10168  ;;  %v5366_v2 = vsub.f32 %v15018_v57, %v11526_v31  ;;  %v5351_v57 = vpop.xlane.xlu0 %5350 }
 0x2b8   : > { %15017 = vst [vmem:[#allocation39_spill] sm:$0xff] %v11597_v17  ;;  %v3606_v0 = vmul.f32 1.442695, %v3576_v5  ;;  %1905 = vadd.xlane.f32.xlu0 %v1904_v19  ;;  %v11601_v22 = vpop.eup %10170  ;;  %v3655_v56 = vsel %vm1762_vm4, %v11597_v17, 0.0 }
 0x2b9   : > { %5422 = vadd.xlane.f32.xlu1 %v5421_v49  ;;  %v11607_v36 = vpop.eup %10172  ;;  %v1889_v55 = vsel %vm1762_vm4, %v11601_v22, 0.0  ;;  %v5393_v5 = vmul.f32 1.442695, %v5366_v2 }
 0x2ba   : > { %10178 = vpow2.f32 %v3606_v0  ;;  %15019 = vst [vmem:[#allocation40_spill] sm:$0xff] %v11607_v36  ;;  %v11611_v10 = vpop.eup %10174  ;;  %v5433_v26 = vsel %vm1762_vm4, %v11607_v36, 0.0 }
 0x2bb   : > { %10180 = vpow2.f32 %v5389_v24  ;;  %v3640_v31 = vsel %vm1762_vm4, %v11611_v10, 0.0 }
 0x2bc   : > { %3656 = vadd.xlane.f32.xlu0 %v3655_v56  ;;  %10182 = vpow2.f32 %v5393_v5 }
 0x2bd   : > { %1890 = vadd.xlane.f32.xlu1 %v1889_v55  ;;  %v11631_v55 = vpop.xlane.xlu0 %7107 }
 0x2c0   : > { %5434 = vadd.xlane.f32.xlu0 %v5433_v26  ;;  %v11617_v54 = vpop.eup %10176 }
 0x2c1   : > { %3641 = vadd.xlane.f32.xlu1 %v3640_v31  ;;  %v1901_v19 = vsel %vm1762_vm4, %v11617_v54, 0.0  ;;  %v11635_v26 = vpop.xlane.xlu0 %7113  ;;  %v15023_v31 = vld [vmem:[#allocation6_spill] sm:$0xff] }
 0x2c4   : > { %v11621_v0 = vpop.eup %10178 }
 0x2c5   : > { %15020 = vst [vmem:[#allocation37_spill] sm:$0xff] %v11621_v0  ;;  %1902 = vadd.xlane.f32.xlu1 %v1901_v19  ;;  %v3652_v49 = vsel %vm1762_vm4, %v11621_v0, 0.0  ;;  %v11625_v24 = vpop.eup %10180  ;;  %v11639_v19 = vpop.xlane.xlu1 %7110 }
 0x2c6   : > { %15021 = vst [vmem:[#allocation42_spill] sm:$0xff] %v11625_v24  ;;  %v5430_v2 = vsel %vm1762_vm4, %v11625_v24, 0.0  ;;  %v11629_v56 = vpop.eup %10182  ;;  %v15024_v24 = vld [vmem:[#allocation38_spill] sm:$0xff] }
 0x2c7   : > { %15022 = vst [vmem:[#allocation44_spill] sm:$0xff] %v11629_v56  ;;  %v5436_v5 = vsel %vm1762_vm4, %v11629_v56, 0.0  ;;  %v5369_v56 = vsub.f32 %v11243_v32, %v5351_v57  ;;  %v5370_v57 = vsub.f32 %v11249_v6, %v11573_v61 }
 0x2c9   : > { %3653 = vadd.xlane.f32.xlu1 %v3652_v49  ;;  %v11641_v49 = vpop.xlane.xlu0 %7119  ;;  %v11643_v36 = vpop.xlane.xlu1 %7116  ;;  %v5399_v8 = vmul.f32 1.442695, %v5369_v56 }
 0x2cd   : > { %5431 = vadd.xlane.f32.xlu1 %v5430_v2  ;;  %v5367_v2 = vsub.f32 %v15024_v24, %v11488_v52  ;;  %v11647_v14 = vpop.xlane.xlu0 %7125  ;;  %v11652_v17 = vpop.xlane.xlu1 %7122  ;;  %v15028_v52 = vld [vmem:[#allocation36_spill] sm:$0xff] }
 0x2ce   : > { %v5368_v24 = vsub.f32 %v15028_v52, %v11438_v30  ;;  %v5401_v30 = vmul.f32 1.442695, %v5370_v57 }
 0x2d0   : > { %v5397_v32 = vmul.f32 1.442695, %v5368_v24 }
 0x2d1   : > { %5437 = vadd.xlane.f32.xlu1 %v5436_v5  ;;  %v5395_v5 = vmul.f32 1.442695, %v5367_v2  ;;  %v11654_v48 = vpop.xlane.xlu0 %7131 }
 0x2d3   : > { %10184 = vpow2.f32 %v5395_v5 }
 0x2d4   : > { %10186 = vpow2.f32 %v5399_v8 }
 0x2d5   : > { %v11658_v0 = vpop.xlane.xlu0 %7137  ;;  %10188 = vpow2.f32 %v5397_v32 }
 0x2d6   : > { %9985 = vrot.lane.b32.xlu0 %v15023_v31, %s10515_s21  ;;  %v11656_v31 = vpop.xlane.xlu1 %7128  ;;  %15027 = vst [vmem:[#allocation43_spill] sm:$0xff] %v11658_v0  ;;  %10190 = vpow2.f32 %v5401_v30 }
 0x2d7   : > { %15026 = vst [vmem:[#allocation33_spill] sm:$0xff] %v11656_v31 }
 0x2d9   : > { %v11666_v2 = vpop.xlane.xlu0 %7143 }
 0x2da   : > { %v11662_v21 = vpop.xlane.xlu1 %7134  ;;  %15031 = vst [vmem:[#allocation52_spill] sm:$0xff] %v11666_v2 }
 0x2db   : > { %15029 = vst [vmem:[#allocation38_spill] sm:$0xff] %v11662_v21 }
 0x2dd   : > { %v11678_v0 = vpop.permute.xlu0 %9975 }
 0x2de   : > { %v11674_v8 = vpop.xlane.xlu1 %7140 }
 0x2df   : > { %15033 = vst [vmem:[#allocation54_spill] sm:$0xff] %v11674_v8 }
 0x2e2   : > { %9990 = vrot.lane.b32.xlu1 %v15025_v9, %s10515_s21  ;;  %v11664_v9 = vpop.eup %10184  ;;  %v11680_v24 = vpop.xlane.xlu1 %7146 }
 0x2e3   : > { %15030 = vst [vmem:[#allocation36_spill] sm:$0xff] %v11664_v9  ;;  %v5439_v56 = vsel %vm1762_vm4, %v11664_v9, 0.0  ;;  %v11672_v5 = vpop.eup %10186  ;;  %15034 = vst [vmem:[#allocation55_spill] sm:$0xff] %v11680_v24 }
 0x2e4   : > { %15032 = vst [vmem:[#allocation53_spill] sm:$0xff] %v11672_v5  ;;  %v5445_v52 = vsel %vm1762_vm4, %v11672_v5, 0.0  ;;  %v11682_v2 = vpop.eup %10188 }
 0x2e5   : > { %15035 = vst [vmem:[#allocation56_spill] sm:$0xff] %v11682_v2  ;;  %v5442_v32 = vsel %vm1762_vm4, %v11682_v2, 0.0  ;;  %v11690_v57 = vpop.eup %10190  ;;  %v15038_v2 = vld [vmem:[#allocation8_spill] sm:$0xff] }
 0x2e6   : > { %v11684_v9 = vpop.permute.xlu1 %9980  ;;  %15036 = vst [vmem:[#allocation57_spill] sm:$0xff] %v11690_v57 }
 0x2f5   : > { %5440 = vadd.xlane.f32.xlu0 %v5439_v56 }
 0x2f9   : > { %5446 = vadd.xlane.f32.xlu0 %v5445_v52  ;;  %v5448_v52 = vsel %vm1762_vm4, %v11690_v57, 0.0  ;;  %v15040_v57 = vld [vmem:[#allocation22_spill] sm:$0xff] }
 0x2fd   : > { %v1864_v6 = vpop.xlane.xlu0 %1863 }
 0x2fe   : > { %10192 = vrcp.f32 %v1864_v6 }
 0x301   : > { %v1876_v61 = vpop.xlane.xlu0 %1875 }
 0x305   : > { %v11686_v56 = vpop.xlane.xlu0 %3614 }
 0x306   : > { %5443 = vadd.xlane.f32.xlu1 %v5442_v32  ;;  %v1861_v5 = vpop.xlane.xlu1 %1860 }
 0x307   : > { %10194 = vrcp.f32 %v1861_v5 }
 0x308   : > { %10196 = vrcp.f32 %v1876_v61  ;;  %v10193_v6 = vpop.eup %10192 }
 0x309   : > { %v11692_v30 = vpop.xlane.xlu0 %3626  ;;  %v1910_v61 = vmul.f32 %v10193_v6, %v11375_v34 }
 0x30a   : > { %5449 = vadd.xlane.f32.xlu1 %v5448_v52  ;;  %v1873_v24 = vpop.xlane.xlu1 %1872 }
 0x30b   : > { %10198 = vrcp.f32 %v1873_v24 }
 0x30d   : > { %v11696_v8 = vpop.xlane.xlu0 %5407 }
 0x30e   : > { %15037 = vst [vmem:[#allocation58_spill] sm:$0xff] %v11696_v8  ;;  %v11698_v21 = vpop.xlane.xlu1 %3611  ;;  %v7148_v8 = vsub.f32 %v15040_v57, %v11344_v7  ;;  %v15043_v57 = vld [vmem:[#allocation12_spill] sm:$0xff] }
 0x30f   : > { %9995 = vrot.lane.b32.xlu0 %v15038_v2, %s10515_s21  ;;  %v15041_v2 = vld [vmem:[#allocation4_spill] sm:$0xff] }
 0x311   : > { %v10195_v32 = vpop.eup %10194  ;;  %v11702_v42 = vpop.xlane.xlu0 %5419 }
 0x312   : > { %15039 = vst [vmem:[#allocation59_spill] sm:$0xff] %v11702_v42  ;;  %v11704_v5 = vpop.xlane.xlu1 %3623  ;;  %v1908_v31 = vmul.f32 %v10195_v32, %v11397_v41  ;;  %v10197_v52 = vpop.eup %10196  ;;  %v7164_v41 = vmul.f32 1.442695, %v7148_v8 }
 0x313   : > { %v1918_v34 = vmul.f32 %v10197_v52, %v11385_v12 }
 0x314   : > { %9519 = vmatprep.mubr.msk.f32.mxu0 %vm1762_vm4, %v1908_v31  ;;  %10200 = vpow2.f32 %v7164_v41 }
 0x315   : > { %v10199_v24 = vpop.eup %10198  ;;  %v1870_v58 = vpop.xlane.xlu0 %1869  ;;  %9520 = vmatmul.mubr.msk.f32.vlgmr.msra.gmra.mrb[14].mxu0 %vm1762_vm4, %v1910_v61 }
 0x316   : > { %9790 = vmatpush3.bf16.msra.mxu0 %v15041_v2  ;;  %v11713_v53 = vpop.xlane.xlu1 %5404  ;;  %v1916_v42 = vmul.f32 %v10199_v24, %v11411_v40  ;;  %v15044_v2 = vld [vmem:[#allocation14_spill] sm:$0xff]  ;;  %v7150_v40 = vsub.f32 %v11254_v11, %v11631_v55  ;;  %10202 = vrcp.f32 %v1870_v58  ;;  %v15047_v24 = vld [vmem:[#allocation27_spill] sm:$0xff] }
 0x317   : > { %9796 = vmatprep.subr.bf16.mxu0 %v15042_v51  ;;  %v7149_v58 = vsub.f32 %v15047_v24, %v11357_v23  ;;  %v9978_v23 = vunpack.i.h.bf16 %v11678_v0  ;;  %v9977_v24 = vunpack.i.l.bf16 %v11678_v0 }
 0x318   : > { %9533 = vmatprep.mubr.msk.f32.mxu0 %vm1762_vm4, %v1916_v42  ;;  %v7168_v8 = vmul.f32 1.442695, %v7150_v40 }
 0x319   : > { %v1888_v31 = vpop.xlane.xlu0 %1887  ;;  %9534 = vmatmul.mubr.msk.f32.vlgmr.msra.gmra.mrb[16].mxu0 %vm1762_vm4, %v1918_v34 }
 0x31a   : > { %9798 = vmatpush3.bf16.msra.mxu0 %v15042_v51  ;;  %v11721_v7 = vpop.xlane.xlu1 %5416 }
 0x31b   : > { %9804 = vmatprep.subr.bf16.mxu0 %v15043_v57  ;;  %10000 = vrot.lane.b32.xlu1 %v15044_v2, %s10515_s21  ;;  %v7166_v2 = vmul.f32 1.442695, %v7149_v58  ;;  %v15051_v58 = vld [vmem:[#allocation15_spill] sm:$0xff] }
 0x31d   : > { %v11728_v12 = vpop.xlane.xlu0 %3620 }
 0x31e   : > { %v1867_v42 = vpop.xlane.xlu1 %1866  ;;  %v11736_v52 = vpop.eup %10200 }
 0x31f   : > { %10204 = vrcp.f32 %v1867_v42  ;;  %15046 = vst [vmem:[#allocation4_spill] sm:$0xff] %v11736_v52 }
 0x320   : > { %10206 = vrcp.f32 %v1888_v31  ;;  %v10203_v11 = vpop.eup %10202 }
 0x321   : > { %v11730_v6 = vpop.xlane.xlu0 %3638  ;;  %v1914_v40 = vmul.f32 %v10203_v11, %v11450_v1  ;;  %v15050_v1 = vld [vmem:[#allocation10_spill] sm:$0xff] }
 0x322   : > { %v1885_v51 = vpop.xlane.xlu1 %1884 }
 0x323   : > { %10208 = vrcp.f32 %v1885_v51 }
 0x324   : > { %10210 = vpow2.f32 %v7168_v8  ;;  %v7196_v8 = vsel %vm1762_vm4, %v11736_v52, 0.0 }
 0x325   : > { %v11732_v32 = vpop.xlane.xlu0 %5413  ;;  %10212 = vpow2.f32 %v7166_v2 }
 0x326   : > { %15045 = vst [vmem:[#allocation22_spill] sm:$0xff] %v11732_v32  ;;  %v11734_v61 = vpop.xlane.xlu1 %3617  ;;  %v7151_v32 = vsub.f32 %v11285_v38, %v11639_v19 }
 0x328   : > { %v7170_v0 = vmul.f32 1.442695, %v7151_v32 }
 0x329   : > { %v10205_v55 = vpop.eup %10204  ;;  %v11740_v34 = vpop.xlane.xlu0 %5428 }
 0x32a   : > { %15048 = vst [vmem:[#allocation9_spill] sm:$0xff] %v11740_v34  ;;  %v11742_v41 = vpop.xlane.xlu1 %3635  ;;  %v1912_v31 = vmul.f32 %v10205_v55, %v11482_v63  ;;  %v10207_v42 = vpop.eup %10206  ;;  %10214 = vpow2.f32 %v7170_v0 }
 0x32b   : > { %v1926_v38 = vmul.f32 %v10207_v42, %v11464_v13 }
 0x32c   : > { %9526 = vmatprep.mubr.msk.f32.mxu1 %vm1762_vm4, %v1912_v31 }
 0x32d   : > { %v10209_v51 = vpop.eup %10208  ;;  %v1882_v34 = vpop.xlane.xlu0 %1881  ;;  %9527 = vmatmul.mubr.msk.f32.vlgmr.msra.gmra.mrb[18].mxu1 %vm1762_vm4, %v1914_v40  ;;  %v9811_v40 = vpack.c.bf16 %v9978_v23, %v9977_v24 }
 0x32e   : > { %v11754_v63 = vpop.eup %10210  ;;  %9794 = vmatpush3.bf16.msra.mxu1 %v15050_v1  ;;  %7197 = vadd.xlane.f32.xlu0 %v7196_v8  ;;  %v11757_v11 = vpop.xlane.xlu1 %5410  ;;  %v1924_v55 = vmul.f32 %v10209_v51, %v11496_v62  ;;  %10216 = vrcp.f32 %v1882_v34 }
 0x32f   : > { %15049 = vst [vmem:[#allocation12_spill] sm:$0xff] %v11754_v63  ;;  %9800 = vmatprep.subr.bf16.mxu1 %v15051_v58  ;;  %v7202_v31 = vsel %vm1762_vm4, %v11754_v63, 0.0  ;;  %v11774_v42 = vpop.eup %10212 }
 0x330   : > { %9547 = vmatprep.mubr.msk.f32.mxu0 %vm1762_vm4, %v1924_v55  ;;  %15052 = vst [vmem:[#allocation27_spill] sm:$0xff] %v11774_v42  ;;  %v7199_v23 = vsel %vm1762_vm4, %v11774_v42, 0.0 }
 0x331   : > { %v1900_v19 = vpop.xlane.xlu0 %1899  ;;  %9548 = vmatmul.mubr.msk.f32.vlgmr.msra.gmra.mrb[18].mxu0 %vm1762_vm4, %v1926_v38 }
 0x332   : > { %9806 = vmatpush3.bf16.msra.mxu0 %v15043_v57  ;;  %7203 = vadd.xlane.f32.xlu0 %v7202_v31  ;;  %v11767_v8 = vpop.xlane.xlu1 %5425 }
 0x333   : > { %9812 = vmatprep.subr.bf16.mxu0 %v9811_v40 }
 0x334   : > { %v11781_v34 = vpop.eup %10214 }
 0x335   : > { %v11769_v62 = vpop.xlane.xlu0 %3632  ;;  %15053 = vst [vmem:[#allocation10_spill] sm:$0xff] %v11781_v34  ;;  %v7205_v38 = vsel %vm1762_vm4, %v11781_v34, 0.0  ;;  %v15054_v34 = vld [vmem:[#allocation16_spill] sm:$0xff] }
 0x336   : > { %v1879_v13 = vpop.xlane.xlu1 %1878 }
 0x337   : > { %10218 = vrcp.f32 %v1879_v13 }
 0x338   : > { %10220 = vrcp.f32 %v11698_v21  ;;  %v10217_v21 = vpop.eup %10216 }
 0x339   : > { %v11772_v2 = vpop.xlane.xlu0 %3650  ;;  %10222 = vrcp.f32 %v1900_v19  ;;  %v1922_v19 = vmul.f32 %v10217_v21, %v11524_v59  ;;  %v15055_v59 = vld [vmem:[#allocation13_spill] sm:$0xff] }
 0x33a   : > { %v1897_v32 = vpop.xlane.xlu1 %1896 }
 0x33b   : > { %10224 = vrcp.f32 %v1897_v32 }
 0x33c   : > { %10226 = vrcp.f32 %v11686_v56 }
 0x33d   : > { %v1894_v57 = vpop.xlane.xlu0 %1893  ;;  %10228 = vrcp.f32 %v11704_v5 }
 0x33e   : > { %v11777_v51 = vpop.xlane.xlu1 %3629  ;;  %10230 = vrcp.f32 %v11692_v30 }
 0x33f   : > { %7200 = vadd.xlane.f32.xlu1 %v7199_v23  ;;  %10232 = vrcp.f32 %v1894_v57 }
 0x341   : > { %v10219_v24 = vpop.eup %10218  ;;  %v11784_v1 = vpop.xlane.xlu0 %3644 }
 0x342   : > { %v11786_v55 = vpop.xlane.xlu1 %3647  ;;  %v1920_v56 = vmul.f32 %v10219_v24, %v11551_v33  ;;  %v10221_v0 = vpop.eup %10220 }
 0x343   : > { %7206 = vadd.xlane.f32.xlu1 %v7205_v38  ;;  %v10223_v31 = vpop.eup %10222  ;;  %v3659_v21 = vmul.f32 %v10221_v0, %v11427_v20 }
 0x344   : > { %9540 = vmatprep.mubr.msk.f32.mxu1 %vm1762_vm4, %v1920_v56  ;;  %v1934_v33 = vmul.f32 %v10223_v31, %v11536_v28 }
 0x345   : > { %v10225_v5 = vpop.eup %10224  ;;  %v1906_v13 = vpop.xlane.xlu0 %1905  ;;  %9541 = vmatmul.mubr.msk.f32.vlgmr.msra.gmra.mrb[20].mxu1 %vm1762_vm4, %v1922_v19 }
 0x346   : > { %9802 = vmatpush3.bf16.msra.mxu1 %v15051_v58  ;;  %v11795_v32 = vpop.xlane.xlu1 %5422  ;;  %v1932_v23 = vmul.f32 %v10225_v5, %v11560_v25  ;;  %v10227_v24 = vpop.eup %10226  ;;  %v15056_v5 = vld [vmem:[#allocation17_spill] sm:$0xff] }
 0x347   : > { %9808 = vmatprep.subr.bf16.mxu1 %v15054_v34  ;;  %v10229_v38 = vpop.eup %10228  ;;  %v3661_v25 = vmul.f32 %v10227_v24, %v11395_v3 }
 0x348   : > { %10005 = vrot.lane.b32.xlu0 %v15055_v59, %s10515_s21  ;;  %9561 = vmatprep.mubr.msk.f32.mxu0 %vm1762_vm4, %v1932_v23  ;;  %v3667_v56 = vmul.f32 %v10229_v38, %v11442_v46  ;;  %v7154_v46 = vsub.f32 %v11282_v16, %v11641_v49 }
 0x349   : > { %v11805_v58 = vpop.xlane.xlu0 %3656  ;;  %9562 = vmatmul.mubr.msk.f32.vlgmr.msra.gmra.mrb[20].mxu0 %vm1762_vm4, %v1934_v33 }
 0x34a   : > { %9814 = vmatpush3.bf16.msra.mxu0 %v9811_v40  ;;  %9575 = vmatprep.mubr.msk.f32.mxu0 %vm1762_vm4, %v3659_v21  ;;  %v1891_v28 = vpop.xlane.xlu1 %1890  ;;  %v7152_v40 = vsub.f32 %v11268_v47, %v11635_v26  ;;  %v9983_v47 = vunpack.i.h.bf16 %v11684_v9  ;;  %v9982_v26 = vunpack.i.l.bf16 %v11684_v9  ;;  %v7176_v49 = vmul.f32 1.442695, %v7154_v46 }
 0x34b   : > { %10234 = vrcp.f32 %v1891_v28 }
 0x34c   : > { %10236 = vrcp.f32 %v11742_v41  ;;  %v10231_v41 = vpop.eup %10230  ;;  %v7172_v24 = vmul.f32 1.442695, %v7152_v40  ;;  %v9815_v9 = vpack.c.bf16 %v9983_v47, %v9982_v26  ;;  %v7156_v26 = vsub.f32 %v11294_v50, %v11647_v14  ;;  %v15063_v50 = vld [vmem:[#allocation32_spill] sm:$0xff] }
 0x34d   : > { %v11812_v20 = vpop.xlane.xlu0 %5434  ;;  %9576 = vmatmul.mubr.msk.f32.vlgmr.msra.gmra.mrb[22].mxu0 %vm1762_vm4, %v3661_v25  ;;  %10238 = vrcp.f32 %v11734_v61  ;;  %v10233_v31 = vpop.eup %10232  ;;  %v3669_v38 = vmul.f32 %v10231_v41, %v11405_v39 }
 0x34e   : > { %9589 = vmatprep.mubr.msk.f32.mxu0 %vm1762_vm4, %v3667_v56  ;;  %v3642_v30 = vpop.xlane.xlu1 %3641  ;;  %10240 = vrcp.f32 %v1906_v13  ;;  %v1930_v21 = vmul.f32 %v10233_v31, %v11567_v18 }
 0x351   : > { %v9986_v57 = vpop.permute.xlu0 %9985 }
 0x352   : > { %v9988_v0 = vunpack.i.h.bf16 %v9986_v57  ;;  %v9987_v3 = vunpack.i.l.bf16 %v9986_v57  ;;  %v1903_v19 = vpop.xlane.xlu1 %1902  ;;  %v7153_v57 = vsub.f32 %v11297_v35, %v11643_v36  ;;  %v7155_v35 = vsub.f32 %v11310_v29, %v11652_v17 }
 0x353   : > { %10242 = vrcp.f32 %v1903_v19 }
 0x354   : > { %10010 = vrot.lane.b32.xlu1 %v15056_v5, %s10515_s21  ;;  %v9819_v23 = vpack.c.bf16 %v9988_v0, %v9987_v3  ;;  %10244 = vrcp.f32 %v11728_v12  ;;  %v7174_v46 = vmul.f32 1.442695, %v7153_v57 }
 0x355   : > { %v10235_v33 = vpop.eup %10234  ;;  %10246 = vrcp.f32 %v11777_v51 }
 0x356   : > { %v10237_v61 = vpop.eup %10236  ;;  %9820 = vmatprep.subr.bf16.mxu0 %v9819_v23  ;;  %v11826_v13 = vpop.xlane.xlu1 %3653  ;;  %v1928_v16 = vmul.f32 %v10235_v33, %v11601_v22  ;;  %10248 = vpow2.f32 %v7172_v24 }
 0x357   : > { %9822 = vmatpush3.bf16.msra.mxu0 %v9819_v23  ;;  %v3675_v12 = vmul.f32 %v10237_v61, %v11518_v44  ;;  %v10239_v51 = vpop.eup %10238  ;;  %10250 = vpow2.f32 %v7176_v49 }
 0x358   : > { %9554 = vmatprep.mubr.msk.f32.mxu1 %vm1762_vm4, %v1928_v16  ;;  %v10241_v18 = vpop.eup %10240  ;;  %10252 = vrcp.f32 %v11769_v62  ;;  %v3663_v56 = vmul.f32 %v10239_v51, %v11507_v45  ;;  %v7180_v51 = vmul.f32 1.442695, %v7156_v26 }
 0x359   : > { %9555 = vmatmul.mubr.msk.f32.vlgmr.msra.gmra.mrb[22].mxu1 %vm1762_vm4, %v1930_v21  ;;  %10254 = vrcp.f32 %v3642_v30  ;;  %v7158_v21 = vsub.f32 %v11307_v60, %v11654_v48  ;;  %v15064_v48 = vld [vmem:[#allocation33_spill] sm:$0xff] }
 0x35a   : > { %9810 = vmatpush3.bf16.msra.mxu1 %v15054_v34  ;;  %9590 = vmatmul.mubr.msk.f32.vlgmr.msra.gmra.mrb[24].mxu0 %vm1762_vm4, %v3669_v38  ;;  %v11837_v22 = vpop.xlane.xlu1 %5431  ;;  %v1938_v34 = vmul.f32 %v10241_v18, %v11586_v4  ;;  %10256 = vpow2.f32 %v7174_v46  ;;  %v15061_v38 = vld [vmem:[#allocation7_spill] sm:$0xff]  ;;  %v15062_v18 = vld [vmem:[#allocation24_spill] sm:$0xff] }
 0x35b   : > { %9816 = vmatprep.subr.bf16.mxu1 %v9815_v9  ;;  %9603 = vmatprep.mubr.msk.f32.mxu0 %vm1762_vm4, %v3675_v12 }
 0x35d   : > { %v10243_v39 = vpop.eup %10242 }
 0x35e   : > { %v11841_v28 = vpop.xlane.xlu1 %5437  ;;  %v1936_v44 = vmul.f32 %v10243_v39, %v11617_v54  ;;  %v10245_v25 = vpop.eup %10244 }
 0x35f   : > { %v10247_v40 = vpop.eup %10246  ;;  %v3665_v4 = vmul.f32 %v10245_v25, %v11478_v27  ;;  %v7178_v27 = vmul.f32 1.442695, %v7155_v35  ;;  %v15070_v35 = vld [vmem:[#allocation30_spill] sm:$0xff] }
 0x360   : > { %9568 = vmatprep.mubr.msk.f32.mxu1 %vm1762_vm4, %v1936_v44  ;;  %v11851_v30 = vpop.eup %10248  ;;  %v3671_v3 = vmul.f32 %v10247_v40, %v11571_v37 }
 0x361   : > { %9569 = vmatmul.mubr.msk.f32.vlgmr.msra.gmra.mrb[24].mxu1 %vm1762_vm4, %v1938_v34  ;;  %15057 = vst [vmem:[#allocation15_spill] sm:$0xff] %v11851_v30  ;;  %v11855_v19 = vpop.eup %10250  ;;  %v7208_v36 = vsel %vm1762_vm4, %v11851_v30, 0.0  ;;  %10258 = vpow2.f32 %v7178_v27  ;;  %v15065_v34 = vld [vmem:[#allocation46_spill] sm:$0xff]  ;;  %v15071_v27 = vld [vmem:[#allocation37_spill] sm:$0xff] }
 0x362   : > { %9818 = vmatpush3.bf16.msra.mxu1 %v9815_v9  ;;  %9582 = vmatprep.mubr.msk.f32.mxu1 %vm1762_vm4, %v3663_v56  ;;  %v9991_v62 = vpop.permute.xlu1 %9990  ;;  %15058 = vst [vmem:[#allocation16_spill] sm:$0xff] %v11855_v19  ;;  %v10253_v41 = vpop.eup %10252  ;;  %v7214_v23 = vsel %vm1762_vm4, %v11855_v19, 0.0  ;;  %10260 = vrcp.f32 %v11730_v6  ;;  %v7157_v25 = vsub.f32 %v15065_v34, %v15064_v48 }
 0x363   : > { %v9993_v54 = vunpack.i.h.bf16 %v9991_v62  ;;  %v9992_v0 = vunpack.i.l.bf16 %v9991_v62  ;;  %v10255_v31 = vpop.eup %10254  ;;  %v3673_v37 = vmul.f32 %v10253_v41, %v11546_v15  ;;  %10262 = vrcp.f32 %v11786_v55  ;;  %v15069_v41 = vld [vmem:[#allocation48_spill] sm:$0xff] }
 0x364   : > { %v3679_v33 = vmul.f32 %v10255_v31, %v11611_v10  ;;  %v11869_v29 = vpop.eup %10256  ;;  %v7184_v55 = vmul.f32 1.442695, %v7158_v21  ;;  %10264 = vpow2.f32 %v7180_v51  ;;  %v15077_v51 = vld [vmem:[#allocation11_spill] sm:$0xff] }
 0x365   : > { %9583 = vmatmul.mubr.msk.f32.vlgmr.msra.gmra.mrb[26].mxu1 %vm1762_vm4, %v3665_v4  ;;  %v9823_v45 = vpack.c.bf16 %v9993_v54, %v9992_v0  ;;  %15059 = vst [vmem:[#allocation13_spill] sm:$0xff] %v11869_v29  ;;  %v7211_v17 = vsel %vm1762_vm4, %v11869_v29, 0.0 }
 0x366   : > { %9596 = vmatprep.mubr.msk.f32.mxu1 %vm1762_vm4, %v3671_v3  ;;  %10266 = vpow2.f32 %v7184_v55  ;;  %v7182_v3 = vmul.f32 1.442695, %v7157_v25 }
 0x367   : > { %7209 = vadd.xlane.f32.xlu0 %v7208_v36  ;;  %9824 = vmatprep.subr.bf16.mxu1 %v9823_v45  ;;  %10268 = vrcp.f32 %v11784_v1 }
 0x368   : > { %9826 = vmatpush3.bf16.msra.mxu1 %v9823_v45  ;;  %10270 = vrcp.f32 %v11826_v13  ;;  %v15068_v45 = vld [vmem:[#allocation38_spill] sm:$0xff] }
 0x369   : > { %v7159_v1 = vsub.f32 %v15069_v41, %v15068_v45  ;;  %10272 = vpow2.f32 %v7182_v3  ;;  %v15083_v45 = vld [vmem:[#allocation28_spill] sm:$0xff] }
 0x36b   : > { %7215 = vadd.xlane.f32.xlu0 %v7214_v23  ;;  %9597 = vmatmul.mubr.msk.f32.vlgmr.msra.gmra.mrb[28].mxu1 %vm1762_vm4, %v3673_v37  ;;  %v11873_v24 = vpop.eup %10258  ;;  %v7186_v31 = vmul.f32 1.442695, %v7159_v1 }
 0x36c   : > { %9610 = vmatprep.mubr.msk.f32.mxu1 %vm1762_vm4, %v3679_v33  ;;  %15060 = vst [vmem:[#allocation17_spill] sm:$0xff] %v11873_v24  ;;  %v7217_v15 = vsel %vm1762_vm4, %v11873_v24, 0.0  ;;  %v10261_v12 = vpop.eup %10260 }
 0x36d   : > { %v10263_v6 = vpop.eup %10262  ;;  %v3677_v39 = vmul.f32 %v10261_v12, %v15062_v18  ;;  %10274 = vpow2.f32 %v7186_v31 }
 0x36e   : > { %v3683_v14 = vmul.f32 %v10263_v6, %v15063_v50  ;;  %v11903_v40 = vpop.eup %10264  ;;  %10276 = vrcp.f32 %v11772_v2 }
 0x36f   : > { %15066 = vst [vmem:[#allocation7_spill] sm:$0xff] %v11903_v40  ;;  %v7220_v13 = vsel %vm1762_vm4, %v11903_v40, 0.0  ;;  %10278 = vrcp.f32 %v11713_v53 }
 0x370   : > { %v11905_v54 = vpop.eup %10266  ;;  %10280 = vrcp.f32 %v11805_v58 }
 0x371   : > { %15067 = vst [vmem:[#allocation24_spill] sm:$0xff] %v11905_v54  ;;  %v10269_v4 = vpop.eup %10268  ;;  %v7226_v37 = vsel %vm1762_vm4, %v11905_v54, 0.0  ;;  %10282 = vrcp.f32 %v11757_v11  ;;  %v15094_v54 = vld [vmem:[#allocation59_spill] sm:$0xff] }
 0x372   : > { %v10271_v46 = vpop.eup %10270  ;;  %v3681_v36 = vmul.f32 %v10269_v4, %v15070_v35  ;;  %v15082_v4 = vld [vmem:[#allocation39_spill] sm:$0xff] }
 0x373   : > { %v3687_v23 = vmul.f32 %v10271_v46, %v15071_v27  ;;  %v11917_v33 = vpop.eup %10272  ;;  %v15085_v27 = vld [vmem:[#allocation58_spill] sm:$0xff] }
 0x374   : > { %15072 = vst [vmem:[#allocation32_spill] sm:$0xff] %v11917_v33 }
 0x378   : > { %7212 = vadd.xlane.f32.xlu1 %v7211_v17  ;;  %v7223_v17 = vsel %vm1762_vm4, %v11917_v33, 0.0 }
 0x37c   : > { %7218 = vadd.xlane.f32.xlu1 %v7217_v15  ;;  %v11921_v15 = vpop.eup %10274 }
 0x37d   : > { %15073 = vst [vmem:[#allocation33_spill] sm:$0xff] %v11921_v15  ;;  %v7229_v26 = vsel %vm1762_vm4, %v11921_v15, 0.0  ;;  %v10277_v55 = vpop.eup %10276 }
 0x37e   : > { %v10279_v18 = vpop.eup %10278 }
 0x381   : > { %10015 = vrot.lane.b32.xlu0 %v10679_v43, %s10516_s22 }
 0x382   : > { %v11879_v10 = vpop.xlane.xlu0 %5440 }
 0x386   : > { %v11883_v47 = vpop.xlane.xlu0 %5446 }
 0x38a   : > { %v9996_v61 = vpop.permute.xlu0 %9995 }
 0x38b   : > { %v9998_v16 = vunpack.i.h.bf16 %v9996_v61  ;;  %v9997_v49 = vunpack.i.l.bf16 %v9996_v61  ;;  %v15074_v61 = vld [vmem:[#allocation6_spill] sm:$0xff] }
 0x38d   : > { %10020 = vrot.lane.b32.xlu1 %v15061_v38, %s10516_s22  ;;  %v9827_v9 = vpack.c.bf16 %v9998_v16, %v9997_v49 }
 0x38f   : > { %9828 = vmatprep.subr.bf16.mxu0 %v9827_v9 }
 0x390   : > { %9830 = vmatpush3.bf16.msra.mxu0 %v9827_v9 }
 0x393   : > { %9604 = vmatmul.mubr.msk.f32.vlgmr.msra.gmra.mrb[26].mxu0 %vm1762_vm4, %v3677_v39  ;;  %v11894_v44 = vpop.xlane.xlu1 %5443  ;;  %v15078_v39 = vld [vmem:[#allocation29_spill] sm:$0xff] }
 0x394   : > { %9617 = vmatprep.mubr.msk.f32.mxu0 %vm1762_vm4, %v3683_v14  ;;  %v3685_v50 = vmul.f32 %v10277_v55, %v15078_v39  ;;  %v15079_v14 = vld [vmem:[#allocation34_spill] sm:$0xff] }
 0x395   : > { %v5452_v48 = vmul.f32 %v10279_v18, %v15079_v14  ;;  %v11968_v55 = vld [vmem:[%s14810_s3] sm:$0xff]  ;;  %v11974_v39 = vld [vmem:[%s14810_s3 + $0x18] sm:$0xff] }
 0x397   : > { %v11899_v60 = vpop.xlane.xlu1 %5449 }
 0x39b   : > { %v10001_v56 = vpop.permute.xlu1 %10000 }
 0x39c   : > { %v10003_v57 = vunpack.i.h.bf16 %v10001_v56  ;;  %v10002_v62 = vunpack.i.l.bf16 %v10001_v56 }
 0x39e   : > { %v9831_v0 = vpack.c.bf16 %v10003_v57, %v10002_v62  ;;  %v10281_v62 = vpop.eup %10280 }
 0x39f   : > { %v3689_v3 = vmul.f32 %v10281_v62, %v15082_v4 }
 0x3a0   : > { %7221 = vadd.xlane.f32.xlu0 %v7220_v13  ;;  %9832 = vmatprep.subr.bf16.mxu1 %v9831_v0 }
 0x3a1   : > { %9834 = vmatpush3.bf16.msra.mxu1 %v9831_v0  ;;  %v10283_v0 = vpop.eup %10282 }
 0x3a2   : > { %v5456_v41 = vmul.f32 %v10283_v0, %v15083_v45 }
 0x3a4   : > { %7227 = vadd.xlane.f32.xlu0 %v7226_v37  ;;  %9611 = vmatmul.mubr.msk.f32.vlgmr.msra.gmra.mrb[30].mxu1 %vm1762_vm4, %v3681_v36 }
 0x3a5   : > { %9624 = vmatprep.mubr.msk.f32.mxu1 %vm1762_vm4, %v3687_v23 }
 0x3b1   : > { %7224 = vadd.xlane.f32.xlu1 %v7223_v17 }
 0x3b5   : > { %7230 = vadd.xlane.f32.xlu1 %v7229_v26 }
 0x3ba   : > { %10025 = vrot.lane.b32.xlu0 %v15074_v61, %s10516_s22 }
 0x3bb   : > { %v11927_v16 = vpop.xlane.xlu0 %7197 }
 0x3bc   : > { %15075 = vst [vmem:[#allocation46_spill] sm:$0xff] %v11927_v16 }
 0x3bf   : > { %v11931_v49 = vpop.xlane.xlu0 %7203 }
 0x3c0   : > { %15076 = vst [vmem:[#allocation38_spill] sm:$0xff] %v11931_v49 }
 0x3c3   : > { %v10006_v21 = vpop.permute.xlu0 %10005 }
 0x3c4   : > { %v10008_v9 = vunpack.i.h.bf16 %v10006_v21  ;;  %v10007_v12 = vunpack.i.l.bf16 %v10006_v21 }
 0x3c6   : > { %10030 = vrot.lane.b32.xlu1 %v15077_v51, %s10516_s22  ;;  %v9835_v6 = vpack.c.bf16 %v10008_v9, %v10007_v12  ;;  %v11963_v12 = vld [vmem:[%s14810_s3 + $0x8] sm:$0xff] }
 0x3c8   : > { %9836 = vmatprep.subr.bf16.mxu0 %v9835_v6 }
 0x3c9   : > { %9838 = vmatpush3.bf16.msra.mxu0 %v9835_v6 }
 0x3cc   : > { %9618 = vmatmul.mubr.msk.f32.vlgmr.msra.gmra.mrb[28].mxu0 %vm1762_vm4, %v3685_v50  ;;  %v11938_v53 = vpop.xlane.xlu1 %7200 }
 0x3cd   : > { %15080 = vst [vmem:[#allocation48_spill] sm:$0xff] %v11938_v53  ;;  %9631 = vmatprep.mubr.msk.f32.mxu0 %vm1762_vm4, %v5452_v48  ;;  %v11980_v48 = vld [vmem:[%s14810_s3 + $0x10] sm:$0xff] }
 0x3d0   : > { %v11943_v2 = vpop.xlane.xlu1 %7206 }
 0x3d1   : > { %15081 = vst [vmem:[#allocation30_spill] sm:$0xff] %v11943_v2 }
 0x3d4   : > { %v10011_v34 = vpop.permute.xlu1 %10010 }
 0x3d5   : > { %v10013_v25 = vunpack.i.h.bf16 %v10011_v34  ;;  %v10012_v56 = vunpack.i.l.bf16 %v10011_v34 }
 0x3d7   : > { %v9839_v57 = vpack.c.bf16 %v10013_v25, %v10012_v56 }
 0x3d9   : > { %9840 = vmatprep.subr.bf16.mxu1 %v9839_v57 }
 0x3da   : > { %9842 = vmatpush3.bf16.msra.mxu1 %v9839_v57 }
 0x3dd   : > { %9625 = vmatmul.mubr.msk.f32.vlgmr.msra.gmra.mrb[32].mxu1 %vm1762_vm4, %v3689_v3 }
 0x3de   : > { %9638 = vmatprep.mubr.msk.f32.mxu1 %vm1762_vm4, %v5456_v41 }
 0x3e8   : > { %v9521_v58 = vpop.f32.mrb[14].mxu0 }
 0x3e9   : > { %v2604_v11 = vmin.f32 %v9521_v58, 0.0  ;;  %v2011_v1 = vpop.f32.mrb[15].mxu0  ;;  %vm2588_vm12 = vcmp.gt.f32.partialorder %v9521_v58, 0.0 }
 0x3ea   : > { %v2603_v13 = vmin.f32 %v2011_v1, 0.0  ;;  %vm2587_vm13 = vcmp.gt.f32.partialorder %v2011_v1, 0.0 }
 0x3eb   : > { %v2621_v46 = vmul.f32 1.442695, %v2604_v11 }
 0x3ec   : > { %v2619_v35 = vmul.f32 1.442695, %v2603_v13  ;;  %v11949_v36 = vpop.f32.mrb[16].mxu0 }
 0x3ed   : > { %10284 = vpow2.f32 %v2621_v46  ;;  %v11951_v31 = vpop.f32.mrb[17].mxu0  ;;  %v2608_v21 = vmin.f32 %v11949_v36, 0.0  ;;  %vm2592_vm14 = vcmp.gt.f32.partialorder %v11949_v36, 0.0 }
 0x3ee   : > { %10286 = vpow2.f32 %v2619_v35  ;;  %vm2591_vm1 = vcmp.gt.f32.partialorder %v11951_v31, 0.0 }
 0x3ef   : > { %10288 = vrcp.f32 %v15085_v27  ;;  %v2629_v34 = vmul.f32 1.442695, %v2608_v21 }
 0x3f0   : > { %10290 = vrcp.f32 %v11721_v7  ;;  %v2607_v7 = vmin.f32 %v11951_v31, 0.0 }
 0x3f1   : > { %10292 = vpow2.f32 %v2629_v34 }
 0x3f2   : > { %v2627_v3 = vmul.f32 1.442695, %v2607_v7 }
 0x3f4   : > { %v11953_v37 = vpop.xlane.xlu0 %7209  ;;  %10294 = vpow2.f32 %v2627_v3 }
 0x3f5   : > { %15084 = vst [vmem:[#allocation37_spill] sm:$0xff] %v11953_v37 }
 0x3f7   : > { %v10285_v23 = vpop.eup %10284 }
 0x3f8   : > { %v10287_v17 = vpop.eup %10286  ;;  %v9094_v26 = vadd.f32 -1.0, %v10285_v23  ;;  %v11958_v9 = vpop.xlane.xlu0 %7215 }
 0x3f9   : > { %15086 = vst [vmem:[#allocation6_spill] sm:$0xff] %v11958_v9  ;;  %v9093_v6 = vadd.f32 -1.0, %v10287_v17  ;;  %v10289_v13 = vpop.eup %10288 }
 0x3fa   : > { %v2668_v18 = vsel %vm2588_vm12, %v9521_v58, %v9094_v26  ;;  %v11990_v58 = vld [vmem:[%s14810_s3 + $0x28] sm:$0xff]  ;;  %v10291_v35 = vpop.eup %10290 }
 0x3fb   : > { %v2667_v50 = vsel %vm2587_vm13, %v2011_v1, %v9093_v6  ;;  %v2692_v14 = vmul.f32 %v11963_v12, %v2668_v18  ;;  %v2708_v4 = vmul.f32 %v11974_v39, %v2668_v18  ;;  %v11995_v1 = vld [vmem:[%s14810_s3 + $0x20] sm:$0xff]  ;;  %v2724_v26 = vmul.f32 %v11990_v58, %v2668_v18 }
 0x3fc   : > { %v10016_v25 = vpop.permute.xlu0 %10015  ;;  %v2691_v56 = vmul.f32 %v11968_v55, %v2667_v50  ;;  %v2707_v41 = vmul.f32 %v11980_v48, %v2667_v50  ;;  %v2723_v7 = vmul.f32 %v11995_v1, %v2667_v50 }
 0x3fd   : > { %v10018_v57 = vunpack.i.h.bf16 %v10016_v25  ;;  %v10017_v62 = vunpack.i.l.bf16 %v10016_v25  ;;  %v2758_v0 = vsel %vm373_vm0, %v2692_v14, 0.0  ;;  %v2806_v17 = vsel %vm373_vm0, %v2708_v4, 0.0  ;;  %v12004_v14 = vld [vmem:[%s14810_s3 + $0x38] sm:$0xff]  ;;  %v15087_v25 = vld [vmem:[#allocation51_spill] sm:$0xff] }
 0x3fe   : > { %2759 = vadd.xlane.f32.xlu0 %v2758_v0  ;;  %v2755_v45 = vsel %vm373_vm0, %v2691_v56, 0.0  ;;  %v2803_v6 = vsel %vm373_vm0, %v2707_v41, 0.0  ;;  %v5454_v56 = vmul.f32 %v10289_v13, %v15087_v25  ;;  %v15088_v4 = vld [vmem:[#allocation31_spill] sm:$0xff]  ;;  %v2740_v13 = vmul.f32 %v12004_v14, %v2668_v18 }
 0x3ff   : > { %2756 = vadd.xlane.f32.xlu1 %v2755_v45  ;;  %v9843_v11 = vpack.c.bf16 %v10018_v57, %v10017_v62  ;;  %v12010_v57 = vld [vmem:[%s14810_s3 + $0x30] sm:$0xff]  ;;  %v5460_v3 = vmul.f32 %v10291_v35, %v15088_v4  ;;  %v15090_v35 = vld [vmem:[#allocation22_spill] sm:$0xff] }
 0x400   : > { %v9528_v46 = vpop.f32.mrb[18].mxu1 }
 0x401   : > { %v2606_v27 = vmin.f32 %v9528_v46, 0.0  ;;  %v2092_v23 = vpop.f32.mrb[19].mxu1  ;;  %9844 = vmatprep.subr.bf16.mxu0 %v9843_v11  ;;  %vm2590_vm15 = vcmp.gt.f32.partialorder %v9528_v46, 0.0 }
 0x402   : > { %v2605_v21 = vmin.f32 %v2092_v23, 0.0  ;;  %2807 = vadd.xlane.f32.xlu0 %v2806_v17  ;;  %9846 = vmatpush3.bf16.msra.mxu0 %v9843_v11  ;;  %v2854_v11 = vsel %vm373_vm0, %v2724_v26, 0.0  ;;  %v2739_v17 = vmul.f32 %v12010_v57, %v2667_v50  ;;  %v10293_v26 = vpop.eup %10292  ;;  %vm2589_vm2 = vcmp.gt.f32.partialorder %v2092_v23, 0.0 }
 0x403   : > { %v2625_v34 = vmul.f32 1.442695, %v2606_v27  ;;  %2804 = vadd.xlane.f32.xlu1 %v2803_v6  ;;  %v2851_v27 = vsel %vm373_vm0, %v2723_v7, 0.0  ;;  %v2902_v6 = vsel %vm373_vm0, %v2740_v13, 0.0 }
 0x404   : > { %v2623_v62 = vmul.f32 1.442695, %v2605_v21  ;;  %v12012_v0 = vpop.f32.mrb[18].mxu0  ;;  %v2899_v18 = vsel %vm373_vm0, %v2739_v17, 0.0 }
 0x405   : > { %10296 = vpow2.f32 %v2625_v34  ;;  %v12015_v45 = vpop.f32.mrb[19].mxu0  ;;  %9632 = vmatmul.mubr.msk.f32.vlgmr.msra.gmra.mrb[30].mxu0 %vm1762_vm4, %v5454_v56  ;;  %v12018_v41 = vpop.xlane.xlu1 %7212  ;;  %v9098_v56 = vadd.f32 -1.0, %v10293_v26  ;;  %vm2596_vm6 = vcmp.gt.f32.partialorder %v12012_v0, 0.0 }
 0x406   : > { %15089 = vst [vmem:[#allocation11_spill] sm:$0xff] %v12018_v41  ;;  %10298 = vpow2.f32 %v2623_v62  ;;  %2855 = vadd.xlane.f32.xlu0 %v2854_v11  ;;  %9645 = vmatprep.mubr.msk.f32.mxu0 %vm1762_vm4, %v5460_v3  ;;  %v10295_v34 = vpop.eup %10294  ;;  %vm2595_vm7 = vcmp.gt.f32.partialorder %v12015_v45, 0.0 }
 0x407   : > { %10300 = vrcp.f32 %v15090_v35  ;;  %2852 = vadd.xlane.f32.xlu1 %v2851_v27  ;;  %v9097_v4 = vadd.f32 -1.0, %v10295_v34  ;;  %v12033_v17 = vsel %vm2592_vm14, %v11949_v36, %v9098_v56 }
 0x408   : > { %10302 = vrcp.f32 %v11795_v32 }
 0x409   : > { %v12027_v21 = vpop.xlane.xlu1 %7218 }
 0x40a   : > { %15091 = vst [vmem:[#allocation29_spill] sm:$0xff] %v12027_v21  ;;  %2903 = vadd.xlane.f32.xlu0 %v2902_v6 }
 0x40b   : > { %2900 = vadd.xlane.f32.xlu1 %v2899_v18  ;;  %v12039_v18 = vsel %vm2591_vm1, %v11951_v31, %v9097_v4  ;;  %v2612_v4 = vmin.f32 %v12012_v0, 0.0 }
 0x40d   : > { %v10021_v25 = vpop.permute.xlu1 %10020 }
 0x40e   : > { %v10023_v7 = vunpack.i.h.bf16 %v10021_v25  ;;  %v10022_v62 = vunpack.i.l.bf16 %v10021_v25  ;;  %v15092_v25 = vld [vmem:[#allocation26_spill] sm:$0xff] }
 0x40f   : > { %v10297_v50 = vpop.eup %10296 }
 0x410   : > { %v10299_v3 = vpop.eup %10298  ;;  %v9096_v11 = vadd.f32 -1.0, %v10297_v50  ;;  %v9847_v27 = vpack.c.bf16 %v10023_v7, %v10022_v62  ;;  %v2696_v50 = vmul.f32 %v11963_v12, %v12033_v17 }
 0x411   : > { %v10301_v32 = vpop.eup %10300  ;;  %v9095_v13 = vadd.f32 -1.0, %v10299_v3 }
 0x412   : > { %v10303_v35 = vpop.eup %10302  ;;  %v12036_v6 = vsel %vm2590_vm15, %v9528_v46, %v9096_v11  ;;  %9848 = vmatprep.subr.bf16.mxu1 %v9847_v27  ;;  %v5458_v7 = vmul.f32 %v10301_v32, %v15092_v25  ;;  %v15093_v46 = vld [vmem:[#allocation41_spill] sm:$0xff]  ;;  %v2611_v11 = vmin.f32 %v12015_v45, 0.0 }
 0x413   : > { %v12041_v26 = vsel %vm2589_vm2, %v2092_v23, %v9095_v13  ;;  %9850 = vmatpush3.bf16.msra.mxu1 %v9847_v27  ;;  %v2694_v34 = vmul.f32 %v11963_v12, %v12036_v6  ;;  %v5464_v62 = vmul.f32 %v10303_v35, %v15093_v46  ;;  %v2695_v23 = vmul.f32 %v11968_v55, %v12039_v18 }
 0x414   : > { %v2693_v36 = vmul.f32 %v11968_v55, %v12041_v26  ;;  %v2770_v13 = vsel %vm373_vm0, %v2696_v50, 0.0  ;;  %v2710_v35 = vmul.f32 %v11974_v39, %v12036_v6 }
 0x415   : > { %v2764_v56 = vsel %vm373_vm0, %v2694_v34, 0.0  ;;  %v2767_v25 = vsel %vm373_vm0, %v2695_v23, 0.0 }
 0x416   : > { %9639 = vmatmul.mubr.msk.f32.vlgmr.msra.gmra.mrb[34].mxu1 %vm1762_vm4, %v5458_v7  ;;  %2765 = vadd.xlane.f32.xlu0 %v2764_v56  ;;  %v2761_v31 = vsel %vm373_vm0, %v2693_v36, 0.0  ;;  %v2709_v7 = vmul.f32 %v11980_v48, %v12041_v26  ;;  %v2637_v56 = vmul.f32 1.442695, %v2612_v4  ;;  %v2812_v15 = vsel %vm373_vm0, %v2710_v35, 0.0 }
 0x417   : > { %9652 = vmatprep.mubr.msk.f32.mxu1 %vm1762_vm4, %v5464_v62  ;;  %2762 = vadd.xlane.f32.xlu1 %v2761_v31  ;;  %v2635_v31 = vmul.f32 1.442695, %v2611_v11  ;;  %v2726_v35 = vmul.f32 %v11990_v58, %v12036_v6 }
 0x418   : > { %v12058_v3 = vpop.f32.mrb[20].mxu1  ;;  %v2809_v23 = vsel %vm373_vm0, %v2709_v7, 0.0 }
 0x419   : > { %v2610_v27 = vmin.f32 %v12058_v3, 0.0  ;;  %v12062_v32 = vpop.f32.mrb[21].mxu1  ;;  %v2860_v7 = vsel %vm373_vm0, %v2726_v35, 0.0  ;;  %vm2594_vm3 = vcmp.gt.f32.partialorder %v12058_v3, 0.0 }
 0x41a   : > { %v2609_v34 = vmin.f32 %v12062_v32, 0.0  ;;  %2771 = vadd.xlane.f32.xlu0 %v2770_v13  ;;  %v2712_v13 = vmul.f32 %v11974_v39, %v12033_v17  ;;  %vm2593_vm5 = vcmp.gt.f32.partialorder %v12062_v32, 0.0 }
 0x41b   : > { %v2633_v36 = vmul.f32 1.442695, %v2610_v27  ;;  %2768 = vadd.xlane.f32.xlu1 %v2767_v25  ;;  %v2711_v27 = vmul.f32 %v11980_v48, %v12039_v18  ;;  %v2725_v25 = vmul.f32 %v11995_v1, %v12041_v26 }
 0x41c   : > { %v2631_v46 = vmul.f32 1.442695, %v2609_v34  ;;  %v12071_v62 = vpop.f32.mrb[20].mxu0  ;;  %v2818_v34 = vsel %vm373_vm0, %v2712_v13, 0.0 }
 0x41d   : > { %10304 = vpow2.f32 %v2633_v36  ;;  %v12073_v50 = vpop.f32.mrb[21].mxu0  ;;  %v2728_v36 = vmul.f32 %v11990_v58, %v12033_v17  ;;  %vm2600_vm10 = vcmp.gt.f32.partialorder %v12071_v62, 0.0 }
 0x41e   : > { %10306 = vpow2.f32 %v2631_v46  ;;  %2813 = vadd.xlane.f32.xlu0 %v2812_v15  ;;  %v2815_v15 = vsel %vm373_vm0, %v2711_v27, 0.0  ;;  %v2727_v46 = vmul.f32 %v11995_v1, %v12039_v18  ;;  %v2742_v27 = vmul.f32 %v12004_v14, %v12036_v6 }
 0x41f   : > { %2810 = vadd.xlane.f32.xlu1 %v2809_v23  ;;  %10308 = vpow2.f32 %v2637_v56  ;;  %v2857_v56 = vsel %vm373_vm0, %v2725_v25, 0.0  ;;  %v2866_v23 = vsel %vm373_vm0, %v2728_v36, 0.0  ;;  %v2744_v36 = vmul.f32 %v12004_v14, %v12033_v17 }
 0x420   : > { %v12081_v4 = vpop.f32.mrb[22].mxu0  ;;  %10310 = vpow2.f32 %v2635_v31  ;;  %v2863_v35 = vsel %vm373_vm0, %v2727_v46, 0.0  ;;  %v2908_v46 = vsel %vm373_vm0, %v2742_v27, 0.0  ;;  %vm2599_vm11 = vcmp.gt.f32.partialorder %v12073_v50, 0.0 }
 0x421   : > { %v12083_v11 = vpop.f32.mrb[23].mxu0  ;;  %10312 = vrcp.f32 %v15094_v54  ;;  %vm4387_vm15 = vcmp.gt.f32.partialorder %v12081_v4, 0.0 }
 0x422   : > { %2819 = vadd.xlane.f32.xlu0 %v2818_v34  ;;  %vm4386_vm14 = vcmp.gt.f32.partialorder %v12083_v11, 0.0 }
 0x423   : > { %2816 = vadd.xlane.f32.xlu1 %v2815_v15 }
 0x426   : > { %2861 = vadd.xlane.f32.xlu0 %v2860_v7  ;;  %v2741_v7 = vmul.f32 %v12010_v57, %v12041_v26  ;;  %v2743_v26 = vmul.f32 %v12010_v57, %v12039_v18 }
 0x427   : > { %v10305_v31 = vpop.eup %10304  ;;  %2858 = vadd.xlane.f32.xlu1 %v2857_v56 }
 0x428   : > { %v10307_v13 = vpop.eup %10306  ;;  %v9100_v15 = vadd.f32 -1.0, %v10305_v31  ;;  %v2905_v17 = vsel %vm373_vm0, %v2741_v7, 0.0 }
 0x429   : > { %v10309_v34 = vpop.eup %10308  ;;  %v9099_v33 = vadd.f32 -1.0, %v10307_v13 }
 0x42a   : > { %2867 = vadd.xlane.f32.xlu0 %v2866_v23  ;;  %v10311_v25 = vpop.eup %10310  ;;  %v9102_v24 = vadd.f32 -1.0, %v10309_v34  ;;  %v12117_v54 = vsel %vm2594_vm3, %v12058_v3, %v9100_v15  ;;  %v15096_v34 = vld [vmem:[#allocation9_spill] sm:$0xff]  ;;  %v2914_v3 = vsel %vm373_vm0, %v2744_v36, 0.0 }
 0x42b   : > { %2864 = vadd.xlane.f32.xlu1 %v2863_v35  ;;  %v9101_v13 = vadd.f32 -1.0, %v10311_v25  ;;  %10314 = vrcp.f32 %v15096_v34  ;;  %v12125_v35 = vsel %vm2593_vm5, %v12062_v32, %v9099_v33  ;;  %v2698_v15 = vmul.f32 %v11963_v12, %v12117_v54 }
 0x42c   : > { %v12104_v56 = vpop.f32.mrb[22].mxu1  ;;  %v12137_v7 = vsel %vm2596_vm6, %v12012_v0, %v9102_v24  ;;  %v2911_v32 = vsel %vm373_vm0, %v2743_v26, 0.0  ;;  %v2697_v25 = vmul.f32 %v11968_v55, %v12125_v35  ;;  %v10313_v26 = vpop.eup %10312  ;;  %10316 = vrcp.f32 %v11767_v8 }
 0x42d   : > { %v12109_v6 = vpop.xlane.xlu0 %7221  ;;  %v12111_v31 = vpop.f32.mrb[23].mxu1  ;;  %v12140_v33 = vsel %vm2595_vm7, %v12015_v45, %v9101_v13  ;;  %v2614_v36 = vmin.f32 %v12104_v56, 0.0  ;;  %v2776_v24 = vsel %vm373_vm0, %v2698_v15, 0.0  ;;  %v2700_v0 = vmul.f32 %v11963_v12, %v12137_v7 }
 0x42e   : > { %15095 = vst [vmem:[#allocation34_spill] sm:$0xff] %v12109_v6  ;;  %v12120_v23 = vpop.f32.mrb[24].mxu0  ;;  %2909 = vadd.xlane.f32.xlu0 %v2908_v46  ;;  %v2699_v45 = vmul.f32 %v11968_v55, %v12140_v33  ;;  %v2613_v13 = vmin.f32 %v12111_v31, 0.0  ;;  %v2773_v40 = vsel %vm373_vm0, %v2697_v25, 0.0  ;;  %v2616_v15 = vmin.f32 %v12071_v62, 0.0 }
 0x42f   : > { %v12127_v27 = vpop.f32.mrb[25].mxu0  ;;  %2906 = vadd.xlane.f32.xlu1 %v2905_v17  ;;  %v2641_v42 = vmul.f32 1.442695, %v2614_v36  ;;  %v2782_v52 = vsel %vm373_vm0, %v2700_v0, 0.0  ;;  %v2713_v25 = vmul.f32 %v11980_v48, %v12125_v35  ;;  %v15098_v36 = vld [vmem:[#allocation23_spill] sm:$0xff]  ;;  %vm2598_vm8 = vcmp.gt.f32.partialorder %v12104_v56, 0.0 }
 0x430   : > { %v15099_v0 = vld [vmem:[#allocation35_spill] sm:$0xff]  ;;  %v2645_v6 = vmul.f32 1.442695, %v2616_v15  ;;  %vm2597_vm9 = vcmp.gt.f32.partialorder %v12111_v31, 0.0  ;;  %vm4390_vm3 = vcmp.gt.f32.partialorder %v12127_v27, 0.0  ;;  %vm4391_vm5 = vcmp.gt.f32.partialorder %v12120_v23, 0.0 }
 0x431   : > { %v12131_v18 = vpop.xlane.xlu0 %7227  ;;  %10318 = vpow2.f32 %v2641_v42  ;;  %v2821_v8 = vsel %vm373_vm0, %v2713_v25, 0.0 }
 0x432   : > { %15097 = vst [vmem:[#allocation39_spill] sm:$0xff] %v12131_v18  ;;  %2915 = vadd.xlane.f32.xlu0 %v2914_v3  ;;  %v2714_v18 = vmul.f32 %v11974_v39, %v12117_v54 }
 0x433   : > { %2912 = vadd.xlane.f32.xlu1 %v2911_v32 }
 0x434   : > { %v12145_v46 = vpop.f32.mrb[24].mxu1  ;;  %v2824_v21 = vsel %vm373_vm0, %v2714_v18, 0.0 }
 0x435   : > { %v10026_v17 = vpop.permute.xlu0 %10025  ;;  %v12148_v34 = vpop.f32.mrb[25].mxu1  ;;  %vm2602_vm12 = vcmp.gt.f32.partialorder %v12145_v46, 0.0 }
 0x436   : > { %v10028_v3 = vunpack.i.h.bf16 %v10026_v17  ;;  %v10027_v32 = vunpack.i.l.bf16 %v10026_v17  ;;  %2777 = vadd.xlane.f32.xlu0 %v2776_v24  ;;  %v10315_v30 = vpop.eup %10314  ;;  %v2615_v17 = vmin.f32 %v12073_v50, 0.0  ;;  %v2639_v24 = vmul.f32 1.442695, %v2613_v13 }
 0x437   : > { %2774 = vadd.xlane.f32.xlu1 %v2773_v40  ;;  %v2779_v40 = vsel %vm373_vm0, %v2699_v45, 0.0  ;;  %vm2601_vm13 = vcmp.gt.f32.partialorder %v12148_v34, 0.0 }
 0x438   : > { %v12157_v29 = vpop.f32.mrb[26].mxu1  ;;  %v9851_v19 = vpack.c.bf16 %v10028_v3, %v10027_v32  ;;  %v5462_v3 = vmul.f32 %v10313_v26, %v15098_v36  ;;  %v5468_v32 = vmul.f32 %v10315_v30, %v15099_v0  ;;  %v2643_v13 = vmul.f32 1.442695, %v2615_v17 }
 0x439   : > { %v12160_v63 = vpop.f32.mrb[27].mxu1  ;;  %10320 = vpow2.f32 %v2639_v24  ;;  %v2715_v30 = vmul.f32 %v11980_v48, %v12140_v33  ;;  %v10317_v24 = vpop.eup %10316  ;;  %v2731_v36 = vmul.f32 %v11995_v1, %v12140_v33  ;;  %vm4389_vm2 = vcmp.gt.f32.partialorder %v12157_v29, 0.0 }
 0x43a   : > { %9852 = vmatprep.subr.bf16.mxu0 %v9851_v19  ;;  %2783 = vadd.xlane.f32.xlu0 %v2782_v52  ;;  %v2716_v52 = vmul.f32 %v11974_v39, %v12137_v7  ;;  %10322 = vrcp.f32 %v11812_v20  ;;  %v2729_v20 = vmul.f32 %v11995_v1, %v12125_v35  ;;  %vm4388_vm1 = vcmp.gt.f32.partialorder %v12160_v63, 0.0 }
 0x43b   : > { %9854 = vmatpush3.bf16.msra.mxu0 %v9851_v19  ;;  %2780 = vadd.xlane.f32.xlu1 %v2779_v40  ;;  %10324 = vpow2.f32 %v2645_v6  ;;  %v2827_v15 = vsel %vm373_vm0, %v2715_v30, 0.0  ;;  %v2732_v6 = vmul.f32 %v11990_v58, %v12137_v7 }
 0x43c   : > { %v2830_v18 = vsel %vm373_vm0, %v2716_v52, 0.0  ;;  %10326 = vpow2.f32 %v2643_v13  ;;  %v2869_v25 = vsel %vm373_vm0, %v2729_v20, 0.0  ;;  %v2745_v20 = vmul.f32 %v12010_v57, %v12125_v35 }
 0x43d   : > { %v2747_v35 = vmul.f32 %v12010_v57, %v12140_v33 }
 0x43e   : > { %9646 = vmatmul.mubr.msk.f32.vlgmr.msra.gmra.mrb[32].mxu0 %vm1762_vm4, %v5462_v3  ;;  %v12176_v45 = vpop.xlane.xlu1 %7224  ;;  %2825 = vadd.xlane.f32.xlu0 %v2824_v21  ;;  %v12178_v19 = vpop.f32.mrb[28].mxu1  ;;  %v2730_v21 = vmul.f32 %v11990_v58, %v12117_v54 }
 0x43f   : > { %15100 = vst [vmem:[#allocation28_spill] sm:$0xff] %v12176_v45  ;;  %9659 = vmatprep.mubr.msk.f32.mxu0 %vm1762_vm4, %v5468_v32  ;;  %2822 = vadd.xlane.f32.xlu1 %v2821_v8  ;;  %v12185_v42 = vpop.f32.mrb[29].mxu1  ;;  %v10319_v3 = vpop.eup %10318  ;;  %v2878_v8 = vsel %vm373_vm0, %v2732_v6, 0.0  ;;  %v15103_v6 = vld [vmem:[#allocation40_spill] sm:$0xff]  ;;  %v4409_v41 = vmin.f32 %v12178_v19, 0.0  ;;  %vm4393_vm7 = vcmp.gt.f32.partialorder %v12178_v19, 0.0 }
 0x440   : > { %v2872_v17 = vsel %vm373_vm0, %v2730_v21, 0.0  ;;  %v9104_v21 = vadd.f32 -1.0, %v10319_v3  ;;  %vm4392_vm6 = vcmp.gt.f32.partialorder %v12185_v42, 0.0 }
 0x442   : > { %v12190_v26 = vpop.xlane.xlu1 %7230  ;;  %2831 = vadd.xlane.f32.xlu0 %v2830_v18  ;;  %v2746_v18 = vmul.f32 %v12004_v14, %v12117_v54 }
 0x443   : > { %15101 = vst [vmem:[#allocation58_spill] sm:$0xff] %v12190_v26  ;;  %2828 = vadd.xlane.f32.xlu1 %v2827_v15  ;;  %v10321_v52 = vpop.eup %10320  ;;  %v2875_v15 = vsel %vm373_vm0, %v2731_v36, 0.0  ;;  %v2748_v36 = vmul.f32 %v12004_v14, %v12137_v7 }
 0x444   : > { %v10323_v13 = vpop.eup %10322  ;;  %v9103_v26 = vadd.f32 -1.0, %v10321_v52  ;;  %v2920_v54 = vsel %vm373_vm0, %v2746_v18, 0.0 }
 0x445   : > { %v2926_v7 = vsel %vm373_vm0, %v2748_v36, 0.0 }
 0x446   : > { %v10031_v40 = vpop.permute.xlu1 %10030  ;;  %2873 = vadd.xlane.f32.xlu0 %v2872_v17  ;;  %v10325_v17 = vpop.eup %10324 }
 0x447   : > { %v10033_v0 = vunpack.i.h.bf16 %v10031_v40  ;;  %v10032_v32 = vunpack.i.l.bf16 %v10031_v40  ;;  %2870 = vadd.xlane.f32.xlu1 %v2869_v25  ;;  %v10327_v40 = vpop.eup %10326  ;;  %v15102_v25 = vld [vmem:[#allocation25_spill] sm:$0xff]  ;;  %v9106_v3 = vadd.f32 -1.0, %v10325_v17 }
 0x448   : > { %v5466_v45 = vmul.f32 %v10317_v24, %v15102_v25  ;;  %v2917_v24 = vsel %vm373_vm0, %v2745_v20, 0.0  ;;  %v9105_v52 = vadd.f32 -1.0, %v10327_v40 }
 0x449   : > { %v9855_v30 = vpack.c.bf16 %v10033_v0, %v10032_v32  ;;  %v5472_v0 = vmul.f32 %v10323_v13, %v15103_v6  ;;  %v2678_v32 = vsel %vm2598_vm8, %v12104_v56, %v9104_v21  ;;  %v2677_v13 = vsel %vm2597_vm9, %v12111_v31, %v9103_v26 }
 0x44a   : > { %2879 = vadd.xlane.f32.xlu0 %v2878_v8  ;;  %v2702_v33 = vmul.f32 %v11963_v12, %v2678_v32  ;;  %v2680_v56 = vsel %vm2600_vm10, %v12071_v62, %v9106_v3  ;;  %v2923_v8 = vsel %vm373_vm0, %v2747_v35, 0.0  ;;  %v2701_v31 = vmul.f32 %v11968_v55, %v2677_v13 }
 0x44b   : > { %9856 = vmatprep.subr.bf16.mxu1 %v9855_v30  ;;  %2876 = vadd.xlane.f32.xlu1 %v2875_v15  ;;  %v2618_v26 = vmin.f32 %v12145_v46, 0.0  ;;  %v2704_v18 = vmul.f32 %v11963_v12, %v2680_v56  ;;  %v2617_v21 = vmin.f32 %v12148_v34, 0.0  ;;  %v2717_v6 = vmul.f32 %v11980_v48, %v2677_v13 }
 0x44c   : > { %9858 = vmatpush3.bf16.msra.mxu1 %v9855_v30  ;;  %v2788_v30 = vsel %vm373_vm0, %v2702_v33, 0.0  ;;  %v2785_v62 = vsel %vm373_vm0, %v2701_v31, 0.0  ;;  %vm3022_vm8 = vcmask 130112   ;;  %vm3303_vm9 = vcmask 1041409  }
 0x44d   : > { %v2649_v20 = vmul.f32 1.442695, %v2618_v26  ;;  %v2794_v17 = vsel %vm373_vm0, %v2704_v18, 0.0  ;;  %v2647_v40 = vmul.f32 1.442695, %v2617_v21  ;;  %v2833_v36 = vsel %vm373_vm0, %v2717_v6, 0.0 }
 0x44e   : > { %2921 = vadd.xlane.f32.xlu0 %v2920_v54  ;;  %v2720_v54 = vmul.f32 %v11974_v39, %v2680_v56  ;;  %vm3305_vm10 = vcmask 1042434  }
 0x44f   : > { %9653 = vmatmul.mubr.msk.f32.vlgmr.msra.gmra.mrb[36].mxu1 %vm1762_vm4, %v5466_v45  ;;  %2918 = vadd.xlane.f32.xlu1 %v2917_v24  ;;  %v2679_v45 = vsel %vm2599_vm11, %v12073_v50, %v9105_v52  ;;  %v2718_v50 = vmul.f32 %v11974_v39, %v2678_v32  ;;  %10328 = vpow2.f32 %v2649_v20  ;;  %v2734_v24 = vmul.f32 %v11990_v58, %v2678_v32 }
 0x450   : > { %9666 = vmatprep.mubr.msk.f32.mxu1 %vm1762_vm4, %v5472_v0  ;;  %v2703_v15 = vmul.f32 %v11968_v55, %v2679_v45  ;;  %10330 = vpow2.f32 %v2647_v40  ;;  %v2719_v35 = vmul.f32 %v11980_v48, %v2679_v45  ;;  %v2842_v3 = vsel %vm373_vm0, %v2720_v54, 0.0 }
 0x451   : > { %v2836_v0 = vsel %vm373_vm0, %v2718_v50, 0.0  ;;  %v2884_v33 = vsel %vm373_vm0, %v2734_v24, 0.0  ;;  %v2750_v20 = vmul.f32 %v12004_v14, %v2678_v32  ;;  %v2749_v40 = vmul.f32 %v12010_v57, %v2677_v13 }
 0x452   : > { %2927 = vadd.xlane.f32.xlu0 %v2926_v7  ;;  %v2791_v25 = vsel %vm373_vm0, %v2703_v15, 0.0  ;;  %v2839_v52 = vsel %vm373_vm0, %v2719_v35, 0.0  ;;  %v2733_v7 = vmul.f32 %v11995_v1, %v2677_v13  ;;  %v15105_v13 = vld [vmem:[#allocation43_spill] sm:$0xff]  ;;  %vm3307_vm11 = vcmask 1043459  }
 0x453   : > { %2924 = vadd.xlane.f32.xlu1 %v2923_v8  ;;  %v2736_v8 = vmul.f32 %v11990_v58, %v2680_v56  ;;  %v2932_v6 = vsel %vm373_vm0, %v2750_v20, 0.0  ;;  %v2929_v32 = vsel %vm373_vm0, %v2749_v40, 0.0  ;;  %v15112_v20 = vld [vmem:[#allocation50_spill] sm:$0xff] }
 0x454   : > { %v2881_v26 = vsel %vm373_vm0, %v2733_v7, 0.0  ;;  %v15108_v7 = vld [vmem:[#allocation49_spill] sm:$0xff] }
 0x455   : > { %v2890_v15 = vsel %vm373_vm0, %v2736_v8, 0.0 }
 0x456   : > { %2789 = vadd.xlane.f32.xlu0 %v2788_v30  ;;  %v2735_v30 = vmul.f32 %v11995_v1, %v2679_v45 }
 0x457   : > { %2786 = vadd.xlane.f32.xlu1 %v2785_v62 }
 0x458   : > { %v2887_v50 = vsel %vm373_vm0, %v2735_v30, 0.0  ;;  %v15109_v30 = vld [vmem:[#allocation52_spill] sm:$0xff] }
 0x459   : > { %v10329_v18 = vpop.eup %10328 }
 0x45a   : > { %2795 = vadd.xlane.f32.xlu0 %v2794_v17  ;;  %v10331_v62 = vpop.eup %10330  ;;  %v9108_v17 = vadd.f32 -1.0, %v10329_v18 }
 0x45b   : > { %2792 = vadd.xlane.f32.xlu1 %v2791_v25  ;;  %v9107_v25 = vadd.f32 -1.0, %v10331_v62 }
 0x45c   : > { %v2682_v54 = vsel %vm2602_vm12, %v12145_v46, %v9108_v17  ;;  %vm3309_vm12 = vcmask 1044484  }
 0x45d   : > { %v2681_v35 = vsel %vm2601_vm13, %v12148_v34, %v9107_v25  ;;  %v2706_v46 = vmul.f32 %v11963_v12, %v2682_v54  ;;  %v15110_v34 = vld [vmem:[#allocation47_spill] sm:$0xff]  ;;  %v2722_v40 = vmul.f32 %v11974_v39, %v2682_v54  ;;  %vm3311_vm13 = vcmask 1045509  }
 0x45e   : > { %2837 = vadd.xlane.f32.xlu0 %v2836_v0  ;;  %v2752_v0 = vmul.f32 %v12004_v14, %v2680_v56  ;;  %v7162_v18 = vsub.f32 %v15110_v34, %v15109_v30  ;;  %v2721_v25 = vmul.f32 %v11980_v48, %v2681_v35 }
 0x45f   : > { %2834 = vadd.xlane.f32.xlu1 %v2833_v36  ;;  %v2751_v36 = vmul.f32 %v12010_v57, %v2679_v45 }
 0x460   : > { %v2938_v56 = vsel %vm373_vm0, %v2752_v0, 0.0  ;;  %v2845_v39 = vsel %vm373_vm0, %v2721_v25, 0.0 }
 0x461   : > { %v2935_v8 = vsel %vm373_vm0, %v2751_v36, 0.0  ;;  %v2848_v36 = vsel %vm373_vm0, %v2722_v40, 0.0 }
 0x462   : > { %2843 = vadd.xlane.f32.xlu0 %v2842_v3  ;;  %v15106_v3 = vld [vmem:[#allocation45_spill] sm:$0xff] }
 0x463   : > { %2840 = vadd.xlane.f32.xlu1 %v2839_v52  ;;  %v7160_v24 = vsub.f32 %v15106_v3, %v15105_v13  ;;  %v15107_v52 = vld [vmem:[#allocation54_spill] sm:$0xff]  ;;  %v2738_v13 = vmul.f32 %v11990_v58, %v2682_v54  ;;  %v2737_v3 = vmul.f32 %v11995_v1, %v2681_v35 }
 0x465   : > { %v7188_v45 = vmul.f32 1.442695, %v7160_v24  ;;  %v2896_v48 = vsel %vm373_vm0, %v2738_v13, 0.0  ;;  %v2754_v24 = vmul.f32 %v12004_v14, %v2682_v54 }
 0x466   : > { %v12249_v31 = vpop.f32.mrb[26].mxu0  ;;  %2885 = vadd.xlane.f32.xlu0 %v2884_v33  ;;  %v7161_v33 = vsub.f32 %v15108_v7, %v15107_v52  ;;  %v2893_v52 = vsel %vm373_vm0, %v2737_v3, 0.0  ;;  %v2753_v7 = vmul.f32 %v12010_v57, %v2681_v35 }
 0x467   : > { %15104 = vst [vmem:[#allocation51_spill] sm:$0xff] %v12249_v31  ;;  %v12253_v21 = vpop.f32.mrb[27].mxu0  ;;  %2882 = vadd.xlane.f32.xlu1 %v2881_v26  ;;  %v2705_v26 = vmul.f32 %v11968_v55, %v2681_v35  ;;  %10332 = vpow2.f32 %v7188_v45  ;;  %v7192_v55 = vmul.f32 1.442695, %v7162_v18  ;;  %v2944_v58 = vsel %vm373_vm0, %v2754_v24, 0.0 }
 0x468   : > { %v7190_v62 = vmul.f32 1.442695, %v7161_v33  ;;  %v2941_v1 = vsel %vm373_vm0, %v2753_v7, 0.0  ;;  %v4403_v24 = vmin.f32 %v12081_v4, 0.0 }
 0x469   : > { %v2797_v12 = vsel %vm373_vm0, %v2705_v26, 0.0 }
 0x46a   : > { %2891 = vadd.xlane.f32.xlu0 %v2890_v15  ;;  %v15111_v15 = vld [vmem:[#allocation55_spill] sm:$0xff]  ;;  %10334 = vpow2.f32 %v7190_v62 }
 0x46b   : > { %2888 = vadd.xlane.f32.xlu1 %v2887_v50  ;;  %v7163_v17 = vsub.f32 %v15112_v20, %v15111_v15  ;;  %v2800_v50 = vsel %vm373_vm0, %v2706_v46, 0.0  ;;  %10336 = vpow2.f32 %v7192_v55  ;;  %v15119_v15 = vld [vmem:[#allocation14_spill] sm:$0xff] }
 0x46e   : > { %2933 = vadd.xlane.f32.xlu0 %v2932_v6 }
 0x46f   : > { %2930 = vadd.xlane.f32.xlu1 %v2929_v32  ;;  %v7194_v32 = vmul.f32 1.442695, %v7163_v17 }
 0x471   : > { %10338 = vpow2.f32 %v7194_v32  ;;  %v12296_v33 = vpop.eup %10332 }
 0x472   : > { %2939 = vadd.xlane.f32.xlu0 %v2938_v56  ;;  %15115 = vst [vmem:[#allocation26_spill] sm:$0xff] %v12296_v33  ;;  %v7232_v46 = vsel %vm1762_vm4, %v12296_v33, 0.0 }
 0x473   : > { %2936 = vadd.xlane.f32.xlu1 %v2935_v8 }
 0x474   : > { %v12299_v56 = vpop.eup %10334 }
 0x475   : > { %15116 = vst [vmem:[#allocation41_spill] sm:$0xff] %v12299_v56  ;;  %v12303_v14 = vpop.eup %10336  ;;  %v7235_v57 = vsel %vm1762_vm4, %v12299_v56, 0.0 }
 0x476   : > { %2801 = vadd.xlane.f32.xlu0 %v2800_v50  ;;  %15117 = vst [vmem:[#allocation59_spill] sm:$0xff] %v12303_v14  ;;  %v7238_v35 = vsel %vm1762_vm4, %v12303_v14, 0.0 }
 0x477   : > { %v12283_v6 = vpop.f32.mrb[30].mxu1  ;;  %2798 = vadd.xlane.f32.xlu1 %v2797_v12  ;;  %v15122_v12 = vld [vmem:[#allocation8_spill] sm:$0xff] }
 0x478   : > { %15113 = vst [vmem:[#allocation31_spill] sm:$0xff] %v12283_v6  ;;  %v12285_v0 = vpop.f32.mrb[31].mxu1 }
 0x479   : > { %15114 = vst [vmem:[#allocation22_spill] sm:$0xff] %v12285_v0 }
 0x47a   : > { %2849 = vadd.xlane.f32.xlu0 %v2848_v36 }
 0x47b   : > { %2846 = vadd.xlane.f32.xlu1 %v2845_v39  ;;  %v12307_v54 = vpop.eup %10338 }
 0x47c   : > { %15118 = vst [vmem:[#allocation9_spill] sm:$0xff] %v12307_v54  ;;  %v7241_v8 = vsel %vm1762_vm4, %v12307_v54, 0.0 }
 0x47e   : > { %2897 = vadd.xlane.f32.xlu0 %v2896_v48 }
 0x47f   : > { %2894 = vadd.xlane.f32.xlu1 %v2893_v52 }
 0x482   : > { %2945 = vadd.xlane.f32.xlu0 %v2944_v58  ;;  %v4404_v58 = vmin.f32 %v12160_v63, 0.0 }
 0x483   : > { %2942 = vadd.xlane.f32.xlu1 %v2941_v1  ;;  %v4420_v1 = vmul.f32 1.442695, %v4403_v24 }
 0x486   : > { %7233 = vadd.xlane.f32.xlu0 %v7232_v46 }
 0x487   : > { %7236 = vadd.xlane.f32.xlu1 %v7235_v57 }
 0x48a   : > { %7239 = vadd.xlane.f32.xlu0 %v7238_v35  ;;  %v4422_v35 = vmul.f32 1.442695, %v4404_v58 }
 0x48b   : > { %7242 = vadd.xlane.f32.xlu1 %v7241_v8  ;;  %v12313_v26 = vpop.xlane.xlu0 %2759 }
 0x48c   : > { %v12315_v45 = vpop.xlane.xlu1 %2756 }
 0x48f   : > { %v12317_v30 = vpop.xlane.xlu0 %2807 }
 0x490   : > { %v12319_v34 = vpop.xlane.xlu1 %2804 }
 0x493   : > { %v12321_v18 = vpop.xlane.xlu0 %2855 }
 0x494   : > { %v12323_v62 = vpop.xlane.xlu1 %2852 }
 0x497   : > { %v12327_v20 = vpop.xlane.xlu0 %2903 }
 0x498   : > { %v12331_v50 = vpop.xlane.xlu1 %2900 }
 0x49c   : > { %10040 = vrot.lane.b32.xlu1 %v15119_v15, %s10516_s22 }
 0x49f   : > { %v12329_v17 = vpop.f32.mrb[28].mxu0 }
 0x4a0   : > { %15120 = vst [vmem:[#allocation23_spill] sm:$0xff] %v12329_v17  ;;  %v12333_v40 = vpop.f32.mrb[29].mxu0  ;;  %10035 = vrot.lane.b32.xlu0 %v15122_v12, %s10516_s22  ;;  %10050 = vrot.lane.b32.xlu1 %v15056_v5, %s10516_s22 }
 0x4a1   : > { %15121 = vst [vmem:[#allocation35_spill] sm:$0xff] %v12333_v40 }
 0x4a3   : > { %v12339_v25 = vpop.xlane.xlu0 %2765 }
 0x4a4   : > { %v12341_v55 = vpop.xlane.xlu1 %2762  ;;  %10045 = vrot.lane.b32.xlu0 %v15055_v59, %s10516_s22  ;;  %10060 = vrot.lane.b32.xlu1 %v15061_v38, %s10517_s19 }
 0x4a7   : > { %v12346_v32 = vpop.xlane.xlu0 %2771 }
 0x4a8   : > { %v12348_v36 = vpop.xlane.xlu1 %2768  ;;  %10055 = vrot.lane.b32.xlu0 %v10679_v43, %s10517_s19  ;;  %10070 = vrot.lane.b32.xlu1 %v15077_v51, %s10517_s19  ;;  %v4402_v51 = vmin.f32 %v12083_v11, 0.0 }
 0x4aa   : > { %v4418_v7 = vmul.f32 1.442695, %v4402_v51 }
 0x4ab   : > { %v12352_v13 = vpop.xlane.xlu0 %2813 }
 0x4ac   : > { %v12354_v39 = vpop.xlane.xlu1 %2810  ;;  %10065 = vrot.lane.b32.xlu0 %v15074_v61, %s10517_s19  ;;  %10080 = vrot.lane.b32.xlu1 %v15119_v15, %s10517_s19  ;;  %10340 = vpow2.f32 %v4418_v7 }
 0x4ad   : > { %10342 = vpow2.f32 %v4420_v1  ;;  %v4407_v1 = vmin.f32 %v12120_v23, 0.0 }
 0x4ae   : > { %10344 = vpow2.f32 %v4422_v35 }
 0x4af   : > { %v12358_v3 = vpop.xlane.xlu0 %2819 }
 0x4b0   : > { %v12360_v48 = vpop.xlane.xlu1 %2816  ;;  %10075 = vrot.lane.b32.xlu0 %v15122_v12, %s10517_s19  ;;  %v12363_v38 = vpop.f32.mrb[32].mxu1  ;;  %10090 = vrot.lane.b32.xlu1 %v15056_v5, %s10517_s19  ;;  %v4405_v5 = vmin.f32 %v12157_v29, 0.0 }
 0x4b1   : > { %15123 = vst [vmem:[#allocation25_spill] sm:$0xff] %v12363_v38  ;;  %v12366_v43 = vpop.f32.mrb[33].mxu1 }
 0x4b2   : > { %15124 = vst [vmem:[#allocation40_spill] sm:$0xff] %v12366_v43  ;;  %v4424_v12 = vmul.f32 1.442695, %v4405_v5 }
 0x4b3   : > { %v12370_v52 = vpop.xlane.xlu0 %2861 }
 0x4b4   : > { %v12372_v61 = vpop.xlane.xlu1 %2858  ;;  %10085 = vrot.lane.b32.xlu0 %v15055_v59, %s10517_s19  ;;  %v4406_v59 = vmin.f32 %v12127_v27, 0.0  ;;  %10346 = vpow2.f32 %v4424_v12  ;;  %v4428_v12 = vmul.f32 1.442695, %v4407_v1  ;;  %v12419_v1 = vld [vmem:[%s14810_s3 + $0x48] sm:$0xff] }
 0x4b6   : > { %v4426_v43 = vmul.f32 1.442695, %v4406_v59  ;;  %v10341_v7 = vpop.eup %10340 }
 0x4b7   : > { %v12376_v46 = vpop.xlane.xlu0 %2867  ;;  %v10343_v58 = vpop.eup %10342  ;;  %v9125_v17 = vadd.f32 -1.0, %v10341_v7 }
 0x4b8   : > { %v12378_v57 = vpop.xlane.xlu1 %2864  ;;  %10348 = vpow2.f32 %v4426_v43  ;;  %v10345_v35 = vpop.eup %10344  ;;  %v9126_v54 = vadd.f32 -1.0, %v10343_v58  ;;  %v12409_v43 = vld [vmem:[%s14810_s3 + $0x40] sm:$0xff] }
 0x4b9   : > { %v12402_v59 = vsel %vm4386_vm14, %v12083_v11, %v9125_v17  ;;  %v9127_v6 = vadd.f32 -1.0, %v10345_v35  ;;  %15125 = vst [vmem:[#allocation43_spill] sm:$0xff] %v12409_v43  ;;  %10350 = vpow2.f32 %v4428_v12  ;;  %v4408_v11 = vmin.f32 %v12185_v42, 0.0  ;;  %v12438_v12 = vld [vmem:[%s14810_s3 + $0x50] sm:$0xff] }
 0x4ba   : > { %v12412_v58 = vsel %vm4387_vm15, %v12081_v4, %v9126_v54  ;;  %v4491_v17 = vmul.f32 %v12409_v43, %v12402_v59  ;;  %15129 = vst [vmem:[#allocation52_spill] sm:$0xff] %v12438_v12  ;;  %v4507_v49 = vmul.f32 %v12438_v12, %v12402_v59  ;;  %vm3313_vm14 = vcmask 1046534  }
 0x4bb   : > { %v12381_v8 = vpop.xlane.xlu0 %2909  ;;  %15126 = vst [vmem:[#allocation45_spill] sm:$0xff] %v12412_v58  ;;  %v12426_v0 = vsel %vm4388_vm1, %v12160_v63, %v9127_v6  ;;  %v4492_v54 = vmul.f32 %v12419_v1, %v12412_v58  ;;  %vm3315_vm15 = vcmask 1047559  }
 0x4bc   : > { %v12383_v15 = vpop.xlane.xlu1 %2906  ;;  %v4555_v63 = vsel %vm373_vm0, %v4491_v17, 0.0  ;;  %v4493_v6 = vmul.f32 %v12409_v43, %v12426_v0 }
 0x4bd   : > { %v4558_v53 = vsel %vm373_vm0, %v4492_v54, 0.0 }
 0x4be   : > { %v10347_v7 = vpop.eup %10346 }
 0x4bf   : > { %v12386_v51 = vpop.xlane.xlu0 %2915  ;;  %v9128_v35 = vadd.f32 -1.0, %v10347_v7  ;;  %v4430_v7 = vmul.f32 1.442695, %v4408_v11  ;;  %v4561_v11 = vsel %vm373_vm0, %v4493_v6, 0.0 }
 0x4c0   : > { %v12388_v24 = vpop.xlane.xlu1 %2912 }
 0x4c1   : > { %v12445_v37 = vsel %vm4389_vm2, %v12157_v29, %v9128_v35  ;;  %10352 = vpow2.f32 %v4430_v7  ;;  %v4603_v35 = vsel %vm373_vm0, %v4507_v49, 0.0 }
 0x4c2   : > { %v10349_v31 = vpop.eup %10348  ;;  %15130 = vst [vmem:[#allocation47_spill] sm:$0xff] %v12445_v37  ;;  %v4494_v29 = vmul.f32 %v12419_v1, %v12445_v37 }
 0x4c3   : > { %v12390_v38 = vpop.xlane.xlu0 %2777  ;;  %v9129_v16 = vadd.f32 -1.0, %v10349_v31  ;;  %v4509_v31 = vmul.f32 %v12438_v12, %v12426_v0 }
 0x4c4   : > { %v12392_v40 = vpop.xlane.xlu1 %2774  ;;  %v4564_v49 = vsel %vm373_vm0, %v4494_v29, 0.0 }
 0x4c5   : > { %v12469_v54 = vsel %vm4390_vm3, %v12127_v27, %v9129_v16  ;;  %v4609_v16 = vsel %vm373_vm0, %v4509_v31, 0.0 }
 0x4c6   : > { %15133 = vst [vmem:[#allocation14_spill] sm:$0xff] %v12469_v54 }
 0x4c7   : > { %v12395_v5 = vpop.xlane.xlu0 %2783 }
 0x4c8   : > { %v12397_v56 = vpop.xlane.xlu1 %2780 }
 0x4cb   : > { %v12404_v14 = vpop.xlane.xlu0 %2825 }
 0x4cc   : > { %v12414_v33 = vpop.xlane.xlu1 %2822 }
 0x4cf   : > { %v12428_v4 = vpop.xlane.xlu0 %2831 }
 0x4d0   : > { %15127 = vst [vmem:[#allocation54_spill] sm:$0xff] %v12428_v4  ;;  %v12433_v9 = vpop.xlane.xlu1 %2828 }
 0x4d1   : > { %15128 = vst [vmem:[#allocation49_spill] sm:$0xff] %v12433_v9  ;;  %v4432_v9 = vmul.f32 1.442695, %v4409_v41  ;;  %v10351_v41 = vpop.eup %10350 }
 0x4d3   : > { %v12447_v2 = vpop.xlane.xlu0 %2873  ;;  %4556 = vadd.xlane.f32.xlu0 %v4555_v63  ;;  %10354 = vpow2.f32 %v4432_v9  ;;  %v4495_v9 = vmul.f32 %v12409_v43, %v12469_v54 }
 0x4d4   : > { %v12452_v4 = vpop.xlane.xlu1 %2870  ;;  %4559 = vadd.xlane.f32.xlu1 %v4558_v53  ;;  %v12466_v53 = vld [vmem:[%s14810_s3 + $0x58] sm:$0xff]  ;;  %10356 = vrcp.f32 %v11837_v22 }
 0x4d5   : > { %15131 = vst [vmem:[#allocation55_spill] sm:$0xff] %v12452_v4  ;;  %v4510_v29 = vmul.f32 %v12466_v53, %v12445_v37  ;;  %v4567_v31 = vsel %vm373_vm0, %v4495_v9, 0.0  ;;  %10358 = vrcp.f32 %v11841_v28 }
 0x4d6   : > { %10360 = vrcp.f32 %v11879_v10 }
 0x4d7   : > { %v12458_v17 = vpop.xlane.xlu0 %2879  ;;  %4562 = vadd.xlane.f32.xlu0 %v4561_v11  ;;  %v4508_v11 = vmul.f32 %v12466_v53, %v12412_v58  ;;  %10362 = vrcp.f32 %v11883_v47 }
 0x4d8   : > { %15132 = vst [vmem:[#allocation50_spill] sm:$0xff] %v12458_v17  ;;  %v12471_v7 = vpop.f32.mrb[30].mxu0  ;;  %v12473_v63 = vpop.xlane.xlu1 %2876  ;;  %4604 = vadd.xlane.f32.xlu1 %v4603_v35  ;;  %v9130_v17 = vadd.f32 -1.0, %v10351_v41  ;;  %10364 = vrcp.f32 %v11894_v44 }
 0x4d9   : > { %15134 = vst [vmem:[#allocation8_spill] sm:$0xff] %v12471_v7  ;;  %15135 = vst [vmem:[#allocation60_spill] sm:$0xff] %v12473_v63  ;;  %v12475_v6 = vpop.f32.mrb[31].mxu0  ;;  %v4606_v35 = vsel %vm373_vm0, %v4508_v11, 0.0  ;;  %v12504_v11 = vld [vmem:[%s14810_s3 + $0x60] sm:$0xff]  ;;  %10366 = vrcp.f32 %v11899_v60 }
 0x4da   : > { %v12492_v41 = vsel %vm4391_vm5, %v12120_v23, %v9130_v17  ;;  %15140 = vst [vmem:[#allocation65_spill] sm:$0xff] %v12504_v11  ;;  %v4612_v23 = vsel %vm373_vm0, %v4510_v29, 0.0  ;;  %v4525_v22 = vmul.f32 %v12504_v11, %v12426_v0  ;;  %v4527_v44 = vmul.f32 %v12504_v11, %v12469_v54 }
 0x4db   : > { %v12480_v4 = vpop.xlane.xlu0 %2921  ;;  %4565 = vadd.xlane.f32.xlu0 %v4564_v49  ;;  %v4511_v49 = vmul.f32 %v12438_v12, %v12469_v54  ;;  %v4496_v17 = vmul.f32 %v12419_v1, %v12492_v41  ;;  %vm6179_vm1 = vcmp.gt.f32.partialorder %v12475_v6, 0.0 }
 0x4dc   : > { %15136 = vst [vmem:[#allocation61_spill] sm:$0xff] %v12480_v4  ;;  %v12485_v27 = vpop.xlane.xlu1 %2918  ;;  %4610 = vadd.xlane.f32.xlu1 %v4609_v16 }
 0x4dd   : > { %15137 = vst [vmem:[#allocation62_spill] sm:$0xff] %v12485_v27  ;;  %v10353_v27 = vpop.eup %10352  ;;  %v4570_v29 = vsel %vm373_vm0, %v4496_v17, 0.0 }
 0x4de   : > { %v10355_v63 = vpop.eup %10354 }
 0x4df   : > { %v12494_v4 = vpop.xlane.xlu0 %2927  ;;  %4607 = vadd.xlane.f32.xlu0 %v4606_v35  ;;  %v9131_v35 = vadd.f32 -1.0, %v10353_v27  ;;  %v9132_v7 = vadd.f32 -1.0, %v10355_v63  ;;  %v4512_v27 = vmul.f32 %v12466_v53, %v12492_v41  ;;  %v12533_v63 = vld [vmem:[%s14810_s3 + $0x68] sm:$0xff] }
 0x4e0   : > { %15138 = vst [vmem:[#allocation63_spill] sm:$0xff] %v12494_v4  ;;  %v12499_v16 = vpop.xlane.xlu1 %2924  ;;  %4568 = vadd.xlane.f32.xlu1 %v4567_v31  ;;  %v4615_v4 = vsel %vm373_vm0, %v4511_v49, 0.0  ;;  %v4523_v31 = vmul.f32 %v12504_v11, %v12402_v59  ;;  %v15144_v11 = vld [vmem:[#allocation3_spill] sm:$0xff] }
 0x4e1   : > { %15139 = vst [vmem:[#allocation64_spill] sm:$0xff] %v12499_v16  ;;  %v12523_v49 = vsel %vm4392_vm6, %v12185_v42, %v9131_v35  ;;  %v12541_v42 = vsel %vm4393_vm7, %v12178_v19, %v9132_v7  ;;  %v4657_v19 = vsel %vm373_vm0, %v4525_v22, 0.0  ;;  %v12561_v7 = vld [vmem:[%s14810_s3 + $0x70] sm:$0xff]  ;;  %vm4394_vm6 = vcmp.gt.f32.partialorder %v12253_v21, 0.0 }
 0x4e2   : > { %15141 = vst [vmem:[#allocation66_spill] sm:$0xff] %v12523_v49  ;;  %15142 = vst [vmem:[#allocation67_spill] sm:$0xff] %v12541_v42  ;;  %v4497_v10 = vmul.f32 %v12409_v43, %v12523_v49  ;;  %v4513_v43 = vmul.f32 %v12438_v12, %v12523_v49  ;;  %v4514_v22 = vmul.f32 %v12466_v53, %v12541_v42 }
 0x4e3   : > { %v12509_v9 = vpop.xlane.xlu0 %2789  ;;  %4613 = vadd.xlane.f32.xlu0 %v4612_v23  ;;  %v12579_v49 = vmul.f32 %v12561_v7, %v12402_v59  ;;  %v3027_v53 = vrot.slane %v12341_v55, %v15144_v11  ;;  %v4663_v55 = vsel %vm373_vm0, %v4527_v44, 0.0  ;;  %v3162_v44 = vrot.slane %v12323_v62, %v15144_v11 }
 0x4e4   : > { %v12514_v16 = vpop.xlane.xlu1 %2786  ;;  %4616 = vadd.xlane.f32.xlu1 %v4615_v4  ;;  %v4651_v4 = vsel %vm373_vm0, %v4523_v31, 0.0  ;;  %v4618_v31 = vsel %vm373_vm0, %v4512_v27, 0.0 }
 0x4e7   : > { %v12525_v23 = vpop.xlane.xlu0 %2795  ;;  %4571 = vadd.xlane.f32.xlu0 %v4570_v29  ;;  %v4524_v29 = vmul.f32 %v12533_v63, %v12412_v58 }
 0x4e8   : > { %v12537_v28 = vpop.xlane.xlu1 %2792  ;;  %4652 = vadd.xlane.f32.xlu1 %v4651_v4  ;;  %v4526_v4 = vmul.f32 %v12533_v63, %v12445_v37  ;;  %v4498_v37 = vmul.f32 %v12419_v1, %v12541_v42  ;;  %v15143_v1 = vld [vmem:[#allocation5_spill] sm:$0xff] }
 0x4e9   : > { %v12543_v17 = vpop.f32.mrb[34].mxu1  ;;  %v3031_v54 = vrot.slane %v12339_v25, %v15143_v1  ;;  %v3103_v60 = vrot.slane %v12352_v13, %v15143_v1  ;;  %v4621_v25 = vsel %vm373_vm0, %v4513_v43, 0.0  ;;  %v4624_v13 = vsel %vm373_vm0, %v4514_v22, 0.0 }
 0x4ea   : > { %v12545_v35 = vpop.f32.mrb[35].mxu1  ;;  %v4660_v58 = vsel %vm373_vm0, %v4526_v4, 0.0  ;;  %v4576_v4 = vsel %vm373_vm0, %v4498_v37, 0.0  ;;  %v3090_v43 = vrot.slane %v12319_v34, %v15144_v11  ;;  %v3166_v37 = vrot.slane %v12321_v18, %v15143_v1 }
 0x4eb   : > { %v12555_v47 = vpop.xlane.xlu0 %2837  ;;  %4619 = vadd.xlane.f32.xlu0 %v4618_v31  ;;  %v4654_v31 = vsel %vm373_vm0, %v4524_v29, 0.0  ;;  %v3099_v29 = vrot.slane %v12354_v39, %v15144_v11  ;;  %v3021_v39 = vrot.slane %v12313_v26, %v15143_v1  ;;  %v3238_v26 = vrot.slane %v12327_v20, %v15143_v1 }
 0x4ec   : > { %v12563_v27 = vpop.xlane.xlu1 %2834  ;;  %4658 = vadd.xlane.f32.xlu1 %v4657_v19  ;;  %v4573_v19 = vsel %vm373_vm0, %v4497_v10, 0.0  ;;  %v12591_v10 = vpop.eup %10356  ;;  %v3040_v34 = vrot.slane %v12346_v32, %v15143_v1  ;;  %v3112_v62 = vrot.slane %v12358_v3, %v15143_v1  ;;  %v3108_v20 = vrot.slane %v12360_v48, %v15144_v11 }
 0x4ed   : > { %15145 = vst [vmem:[#allocation68_spill] sm:$0xff] %v12591_v10  ;;  %v12599_v12 = vpop.eup %10358  ;;  %v3094_v10 = vrot.slane %v12317_v30, %v15143_v1  ;;  %v3032_v30 = vsel %vm3022_vm8, %v3031_v54, %v3027_v53  ;;  %v3104_v18 = vsel %vm3022_vm8, %v3103_v60, %v3099_v29  ;;  %v3171_v32 = vrot.slane %v12372_v61, %v15144_v11 }
 0x4ee   : > { %15146 = vst [vmem:[#allocation69_spill] sm:$0xff] %v12599_v12  ;;  %v3180_v3 = vrot.slane %v12378_v57, %v15144_v11  ;;  %v3247_v48 = vrot.slane %v12381_v8, %v15143_v1  ;;  %v4410_v61 = vmin.f32 %v12253_v21, 0.0  ;;  %v3167_v29 = vsel %vm3022_vm8, %v3166_v37, %v3162_v44 }
 0x4ef   : > { %v12589_v42 = vpop.xlane.xlu0 %2843  ;;  %4655 = vadd.xlane.f32.xlu0 %v4654_v31  ;;  %v3016_v31 = vrot.slane %v12315_v45, %v15144_v11  ;;  %v3234_v45 = vrot.slane %v12331_v50, %v15144_v11  ;;  %v3175_v50 = vrot.slane %v12370_v52, %v15143_v1  ;;  %v3243_v52 = vrot.slane %v12383_v15, %v15144_v11 }
 0x4f0   : > { %v12593_v59 = vpop.xlane.xlu1 %2840  ;;  %4574 = vadd.xlane.f32.xlu1 %v4573_v19  ;;  %v12609_v19 = vpop.eup %10360  ;;  %v3095_v60 = vsel %vm3022_vm8, %v3094_v10, %v3090_v43  ;;  %v3045_v43 = vrot.slane %v12392_v40, %v15144_v11  ;;  %v3121_v40 = vrot.slane %v12404_v14, %v15143_v1  ;;  %vm6181_vm2 = vcmp.gt.f32.partialorder %v12545_v35, 0.0 }
 0x4f1   : > { %15147 = vst [vmem:[#allocation70_spill] sm:$0xff] %v12609_v19  ;;  %v12619_v22 = vpop.eup %10362  ;;  %v3036_v19 = vrot.slane %v12348_v36, %v15144_v11  ;;  %v3023_v53 = vsel %vm3022_vm8, %v3021_v39, %v3016_v31  ;;  %v3113_v39 = vsel %vm3022_vm8, %v3112_v62, %v3108_v20  ;;  %v3176_v10 = vsel %vm3022_vm8, %v3175_v50, %v3171_v32  ;;  %v15151_v20 = vld [vmem:[#allocation55_spill] sm:$0xff] }
 0x4f2   : > { %v12639_v36 = vpop.eup %10364  ;;  %v3304_v57 = vsel %vm3303_vm9, %v3032_v30, %v3023_v53  ;;  %v3049_v31 = vrot.slane %v12390_v38, %v15143_v1  ;;  %v3248_v44 = vsel %vm3022_vm8, %v3247_v48, %v3243_v52  ;;  %v3054_v38 = vrot.slane %v12397_v56, %v15144_v11 }
 0x4f3   : > { %v12627_v12 = vpop.xlane.xlu0 %2885  ;;  %4661 = vadd.xlane.f32.xlu0 %v4660_v58  ;;  %15148 = vst [vmem:[#allocation71_spill] sm:$0xff] %v12639_v36  ;;  %v3184_v58 = vrot.slane %v12376_v46, %v15143_v1  ;;  %v3239_v46 = vsel %vm3022_vm8, %v3238_v26, %v3234_v45  ;;  %v3041_v8 = vsel %vm3022_vm8, %v3040_v34, %v3036_v19  ;;  %v15149_v34 = vld [vmem:[#allocation54_spill] sm:$0xff]  ;;  %vm6182_vm5 = vcmp.gt.f32.partialorder %v12543_v17, 0.0 }
 0x4f4   : > { %v12637_v54 = vpop.xlane.xlu1 %2882  ;;  %4622 = vadd.xlane.f32.xlu1 %v4621_v25  ;;  %v12653_v25 = vpop.eup %10366  ;;  %v3317_v36 = vsel %vm3303_vm9, %v3104_v18, %v3095_v60  ;;  %v3252_v26 = vrot.slane %v12388_v24, %v15144_v11  ;;  %v3058_v45 = vrot.slane %v12395_v5, %v15143_v1  ;;  %v3306_v30 = vsel %vm3305_vm10, %v3041_v8, %v3304_v57  ;;  %v15150_v18 = vld [vmem:[#allocation49_spill] sm:$0xff] }
 0x4f5   : > { %v3185_v19 = vsel %vm3022_vm8, %v3184_v58, %v3180_v3  ;;  %v3130_v24 = vrot.slane %v15149_v34, %v15143_v1  ;;  %v3126_v5 = vrot.slane %v15150_v18, %v15144_v11  ;;  %v3324_v56 = vsel %vm3303_vm9, %v3176_v10, %v3167_v29  ;;  %v15152_v10 = vld [vmem:[#allocation50_spill] sm:$0xff] }
 0x4f6   : > { %v3050_v14 = vsel %vm3022_vm8, %v3049_v31, %v3045_v43  ;;  %v3189_v50 = vrot.slane %v15151_v20, %v15144_v11  ;;  %v12701_v58 = vsel %vm3303_vm9, %v3248_v44, %v3239_v46  ;;  %v6195_v3 = vmin.f32 %v12475_v6, 0.0  ;;  %v15153_v31 = vld [vmem:[#allocation8_spill] sm:$0xff] }
 0x4f7   : > { %v12659_v15 = vpop.xlane.xlu0 %2891  ;;  %4577 = vadd.xlane.f32.xlu0 %v4576_v4  ;;  %v3256_v4 = vrot.slane %v12386_v51, %v15143_v1  ;;  %v3318_v51 = vsel %vm3305_vm10, %v3113_v39, %v3317_v36  ;;  %v3325_v36 = vsel %vm3305_vm10, %v3185_v19, %v3324_v56  ;;  %v3059_v48 = vsel %vm3022_vm8, %v3058_v45, %v3054_v38 }
 0x4f8   : > { %v12667_v37 = vpop.xlane.xlu1 %2888  ;;  %4664 = vadd.xlane.f32.xlu1 %v4663_v55  ;;  %v3117_v55 = vrot.slane %v12414_v33, %v15144_v11  ;;  %v3193_v33 = vrot.slane %v12447_v2, %v15143_v1  ;;  %v3067_v52 = vrot.slane %v12509_v9, %v15143_v1  ;;  %v3063_v53 = vrot.slane %v12514_v16, %v15144_v11  ;;  %v15154_v16 = vld [vmem:[#allocation60_spill] sm:$0xff] }
 0x4f9   : > { %v3308_v60 = vsel %vm3307_vm11, %v3050_v14, %v3306_v30  ;;  %v3131_v29 = vsel %vm3022_vm8, %v3130_v24, %v3126_v5  ;;  %v3076_v46 = vrot.slane %v12525_v23, %v15143_v1  ;;  %v3072_v57 = vrot.slane %v12537_v28, %v15144_v11  ;;  %v15155_v14 = vld [vmem:[#allocation61_spill] sm:$0xff] }
 0x4fa   : > { %v3122_v2 = vsel %vm3022_vm8, %v3121_v40, %v3117_v55  ;;  %v3194_v39 = vsel %vm3022_vm8, %v3193_v33, %v3189_v50  ;;  %v3202_v9 = vrot.slane %v15152_v10, %v15143_v1  ;;  %v6196_v43 = vmin.f32 %v15153_v31, 0.0 }
 0x4fb   : > { %v12689_v62 = vpop.xlane.xlu0 %2933  ;;  %4625 = vadd.xlane.f32.xlu0 %v4624_v13  ;;  %v12704_v13 = vsel %vm3022_vm8, %v3256_v4, %v3252_v26  ;;  %v3198_v19 = vrot.slane %v15154_v16, %v15144_v11  ;;  %v3310_v4 = vsel %vm3309_vm12, %v3059_v48, %v3308_v60  ;;  %v3319_v23 = vsel %vm3307_vm11, %v3122_v2, %v3318_v51  ;;  %v15158_v16 = vld [vmem:[#allocation64_spill] sm:$0xff] }
 0x4fc   : > { %v12697_v32 = vpop.xlane.xlu1 %2930  ;;  %v6211_v26 = vmul.f32 1.442695, %v6195_v3  ;;  %v6197_v28 = vmin.f32 %v12545_v35, 0.0  ;;  %v3320_v45 = vsel %vm3309_vm12, %v3131_v29, %v3319_v23  ;;  %v3068_v38 = vsel %vm3022_vm8, %v3067_v52, %v3063_v53 }
 0x4fd   : > { %v3139_v40 = vrot.slane %v12555_v47, %v15143_v1  ;;  %v3135_v55 = vrot.slane %v12563_v27, %v15144_v11  ;;  %v3326_v30 = vsel %vm3307_vm11, %v3194_v39, %v3325_v36  ;;  %v3077_v34 = vsel %vm3022_vm8, %v3076_v46, %v3072_v57  ;;  %v15156_v46 = vld [vmem:[#allocation62_spill] sm:$0xff] }
 0x4fe   : > { %v3148_v51 = vrot.slane %v12589_v42, %v15143_v1  ;;  %v3144_v24 = vrot.slane %v12593_v59, %v15144_v11  ;;  %v6213_v5 = vmul.f32 1.442695, %v6196_v43  ;;  %v3203_v56 = vsel %vm3022_vm8, %v3202_v9, %v3198_v19 }
 0x4ff   : > { %v12719_v8 = vpop.xlane.xlu0 %2939  ;;  %v3265_v47 = vrot.slane %v15155_v14, %v15143_v1  ;;  %10368 = vpow2.f32 %v6211_v26  ;;  %v6215_v20 = vmul.f32 1.442695, %v6197_v28  ;;  %v3312_v36 = vsel %vm3311_vm13, %v3068_v38, %v3310_v4 }
 0x500   : > { %v12727_v44 = vpop.xlane.xlu1 %2936  ;;  %v3140_v42 = vsel %vm3022_vm8, %v3139_v40, %v3135_v55  ;;  %v3211_v59 = vrot.slane %v12627_v12, %v15143_v1  ;;  %v3207_v3 = vrot.slane %v12637_v54, %v15144_v11  ;;  %v3314_v48 = vsel %vm3313_vm14, %v3077_v34, %v3312_v36  ;;  %v15157_v12 = vld [vmem:[#allocation63_spill] sm:$0xff] }
 0x501   : > { %v3149_v2 = vsel %vm3022_vm8, %v3148_v51, %v3144_v24  ;;  %v3220_v52 = vrot.slane %v12659_v15, %v15143_v1  ;;  %v3216_v53 = vrot.slane %v12667_v37, %v15144_v11  ;;  %v3261_v57 = vrot.slane %v15156_v46, %v15144_v11 }
 0x502   : > { %v3274_v39 = vrot.slane %v15157_v12, %v15143_v1  ;;  %10370 = vpow2.f32 %v6215_v20  ;;  %v3321_v37 = vsel %vm3311_vm13, %v3140_v42, %v3320_v45  ;;  %v3270_v19 = vrot.slane %v15158_v16, %v15144_v11 }
 0x503   : > { %v2802_v18 = vpop.xlane.xlu0 %2801  ;;  %v6198_v4 = vmin.f32 %v12543_v17, 0.0  ;;  %v3212_v23 = vsel %vm3022_vm8, %v3211_v59, %v3207_v3  ;;  %v3322_v26 = vsel %vm3313_vm14, %v3149_v2, %v3321_v37  ;;  %v3221_v28 = vsel %vm3022_vm8, %v3220_v52, %v3216_v53 }
 0x504   : > { %v3085_v33 = vrot.slane %v2802_v18, %v15143_v1  ;;  %v2799_v27 = vpop.xlane.xlu1 %2798  ;;  %v3283_v38 = vrot.slane %v12689_v62, %v15143_v1  ;;  %v3279_v40 = vrot.slane %v12697_v32, %v15144_v11  ;;  %v3292_v34 = vrot.slane %v12719_v8, %v15143_v1 }
 0x505   : > { %v3081_v50 = vrot.slane %v2799_v27, %v15144_v11  ;;  %v3288_v51 = vrot.slane %v12727_v44, %v15144_v11  ;;  %v3266_v62 = vsel %vm3022_vm8, %v3265_v47, %v3261_v57  ;;  %v3332_v8 = vsel %vm3305_vm10, %v12704_v13, %v12701_v58 }
 0x506   : > { %10372 = vpow2.f32 %v6213_v5  ;;  %v3275_v44 = vsel %vm3022_vm8, %v3274_v39, %v3270_v19  ;;  %v6217_v36 = vmul.f32 1.442695, %v6198_v4  ;;  %v3333_v59 = vsel %vm3307_vm11, %v3266_v62, %v3332_v8  ;;  %v15167_v8 = vld [vmem:[#allocation42_spill] sm:$0xff] }
 0x507   : > { %v2850_v60 = vpop.xlane.xlu0 %2849  ;;  %v3086_v29 = vsel %vm3022_vm8, %v3085_v33, %v3081_v50  ;;  %v3327_v33 = vsel %vm3309_vm12, %v3203_v56, %v3326_v30  ;;  %v3284_v30 = vsel %vm3022_vm8, %v3283_v38, %v3279_v40  ;;  %v3293_v3 = vsel %vm3022_vm8, %v3292_v34, %v3288_v51  ;;  %v15164_v34 = vld [vmem:[#allocation51_spill] sm:$0xff] }
 0x508   : > { %v3157_v54 = vrot.slane %v2850_v60, %v15143_v1  ;;  %v2847_v10 = vpop.xlane.xlu1 %2846  ;;  %v3316_v9 = vsel %vm3315_vm15, %v3086_v29, %v3314_v48  ;;  %v3328_v20 = vsel %vm3311_vm13, %v3212_v23, %v3327_v33  ;;  %v15159_v48 = vld [vmem:[#allocation46_spill] sm:$0xff]  ;;  %v3334_v2 = vsel %vm3309_vm12, %v3275_v44, %v3333_v59  ;;  %v15168_v44 = vld [vmem:[#allocation68_spill] sm:$0xff] }
 0x509   : > { %v3153_v15 = vrot.slane %v2847_v10, %v15144_v11  ;;  %v3342_v43 = vsel %vm1762_vm4, %v3316_v9, 0.0  ;;  %v10369_v50 = vpop.eup %10368  ;;  %v3329_v42 = vsel %vm3313_vm14, %v3221_v28, %v3328_v20  ;;  %10374 = vrcp.f32 %v15159_v48  ;;  %v15160_v29 = vld [vmem:[#allocation38_spill] sm:$0xff] }
 0x50a   : > { %3343 = vadd.xlane.f32.xlu1 %v3342_v43  ;;  %10376 = vrcp.f32 %v15160_v29  ;;  %v9165_v46 = vadd.f32 -1.0, %v10369_v50  ;;  %v3335_v12 = vsel %vm3311_vm13, %v3284_v30, %v3334_v2  ;;  %v15161_v43 = vld [vmem:[#allocation48_spill] sm:$0xff]  ;;  %v4699_v16 = vsel %vm373_vm0, %v12579_v49, 0.0  ;;  %v15162_v28 = vld [vmem:[#allocation30_spill] sm:$0xff] }
 0x50b   : > { %v2898_v55 = vpop.xlane.xlu0 %2897  ;;  %v3158_v45 = vsel %vm3022_vm8, %v3157_v54, %v3153_v15  ;;  %v4434_v54 = vmul.f32 1.442695, %v4410_v61  ;;  %10378 = vpow2.f32 %v6217_v36  ;;  %v3336_v15 = vsel %vm3313_vm14, %v3293_v3, %v3335_v12  ;;  %v15169_v50 = vld [vmem:[#allocation44_spill] sm:$0xff]  ;;  %v15170_v36 = vld [vmem:[#allocation69_spill] sm:$0xff]  ;;  %v15172_v3 = vld [vmem:[#allocation47_spill] sm:$0xff] }
 0x50c   : > { %v3229_v24 = vrot.slane %v2898_v55, %v15143_v1  ;;  %v2895_v18 = vpop.xlane.xlu1 %2894  ;;  %v3323_v14 = vsel %vm3315_vm15, %v3158_v45, %v3322_v26  ;;  %v10371_v39 = vpop.eup %10370  ;;  %10380 = vrcp.f32 %v15161_v43  ;;  %v4541_v4 = vmul.f32 %v12561_v7, %v12426_v0  ;;  %v12835_v26 = vld [vmem:[%s14810_s3 + $0x78] sm:$0xff]  ;;  %v12844_v0 = vld [vmem:[%s14810_s3 + $0x80] sm:$0xff] }
 0x50d   : > { %v3225_v32 = vrot.slane %v2895_v18, %v15144_v11  ;;  %v3345_v27 = vsel %vm1762_vm4, %v3323_v14, 0.0  ;;  %v4528_v23 = vmul.f32 %v12533_v63, %v12492_v41  ;;  %10382 = vrcp.f32 %v15162_v28  ;;  %v15163_v45 = vld [vmem:[#allocation37_spill] sm:$0xff] }
 0x50e   : > { %3346 = vadd.xlane.f32.xlu0 %v3345_v27  ;;  %v12839_v49 = vsel %vm6179_vm1, %v12475_v6, %v9165_v46  ;;  %v9167_v38 = vadd.f32 -1.0, %v10371_v39  ;;  %10384 = vpow2.f32 %v4434_v54  ;;  %v4411_v51 = vmin.f32 %v15164_v34, 0.0  ;;  %v15165_v6 = vld [vmem:[#allocation45_spill] sm:$0xff] }
 0x50f   : > { %v2946_v56 = vpop.xlane.xlu0 %2945  ;;  %v3230_v47 = vsel %vm3022_vm8, %v3229_v24, %v3225_v32  ;;  %10386 = vrcp.f32 %v15163_v45  ;;  %v4540_v18 = vmul.f32 %v12835_v26, %v15165_v6  ;;  %v4705_v14 = vsel %vm373_vm0, %v4541_v4, 0.0  ;;  %v15166_v32 = vld [vmem:[#allocation6_spill] sm:$0xff]  ;;  %v12901_v45 = vld [vmem:[%s14810_s3 + $0x90] sm:$0xff] }
 0x510   : > { %v3301_v58 = vrot.slane %v2946_v56, %v15143_v1  ;;  %v2943_v13 = vpop.xlane.xlu1 %2942  ;;  %v3330_v5 = vsel %vm3315_vm15, %v3230_v47, %v3329_v42  ;;  %v10373_v55 = vpop.eup %10372  ;;  %v4666_v33 = vsel %vm373_vm0, %v4528_v23, 0.0  ;;  %v6284_v62 = vmul.f32 %v12844_v0, %v12839_v49  ;;  %v15171_v47 = vld [vmem:[#allocation11_spill] sm:$0xff]  ;;  %v15177_v23 = vld [vmem:[#allocation34_spill] sm:$0xff]  ;;  %v15178_v6 = vld [vmem:[#allocation56_spill] sm:$0xff] }
 0x511   : > { %v3297_v52 = vrot.slane %v2943_v13, %v15144_v11  ;;  %v12807_v53 = vpop.f32.mrb[32].mxu0  ;;  %v3348_v60 = vsel %vm1762_vm4, %v3330_v5, 0.0  ;;  %10388 = vrcp.f32 %v15166_v32  ;;  %v12861_v27 = vsel %vm6181_vm2, %v12545_v35, %v9167_v38  ;;  %v15174_v13 = vld [vmem:[#allocation70_spill] sm:$0xff] }
 0x512   : > { %v12811_v57 = vpop.f32.mrb[33].mxu0  ;;  %3349 = vadd.xlane.f32.xlu1 %v3348_v60  ;;  %v12865_v20 = vmul.f32 %v15168_v44, %v15167_v8  ;;  %v12869_v30 = vmul.f32 %v15170_v36, %v15169_v50  ;;  %10390 = vrcp.f32 %v15171_v47  ;;  %v9166_v42 = vadd.f32 -1.0, %v10373_v55 }
 0x513   : > { %v12816_v10 = vpop.xlane.xlu0 %7233  ;;  %v3302_v9 = vsel %vm3022_vm8, %v3301_v58, %v3297_v52  ;;  %v12871_v56 = vpop.eup %10374  ;;  %v4542_v35 = vmul.f32 %v12835_v26, %v15172_v3  ;;  %v15173_v58 = vld [vmem:[#allocation36_spill] sm:$0xff]  ;;  %v4436_v2 = vmul.f32 1.442695, %v4411_v51  ;;  %v4702_v46 = vsel %vm373_vm0, %v4540_v18, 0.0 }
 0x514   : > { %v12821_v37 = vpop.xlane.xlu1 %7236  ;;  %v3337_v19 = vsel %vm3315_vm15, %v3302_v9, %v3336_v15  ;;  %v12878_v5 = vmul.f32 %v15174_v13, %v15173_v58  ;;  %v12880_v48 = vpop.eup %10376  ;;  %v6348_v9 = vsel %vm373_vm0, %v6284_v62, 0.0  ;;  %v6286_v15 = vmul.f32 %v12844_v0, %v12861_v27  ;;  %v12906_v51 = vld [vmem:[%s14810_s3 + $0x88] sm:$0xff] }
 0x515   : > { %v3351_v61 = vsel %vm1762_vm4, %v3337_v19, 0.0  ;;  %v10379_v12 = vpop.eup %10378  ;;  %vm6180_vm3 = vcmp.gt.f32.partialorder %v15153_v31, 0.0  ;;  %v4708_v8 = vsel %vm373_vm0, %v4542_v35, 0.0  ;;  %v6300_v35 = vmul.f32 %v12901_v45, %v12839_v49 }
 0x516   : > { %4700 = vadd.xlane.f32.xlu1 %v4699_v16  ;;  %3352 = vadd.xlane.f32.xlu0 %v3351_v61  ;;  %v12886_v43 = vpop.eup %10380  ;;  %v15175_v16 = vld [vmem:[#allocation29_spill] sm:$0xff]  ;;  %v12896_v28 = vsel %vm6180_vm3, %v15153_v31, %v9166_v42  ;;  %v9168_v31 = vadd.f32 -1.0, %v10379_v12  ;;  %v6354_v47 = vsel %vm373_vm0, %v6286_v15, 0.0  ;;  %vm4395_vm7 = vcmp.gt.f32.partialorder %v15164_v34, 0.0 }
 0x517   : > { %v12846_v40 = vpop.xlane.xlu0 %7239  ;;  %10392 = vrcp.f32 %v15175_v16  ;;  %v15176_v61 = vld [vmem:[#allocation53_spill] sm:$0xff]  ;;  %v6285_v13 = vmul.f32 %v12906_v51, %v12896_v28  ;;  %vm6183_vm1 = vcmp.gt.f32.partialorder %v12811_v57, 0.0  ;;  %vm6184_vm2 = vcmp.gt.f32.partialorder %v12807_v53, 0.0 }
 0x518   : > { %v12850_v24 = vpop.xlane.xlu1 %7242  ;;  %v12892_v4 = vmul.f32 %v12619_v22, %v15176_v61  ;;  %10394 = vrcp.f32 %v15177_v23  ;;  %v15179_v22 = vld [vmem:[#allocation71_spill] sm:$0xff]  ;;  %v15182_v23 = vld [vmem:[#allocation28_spill] sm:$0xff] }
 0x519   : > { %v12910_v18 = vmul.f32 %v15179_v22, %v15178_v6  ;;  %10396 = vpow2.f32 %v4436_v2  ;;  %v15180_v2 = vld [vmem:[#allocation39_spill] sm:$0xff]  ;;  %v6351_v22 = vsel %vm373_vm0, %v6285_v13, 0.0  ;;  %v12970_v13 = vld [vmem:[%s14810_s3 + $0x98] sm:$0xff] }
 0x51a   : > { %4706 = vadd.xlane.f32.xlu1 %v4705_v14  ;;  %4667 = vadd.xlane.f32.xlu0 %v4666_v33  ;;  %v12912_v14 = vpop.eup %10382  ;;  %10398 = vrcp.f32 %v15180_v2 }
 0x51b   : > { %v10036_v59 = vpop.permute.xlu0 %10035  ;;  %v10385_v44 = vpop.eup %10384  ;;  %10400 = vrcp.f32 %v15182_v23 }
 0x51c   : > { %v10038_v52 = vunpack.i.h.bf16 %v10036_v59  ;;  %v10037_v60 = vunpack.i.l.bf16 %v10036_v59  ;;  %v10041_v29 = vpop.permute.xlu1 %10040  ;;  %v12916_v42 = vpop.eup %10386  ;;  %v6199_v59 = vmin.f32 %v12811_v57, 0.0 }
 0x51d   : > { %v10043_v39 = vunpack.i.h.bf16 %v10041_v29  ;;  %v10042_v54 = vunpack.i.l.bf16 %v10041_v29 }
 0x51e   : > { %6349 = vadd.xlane.f32.xlu1 %v6348_v9  ;;  %4703 = vadd.xlane.f32.xlu0 %v4702_v46  ;;  %v9859_v19 = vpack.c.bf16 %v10038_v52, %v10037_v60  ;;  %v15181_v46 = vld [vmem:[#allocation57_spill] sm:$0xff]  ;;  %v12934_v9 = vsel %vm6182_vm5, %v12543_v17, %v9168_v31  ;;  %v6219_v6 = vmul.f32 1.442695, %v6199_v59 }
 0x51f   : > { %v10046_v38 = vpop.permute.xlu0 %10045  ;;  %v9863_v55 = vpack.c.bf16 %v10043_v39, %v10042_v54  ;;  %v5482_v12 = vmul.f32 %v12653_v25, %v15181_v46  ;;  %v12931_v39 = vpop.eup %10388  ;;  %v9133_v54 = vadd.f32 -1.0, %v10385_v44  ;;  %v15183_v25 = vld [vmem:[#allocation4_spill] sm:$0xff]  ;;  %v6200_v46 = vmin.f32 %v12807_v53, 0.0 }
 0x520   : > { %v10048_v33 = vunpack.i.h.bf16 %v10046_v38  ;;  %v10047_v62 = vunpack.i.l.bf16 %v10046_v38  ;;  %9860 = vmatprep.subr.bf16.mxu0 %v9859_v19  ;;  %v10051_v32 = vpop.permute.xlu1 %10050  ;;  %v12938_v61 = vpop.eup %10390  ;;  %v7245_v17 = vmul.f32 %v12871_v56, %v15183_v25  ;;  %v6287_v56 = vmul.f32 %v12906_v51, %v12934_v9 }
 0x521   : > { %v10053_v50 = vunpack.i.h.bf16 %v10051_v32  ;;  %v10052_v36 = vunpack.i.l.bf16 %v10051_v32  ;;  %9862 = vmatpush3.bf16.msra.mxu0 %v9859_v19  ;;  %9864 = vmatprep.subr.bf16.mxu1 %v9863_v55  ;;  %v12954_v32 = vpop.eup %10392 }
 0x522   : > { %v12919_v3 = vpop.f32.mrb[36].mxu1  ;;  %6355 = vadd.xlane.f32.xlu1 %v6354_v47  ;;  %4709 = vadd.xlane.f32.xlu0 %v4708_v8  ;;  %v9867_v58 = vpack.c.bf16 %v10048_v33, %v10047_v62  ;;  %v12958_v8 = vsel %vm4394_vm6, %v12253_v21, %v9133_v54  ;;  %v10395_v47 = vpop.eup %10394  ;;  %v6357_v54 = vsel %vm373_vm0, %v6287_v56, 0.0 }
 0x523   : > { %9866 = vmatpush3.bf16.msra.mxu1 %v9863_v55  ;;  %v10056_v52 = vpop.permute.xlu0 %10055  ;;  %v12927_v60 = vpop.f32.mrb[37].mxu1  ;;  %v9871_v29 = vpack.c.bf16 %v10053_v50, %v10052_v36 }
 0x524   : > { %v10058_v15 = vunpack.i.h.bf16 %v10056_v52  ;;  %v10057_v16 = vunpack.i.l.bf16 %v10056_v52  ;;  %9660 = vmatmul.mubr.msk.f32.vlgmr.msra.gmra.mrb[34].mxu0 %vm1762_vm4, %v12865_v20  ;;  %9868 = vmatprep.subr.bf16.mxu0 %v9867_v58  ;;  %v10061_v19 = vpop.permute.xlu1 %10060  ;;  %v6396_v20 = vsel %vm373_vm0, %v6300_v35, 0.0  ;;  %v15185_v35 = vld [vmem:[#allocation12_spill] sm:$0xff]  ;;  %vm6185_vm6 = vcmp.gt.f32.partialorder %v12927_v60, 0.0 }
 0x525   : > { %v10063_v38 = vunpack.i.h.bf16 %v10061_v19  ;;  %v10062_v55 = vunpack.i.l.bf16 %v10061_v19  ;;  %9870 = vmatpush3.bf16.msra.mxu0 %v9867_v58  ;;  %9673 = vmatprep.mubr.msk.f32.mxu0 %vm1762_vm4, %v12878_v5  ;;  %v6302_v5 = vmul.f32 %v12901_v45, %v12861_v27  ;;  %v7249_v21 = vmul.f32 %v12880_v48, %v15185_v35 }
 0x526   : > { %9667 = vmatmul.mubr.msk.f32.vlgmr.msra.gmra.mrb[38].mxu1 %vm1762_vm4, %v12869_v30  ;;  %9872 = vmatprep.subr.bf16.mxu1 %v9871_v29  ;;  %v9875_v31 = vpack.c.bf16 %v10058_v15, %v10057_v16  ;;  %v15184_v30 = vld [vmem:[#allocation58_spill] sm:$0xff]  ;;  %v15188_v16 = vld [vmem:[#allocation43_spill] sm:$0xff] }
 0x527   : > { %6397 = vadd.xlane.f32.xlu1 %v6396_v20  ;;  %6352 = vadd.xlane.f32.xlu0 %v6351_v22  ;;  %v10066_v33 = vpop.permute.xlu0 %10065  ;;  %v9879_v62 = vpack.c.bf16 %v10063_v38, %v10062_v55  ;;  %10402 = vrcp.f32 %v15184_v30  ;;  %v6402_v48 = vsel %vm373_vm0, %v6302_v5, 0.0  ;;  %v4499_v19 = vmul.f32 %v15188_v16, %v12958_v8  ;;  %v15190_v22 = vld [vmem:[#allocation16_spill] sm:$0xff] }
 0x528   : > { %9874 = vmatpush3.bf16.msra.mxu1 %v9871_v29  ;;  %9680 = vmatprep.mubr.msk.f32.mxu1 %vm1762_vm4, %v12892_v4  ;;  %v10068_v44 = vunpack.i.h.bf16 %v10066_v33  ;;  %v10067_v50 = vunpack.i.l.bf16 %v10066_v33  ;;  %v10071_v36 = vpop.permute.xlu1 %10070  ;;  %10404 = vrcp.f32 %v12816_v10  ;;  %v15186_v4 = vld [vmem:[#allocation27_spill] sm:$0xff]  ;;  %v10397_v29 = vpop.eup %10396  ;;  %v6301_v55 = vmul.f32 %v12970_v13, %v12896_v28  ;;  %v15191_v33 = vld [vmem:[#allocation13_spill] sm:$0xff] }
 0x529   : > { %9674 = vmatmul.mubr.msk.f32.vlgmr.msra.gmra.mrb[36].mxu0 %vm1762_vm4, %v12910_v18  ;;  %9876 = vmatprep.subr.bf16.mxu0 %v9875_v31  ;;  %v10073_v59 = vunpack.i.h.bf16 %v10071_v36  ;;  %v10072_v58 = vunpack.i.l.bf16 %v10071_v36  ;;  %10406 = vpow2.f32 %v6219_v6  ;;  %v7247_v10 = vmul.f32 %v12886_v43, %v15186_v4  ;;  %v15187_v18 = vld [vmem:[#allocation10_spill] sm:$0xff]  ;;  %v10399_v25 = vpop.eup %10398  ;;  %v15189_v6 = vld [vmem:[#allocation15_spill] sm:$0xff] }
 0x52a   : > { %9878 = vmatpush3.bf16.msra.mxu0 %v9875_v31  ;;  %9687 = vmatprep.mubr.msk.f32.mxu0 %vm1762_vm4, %v7245_v17  ;;  %v9883_v2 = vpack.c.bf16 %v10068_v44, %v10067_v50  ;;  %v7251_v52 = vmul.f32 %v12912_v14, %v15187_v18  ;;  %10408 = vrcp.f32 %v12846_v40  ;;  %v7253_v20 = vmul.f32 %v12916_v42, %v15189_v6  ;;  %v15192_v40 = vld [vmem:[#allocation7_spill] sm:$0xff]  ;;  %v10401_v56 = vpop.eup %10400 }
 0x52b   : > { %9681 = vmatmul.mubr.msk.f32.vlgmr.msra.gmra.mrb[40].mxu1 %vm1762_vm4, %v5482_v12  ;;  %9880 = vmatprep.subr.bf16.mxu1 %v9879_v62  ;;  %v10076_v15 = vpop.permute.xlu0 %10075  ;;  %v9887_v14 = vpack.c.bf16 %v10073_v59, %v10072_v58  ;;  %10410 = vrcp.f32 %v12821_v37  ;;  %v7257_v31 = vmul.f32 %v12931_v39, %v15190_v22  ;;  %v7255_v5 = vmul.f32 %v12938_v61, %v15191_v33  ;;  %v15193_v58 = vld [vmem:[#allocation52_spill] sm:$0xff] }
 0x52c   : > { %6403 = vadd.xlane.f32.xlu1 %v6402_v48  ;;  %6358 = vadd.xlane.f32.xlu0 %v6357_v54  ;;  %v10078_v43 = vunpack.i.h.bf16 %v10076_v15  ;;  %v10077_v23 = vunpack.i.l.bf16 %v10076_v15  ;;  %v10081_v38 = vpop.permute.xlu1 %10080  ;;  %v9134_v30 = vadd.f32 -1.0, %v10397_v29  ;;  %v6221_v44 = vmul.f32 1.442695, %v6200_v46  ;;  %v15195_v46 = vld [vmem:[#allocation17_spill] sm:$0xff]  ;;  %v13025_v6 = vld [vmem:[%s14810_s3 + $0x48] sm:$0xff] }
 0x52d   : > { %9882 = vmatpush3.bf16.msra.mxu1 %v9879_v62  ;;  %9694 = vmatprep.mubr.msk.f32.mxu1 %vm1762_vm4, %v7249_v21  ;;  %v10083_v12 = vunpack.i.h.bf16 %v10081_v38  ;;  %v10082_v17 = vunpack.i.l.bf16 %v10081_v38  ;;  %v7261_v62 = vmul.f32 %v10395_v47, %v15192_v40  ;;  %v4579_v42 = vsel %vm373_vm0, %v4499_v19, 0.0  ;;  %v15196_v19 = vld [vmem:[#allocation24_spill] sm:$0xff]  ;;  %v15198_v38 = vld [vmem:[#allocation65_spill] sm:$0xff] }
 0x52e   : > { %9688 = vmatmul.mubr.msk.f32.vlgmr.msra.gmra.mrb[38].mxu0 %vm1762_vm4, %v7247_v10  ;;  %9884 = vmatprep.subr.bf16.mxu0 %v9883_v2  ;;  %v9891_v50 = vpack.c.bf16 %v10078_v43, %v10077_v23  ;;  %10412 = vrcp.f32 %v12850_v24  ;;  %v6399_v39 = vsel %vm373_vm0, %v6301_v55, 0.0  ;;  %v4515_v35 = vmul.f32 %v15193_v58, %v12958_v8  ;;  %v15194_v24 = vld [vmem:[#allocation22_spill] sm:$0xff]  ;;  %v15201_v40 = vld [vmem:[#allocation33_spill] sm:$0xff] }
 0x52f   : > { %9886 = vmatpush3.bf16.msra.mxu0 %v9883_v2  ;;  %9701 = vmatprep.mubr.msk.f32.mxu0 %vm1762_vm4, %v7253_v20  ;;  %v10086_v37 = vpop.permute.xlu0 %10085  ;;  %v9895_v59 = vpack.c.bf16 %v10083_v12, %v10082_v17  ;;  %v6303_v21 = vmul.f32 %v12970_v13, %v12934_v9  ;;  %v4412_v10 = vmin.f32 %v15194_v24, 0.0  ;;  %v13009_v29 = vsel %vm4395_vm7, %v15164_v34, %v9134_v30  ;;  %v15197_v23 = vld [vmem:[#allocation66_spill] sm:$0xff] }
 0x530   : > { %9695 = vmatmul.mubr.msk.f32.vlgmr.msra.gmra.mrb[42].mxu1 %vm1762_vm4, %v7251_v52  ;;  %9888 = vmatprep.subr.bf16.mxu1 %v9887_v14  ;;  %v10088_v61 = vunpack.i.h.bf16 %v10086_v37  ;;  %v10087_v36 = vunpack.i.l.bf16 %v10086_v37  ;;  %v10091_v47 = vpop.permute.xlu1 %10090  ;;  %10414 = vpow2.f32 %v6221_v44  ;;  %v7259_v48 = vmul.f32 %v12954_v32, %v15195_v46  ;;  %v15199_v32 = vld [vmem:[#allocation32_spill] sm:$0xff]  ;;  %v15202_v30 = vld [vmem:[#allocation14_spill] sm:$0xff]  ;;  %v15207_v46 = vld [vmem:[#allocation67_spill] sm:$0xff] }
 0x531   : > { %4580 = vadd.xlane.f32.xlu1 %v4579_v42  ;;  %6400 = vadd.xlane.f32.xlu0 %v6399_v39  ;;  %v10403_v4 = vpop.eup %10402  ;;  %v10093_v2 = vunpack.i.h.bf16 %v10091_v47  ;;  %v10092_v18 = vunpack.i.l.bf16 %v10091_v47  ;;  %v4627_v16 = vsel %vm373_vm0, %v4515_v35, 0.0  ;;  %v6405_v34 = vsel %vm373_vm0, %v6303_v21, 0.0  ;;  %v13049_v58 = vld [vmem:[%s14810_s3 + $0x58] sm:$0xff] }
 0x532   : > { %9890 = vmatpush3.bf16.msra.mxu1 %v9887_v14  ;;  %9708 = vmatprep.mubr.msk.f32.mxu1 %vm1762_vm4, %v7257_v31  ;;  %v10405_v52 = vpop.eup %10404  ;;  %v9899_v15 = vpack.c.bf16 %v10088_v61, %v10087_v36  ;;  %v7265_v43 = vmul.f32 %v10399_v25, %v15196_v19  ;;  %v4529_v14 = vmul.f32 %v15198_v38, %v15197_v23  ;;  %v4438_v55 = vmul.f32 1.442695, %v4412_v10  ;;  %v15200_v25 = vld [vmem:[#allocation26_spill] sm:$0xff]  ;;  %v15204_v61 = vld [vmem:[#allocation31_spill] sm:$0xff] }
 0x533   : > { %9702 = vmatmul.mubr.msk.f32.vlgmr.msra.gmra.mrb[40].mxu0 %vm1762_vm4, %v7255_v5  ;;  %9892 = vmatprep.subr.bf16.mxu0 %v9891_v50  ;;  %v10407_v54 = vpop.eup %10406  ;;  %v7263_v12 = vmul.f32 %v10401_v56, %v15199_v32  ;;  %v9903_v17 = vpack.c.bf16 %v10093_v2, %v10092_v18  ;;  %v4500_v20 = vmul.f32 %v13025_v6, %v13009_v29  ;;  %v4413_v36 = vmin.f32 %v15204_v61, 0.0 }
 0x534   : > { %9894 = vmatpush3.bf16.msra.mxu0 %v9891_v50  ;;  %9715 = vmatprep.mubr.msk.f32.mxu0 %vm1762_vm4, %v7261_v62  ;;  %v10409_v22 = vpop.eup %10408  ;;  %v9169_v31 = vadd.f32 -1.0, %v10407_v54  ;;  %v7269_v33 = vmul.f32 %v10405_v52, %v15200_v25  ;;  %v7267_v62 = vmul.f32 %v10403_v4, %v15201_v40  ;;  %v4669_v56 = vsel %vm373_vm0, %v4529_v14, 0.0  ;;  %v15203_v50 = vld [vmem:[#allocation59_spill] sm:$0xff] }
 0x535   : > { %9709 = vmatmul.mubr.msk.f32.vlgmr.msra.gmra.mrb[44].mxu1 %vm1762_vm4, %v7259_v48  ;;  %9896 = vmatprep.subr.bf16.mxu1 %v9895_v59  ;;  %v10411_v5 = vpop.eup %10410  ;;  %v4543_v44 = vmul.f32 %v12561_v7, %v15202_v30  ;;  %10416 = vpow2.f32 %v4438_v55  ;;  %v4582_v37 = vsel %vm373_vm0, %v4500_v20, 0.0  ;;  %v7273_v39 = vmul.f32 %v10409_v22, %v15203_v50  ;;  %v13099_v40 = vld [vmem:[%s14810_s3 + $0xa8] sm:$0xff] }
 0x536   : > { %4628 = vadd.xlane.f32.xlu1 %v4627_v16  ;;  %6406 = vadd.xlane.f32.xlu0 %v6405_v34  ;;  %v13043_v47 = vsel %vm6183_vm1, %v12811_v57, %v9169_v31  ;;  %v4516_v35 = vmul.f32 %v13049_v58, %v13009_v29  ;;  %v15206_v57 = vld [vmem:[#allocation9_spill] sm:$0xff]  ;;  %v4440_v18 = vmul.f32 1.442695, %v4413_v36  ;;  %v4530_v48 = vmul.f32 %v12533_v63, %v15207_v46  ;;  %v13074_v63 = vld [vmem:[%s14810_s3 + $0xa0] sm:$0xff] }
 0x537   : > { %9898 = vmatpush3.bf16.msra.mxu1 %v9895_v59  ;;  %9722 = vmatprep.mubr.msk.f32.mxu1 %vm1762_vm4, %v7265_v43  ;;  %v15205_v59 = vld [vmem:[#allocation41_spill] sm:$0xff]  ;;  %v4711_v10 = vsel %vm373_vm0, %v4543_v44, 0.0  ;;  %v6288_v2 = vmul.f32 %v12844_v0, %v13043_v47  ;;  %v6304_v34 = vmul.f32 %v12901_v45, %v13043_v47  ;;  %v4544_v43 = vmul.f32 %v12835_v26, %v12492_v41 }
 0x538   : > { %9716 = vmatmul.mubr.msk.f32.vlgmr.msra.gmra.mrb[42].mxu0 %vm1762_vm4, %v7263_v12  ;;  %9900 = vmatprep.subr.bf16.mxu0 %v9899_v15  ;;  %v10413_v42 = vpop.eup %10412  ;;  %v7271_v7 = vmul.f32 %v10411_v5, %v15205_v59  ;;  %v4630_v52 = vsel %vm373_vm0, %v4516_v35, 0.0  ;;  %10418 = vpow2.f32 %v4440_v18  ;;  %v4672_v19 = vsel %vm373_vm0, %v4530_v48, 0.0  ;;  %v13116_v36 = vld [vmem:[%s14810_s3 + $0x50] sm:$0xff] }
 0x539   : > { %9902 = vmatpush3.bf16.msra.mxu0 %v9899_v15  ;;  %9729 = vmatprep.mubr.msk.f32.mxu0 %vm1762_vm4, %v7269_v33  ;;  %v7275_v4 = vmul.f32 %v10413_v42, %v15206_v57  ;;  %v6201_v15 = vmin.f32 %v12927_v60, 0.0  ;;  %v6360_v16 = vsel %vm373_vm0, %v6288_v2, 0.0  ;;  %v6408_v32 = vsel %vm373_vm0, %v6304_v34, 0.0 }
 0x53a   : > { %9723 = vmatmul.mubr.msk.f32.vlgmr.msra.gmra.mrb[46].mxu1 %vm1762_vm4, %v7267_v62  ;;  %9904 = vmatprep.subr.bf16.mxu1 %v9903_v17  ;;  %v10415_v21 = vpop.eup %10414  ;;  %v6316_v12 = vmul.f32 %v13074_v63, %v12839_v49  ;;  %v4714_v41 = vsel %vm373_vm0, %v4544_v43, 0.0  ;;  %vm4396_vm3 = vcmp.gt.f32.partialorder %v15194_v24, 0.0  ;;  %v6318_v22 = vmul.f32 %v13074_v63, %v12861_v27 }
 0x53b   : > { %4670 = vadd.xlane.f32.xlu1 %v4669_v56  ;;  %4583 = vadd.xlane.f32.xlu0 %v4582_v37  ;;  %v9170_v54 = vadd.f32 -1.0, %v10415_v21  ;;  %v6223_v55 = vmul.f32 1.442695, %v6201_v15  ;;  %v6202_v25 = vmin.f32 %v12919_v3, 0.0  ;;  %v6317_v37 = vmul.f32 %v13099_v40, %v12896_v28 }
 0x53c   : > { %9906 = vmatpush3.bf16.msra.mxu1 %v9903_v17  ;;  %9736 = vmatprep.mubr.msk.f32.mxu1 %vm1762_vm4, %v7273_v39  ;;  %v6450_v56 = vsel %vm373_vm0, %v6318_v22, 0.0  ;;  %vm4397_vm5 = vcmp.gt.f32.partialorder %v15204_v61, 0.0  ;;  %v6319_v35 = vmul.f32 %v13099_v40, %v12934_v9  ;;  %vm6186_vm7 = vcmp.gt.f32.partialorder %v12919_v3, 0.0 }
 0x53d   : > { %9730 = vmatmul.mubr.msk.f32.vlgmr.msra.gmra.mrb[44].mxu0 %vm1762_vm4, %v7271_v7  ;;  %v13077_v14 = vsel %vm6184_vm2, %v12807_v53, %v9170_v54  ;;  %10420 = vpow2.f32 %v6223_v55  ;;  %v6444_v53 = vsel %vm373_vm0, %v6316_v12, 0.0  ;;  %v6225_v44 = vmul.f32 1.442695, %v6202_v25  ;;  %v13143_v54 = vld [vmem:[%s14810_s3 + $0x70] sm:$0xff] }
 0x53e   : > { %v6289_v20 = vmul.f32 %v12906_v51, %v13077_v14  ;;  %v6305_v5 = vmul.f32 %v12970_v13, %v13077_v14  ;;  %v6447_v7 = vsel %vm373_vm0, %v6317_v37, 0.0  ;;  %15209 = vst [vmem:[#allocation49_spill] sm:$0xff] %v13143_v54  ;;  %v4545_v15 = vmul.f32 %v13143_v54, %v15197_v23 }
 0x53f   : > { %9737 = vmatmul.mubr.msk.f32.vlgmr.msra.gmra.mrb[48].mxu1 %vm1762_vm4, %v7275_v4  ;;  %4712 = vadd.xlane.f32.xlu1 %v4711_v10  ;;  %v10417_v38 = vpop.eup %10416  ;;  %10422 = vpow2.f32 %v6225_v44  ;;  %v13131_v10 = vld [vmem:[%s14810_s3 + $0x60] sm:$0xff]  ;;  %v6320_v25 = vmul.f32 %v13074_v63, %v13043_v47 }
 0x540   : > { %4631 = vadd.xlane.f32.xlu0 %v4630_v52  ;;  %v9135_v17 = vadd.f32 -1.0, %v10417_v38  ;;  %v6363_v33 = vsel %vm373_vm0, %v6289_v20, 0.0  ;;  %v6411_v42 = vsel %vm373_vm0, %v6305_v5, 0.0  ;;  %v4531_v2 = vmul.f32 %v13131_v10, %v12958_v8  ;;  %v13183_v5 = vld [vmem:[%s14810_s3 + $0xb0] sm:$0xff] }
 0x541   : > { %v6453_v52 = vsel %vm373_vm0, %v6319_v35, 0.0  ;;  %v4717_v38 = vsel %vm373_vm0, %v4545_v15, 0.0  ;;  %v4546_v20 = vmul.f32 %v12835_v26, %v15207_v46  ;;  %v6332_v46 = vmul.f32 %v13183_v5, %v12839_v49  ;;  %v13200_v49 = vld [vmem:[%s14810_s3 + $0xb8] sm:$0xff] }
 0x542   : > { %v13090_v31 = vsel %vm4396_vm3, %v15194_v24, %v9135_v17  ;;  %v10419_v62 = vpop.eup %10418  ;;  %v13105_v24 = vld [vmem:[%s14810_s3 + $0x40] sm:$0xff] }
 0x543   : > { %6361 = vadd.xlane.f32.xlu1 %v6360_v16  ;;  %v4501_v30 = vmul.f32 %v13105_v24, %v13090_v31  ;;  %v9136_v50 = vadd.f32 -1.0, %v10419_v62  ;;  %v4517_v59 = vmul.f32 %v13116_v36, %v13090_v31 }
 0x544   : > { %4673 = vadd.xlane.f32.xlu0 %v4672_v19 }
 0x545   : > { %v4585_v39 = vsel %vm373_vm0, %v4501_v30, 0.0  ;;  %v13125_v57 = vsel %vm4397_vm5, %v15204_v61, %v9136_v50  ;;  %v4633_v4 = vsel %vm373_vm0, %v4517_v59, 0.0  ;;  %v4675_v61 = vsel %vm373_vm0, %v4531_v2, 0.0 }
 0x546   : > { %15208 = vst [vmem:[#allocation54_spill] sm:$0xff] %v13125_v57  ;;  %v4502_v48 = vmul.f32 %v13025_v6, %v13125_v57  ;;  %v4518_v19 = vmul.f32 %v13049_v58, %v13125_v57  ;;  %v6334_v30 = vmul.f32 %v13183_v5, %v12861_v27  ;;  %v6333_v27 = vmul.f32 %v13200_v49, %v12896_v28 }
 0x547   : > { %6409 = vadd.xlane.f32.xlu1 %v6408_v32  ;;  %v10421_v21 = vpop.eup %10420  ;;  %v6335_v59 = vmul.f32 %v13200_v49, %v12934_v9 }
 0x548   : > { %4715 = vadd.xlane.f32.xlu0 %v4714_v41  ;;  %v9171_v18 = vadd.f32 -1.0, %v10421_v21  ;;  %v4588_v34 = vsel %vm373_vm0, %v4502_v48, 0.0  ;;  %v4636_v32 = vsel %vm373_vm0, %v4518_v19, 0.0  ;;  %v6498_v37 = vsel %vm373_vm0, %v6334_v30, 0.0 }
 0x549   : > { %v10423_v43 = vpop.eup %10422 }
 0x54a   : > { %v13148_v16 = vsel %vm6185_vm6, %v12927_v60, %v9171_v18  ;;  %v13160_v60 = vld [vmem:[%s14810_s3 + $0x68] sm:$0xff]  ;;  %v9172_v12 = vadd.f32 -1.0, %v10423_v43 }
 0x54b   : > { %6445 = vadd.xlane.f32.xlu1 %v6444_v53  ;;  %v6290_v55 = vmul.f32 %v12844_v0, %v13148_v16  ;;  %v4532_v23 = vmul.f32 %v13160_v60, %v13009_v29  ;;  %v6306_v41 = vmul.f32 %v12901_v45, %v13148_v16  ;;  %v4720_v45 = vsel %vm373_vm0, %v4546_v20, 0.0 }
 0x54c   : > { %6364 = vadd.xlane.f32.xlu0 %v6363_v33  ;;  %v13172_v53 = vsel %vm6186_vm7, %v12919_v3, %v9172_v12  ;;  %v6456_v3 = vsel %vm373_vm0, %v6320_v25, 0.0 }
 0x54d   : > { %v6366_v17 = vsel %vm373_vm0, %v6290_v55, 0.0  ;;  %v4678_v0 = vsel %vm373_vm0, %v4532_v23, 0.0  ;;  %v6414_v22 = vsel %vm373_vm0, %v6306_v41, 0.0  ;;  %v6291_v33 = vmul.f32 %v12906_v51, %v13172_v53 }
 0x54e   : > { %v6492_v51 = vsel %vm373_vm0, %v6332_v46, 0.0 }
 0x54f   : > { %6451 = vadd.xlane.f32.xlu1 %v6450_v56  ;;  %v6369_v62 = vsel %vm373_vm0, %v6291_v33, 0.0  ;;  %v6307_v56 = vmul.f32 %v12970_v13, %v13172_v53 }
 0x550   : > { %6412 = vadd.xlane.f32.xlu0 %v6411_v42  ;;  %v6321_v42 = vmul.f32 %v13099_v40, %v13077_v14 }
 0x551   : > { %v6417_v44 = vsel %vm373_vm0, %v6307_v56, 0.0 }
 0x552   : > { %v6459_v50 = vsel %vm373_vm0, %v6321_v42, 0.0 }
 0x553   : > { %4586 = vadd.xlane.f32.xlu1 %v4585_v39  ;;  %v6495_v39 = vsel %vm373_vm0, %v6333_v27, 0.0 }
 0x554   : > { %6448 = vadd.xlane.f32.xlu0 %v6447_v7  ;;  %v6501_v7 = vsel %vm373_vm0, %v6335_v59, 0.0 }
 0x557   : > { %4634 = vadd.xlane.f32.xlu1 %v4633_v4 }
 0x558   : > { %6454 = vadd.xlane.f32.xlu0 %v6453_v52 }
 0x55b   : > { %4676 = vadd.xlane.f32.xlu1 %v4675_v61 }
 0x55c   : > { %4589 = vadd.xlane.f32.xlu0 %v4588_v34 }
 0x55f   : > { %4718 = vadd.xlane.f32.xlu1 %v4717_v38 }
 0x560   : > { %4637 = vadd.xlane.f32.xlu0 %v4636_v32  ;;  %v13210_v35 = vpop.xlane.xlu0 %4556 }
 0x561   : > { %15210 = vst [vmem:[#allocation55_spill] sm:$0xff] %v13210_v35  ;;  %v13216_v2 = vpop.xlane.xlu1 %4559 }
 0x562   : > { %15213 = vst [vmem:[#allocation60_spill] sm:$0xff] %v13216_v2 }
 0x563   : > { %6367 = vadd.xlane.f32.xlu1 %v6366_v17 }
 0x564   : > { %4679 = vadd.xlane.f32.xlu0 %v4678_v0  ;;  %v13212_v21 = vpop.xlane.xlu0 %4562 }
 0x565   : > { %15211 = vst [vmem:[#allocation50_spill] sm:$0xff] %v13212_v21  ;;  %v13220_v28 = vpop.xlane.xlu1 %4604 }
 0x566   : > { %15215 = vst [vmem:[#allocation62_spill] sm:$0xff] %v13220_v28 }
 0x567   : > { %6415 = vadd.xlane.f32.xlu1 %v6414_v22 }
 0x568   : > { %4721 = vadd.xlane.f32.xlu0 %v4720_v45  ;;  %v13214_v4 = vpop.xlane.xlu0 %4565 }
 0x569   : > { %15212 = vst [vmem:[#allocation8_spill] sm:$0xff] %v13214_v4  ;;  %v13224_v48 = vpop.xlane.xlu1 %4610 }
 0x56a   : > { %15217 = vst [vmem:[#allocation64_spill] sm:$0xff] %v13224_v48 }
 0x56b   : > { %6457 = vadd.xlane.f32.xlu1 %v6456_v3 }
 0x56c   : > { %6370 = vadd.xlane.f32.xlu0 %v6369_v62  ;;  %v13218_v18 = vpop.xlane.xlu0 %4607 }
 0x56d   : > { %15214 = vst [vmem:[#allocation61_spill] sm:$0xff] %v13218_v18  ;;  %v13228_v61 = vpop.xlane.xlu1 %4568 }
 0x56e   : > { %15219 = vst [vmem:[#allocation38_spill] sm:$0xff] %v13228_v61 }
 0x56f   : > { %6493 = vadd.xlane.f32.xlu1 %v6492_v51 }
 0x570   : > { %6418 = vadd.xlane.f32.xlu0 %v6417_v44  ;;  %v13222_v52 = vpop.xlane.xlu0 %4613 }
 0x571   : > { %15216 = vst [vmem:[#allocation63_spill] sm:$0xff] %v13222_v52  ;;  %v13234_v19 = vpop.xlane.xlu1 %4616 }
 0x572   : > { %15221 = vst [vmem:[#allocation30_spill] sm:$0xff] %v13234_v19 }
 0x573   : > { %6499 = vadd.xlane.f32.xlu1 %v6498_v37 }
 0x574   : > { %6460 = vadd.xlane.f32.xlu0 %v6459_v50  ;;  %v13226_v9 = vpop.xlane.xlu0 %4571 }
 0x575   : > { %15218 = vst [vmem:[#allocation46_spill] sm:$0xff] %v13226_v9  ;;  %v13248_v17 = vpop.xlane.xlu1 %4652 }
 0x576   : > { %15226 = vst [vmem:[#allocation42_spill] sm:$0xff] %v13248_v17 }
 0x578   : > { %6496 = vadd.xlane.f32.xlu0 %v6495_v39  ;;  %v13230_v15 = vpop.xlane.xlu0 %4619 }
 0x579   : > { %15220 = vst [vmem:[#allocation48_spill] sm:$0xff] %v13230_v15  ;;  %v13256_v3 = vpop.xlane.xlu1 %4658 }
 0x57a   : > { %15230 = vst [vmem:[#allocation11_spill] sm:$0xff] %v13256_v3 }
 0x57c   : > { %6502 = vadd.xlane.f32.xlu0 %v6501_v7  ;;  %v13242_v32 = vpop.xlane.xlu0 %4655 }
 0x57d   : > { %15223 = vst [vmem:[#allocation51_spill] sm:$0xff] %v13242_v32 }
 0x580   : > { %v13254_v22 = vpop.xlane.xlu0 %4661 }
 0x581   : > { %15229 = vst [vmem:[#allocation69_spill] sm:$0xff] %v13254_v22 }
 0x584   : > { %v13265_v27 = vpop.xlane.xlu0 %4577 }
 0x585   : > { %15231 = vst [vmem:[#allocation47_spill] sm:$0xff] %v13265_v27 }
 0x5f7   : > { %v13232_v34 = vpop.f32.mrb[34].mxu0 }
 0x5f8   : > { %v13236_v43 = vpop.f32.mrb[35].mxu0 }
 0x5f9   : > { %v13238_v38 = vpop.f32.mrb[38].mxu1 }
 0x5fa   : > { %v13240_v55 = vpop.f32.mrb[39].mxu1 }
 0x5fb   : > { %15222 = vst [vmem:[#allocation37_spill] sm:$0xff] %v13240_v55 }
 0x5fc   : > { %v13244_v23 = vpop.f32.mrb[36].mxu0 }
 0x5fd   : > { %15224 = vst [vmem:[#allocation45_spill] sm:$0xff] %v13244_v23  ;;  %v13246_v12 = vpop.f32.mrb[37].mxu0 }
 0x5fe   : > { %15225 = vst [vmem:[#allocation6_spill] sm:$0xff] %v13246_v12  ;;  %v13250_v41 = vpop.f32.mrb[40].mxu1 }
 0x5ff   : > { %15227 = vst [vmem:[#allocation68_spill] sm:$0xff] %v13250_v41  ;;  %v13252_v0 = vpop.f32.mrb[41].mxu1 }
 0x600   : > { %15228 = vst [vmem:[#allocation44_spill] sm:$0xff] %v13252_v0 }
 0x601   : > { %v9689_v20 = vpop.f32.mrb[38].mxu0 }
 0x602   : > { %v7354_v25 = vpop.f32.mrb[39].mxu0  ;;  %v7989_v45 = vmin.f32 %v9689_v20, 0.0  ;;  %vm7973_vm1 = vcmp.gt.f32.partialorder %v9689_v20, 0.0 }
 0x603   : > { %v9696_v33 = vpop.f32.mrb[42].mxu1  ;;  %v7988_v46 = vmin.f32 %v7354_v25, 0.0  ;;  %vm7972_vm2 = vcmp.gt.f32.partialorder %v7354_v25, 0.0 }
 0x604   : > { %v13258_v62 = vpop.f32.mrb[43].mxu1  ;;  %v8006_v56 = vmul.f32 1.442695, %v7989_v45  ;;  %v7991_v51 = vmin.f32 %v9696_v33, 0.0  ;;  %v13271_v45 = vpop.xlane.xlu1 %4574  ;;  %vm7975_vm3 = vcmp.gt.f32.partialorder %v9696_v33, 0.0 }
 0x605   : > { %v8004_v30 = vmul.f32 1.442695, %v7988_v46  ;;  %v7990_v44 = vmin.f32 %v13258_v62, 0.0  ;;  %15232 = vst [vmem:[#allocation36_spill] sm:$0xff] %v13271_v45  ;;  %v15233_v46 = vld [vmem:[#allocation23_spill] sm:$0xff]  ;;  %vm7974_vm5 = vcmp.gt.f32.partialorder %v13258_v62, 0.0 }
 0x606   : > { %v13261_v42 = vpop.f32.mrb[40].mxu0  ;;  %10424 = vpow2.f32 %v8006_v56  ;;  %v8010_v37 = vmul.f32 1.442695, %v7991_v51  ;;  %v4415_v17 = vmin.f32 %v15233_v46, 0.0  ;;  %v15234_v56 = vld [vmem:[#allocation35_spill] sm:$0xff]  ;;  %vm4399_vm6 = vcmp.gt.f32.partialorder %v15233_v46, 0.0 }
 0x607   : > { %v13263_v50 = vpop.f32.mrb[41].mxu0  ;;  %10426 = vpow2.f32 %v8004_v30  ;;  %v8008_v39 = vmul.f32 1.442695, %v7990_v44  ;;  %v4414_v51 = vmin.f32 %v15234_v56, 0.0  ;;  %v13281_v30 = vpop.xlane.xlu0 %4625  ;;  %vm4398_vm7 = vcmp.gt.f32.partialorder %v15234_v56, 0.0 }
 0x608   : > { %v13267_v59 = vpop.f32.mrb[44].mxu1  ;;  %10428 = vpow2.f32 %v8010_v37  ;;  %15235 = vst [vmem:[#allocation70_spill] sm:$0xff] %v13281_v30  ;;  %v4444_v37 = vmul.f32 1.442695, %v4415_v17  ;;  %v13285_v19 = vpop.xlane.xlu1 %4622 }
 0x609   : > { %v13269_v7 = vpop.f32.mrb[45].mxu1  ;;  %10430 = vpow2.f32 %v8008_v39  ;;  %v4442_v27 = vmul.f32 1.442695, %v4414_v51  ;;  %15236 = vst [vmem:[#allocation29_spill] sm:$0xff] %v13285_v19  ;;  %v7995_v28 = vmin.f32 %v13267_v59, 0.0 }
 0x60a   : > { %v7994_v48 = vmin.f32 %v13269_v7, 0.0  ;;  %10432 = vpow2.f32 %v4444_v37  ;;  %v13308_v37 = vld [vmem:[%s14810_s3 + $0xc8] sm:$0xff] }
 0x60b   : > { %v13274_v32 = vpop.f32.mrb[42].mxu0  ;;  %v13292_v15 = vpop.xlane.xlu0 %3346  ;;  %10434 = vpow2.f32 %v4442_v27  ;;  %v8018_v21 = vmul.f32 1.442695, %v7995_v28 }
 0x60c   : > { %v13277_v3 = vpop.f32.mrb[43].mxu0  ;;  %15237 = vst [vmem:[#allocation53_spill] sm:$0xff] %v13292_v15  ;;  %v13299_v2 = vpop.xlane.xlu1 %4664  ;;  %v8016_v15 = vmul.f32 1.442695, %v7994_v48 }
 0x60d   : > { %v13279_v22 = vpop.f32.mrb[46].mxu1  ;;  %15238 = vst [vmem:[#allocation34_spill] sm:$0xff] %v13299_v2  ;;  %10436 = vpow2.f32 %v8018_v21  ;;  %v7996_v21 = vmin.f32 %v13277_v3, 0.0 }
 0x60e   : > { %v13283_v44 = vpop.f32.mrb[47].mxu1  ;;  %10438 = vpow2.f32 %v8016_v15 }
 0x60f   : > { %v13301_v35 = vpop.xlane.xlu0 %3352 }
 0x610   : > { %v13287_v45 = vpop.f32.mrb[44].mxu0  ;;  %v10425_v39 = vpop.eup %10424  ;;  %15239 = vst [vmem:[#allocation56_spill] sm:$0xff] %v13301_v35 }
 0x611   : > { %v13290_v61 = vpop.f32.mrb[45].mxu0  ;;  %v10427_v18 = vpop.eup %10426  ;;  %v9206_v17 = vadd.f32 -1.0, %v10425_v39  ;;  %v6204_v39 = vmin.f32 %v13232_v34, 0.0 }
 0x612   : > { %v13295_v9 = vpop.f32.mrb[48].mxu1  ;;  %v10429_v30 = vpop.eup %10428  ;;  %v9205_v52 = vadd.f32 -1.0, %v10427_v18  ;;  %v13316_v18 = vld [vmem:[%s14810_s3 + $0xc0] sm:$0xff] }
 0x613   : > { %v10431_v51 = vpop.eup %10430  ;;  %v13297_v19 = vpop.f32.mrb[49].mxu1  ;;  %v9208_v4 = vadd.f32 -1.0, %v10429_v30  ;;  %v13303_v11 = vsel %vm7973_vm1, %v9689_v20, %v9206_v17  ;;  %v7997_v20 = vmin.f32 %v13274_v32, 0.0  ;;  %v6229_v0 = vmul.f32 1.442695, %v6204_v39 }
 0x614   : > { %v9207_v1 = vadd.f32 -1.0, %v10431_v51  ;;  %v13310_v27 = vsel %vm7972_vm2, %v7354_v25, %v9205_v52  ;;  %v13318_v28 = vpop.xlane.xlu1 %3343  ;;  %v8078_v52 = vmul.f32 %v13308_v37, %v13303_v11  ;;  %v13329_v30 = vpop.xlane.xlu0 %4667  ;;  %vm7979_vm1 = vcmp.gt.f32.partialorder %v13267_v59, 0.0 }
 0x615   : > { %15240 = vst [vmem:[#allocation71_spill] sm:$0xff] %v13318_v28  ;;  %v13320_v48 = vsel %vm7975_vm3, %v9696_v33, %v9208_v4  ;;  %15242 = vst [vmem:[#allocation57_spill] sm:$0xff] %v13329_v30  ;;  %v8077_v4 = vmul.f32 %v13316_v18, %v13310_v27  ;;  %v10433_v15 = vpop.eup %10432  ;;  %v6203_v33 = vmin.f32 %v13236_v43, 0.0  ;;  %v8022_v28 = vmul.f32 1.442695, %v7997_v20 }
 0x616   : > { %15241 = vst [vmem:[#allocation39_spill] sm:$0xff] %v13320_v48  ;;  %v13326_v25 = vsel %vm7974_vm5, %v13258_v62, %v9207_v1  ;;  %v8144_v17 = vsel %vm373_vm0, %v8078_v52, 0.0  ;;  %v8080_v51 = vmul.f32 %v13308_v37, %v13320_v48  ;;  %v13341_v1 = vld [vmem:[%s14810_s3 + $0xd8] sm:$0xff]  ;;  %v10435_v62 = vpop.eup %10434  ;;  %v8020_v30 = vmul.f32 1.442695, %v7996_v21 }
 0x617   : > { %8145 = vadd.xlane.f32.xlu0 %v8144_v17  ;;  %v8141_v52 = vsel %vm373_vm0, %v8077_v4, 0.0  ;;  %v8079_v2 = vmul.f32 %v13316_v18, %v13326_v25  ;;  %v13351_v17 = vld [vmem:[%s14810_s3 + $0xd0] sm:$0xff]  ;;  %v8094_v12 = vmul.f32 %v13341_v1, %v13303_v11  ;;  %v9137_v20 = vadd.f32 -1.0, %v10435_v62  ;;  %v10437_v39 = vpop.eup %10436 }
 0x618   : > { %v13343_v35 = vpop.xlane.xlu1 %3349  ;;  %8142 = vadd.xlane.f32.xlu1 %v8141_v52  ;;  %v8150_v41 = vsel %vm373_vm0, %v8080_v51, 0.0  ;;  %v6227_v23 = vmul.f32 1.442695, %v6203_v33  ;;  %v13356_v4 = vpop.xlane.xlu0 %4703  ;;  %10440 = vpow2.f32 %v8022_v28  ;;  %v7999_v21 = vmin.f32 %v13279_v22, 0.0 }
 0x619   : > { %15243 = vst [vmem:[#allocation28_spill] sm:$0xff] %v13343_v35  ;;  %v9138_v35 = vadd.f32 -1.0, %v10433_v15  ;;  %15244 = vst [vmem:[#allocation4_spill] sm:$0xff] %v13356_v4  ;;  %v8147_v52 = vsel %vm373_vm0, %v8079_v2, 0.0  ;;  %v8093_v55 = vmul.f32 %v13351_v17, %v13310_v27  ;;  %10442 = vpow2.f32 %v8020_v30  ;;  %v10439_v15 = vpop.eup %10438 }
 0x61a   : > { %v7998_v51 = vmin.f32 %v13283_v44, 0.0  ;;  %10444 = vpow2.f32 %v6229_v0  ;;  %v8192_v28 = vsel %vm373_vm0, %v8094_v12, 0.0  ;;  %v8096_v2 = vmul.f32 %v13341_v1, %v13320_v48 }
 0x61b   : > { %8151 = vadd.xlane.f32.xlu0 %v8150_v41  ;;  %v13371_v33 = vsel %vm4399_vm6, %v15233_v46, %v9138_v35  ;;  %v13374_v62 = vsel %vm4398_vm7, %v15234_v56, %v9137_v20  ;;  %10446 = vpow2.f32 %v6227_v23  ;;  %v9212_v30 = vadd.f32 -1.0, %v10437_v39 }
 0x61c   : > { %8148 = vadd.xlane.f32.xlu1 %v8147_v52  ;;  %v13365_v41 = vpop.xlane.xlu1 %4700  ;;  %15246 = vst [vmem:[#allocation12_spill] sm:$0xff] %v13374_v62  ;;  %v8026_v52 = vmul.f32 1.442695, %v7999_v21  ;;  %v8189_v4 = vsel %vm373_vm0, %v8093_v55, 0.0  ;;  %v8095_v0 = vmul.f32 %v13351_v17, %v13326_v25  ;;  %v8024_v12 = vmul.f32 1.442695, %v7998_v51  ;;  %v13381_v35 = vpop.xlane.xlu0 %4709 }
 0x61d   : > { %15245 = vst [vmem:[#allocation58_spill] sm:$0xff] %v13365_v41  ;;  %v9211_v41 = vadd.f32 -1.0, %v10439_v15  ;;  %v4548_v48 = vmul.f32 %v12835_v26, %v13009_v29  ;;  %15247 = vst [vmem:[#allocation27_spill] sm:$0xff] %v13381_v35  ;;  %v8001_v46 = vmin.f32 %v13287_v45, 0.0  ;;  %v8198_v23 = vsel %vm373_vm0, %v8096_v2, 0.0 }
 0x61e   : > { %v4504_v56 = vmul.f32 %v13025_v6, %v13371_v33  ;;  %v8000_v55 = vmin.f32 %v13290_v61, 0.0  ;;  %v4503_v20 = vmul.f32 %v13105_v24, %v13374_v62  ;;  %v13393_v26 = vmul.f32 %v13143_v54, %v12958_v8 }
 0x61f   : > { %8193 = vadd.xlane.f32.xlu0 %v8192_v28  ;;  %vm7978_vm2 = vcmp.gt.f32.partialorder %v13269_v7, 0.0  ;;  %10448 = vpow2.f32 %v8026_v52  ;;  %v8195_v6 = vsel %vm373_vm0, %v8095_v0, 0.0  ;;  %v7993_v21 = vmin.f32 %v13261_v42, 0.0 }
 0x620   : > { %8190 = vadd.xlane.f32.xlu1 %v8189_v4  ;;  %v13395_v29 = vpop.xlane.xlu1 %4706  ;;  %v13398_v4 = vsel %vm7979_vm1, %v13267_v59, %v9212_v30  ;;  %v13404_v39 = vsel %vm7978_vm2, %v13269_v7, %v9211_v41  ;;  %10450 = vpow2.f32 %v8024_v12  ;;  %v13407_v8 = vsel %vm373_vm0, %v4548_v48, 0.0  ;;  %v13419_v12 = vpop.xlane.xlu0 %6352 }
 0x621   : > { %15248 = vst [vmem:[#allocation10_spill] sm:$0xff] %v13395_v29  ;;  %v7992_v15 = vmin.f32 %v13263_v50, 0.0  ;;  %v8030_v59 = vmul.f32 1.442695, %v8001_v46  ;;  %v4594_v28 = vsel %vm373_vm0, %v4504_v56, 0.0  ;;  %v4520_v2 = vmul.f32 %v13049_v58, %v13371_v33  ;;  %15250 = vst [vmem:[#allocation15_spill] sm:$0xff] %v13419_v12 }
 0x622   : > { %v10441_v51 = vpop.eup %10440  ;;  %v8028_v52 = vmul.f32 1.442695, %v8000_v55  ;;  %v8003_v0 = vmin.f32 %v13295_v9, 0.0  ;;  %v4591_v7 = vsel %vm373_vm0, %v4503_v20, 0.0  ;;  %v13417_v48 = vmul.f32 %v13308_v37, %v13398_v4 }
 0x623   : > { %8199 = vadd.xlane.f32.xlu0 %v8198_v23  ;;  %v10443_v30 = vpop.eup %10442  ;;  %v8002_v46 = vmin.f32 %v13297_v19, 0.0  ;;  %v4519_v23 = vmul.f32 %v13116_v36, %v13374_v62  ;;  %v13426_v56 = vmul.f32 %v13316_v18, %v13404_v39  ;;  %v13430_v55 = vmul.f32 %v13341_v1, %v13398_v4 }
 0x624   : > { %8196 = vadd.xlane.f32.xlu1 %v8195_v6  ;;  %15249 = vst [vmem:[#allocation43_spill] sm:$0xff] %v13417_v48  ;;  %v10445_v41 = vpop.eup %10444  ;;  %v8014_v6 = vmul.f32 1.442695, %v7993_v21  ;;  %v4534_v29 = vmul.f32 %v13160_v60, %v13125_v57  ;;  %v13436_v35 = vmul.f32 %v13351_v17, %v13404_v39  ;;  %v13438_v12 = vpop.xlane.xlu1 %6349  ;;  %v8012_v48 = vmul.f32 1.442695, %v7992_v15 }
 0x625   : > { %15251 = vst [vmem:[#allocation16_spill] sm:$0xff] %v13426_v56  ;;  %15252 = vst [vmem:[#allocation13_spill] sm:$0xff] %v13430_v55  ;;  %v10447_v20 = vpop.eup %10446  ;;  %v9213_v54 = vadd.f32 -1.0, %v10443_v30  ;;  %10452 = vpow2.f32 %v8030_v59  ;;  %v4642_v56 = vsel %vm373_vm0, %v4520_v2, 0.0  ;;  %v9174_v62 = vadd.f32 -1.0, %v10445_v41  ;;  %v13450_v2 = vpop.xlane.xlu0 %6358  ;;  %v15257_v41 = vld [vmem:[#allocation40_spill] sm:$0xff] }
 0x626   : > { %15253 = vst [vmem:[#allocation7_spill] sm:$0xff] %v13436_v35  ;;  %15254 = vst [vmem:[#allocation52_spill] sm:$0xff] %v13438_v12  ;;  %10454 = vpow2.f32 %v8028_v52  ;;  %v8034_v55 = vmul.f32 1.442695, %v8003_v0  ;;  %v4533_v21 = vmul.f32 %v13131_v10, %v13090_v31  ;;  %vm7981_vm3 = vcmp.gt.f32.partialorder %v13274_v32, 0.0 }
 0x627   : > { %4595 = vadd.xlane.f32.xlu0 %v4594_v28  ;;  %v9214_v28 = vadd.f32 -1.0, %v10441_v51  ;;  %v15255_v51 = vld [vmem:[#allocation25_spill] sm:$0xff]  ;;  %v8032_v57 = vmul.f32 1.442695, %v8002_v46  ;;  %v4639_v35 = vsel %vm373_vm0, %v4519_v23, 0.0  ;;  %v9173_v12 = vadd.f32 -1.0, %v10447_v20 }
 0x628   : > { %4592 = vadd.xlane.f32.xlu1 %v4591_v7  ;;  %v4417_v7 = vmin.f32 %v15255_v51, 0.0  ;;  %10456 = vpow2.f32 %v8014_v6  ;;  %vm7980_vm5 = vcmp.gt.f32.partialorder %v13277_v3, 0.0  ;;  %15256 = vst [vmem:[#allocation22_spill] sm:$0xff] %v13450_v2  ;;  %vm6188_vm6 = vcmp.gt.f32.partialorder %v13232_v34, 0.0 }
 0x629   : > { %v13447_v15 = vsel %vm7981_vm3, %v13274_v32, %v9214_v28  ;;  %v10449_v59 = vpop.eup %10448  ;;  %10458 = vpow2.f32 %v8012_v48  ;;  %v13454_v30 = vsel %vm7980_vm5, %v13277_v3, %v9213_v54  ;;  %v4684_v52 = vsel %vm373_vm0, %v4534_v29, 0.0 }
 0x62a   : > { %v10451_v0 = vpop.eup %10450  ;;  %v4416_v46 = vmin.f32 %v15257_v41, 0.0  ;;  %v13459_v32 = vsel %vm6188_vm6, %v13232_v34, %v9174_v62  ;;  %10460 = vpow2.f32 %v8034_v55  ;;  %v4448_v23 = vmul.f32 1.442695, %v4417_v7  ;;  %v13475_v34 = vld [vmem:[%s14810_s3 + $0xe8] sm:$0xff]  ;;  %v13495_v55 = vld [vmem:[%s14810_s3 + $0xe0] sm:$0xff] }
 0x62b   : > { %4643 = vadd.xlane.f32.xlu0 %v4642_v56  ;;  %v13462_v56 = vpop.xlane.xlu1 %6355  ;;  %vm6187_vm7 = vcmp.gt.f32.partialorder %v13236_v43, 0.0  ;;  %10462 = vpow2.f32 %v8032_v57  ;;  %v13467_v54 = vmul.f32 %v13308_v37, %v13447_v15  ;;  %v9216_v29 = vadd.f32 -1.0, %v10449_v59  ;;  %v13510_v59 = vpop.xlane.xlu0 %6400 }
 0x62c   : > { %4640 = vadd.xlane.f32.xlu1 %v4639_v35  ;;  %v4681_v35 = vsel %vm373_vm0, %v4533_v21, 0.0  ;;  %15258 = vst [vmem:[#allocation17_spill] sm:$0xff] %v13462_v56  ;;  %v13470_v3 = vsel %vm6187_vm7, %v13236_v43, %v9173_v12  ;;  %v13479_v62 = vmul.f32 %v13316_v18, %v13454_v30  ;;  %v13483_v57 = vmul.f32 %v13341_v1, %v13447_v15  ;;  %v13488_v43 = vld [vmem:[%s14810_s3 + $0x88] sm:$0xff] }
 0x62d   : > { %v9215_v48 = vadd.f32 -1.0, %v10451_v0  ;;  %v6293_v12 = vmul.f32 %v13488_v43, %v13459_v32  ;;  %v13499_v20 = vmul.f32 %v13351_v17, %v13454_v30  ;;  %v13503_v6 = vmul.f32 %v13475_v34, %v13398_v4  ;;  %15263 = vst [vmem:[#allocation26_spill] sm:$0xff] %v13510_v59  ;;  %v13518_v0 = vld [vmem:[%s14810_s3 + $0x80] sm:$0xff] }
 0x62e   : > { %15259 = vst [vmem:[#allocation24_spill] sm:$0xff] %v13483_v57  ;;  %v4446_v28 = vmul.f32 1.442695, %v4416_v46  ;;  %v13508_v21 = vmul.f32 %v13495_v55, %v13404_v39  ;;  %vm7983_vm1 = vcmp.gt.f32.partialorder %v13279_v22, 0.0  ;;  %vm7982_vm2 = vcmp.gt.f32.partialorder %v13283_v44, 0.0 }
 0x62f   : > { %4685 = vadd.xlane.f32.xlu0 %v4684_v52  ;;  %15260 = vst [vmem:[#allocation66_spill] sm:$0xff] %v13499_v20  ;;  %15261 = vst [vmem:[#allocation65_spill] sm:$0xff] %v13503_v6  ;;  %v10453_v7 = vpop.eup %10452  ;;  %v4723_v52 = vsel %vm373_vm0, %v13393_v26, 0.0  ;;  %10464 = vpow2.f32 %v4448_v23  ;;  %v13526_v59 = vpop.xlane.xlu1 %6397  ;;  %v13529_v26 = vsel %vm7982_vm2, %v13283_v44, %v9215_v48  ;;  %v6375_v56 = vsel %vm373_vm0, %v6293_v12, 0.0  ;;  %v13542_v48 = vld [vmem:[%s14810_s3 + $0x90] sm:$0xff] }
 0x630   : > { %4682 = vadd.xlane.f32.xlu1 %v4681_v35  ;;  %15262 = vst [vmem:[#allocation32_spill] sm:$0xff] %v13508_v21  ;;  %v10455_v46 = vpop.eup %10454  ;;  %v13523_v35 = vsel %vm7983_vm1, %v13279_v22, %v9216_v29  ;;  %15264 = vst [vmem:[#allocation33_spill] sm:$0xff] %v13526_v59  ;;  %v6309_v2 = vmul.f32 %v12970_v13, %v13459_v32  ;;  %10466 = vpow2.f32 %v4446_v28  ;;  %v9218_v6 = vadd.f32 -1.0, %v10453_v7 }
 0x631   : > { %v6323_v22 = vmul.f32 %v13099_v40, %v13172_v53  ;;  %v6337_v23 = vmul.f32 %v13200_v49, %v13077_v14  ;;  %v6308_v13 = vmul.f32 %v13542_v48, %v13470_v3  ;;  %vm7985_vm3 = vcmp.gt.f32.partialorder %v13287_v45, 0.0 }
 0x632   : > { %v10457_v21 = vpop.eup %10456  ;;  %v6322_v14 = vmul.f32 %v13074_v63, %v13148_v16  ;;  %v13555_v28 = vmul.f32 %v13316_v18, %v13529_v26  ;;  %v13559_v7 = vmul.f32 %v13341_v1, %v13523_v35  ;;  %vm7984_vm5 = vcmp.gt.f32.partialorder %v13290_v61, 0.0 }
 0x633   : > { %4727 = vadd.xlane.f32.xlu0 %v13407_v8  ;;  %v6292_v8 = vmul.f32 %v13518_v0, %v13470_v3  ;;  %v10459_v29 = vpop.eup %10458  ;;  %v6423_v59 = vsel %vm373_vm0, %v6309_v2, 0.0  ;;  %v13572_v63 = vmul.f32 %v13351_v17, %v13529_v26  ;;  %v13584_v2 = vld [vmem:[%s14810_s3 + $0xf0] sm:$0xff]  ;;  %v13594_v20 = vpop.xlane.xlu1 %6403  ;;  %vm7977_vm6 = vcmp.gt.f32.partialorder %v13261_v42, 0.0 }
 0x634   : > { %4724 = vadd.xlane.f32.xlu1 %v4723_v52  ;;  %v9217_v52 = vadd.f32 -1.0, %v10455_v46  ;;  %v10461_v12 = vpop.eup %10460  ;;  %15266 = vst [vmem:[#allocation59_spill] sm:$0xff] %v13555_v28  ;;  %15267 = vst [vmem:[#allocation31_spill] sm:$0xff] %v13559_v7  ;;  %v13561_v46 = vpop.xlane.xlu0 %6406  ;;  %v13576_v28 = vmul.f32 %v13475_v34, %v13447_v15  ;;  %v9210_v7 = vadd.f32 -1.0, %v10457_v21  ;;  %vm7976_vm7 = vcmp.gt.f32.partialorder %v13263_v50, 0.0 }
 0x635   : > { %v6372_v44 = vsel %vm373_vm0, %v6292_v8, 0.0  ;;  %v10463_v8 = vpop.eup %10462  ;;  %15268 = vst [vmem:[#allocation41_spill] sm:$0xff] %v13561_v46  ;;  %15269 = vst [vmem:[#allocation9_spill] sm:$0xff] %v13572_v63  ;;  %v13579_v46 = vsel %vm7985_vm3, %v13287_v45, %v9218_v6  ;;  %v9220_v45 = vadd.f32 -1.0, %v10461_v12  ;;  %v6420_v6 = vsel %vm373_vm0, %v6308_v13, 0.0 }
 0x636   : > { %15270 = vst [vmem:[#allocation67_spill] sm:$0xff] %v13576_v28  ;;  %15272 = vst [vmem:[#allocation35_spill] sm:$0xff] %v13594_v20  ;;  %v8064_v21 = vsel %vm7984_vm5, %v13290_v61, %v9217_v52  ;;  %v9209_v28 = vadd.f32 -1.0, %v10459_v29  ;;  %v9219_v57 = vadd.f32 -1.0, %v10463_v8  ;;  %v6462_v61 = vsel %vm373_vm0, %v6322_v14, 0.0 }
 0x637   : > { %6376 = vadd.xlane.f32.xlu0 %v6375_v56  ;;  %v13548_v56 = vmul.f32 %v13308_v37, %v13523_v35  ;;  %v13610_v52 = vmul.f32 %v13308_v37, %v13579_v46  ;;  %vm7987_vm1 = vcmp.gt.f32.partialorder %v13295_v9, 0.0  ;;  %vm7986_vm2 = vcmp.gt.f32.partialorder %v13297_v19, 0.0 }
 0x638   : > { %6373 = vadd.xlane.f32.xlu1 %v6372_v44  ;;  %v13568_v44 = vld [vmem:[%s14810_s3 + $0xf8] sm:$0xff]  ;;  %v13623_v13 = vpop.xlane.xlu0 %4583  ;;  %v8067_v12 = vsel %vm7987_vm1, %v13295_v9, %v9220_v45  ;;  %v8066_v8 = vsel %vm7986_vm2, %v13297_v19, %v9219_v57  ;;  %v13646_v45 = vpop.xlane.xlu1 %4580  ;;  %vm4401_vm3 = vcmp.gt.f32.partialorder %v15255_v51, 0.0  ;;  %vm4400_vm5 = vcmp.gt.f32.partialorder %v15257_v41, 0.0 }
 0x639   : > { %15265 = vst [vmem:[#allocation14_spill] sm:$0xff] %v13548_v56  ;;  %v13588_v56 = vmul.f32 %v13495_v55, %v13454_v30  ;;  %v13592_v63 = vmul.f32 %v13568_v44, %v13398_v4  ;;  %v6336_v4 = vmul.f32 %v13183_v5, %v13043_v47  ;;  %v13621_v47 = vmul.f32 %v13341_v1, %v13579_v46  ;;  %v10465_v29 = vpop.eup %10464 }
 0x63a   : > { %15273 = vst [vmem:[#allocation25_spill] sm:$0xff] %v13623_v13  ;;  %v10467_v14 = vpop.eup %10466  ;;  %v13644_v9 = vmul.f32 %v13568_v44, %v13447_v15  ;;  %v6507_v13 = vsel %vm373_vm0, %v6337_v23, 0.0  ;;  %v13656_v19 = vmul.f32 %v13308_v37, %v8067_v12  ;;  %v13665_v23 = vmul.f32 %v13341_v1, %v8067_v12 }
 0x63b   : > { %6424 = vadd.xlane.f32.xlu0 %v6423_v59  ;;  %15271 = vst [vmem:[#allocation23_spill] sm:$0xff] %v13588_v56  ;;  %v13600_v59 = vmul.f32 %v13584_v2, %v13404_v39  ;;  %v6465_v56 = vsel %vm373_vm0, %v6323_v22, 0.0  ;;  %v13613_v39 = vsel %vm7977_vm6, %v13261_v42, %v9210_v7  ;;  %v13617_v22 = vmul.f32 %v13316_v18, %v8064_v21 }
 0x63c   : > { %6421 = vadd.xlane.f32.xlu1 %v6420_v6  ;;  %v13628_v42 = vmul.f32 %v13351_v17, %v8064_v21  ;;  %v13635_v7 = vsel %vm7976_vm7, %v13263_v50, %v9209_v28  ;;  %v13640_v6 = vmul.f32 %v13495_v55, %v13529_v26  ;;  %v8082_v20 = vmul.f32 %v13308_v37, %v13613_v39 }
 0x63d   : > { %v13653_v50 = vmul.f32 %v13584_v2, %v13454_v30  ;;  %v6504_v57 = vsel %vm373_vm0, %v6336_v4, 0.0  ;;  %v8081_v15 = vmul.f32 %v13316_v18, %v13635_v7  ;;  %v13662_v28 = vmul.f32 %v13316_v18, %v8066_v8  ;;  %15275 = vst [vmem:[#allocation72_spill] sm:$0xff] %v13665_v23  ;;  %v13675_v4 = vpop.xlane.xlu0 %4631  ;;  %v15281_v23 = vld [vmem:[#allocation37_spill] sm:$0xff] }
 0x63e   : > { %v13669_v30 = vmul.f32 %v13351_v17, %v8066_v8  ;;  %v13673_v37 = vmul.f32 %v13475_v34, %v13579_v46  ;;  %15278 = vst [vmem:[#allocation75_spill] sm:$0xff] %v13675_v4  ;;  %v8098_v18 = vmul.f32 %v13341_v1, %v13613_v39  ;;  %v13693_v4 = vmul.f32 %v13475_v34, %v8067_v12 }
 0x63f   : > { %6466 = vadd.xlane.f32.xlu0 %v6465_v56  ;;  %v13632_v56 = vmul.f32 %v13475_v34, %v13523_v35  ;;  %15274 = vst [vmem:[#allocation40_spill] sm:$0xff] %v13662_v28  ;;  %v13681_v28 = vmul.f32 %v13495_v55, %v8064_v21  ;;  %v8153_v1 = vsel %vm373_vm0, %v8081_v15, 0.0  ;;  %vm6190_vm6 = vcmp.gt.f32.partialorder %v13238_v38, 0.0 }
 0x640   : > { %6463 = vadd.xlane.f32.xlu1 %v6462_v61  ;;  %v6206_v61 = vmin.f32 %v13238_v38, 0.0  ;;  %15276 = vst [vmem:[#allocation73_spill] sm:$0xff] %v13669_v30  ;;  %15277 = vst [vmem:[#allocation74_spill] sm:$0xff] %v13673_v37  ;;  %v6205_v30 = vmin.f32 %v15281_v23, 0.0  ;;  %v13690_v37 = vmul.f32 %v13584_v2, %v13529_v26  ;;  %v13708_v26 = vmul.f32 %v13584_v2, %v8064_v21 }
 0x641   : > { %15279 = vst [vmem:[#allocation76_spill] sm:$0xff] %v13681_v28  ;;  %15283 = vst [vmem:[#allocation78_spill] sm:$0xff] %v13693_v4  ;;  %v8097_v28 = vmul.f32 %v13351_v17, %v13635_v7  ;;  %v13711_v4 = vmul.f32 %v13568_v44, %v8067_v12  ;;  %v8204_v15 = vsel %vm373_vm0, %v8098_v18, 0.0  ;;  %v8110_v17 = vmul.f32 %v13475_v34, %v13303_v11  ;;  %v15291_v18 = vld [vmem:[#allocation39_spill] sm:$0xff] }
 0x642   : > { %15282 = vst [vmem:[#allocation37_spill] sm:$0xff] %v13690_v37  ;;  %15286 = vst [vmem:[#allocation81_spill] sm:$0xff] %v13708_v26  ;;  %v6233_v37 = vmul.f32 1.442695, %v6206_v61  ;;  %v8109_v12 = vmul.f32 %v13495_v55, %v13310_v27  ;;  %vm6189_vm7 = vcmp.gt.f32.partialorder %v15281_v23, 0.0 }
 0x643   : > { %6508 = vadd.xlane.f32.xlu0 %v6507_v13  ;;  %v8156_v13 = vsel %vm373_vm0, %v8082_v20, 0.0  ;;  %v13695_v20 = vpop.xlane.xlu1 %4628  ;;  %15287 = vst [vmem:[#allocation82_spill] sm:$0xff] %v13711_v4  ;;  %v8201_v21 = vsel %vm373_vm0, %v8097_v28, 0.0  ;;  %v9139_v4 = vadd.f32 -1.0, %v10467_v14  ;;  %v8111_v28 = vmul.f32 %v13495_v55, %v13326_v25 }
 0x644   : > { %6505 = vadd.xlane.f32.xlu1 %v6504_v57  ;;  %v13685_v57 = vmul.f32 %v13568_v44, %v13523_v35  ;;  %v13701_v35 = vmul.f32 %v13495_v55, %v8066_v8  ;;  %10468 = vpow2.f32 %v6233_v37  ;;  %v8237_v14 = vsel %vm373_vm0, %v8109_v12, 0.0 }
 0x646   : > { %15280 = vst [vmem:[#allocation77_spill] sm:$0xff] %v13685_v57  ;;  %15284 = vst [vmem:[#allocation79_spill] sm:$0xff] %v13701_v35  ;;  %v13717_v57 = vmul.f32 %v13584_v2, %v8066_v8  ;;  %v9140_v35 = vadd.f32 -1.0, %v10465_v29  ;;  %v8240_v8 = vsel %vm373_vm0, %v8110_v17, 0.0  ;;  %v8112_v29 = vmul.f32 %v13475_v34, %v15291_v18 }
 0x647   : > { %8157 = vadd.xlane.f32.xlu0 %v8156_v13  ;;  %v13705_v13 = vmul.f32 %v13568_v44, %v13579_v46  ;;  %v13719_v46 = vpop.xlane.xlu0 %4673  ;;  %v13725_v61 = vpop.xlane.xlu1 %4670 }
 0x648   : > { %8154 = vadd.xlane.f32.xlu1 %v8153_v1  ;;  %15288 = vst [vmem:[#allocation83_spill] sm:$0xff] %v13717_v57  ;;  %15289 = vst [vmem:[#allocation84_spill] sm:$0xff] %v13719_v46  ;;  %v6231_v1 = vmul.f32 1.442695, %v6205_v30  ;;  %v13738_v30 = vsel %vm4400_vm5, %v15257_v41, %v9139_v4  ;;  %v8246_v17 = vsel %vm373_vm0, %v8112_v29, 0.0  ;;  %v15301_v46 = vld [vmem:[#allocation45_spill] sm:$0xff] }
 0x649   : > { %15285 = vst [vmem:[#allocation80_spill] sm:$0xff] %v13705_v13  ;;  %15290 = vst [vmem:[#allocation85_spill] sm:$0xff] %v13725_v61  ;;  %v4505_v41 = vmul.f32 %v13105_v24, %v13738_v30  ;;  %v6208_v57 = vmin.f32 %v15301_v46, 0.0  ;;  %vm6192_vm1 = vcmp.gt.f32.partialorder %v15301_v46, 0.0 }
 0x64a   : > { %10470 = vpow2.f32 %v6231_v1 }
 0x64b   : > { %8205 = vadd.xlane.f32.xlu0 %v8204_v15  ;;  %v13731_v15 = vsel %vm4401_vm3, %v15255_v51, %v9140_v35  ;;  %v13740_v37 = vpop.xlane.xlu0 %4715  ;;  %v10490_v51 = vld [vmem:[%s14810_s3 + $0x48] sm:$0xff]  ;;  %v13747_v1 = vpop.xlane.xlu1 %4712 }
 0x64c   : > { %8202 = vadd.xlane.f32.xlu1 %v8201_v21  ;;  %15292 = vst [vmem:[#allocation39_spill] sm:$0xff] %v13740_v37  ;;  %v4506_v35 = vmul.f32 %v10490_v51, %v13731_v15  ;;  %15293 = vst [vmem:[#allocation86_spill] sm:$0xff] %v13747_v1  ;;  %v8243_v21 = vsel %vm373_vm0, %v8111_v28, 0.0  ;;  %v4522_v12 = vmul.f32 %v13049_v58, %v13731_v15 }
 0x64e   : > { %v4600_v4 = vsel %vm373_vm0, %v4506_v35, 0.0  ;;  %v4648_v24 = vsel %vm373_vm0, %v4522_v12, 0.0  ;;  %v4536_v35 = vmul.f32 %v13160_v60, %v13371_v33  ;;  %v13775_v12 = vld [vmem:[%s14810_s3 + $0x78] sm:$0xff] }
 0x64f   : > { %8241 = vadd.xlane.f32.xlu0 %v8240_v8  ;;  %v10469_v8 = vpop.eup %10468  ;;  %v13755_v29 = vpop.xlane.xlu0 %6364  ;;  %v15295_v60 = vld [vmem:[#allocation54_spill] sm:$0xff] }
 0x650   : > { %8238 = vadd.xlane.f32.xlu1 %v8237_v14  ;;  %v4597_v14 = vsel %vm373_vm0, %v4505_v41, 0.0  ;;  %v13760_v51 = vpop.xlane.xlu1 %6361 }
 0x653   : > { %8247 = vadd.xlane.f32.xlu0 %v8246_v17  ;;  %v4521_v17 = vmul.f32 %v13116_v36, %v13738_v30  ;;  %v13768_v37 = vpop.xlane.xlu0 %6412  ;;  %v4690_v36 = vsel %vm373_vm0, %v4536_v35, 0.0 }
 0x654   : > { %8244 = vadd.xlane.f32.xlu1 %v8243_v21  ;;  %v10471_v28 = vpop.eup %10470  ;;  %v9176_v21 = vadd.f32 -1.0, %v10469_v8  ;;  %v4550_v8 = vmul.f32 %v13775_v12, %v15295_v60 }
 0x655   : > { %v4645_v58 = vsel %vm373_vm0, %v4521_v17, 0.0  ;;  %v9175_v41 = vadd.f32 -1.0, %v10471_v28  ;;  %v15296_v28 = vld [vmem:[#allocation49_spill] sm:$0xff] }
 0x657   : > { %4601 = vadd.xlane.f32.xlu0 %v4600_v4  ;;  %v15294_v4 = vld [vmem:[#allocation12_spill] sm:$0xff]  ;;  %v13789_v35 = vsel %vm6189_vm7, %v15281_v23, %v9175_v41  ;;  %v13805_v23 = vld [vmem:[%s14810_s3 + $0x98] sm:$0xff] }
 0x658   : > { %4598 = vadd.xlane.f32.xlu1 %v4597_v14  ;;  %v4535_v1 = vmul.f32 %v13131_v10, %v15294_v4  ;;  %v13780_v14 = vsel %vm6190_vm6, %v13238_v38, %v9176_v21  ;;  %v13782_v10 = vpop.xlane.xlu1 %6409  ;;  %v13794_v21 = vpop.xlane.xlu0 %6448 }
 0x659   : > { %v6295_v38 = vmul.f32 %v13488_v43, %v13780_v14  ;;  %15297 = vst [vmem:[#allocation12_spill] sm:$0xff] %v13794_v21  ;;  %v6311_v41 = vmul.f32 %v13805_v23, %v13780_v14 }
 0x65a   : > { %v4687_v17 = vsel %vm373_vm0, %v4535_v1, 0.0  ;;  %v6294_v1 = vmul.f32 %v13518_v0, %v13789_v35 }
 0x65b   : > { %4649 = vadd.xlane.f32.xlu0 %v4648_v24  ;;  %v4549_v24 = vmul.f32 %v15296_v28, %v13090_v31  ;;  %v6381_v31 = vsel %vm373_vm0, %v6295_v38, 0.0 }
 0x65c   : > { %4646 = vadd.xlane.f32.xlu1 %v4645_v58  ;;  %v4732_v58 = vsel %vm373_vm0, %v4550_v8, 0.0  ;;  %v13799_v60 = vpop.xlane.xlu1 %6445  ;;  %v6378_v8 = vsel %vm373_vm0, %v6294_v1, 0.0  ;;  %v13812_v28 = vpop.xlane.xlu0 %6454  ;;  %v13823_v1 = vld [vmem:[%s14810_s3 + $0xa0] sm:$0xff] }
 0x65d   : > { %15298 = vst [vmem:[#allocation54_spill] sm:$0xff] %v13799_v60 }
 0x65f   : > { %4691 = vadd.xlane.f32.xlu0 %v4690_v36  ;;  %v4729_v36 = vsel %vm373_vm0, %v4549_v24, 0.0  ;;  %v6429_v24 = vsel %vm373_vm0, %v6311_v41, 0.0  ;;  %v6339_v41 = vmul.f32 %v13200_v49, %v13172_v53 }
 0x660   : > { %4688 = vadd.xlane.f32.xlu1 %v4687_v17  ;;  %v6310_v17 = vmul.f32 %v13542_v48, %v13789_v35  ;;  %v13817_v38 = vpop.xlane.xlu1 %6451 }
 0x663   : > { %4733 = vadd.xlane.f32.xlu0 %v4732_v58  ;;  %v6325_v58 = vmul.f32 %v13099_v40, %v13459_v32  ;;  %v13830_v40 = vpop.xlane.xlu0 %4589 }
 0x664   : > { %4730 = vadd.xlane.f32.xlu1 %v4729_v36  ;;  %v6426_v36 = vsel %vm373_vm0, %v6310_v17, 0.0  ;;  %15299 = vst [vmem:[#allocation49_spill] sm:$0xff] %v13830_v40  ;;  %v6338_v17 = vmul.f32 %v13183_v5, %v13148_v16  ;;  %v13835_v61 = vpop.xlane.xlu1 %4586 }
 0x665   : > { %15300 = vst [vmem:[#allocation87_spill] sm:$0xff] %v13835_v61 }
 0x666   : > { %v6510_v53 = vsel %vm373_vm0, %v6338_v17, 0.0  ;;  %v8114_v17 = vmul.f32 %v13475_v34, %v13613_v39 }
 0x667   : > { %6382 = vadd.xlane.f32.xlu0 %v6381_v31  ;;  %v6324_v31 = vmul.f32 %v13823_v1, %v13470_v3  ;;  %v13841_v49 = vpop.xlane.xlu0 %4637 }
 0x668   : > { %6379 = vadd.xlane.f32.xlu1 %v6378_v8  ;;  %v6471_v8 = vsel %vm373_vm0, %v6325_v58, 0.0  ;;  %v15302_v58 = vld [vmem:[#allocation6_spill] sm:$0xff]  ;;  %15303 = vst [vmem:[#allocation45_spill] sm:$0xff] %v13841_v49  ;;  %v13845_v16 = vpop.xlane.xlu1 %4634 }
 0x669   : > { %v6207_v26 = vmin.f32 %v15302_v58, 0.0  ;;  %15305 = vst [vmem:[#allocation6_spill] sm:$0xff] %v13845_v16  ;;  %vm6191_vm2 = vcmp.gt.f32.partialorder %v15302_v58, 0.0  ;;  %v13949_v16 = vld [vmem:[%s14810_s3 + $0xb8] sm:$0xff] }
 0x66b   : > { %6430 = vadd.xlane.f32.xlu0 %v6429_v24  ;;  %v6468_v24 = vsel %vm373_vm0, %v6324_v31, 0.0  ;;  %v15304_v31 = vld [vmem:[#allocation43_spill] sm:$0xff]  ;;  %v6235_v5 = vmul.f32 1.442695, %v6207_v26  ;;  %v8113_v26 = vmul.f32 %v13495_v55, %v13635_v7  ;;  %v8128_v55 = vmul.f32 %v13568_v44, %v15291_v18 }
 0x66c   : > { %6427 = vadd.xlane.f32.xlu1 %v6426_v36  ;;  %v6513_v36 = vsel %vm373_vm0, %v6339_v41, 0.0  ;;  %v8162_v13 = vsel %vm373_vm0, %v15304_v31, 0.0  ;;  %v15307_v41 = vld [vmem:[#allocation13_spill] sm:$0xff]  ;;  %v13859_v31 = vpop.xlane.xlu1 %4676 }
 0x66d   : > { %v8249_v34 = vsel %vm373_vm0, %v8113_v26, 0.0  ;;  %v10494_v26 = vld [vmem:[%s14810_s3 + $0x68] sm:$0xff] }
 0x66f   : > { %6472 = vadd.xlane.f32.xlu0 %v6471_v8  ;;  %v6237_v8 = vmul.f32 1.442695, %v6208_v57  ;;  %v13853_v57 = vpop.xlane.xlu0 %4679 }
 0x670   : > { %6469 = vadd.xlane.f32.xlu1 %v6468_v24  ;;  %v15306_v24 = vld [vmem:[#allocation16_spill] sm:$0xff]  ;;  %15308 = vst [vmem:[#allocation43_spill] sm:$0xff] %v13853_v57 }
 0x671   : > { %v8159_v40 = vsel %vm373_vm0, %v15306_v24, 0.0  ;;  %10472 = vpow2.f32 %v6237_v8  ;;  %15310 = vst [vmem:[#allocation16_spill] sm:$0xff] %v13859_v31  ;;  %v8126_v8 = vmul.f32 %v13568_v44, %v13303_v11 }
 0x672   : > { %10474 = vpow2.f32 %v6235_v5  ;;  %v8125_v5 = vmul.f32 %v13584_v2, %v13310_v27  ;;  %v8294_v27 = vsel %vm373_vm0, %v8128_v55, 0.0 }
 0x673   : > { %6514 = vadd.xlane.f32.xlu0 %v6513_v36  ;;  %v8210_v36 = vsel %vm373_vm0, %v15307_v41, 0.0  ;;  %v13867_v24 = vpop.xlane.xlu0 %4721  ;;  %v8288_v41 = vsel %vm373_vm0, %v8126_v8, 0.0 }
 0x674   : > { %6511 = vadd.xlane.f32.xlu1 %v6510_v53  ;;  %v15309_v53 = vld [vmem:[#allocation7_spill] sm:$0xff]  ;;  %15311 = vst [vmem:[#allocation13_spill] sm:$0xff] %v13867_v24  ;;  %v8285_v11 = vsel %vm373_vm0, %v8125_v5, 0.0 }
 0x677   : > { %8163 = vadd.xlane.f32.xlu0 %v8162_v13  ;;  %v8207_v13 = vsel %vm373_vm0, %v15309_v53, 0.0  ;;  %v8127_v53 = vmul.f32 %v13584_v2, %v13326_v25  ;;  %v13882_v8 = vpop.xlane.xlu0 %6370  ;;  %v10495_v25 = vld [vmem:[%s14810_s3 + $0x60] sm:$0xff] }
 0x678   : > { %8160 = vadd.xlane.f32.xlu1 %v8159_v40  ;;  %v8252_v40 = vsel %vm373_vm0, %v8114_v17, 0.0  ;;  %v13872_v17 = vpop.xlane.xlu1 %4718  ;;  %v4537_v5 = vmul.f32 %v10495_v25, %v13738_v30 }
 0x679   : > { %15312 = vst [vmem:[#allocation7_spill] sm:$0xff] %v13872_v17 }
 0x67b   : > { %8211 = vadd.xlane.f32.xlu0 %v8210_v36  ;;  %v10473_v36 = vpop.eup %10472 }
 0x67c   : > { %8208 = vadd.xlane.f32.xlu1 %v8207_v13  ;;  %v10475_v13 = vpop.eup %10474  ;;  %v9178_v18 = vadd.f32 -1.0, %v10473_v36  ;;  %v13889_v55 = vpop.xlane.xlu1 %6367  ;;  %v4552_v36 = vmul.f32 %v13775_v12, %v13371_v33 }
 0x67d   : > { %v13910_v33 = vpop.xlane.xlu0 %6418 }
 0x67f   : > { %8253 = vadd.xlane.f32.xlu0 %v8252_v40  ;;  %v4538_v40 = vmul.f32 %v10494_v26, %v13731_v15 }
 0x680   : > { %8250 = vadd.xlane.f32.xlu1 %v8249_v34  ;;  %v8291_v34 = vsel %vm373_vm0, %v8127_v53, 0.0  ;;  %v4693_v53 = vsel %vm373_vm0, %v4537_v5, 0.0 }
 0x683   : > { %8289 = vadd.xlane.f32.xlu0 %v8288_v41  ;;  %v9177_v41 = vadd.f32 -1.0, %v10475_v13  ;;  %v13903_v13 = vld [vmem:[%s14810_s3 + $0x70] sm:$0xff] }
 0x684   : > { %8286 = vadd.xlane.f32.xlu1 %v8285_v11  ;;  %v4696_v11 = vsel %vm373_vm0, %v4538_v40, 0.0  ;;  %v4551_v26 = vmul.f32 %v13903_v13, %v15294_v4 }
 0x685   : > { %v13908_v40 = vsel %vm6191_vm2, %v15302_v58, %v9177_v41  ;;  %v13923_v41 = vpop.xlane.xlu0 %6460 }
 0x686   : > { %v4735_v25 = vsel %vm373_vm0, %v4551_v26, 0.0  ;;  %v6296_v5 = vmul.f32 %v13518_v0, %v13908_v40  ;;  %15313 = vst [vmem:[#allocation88_spill] sm:$0xff] %v13923_v41  ;;  %v15315_v26 = vld [vmem:[#allocation68_spill] sm:$0xff] }
 0x687   : > { %8295 = vadd.xlane.f32.xlu0 %v8294_v27  ;;  %v13896_v27 = vsel %vm6192_vm1, %v15301_v46, %v9178_v18  ;;  %v4738_v46 = vsel %vm373_vm0, %v4552_v36, 0.0  ;;  %v6312_v36 = vmul.f32 %v13542_v48, %v13908_v40  ;;  %v15326_v41 = vld [vmem:[#allocation32_spill] sm:$0xff]  ;;  %vm6194_vm3 = vcmp.gt.f32.partialorder %v15315_v26, 0.0 }
 0x688   : > { %8292 = vadd.xlane.f32.xlu1 %v8291_v34  ;;  %v6297_v18 = vmul.f32 %v13488_v43, %v13896_v27  ;;  %v13915_v34 = vpop.xlane.xlu1 %6415  ;;  %v6313_v58 = vmul.f32 %v13805_v23, %v13896_v27 }
 0x689   : > { %v6432_v24 = vsel %vm373_vm0, %v6312_v36, 0.0  ;;  %v13943_v57 = vpop.xlane.xlu0 %6496 }
 0x68a   : > { %v6387_v4 = vsel %vm373_vm0, %v6297_v18, 0.0  ;;  %v13935_v18 = vld [vmem:[%s14810_s3 + $0xa8] sm:$0xff]  ;;  %15317 = vst [vmem:[#allocation68_spill] sm:$0xff] %v13943_v57 }
 0x68b   : > { %4697 = vadd.xlane.f32.xlu0 %v4696_v11  ;;  %v6384_v11 = vsel %vm373_vm0, %v6296_v5, 0.0  ;;  %v15316_v5 = vld [vmem:[#allocation44_spill] sm:$0xff]  ;;  %v15323_v57 = vld [vmem:[#allocation3_spill] sm:$0xff] }
 0x68c   : > { %4694 = vadd.xlane.f32.xlu1 %v4693_v53  ;;  %v13928_v53 = vpop.xlane.xlu1 %6457  ;;  %v6209_v17 = vmin.f32 %v15316_v5, 0.0  ;;  %vm6193_vm5 = vcmp.gt.f32.partialorder %v15316_v5, 0.0 }
 0x68d   : > { %15314 = vst [vmem:[#allocation89_spill] sm:$0xff] %v13928_v53 }
 0x68e   : > { %v6239_v36 = vmul.f32 1.442695, %v6209_v17 }
 0x68f   : > { %4739 = vadd.xlane.f32.xlu0 %v4738_v46  ;;  %v6210_v46 = vmin.f32 %v15315_v26, 0.0 }
 0x690   : > { %4736 = vadd.xlane.f32.xlu1 %v4735_v25  ;;  %v6435_v25 = vsel %vm373_vm0, %v6313_v58, 0.0  ;;  %v13953_v61 = vpop.xlane.xlu1 %6493 }
 0x691   : > { %v6241_v31 = vmul.f32 1.442695, %v6210_v46  ;;  %15318 = vst [vmem:[#allocation44_spill] sm:$0xff] %v13953_v61 }
 0x693   : > { %6388 = vadd.xlane.f32.xlu0 %v6387_v4  ;;  %v6327_v4 = vmul.f32 %v13935_v18, %v13780_v14  ;;  %10476 = vpow2.f32 %v6241_v31 }
 0x694   : > { %6385 = vadd.xlane.f32.xlu1 %v6384_v11  ;;  %v6326_v11 = vmul.f32 %v13823_v1, %v13789_v35  ;;  %10478 = vpow2.f32 %v6239_v36  ;;  %v15322_v36 = vld [vmem:[#allocation24_spill] sm:$0xff] }
 0x695   : > { %v6477_v58 = vsel %vm373_vm0, %v6327_v4, 0.0 }
 0x696   : > { %v6474_v49 = vsel %vm373_vm0, %v6326_v11, 0.0  ;;  %v13967_v11 = vpop.xlane.xlu1 %6499 }
 0x697   : > { %6436 = vadd.xlane.f32.xlu0 %v6435_v25  ;;  %v6341_v25 = vmul.f32 %v13949_v16, %v13459_v32  ;;  %v13964_v32 = vpop.xlane.xlu0 %6502  ;;  %15320 = vst [vmem:[#allocation91_spill] sm:$0xff] %v13967_v11 }
 0x698   : > { %6433 = vadd.xlane.f32.xlu1 %v6432_v24  ;;  %v13959_v24 = vld [vmem:[%s14810_s3 + $0xb0] sm:$0xff]  ;;  %15319 = vst [vmem:[#allocation90_spill] sm:$0xff] %v13964_v32  ;;  %v15324_v32 = vld [vmem:[#allocation66_spill] sm:$0xff] }
 0x699   : > { %v6340_v46 = vmul.f32 %v13959_v24, %v13470_v3  ;;  %v6519_v4 = vsel %vm373_vm0, %v6341_v25, 0.0  ;;  %v8165_v3 = vsel %vm373_vm0, %v13479_v62, 0.0 }
 0x69b   : > { %6478 = vadd.xlane.f32.xlu0 %v6477_v58  ;;  %v6516_v17 = vsel %vm373_vm0, %v6340_v46, 0.0  ;;  %v8168_v58 = vsel %vm373_vm0, %v13467_v54, 0.0  ;;  %v8213_v54 = vsel %vm373_vm0, %v15324_v32, 0.0  ;;  %v8255_v32 = vsel %vm373_vm0, %v15326_v41, 0.0 }
 0x69c   : > { %6475 = vadd.xlane.f32.xlu1 %v6474_v49  ;;  %v15321_v49 = vld [vmem:[#allocation5_spill] sm:$0xff]  ;;  %v4554_v41 = vmul.f32 %v13775_v12, %v13731_v15 }
 0x69f   : > { %6520 = vadd.xlane.f32.xlu0 %v6519_v4  ;;  %v8216_v4 = vsel %vm373_vm0, %v15322_v36, 0.0  ;;  %v8130_v36 = vmul.f32 %v13568_v44, %v13613_v39 }
 0x6a0   : > { %6517 = vadd.xlane.f32.xlu1 %v6516_v17  ;;  %v10477_v17 = vpop.eup %10476 }
 0x6a1   : > { %v10479_v62 = vpop.eup %10478 }
 0x6a3   : > { %8169 = vadd.xlane.f32.xlu0 %v8168_v58 }
 0x6a4   : > { %v8146_v61 = vpop.xlane.xlu0 %8145  ;;  %8166 = vadd.xlane.f32.xlu1 %v8165_v3  ;;  %v15325_v3 = vld [vmem:[#allocation65_spill] sm:$0xff] }
 0x6a5   : > { %v8404_v31 = vrot.slane %v8146_v61, %v15321_v49  ;;  %v8143_v25 = vpop.xlane.xlu1 %8142  ;;  %v8258_v53 = vsel %vm373_vm0, %v15325_v3, 0.0 }
 0x6a6   : > { %v8400_v46 = vrot.slane %v8143_v25, %v15323_v57  ;;  %v9180_v25 = vadd.f32 -1.0, %v10477_v17 }
 0x6a7   : > { %8217 = vadd.xlane.f32.xlu0 %v8216_v4 }
 0x6a8   : > { %v8152_v11 = vpop.xlane.xlu0 %8151  ;;  %v8405_v58 = vsel %vm3022_vm8, %v8404_v31, %v8400_v46  ;;  %8214 = vadd.xlane.f32.xlu1 %v8213_v54  ;;  %v9179_v31 = vadd.f32 -1.0, %v10479_v62  ;;  %v14000_v17 = vsel %vm6194_vm3, %v15315_v26, %v9180_v25  ;;  %v4744_v26 = vsel %vm373_vm0, %v4554_v41, 0.0 }
 0x6a9   : > { %v8413_v60 = vrot.slane %v8152_v11, %v15321_v49  ;;  %v8149_v61 = vpop.xlane.xlu1 %8148  ;;  %v8129_v11 = vmul.f32 %v13584_v2, %v13635_v7 }
 0x6aa   : > { %v8409_v4 = vrot.slane %v8149_v61, %v15323_v57  ;;  %v6299_v61 = vmul.f32 %v13488_v43, %v14000_v17 }
 0x6ab   : > { %8259 = vadd.xlane.f32.xlu0 %v8258_v53  ;;  %v8300_v53 = vsel %vm373_vm0, %v8130_v36, 0.0 }
 0x6ac   : > { %v8194_v21 = vpop.xlane.xlu0 %8193  ;;  %v8414_v46 = vsel %vm3022_vm8, %v8413_v60, %v8409_v4  ;;  %8256 = vadd.xlane.f32.xlu1 %v8255_v32  ;;  %v4553_v60 = vmul.f32 %v13903_v13, %v13738_v30  ;;  %v6393_v43 = vsel %vm373_vm0, %v6299_v61, 0.0  ;;  %v6343_v61 = vmul.f32 %v13949_v16, %v13780_v14 }
 0x6ad   : > { %v8476_v54 = vrot.slane %v8194_v21, %v15321_v49  ;;  %v13994_v44 = vsel %vm3303_vm9, %v8414_v46, %v8405_v58  ;;  %v8191_v39 = vpop.xlane.xlu1 %8190  ;;  %v8297_v21 = vsel %vm373_vm0, %v8129_v11, 0.0  ;;  %v14008_v58 = vsel %vm6193_vm5, %v15316_v5, %v9179_v31 }
 0x6ae   : > { %v8472_v2 = vrot.slane %v8191_v39, %v15323_v57  ;;  %v4741_v30 = vsel %vm373_vm0, %v4553_v60, 0.0  ;;  %v6298_v13 = vmul.f32 %v13518_v0, %v14008_v58  ;;  %v6315_v11 = vmul.f32 %v13805_v23, %v14000_v17 }
 0x6af   : > { %8301 = vadd.xlane.f32.xlu0 %v8300_v53  ;;  %v6329_v23 = vmul.f32 %v13935_v18, %v13896_v27 }
 0x6b0   : > { %v8200_v7 = vpop.xlane.xlu0 %8199  ;;  %v8477_v62 = vsel %vm3022_vm8, %v8476_v54, %v8472_v2  ;;  %8298 = vadd.xlane.f32.xlu1 %v8297_v21  ;;  %v6390_v0 = vsel %vm373_vm0, %v6298_v13, 0.0  ;;  %v6314_v54 = vmul.f32 %v13542_v48, %v14008_v58  ;;  %v6441_v2 = vsel %vm373_vm0, %v6315_v11, 0.0 }
 0x6b1   : > { %v8485_v15 = vrot.slane %v8200_v7, %v15321_v49  ;;  %v8197_v12 = vpop.xlane.xlu1 %8196  ;;  %v6328_v48 = vmul.f32 %v13823_v1, %v13908_v40  ;;  %v6342_v13 = vmul.f32 %v13959_v24, %v13789_v35 }
 0x6b2   : > { %v8481_v3 = vrot.slane %v8197_v12, %v15323_v57  ;;  %v6438_v60 = vsel %vm373_vm0, %v6314_v54, 0.0  ;;  %v15327_v54 = vld [vmem:[#allocation14_spill] sm:$0xff] }
 0x6b3   : > { %4745 = vadd.xlane.f32.xlu0 %v4744_v26  ;;  %v6483_v26 = vsel %vm373_vm0, %v6329_v23, 0.0  ;;  %v15328_v23 = vld [vmem:[#allocation59_spill] sm:$0xff] }
 0x6b4   : > { %v4596_v36 = vpop.xlane.xlu0 %4595  ;;  %v8486_v5 = vsel %vm3022_vm8, %v8485_v15, %v8481_v3  ;;  %4742 = vadd.xlane.f32.xlu1 %v4741_v30  ;;  %v6480_v30 = vsel %vm373_vm0, %v6328_v48, 0.0 }
 0x6b5   : > { %v4872_v25 = vrot.slane %v4596_v36, %v15321_v49  ;;  %v14022_v4 = vsel %vm3303_vm9, %v8486_v5, %v8477_v62  ;;  %v4593_v32 = vpop.xlane.xlu1 %4592 }
 0x6b6   : > { %v4868_v31 = vrot.slane %v4593_v32, %v15323_v57 }
 0x6b7   : > { %6394 = vadd.xlane.f32.xlu0 %v6393_v43  ;;  %v6525_v43 = vsel %vm373_vm0, %v6343_v61, 0.0 }
 0x6b8   : > { %v4644_v46 = vpop.xlane.xlu0 %4643  ;;  %v14032_v39 = vsel %vm3022_vm8, %v4872_v25, %v4868_v31  ;;  %6391 = vadd.xlane.f32.xlu1 %v6390_v0  ;;  %v6522_v31 = vsel %vm373_vm0, %v6342_v13, 0.0 }
 0x6b9   : > { %v4944_v53 = vrot.slane %v4644_v46, %v15321_v49  ;;  %v4641_v41 = vpop.xlane.xlu1 %4640 }
 0x6ba   : > { %v4940_v7 = vrot.slane %v4641_v41, %v15323_v57 }
 0x6bb   : > { %6442 = vadd.xlane.f32.xlu0 %v6441_v2 }
 0x6bc   : > { %v4686_v21 = vpop.xlane.xlu0 %4685  ;;  %v14043_v62 = vsel %vm3022_vm8, %v4944_v53, %v4940_v7  ;;  %6439 = vadd.xlane.f32.xlu1 %v6438_v60  ;;  %v8174_v53 = vsel %vm373_vm0, %v15327_v54, 0.0  ;;  %v8171_v7 = vsel %vm373_vm0, %v15328_v23, 0.0 }
 0x6bd   : > { %v5007_v15 = vrot.slane %v4686_v21, %v15321_v49  ;;  %v4683_v12 = vpop.xlane.xlu1 %4682 }
 0x6be   : > { %v5003_v3 = vrot.slane %v4683_v12, %v15323_v57 }
 0x6bf   : > { %6484 = vadd.xlane.f32.xlu0 %v6483_v26 }
 0x6c0   : > { %v4728_v36 = vpop.xlane.xlu0 %4727  ;;  %v14054_v5 = vsel %vm3022_vm8, %v5007_v15, %v5003_v3  ;;  %6481 = vadd.xlane.f32.xlu1 %v6480_v30  ;;  %v15329_v15 = vld [vmem:[#allocation31_spill] sm:$0xff]  ;;  %v15330_v3 = vld [vmem:[#allocation9_spill] sm:$0xff] }
 0x6c1   : > { %v5070_v25 = vrot.slane %v4728_v36, %v15321_v49  ;;  %v4725_v32 = vpop.xlane.xlu1 %4724  ;;  %v8222_v12 = vsel %vm373_vm0, %v15329_v15, 0.0  ;;  %v8219_v36 = vsel %vm373_vm0, %v15330_v3, 0.0 }
 0x6c2   : > { %v5066_v14 = vrot.slane %v4725_v32, %v15323_v57  ;;  %v15331_v32 = vld [vmem:[#allocation67_spill] sm:$0xff] }
 0x6c3   : > { %6526 = vadd.xlane.f32.xlu0 %v6525_v43  ;;  %v8264_v43 = vsel %vm373_vm0, %v15331_v32, 0.0 }
 0x6c4   : > { %v6377_v11 = vpop.xlane.xlu0 %6376  ;;  %v14061_v46 = vsel %vm3022_vm8, %v5070_v25, %v5066_v14  ;;  %6523 = vadd.xlane.f32.xlu1 %v6522_v31  ;;  %v15332_v31 = vld [vmem:[#allocation23_spill] sm:$0xff] }
 0x6c5   : > { %v6647_v35 = vrot.slane %v6377_v11, %v15321_v49  ;;  %v6374_v0 = vpop.xlane.xlu1 %6373 }
 0x6c6   : > { %v6643_v41 = vrot.slane %v6374_v0, %v15323_v57 }
 0x6c7   : > { %8175 = vadd.xlane.f32.xlu0 %v8174_v53 }
 0x6c8   : > { %v6425_v2 = vpop.xlane.xlu0 %6424  ;;  %v14070_v21 = vsel %vm3022_vm8, %v6647_v35, %v6643_v41  ;;  %8172 = vadd.xlane.f32.xlu1 %v8171_v7  ;;  %v8261_v35 = vsel %vm373_vm0, %v15332_v31, 0.0  ;;  %v8306_v41 = vsel %vm373_vm0, %v13592_v63, 0.0 }
 0x6c9   : > { %v6719_v60 = vrot.slane %v6425_v2, %v15321_v49  ;;  %v6422_v48 = vpop.xlane.xlu1 %6421  ;;  %v6331_v2 = vmul.f32 %v13935_v18, %v14000_v17  ;;  %v6345_v18 = vmul.f32 %v13949_v16, %v13896_v27 }
 0x6ca   : > { %v6715_v26 = vrot.slane %v6422_v48, %v15323_v57  ;;  %v6330_v48 = vmul.f32 %v13823_v1, %v14008_v58  ;;  %v6344_v1 = vmul.f32 %v13959_v24, %v13908_v40 }
 0x6cb   : > { %8223 = vadd.xlane.f32.xlu0 %v8222_v12  ;;  %v6531_v27 = vsel %vm373_vm0, %v6345_v18, 0.0 }
 0x6cc   : > { %v6467_v61 = vpop.xlane.xlu0 %6466  ;;  %v14079_v30 = vsel %vm3022_vm8, %v6719_v60, %v6715_v26  ;;  %8220 = vadd.xlane.f32.xlu1 %v8219_v36  ;;  %v8303_v60 = vsel %vm373_vm0, %v13600_v59, 0.0  ;;  %v6489_v26 = vsel %vm373_vm0, %v6331_v2, 0.0  ;;  %v6486_v59 = vsel %vm373_vm0, %v6330_v48, 0.0 }
 0x6cd   : > { %v6782_v13 = vrot.slane %v6467_v61, %v15321_v49  ;;  %v6464_v25 = vpop.xlane.xlu1 %6463  ;;  %v8228_v2 = vsel %vm373_vm0, %v13621_v47, 0.0  ;;  %v15337_v47 = vld [vmem:[#allocation63_spill] sm:$0xff] }
 0x6ce   : > { %v6778_v14 = vrot.slane %v6464_v25, %v15323_v57  ;;  %v4899_v18 = vrot.slane %v15337_v47, %v15321_v49  ;;  %v8312_v47 = vsel %vm373_vm0, %v13644_v9, 0.0  ;;  %v8309_v9 = vsel %vm373_vm0, %v13653_v50, 0.0  ;;  %v15349_v50 = vld [vmem:[#allocation36_spill] sm:$0xff] }
 0x6cf   : > { %8265 = vadd.xlane.f32.xlu0 %v8264_v43 }
 0x6d0   : > { %v6509_v11 = vpop.xlane.xlu0 %6508  ;;  %v14088_v0 = vsel %vm3022_vm8, %v6782_v13, %v6778_v14  ;;  %8262 = vadd.xlane.f32.xlu1 %v8261_v35 }
 0x6d1   : > { %v6845_v54 = vrot.slane %v6509_v11, %v15321_v49  ;;  %v6506_v53 = vpop.xlane.xlu1 %6505  ;;  %v6528_v11 = vsel %vm373_vm0, %v6344_v1, 0.0  ;;  %v15339_v1 = vld [vmem:[#allocation64_spill] sm:$0xff] }
 0x6d2   : > { %v6841_v23 = vrot.slane %v6506_v53, %v15323_v57  ;;  %v8177_v53 = vsel %vm373_vm0, %v13617_v22, 0.0  ;;  %v15335_v22 = vld [vmem:[#allocation60_spill] sm:$0xff] }
 0x6d3   : > { %8307 = vadd.xlane.f32.xlu0 %v8306_v41 }
 0x6d4   : > { %v8158_v7 = vpop.xlane.xlu0 %8157  ;;  %v14101_v15 = vsel %vm3022_vm8, %v6845_v54, %v6841_v23  ;;  %8304 = vadd.xlane.f32.xlu1 %v8303_v60  ;;  %v15334_v60 = vld [vmem:[#allocation55_spill] sm:$0xff] }
 0x6d5   : > { %v8422_v12 = vrot.slane %v8158_v7, %v15321_v49  ;;  %v8155_v63 = vpop.xlane.xlu1 %8154  ;;  %v4814_v48 = vrot.slane %v15334_v60, %v15323_v57  ;;  %v15344_v60 = vld [vmem:[#allocation30_spill] sm:$0xff] }
 0x6d6   : > { %v8418_v61 = vrot.slane %v8155_v63, %v15323_v57  ;;  %v15336_v63 = vld [vmem:[#allocation50_spill] sm:$0xff] }
 0x6d7   : > { %6490 = vadd.xlane.f32.xlu0 %v6489_v26  ;;  %v4823_v26 = vrot.slane %v15336_v63, %v15323_v57 }
 0x6d8   : > { %v8206_v3 = vpop.xlane.xlu0 %8205  ;;  %v8423_v36 = vsel %vm3022_vm8, %v8422_v12, %v8418_v61  ;;  %6487 = vadd.xlane.f32.xlu1 %v6486_v59  ;;  %v4818_v12 = vrot.slane %v15335_v22, %v15321_v49  ;;  %v15338_v61 = vld [vmem:[#allocation46_spill] sm:$0xff]  ;;  %v4904_v22 = vrot.slane %v15344_v60, %v15323_v57 }
 0x6d9   : > { %v8494_v13 = vrot.slane %v8206_v3, %v15321_v49  ;;  %v14115_v25 = vsel %vm3305_vm10, %v8423_v36, %v13994_v44  ;;  %v8203_v32 = vpop.xlane.xlu1 %8202  ;;  %v8180_v44 = vsel %vm373_vm0, %v13610_v52, 0.0  ;;  %v8225_v52 = vsel %vm373_vm0, %v13628_v42, 0.0 }
 0x6da   : > { %v8490_v43 = vrot.slane %v8203_v32, %v15323_v57  ;;  %v4836_v3 = vrot.slane %v15338_v61, %v15321_v49  ;;  %v8270_v42 = vsel %vm373_vm0, %v13632_v56, 0.0  ;;  %v4895_v36 = vrot.slane %v15339_v1, %v15323_v57  ;;  %v15345_v61 = vld [vmem:[#allocation22_spill] sm:$0xff] }
 0x6db   : > { %6532 = vadd.xlane.f32.xlu0 %v6531_v27  ;;  %v8267_v56 = vsel %vm373_vm0, %v13640_v6, 0.0  ;;  %v6347_v6 = vmul.f32 %v13949_v16, %v14000_v17  ;;  %v6346_v16 = vmul.f32 %v13959_v24, %v14008_v58  ;;  %v15350_v24 = vld [vmem:[#allocation70_spill] sm:$0xff] }
 0x6dc   : > { %v14119_v14 = vpop.xlane.xlu0 %8241  ;;  %v8495_v40 = vsel %vm3022_vm8, %v8494_v13, %v8490_v43  ;;  %6529 = vadd.xlane.f32.xlu1 %v6528_v11  ;;  %v15340_v13 = vld [vmem:[#allocation48_spill] sm:$0xff]  ;;  %v15341_v43 = vld [vmem:[#allocation61_spill] sm:$0xff]  ;;  %v4917_v58 = vrot.slane %v15350_v24, %v15321_v49  ;;  %v6634_v24 = vrot.slane %v13889_v55, %v15323_v57  ;;  %v6710_v55 = vrot.slane %v13910_v33, %v15321_v49 }
 0x6dd   : > { %v14125_v31 = vsel %vm3305_vm10, %v8495_v40, %v14022_v4  ;;  %v14127_v35 = vpop.xlane.xlu1 %8238  ;;  %v15333_v4 = vld [vmem:[#allocation8_spill] sm:$0xff]  ;;  %v4908_v32 = vrot.slane %v15340_v13, %v15321_v49  ;;  %v4890_v11 = vrot.slane %v15341_v43, %v15321_v49  ;;  %v15342_v40 = vld [vmem:[#allocation38_spill] sm:$0xff]  ;;  %v15348_v43 = vld [vmem:[#allocation15_spill] sm:$0xff]  ;;  %v6706_v33 = vrot.slane %v13915_v34, %v15323_v57 }
 0x6de   : > { %v4827_v23 = vrot.slane %v15333_v4, %v15321_v49  ;;  %v15343_v4 = vld [vmem:[#allocation62_spill] sm:$0xff] }
 0x6df   : > { %8181 = vadd.xlane.f32.xlu0 %v8180_v44  ;;  %v4832_v44 = vrot.slane %v15342_v40, %v15323_v57 }
 0x6e0   : > { %v14131_v54 = vpop.xlane.xlu0 %8247  ;;  %8178 = vadd.xlane.f32.xlu1 %v8177_v53  ;;  %v4828_v27 = vsel %vm3022_vm8, %v4827_v23, %v4823_v26  ;;  %v4900_v23 = vsel %vm3022_vm8, %v4899_v18, %v4895_v36 }
 0x6e1   : > { %v14135_v41 = vpop.xlane.xlu1 %8244  ;;  %v4837_v63 = vsel %vm3022_vm8, %v4836_v3, %v4832_v44  ;;  %v15346_v3 = vld [vmem:[#allocation47_spill] sm:$0xff]  ;;  %v4841_v44 = vrot.slane %v15349_v50, %v15323_v57 }
 0x6e2   : > { %v4845_v1 = vrot.slane %v15346_v3, %v15321_v49 }
 0x6e3   : > { %8229 = vadd.xlane.f32.xlu0 %v8228_v2  ;;  %v4819_v2 = vsel %vm3022_vm8, %v4818_v12, %v4814_v48  ;;  %v4909_v12 = vsel %vm3022_vm8, %v4908_v32, %v4904_v22  ;;  %v15347_v32 = vld [vmem:[#allocation17_spill] sm:$0xff] }
 0x6e4   : > { %v14141_v7 = vpop.xlane.xlu0 %4601  ;;  %8226 = vadd.xlane.f32.xlu1 %v8225_v52  ;;  %v4886_v52 = vrot.slane %v15343_v4, %v15323_v57  ;;  %v5099_v48 = vsel %vm3303_vm9, %v4828_v27, %v4819_v2  ;;  %v6616_v27 = vrot.slane %v15347_v32, %v15323_v57  ;;  %v6537_v2 = vsel %vm373_vm0, %v6347_v6, 0.0  ;;  %v15351_v4 = vld [vmem:[#allocation52_spill] sm:$0xff]  ;;  %v15352_v22 = vld [vmem:[#allocation41_spill] sm:$0xff]  ;;  %v15354_v6 = vld [vmem:[#allocation26_spill] sm:$0xff] }
 0x6e5   : > { %v14155_v59 = vpop.xlane.xlu1 %4598  ;;  %v14200_v13 = vsel %vm3305_vm10, %v4837_v63, %v5099_v48  ;;  %v6629_v63 = vrot.slane %v13755_v29, %v15321_v49  ;;  %v6625_v29 = vrot.slane %v13760_v51, %v15323_v57  ;;  %v6638_v32 = vrot.slane %v13882_v8, %v15321_v49 }
 0x6e6   : > { %v4891_v18 = vsel %vm3022_vm8, %v4890_v11, %v4886_v52  ;;  %v6611_v11 = vrot.slane %v15348_v43, %v15321_v49  ;;  %v6607_v52 = vrot.slane %v15351_v4, %v15323_v57  ;;  %v6701_v8 = vrot.slane %v13768_v37, %v15321_v49 }
 0x6e7   : > { %8271 = vadd.xlane.f32.xlu0 %v8270_v42  ;;  %v6620_v42 = vrot.slane %v15345_v61, %v15321_v49  ;;  %v5106_v17 = vsel %vm3303_vm9, %v4900_v23, %v4891_v18  ;;  %v6692_v23 = vrot.slane %v15352_v22, %v15321_v49  ;;  %v6683_v61 = vrot.slane %v15354_v6, %v15321_v49 }
 0x6e8   : > { %v14168_v53 = vpop.xlane.xlu0 %4649  ;;  %8268 = vadd.xlane.f32.xlu1 %v8267_v56  ;;  %v14207_v40 = vsel %vm3305_vm10, %v4909_v12, %v5106_v17  ;;  %v14226_v12 = vsel %vm3022_vm8, %v4845_v1, %v4841_v44  ;;  %v6612_v3 = vsel %vm3022_vm8, %v6611_v11, %v6607_v52  ;;  %v8186_v11 = vsel %vm373_vm0, %v13656_v19, 0.0  ;;  %v15357_v52 = vld [vmem:[#allocation40_spill] sm:$0xff] }
 0x6e9   : > { %v14179_v26 = vpop.xlane.xlu1 %4646  ;;  %v6621_v60 = vsel %vm3022_vm8, %v6620_v42, %v6616_v27  ;;  %v6534_v42 = vsel %vm373_vm0, %v6346_v16, 0.0  ;;  %v15356_v27 = vld [vmem:[#allocation33_spill] sm:$0xff]  ;;  %v6630_v51 = vsel %vm3022_vm8, %v6629_v63, %v6625_v29  ;;  %v4922_v4 = vrot.slane %v13695_v20, %v15323_v57 }
 0x6ea   : > { %v6679_v43 = vrot.slane %v15356_v27, %v15323_v57  ;;  %v6892_v16 = vsel %vm3303_vm9, %v6621_v60, %v6612_v3  ;;  %v8183_v60 = vsel %vm373_vm0, %v15357_v52, 0.0  ;;  %v6697_v22 = vrot.slane %v13782_v10, %v15323_v57  ;;  %v15358_v63 = vld [vmem:[#allocation25_spill] sm:$0xff]  ;;  %v15364_v52 = vld [vmem:[#allocation74_spill] sm:$0xff] }
 0x6eb   : > { %8313 = vadd.xlane.f32.xlu0 %v8312_v47  ;;  %v15353_v47 = vld [vmem:[#allocation29_spill] sm:$0xff]  ;;  %v6639_v37 = vsel %vm3022_vm8, %v6638_v32, %v6634_v24  ;;  %v6760_v3 = vrot.slane %v13817_v38, %v15323_v57  ;;  %v15360_v32 = vld [vmem:[#allocation88_spill] sm:$0xff]  ;;  %v6711_v38 = vsel %vm3022_vm8, %v6710_v55, %v6706_v33 }
 0x6ec   : > { %v14192_v36 = vpop.xlane.xlu0 %4691  ;;  %8310 = vadd.xlane.f32.xlu1 %v8309_v9  ;;  %v4913_v48 = vrot.slane %v15353_v47, %v15323_v57  ;;  %v15355_v9 = vld [vmem:[#allocation35_spill] sm:$0xff]  ;;  %v4854_v47 = vrot.slane %v15358_v63, %v15321_v49  ;;  %v6702_v10 = vsel %vm3022_vm8, %v6701_v8, %v6697_v22  ;;  %v6773_v27 = vrot.slane %v15360_v32, %v15321_v49  ;;  %v15363_v24 = vld [vmem:[#allocation89_spill] sm:$0xff]  ;;  %v15366_v33 = vld [vmem:[#allocation76_spill] sm:$0xff] }
 0x6ed   : > { %v14213_v56 = vpop.xlane.xlu1 %4688  ;;  %v6688_v17 = vrot.slane %v15355_v9, %v15323_v57 }
 0x6ee   : > { %v14241_v1 = vsel %vm3022_vm8, %v4917_v58, %v4913_v48  ;;  %v6684_v58 = vsel %vm3022_vm8, %v6683_v61, %v6679_v43  ;;  %v6893_v48 = vsel %vm3305_vm10, %v6630_v51, %v6892_v16  ;;  %v15359_v61 = vld [vmem:[#allocation72_spill] sm:$0xff]  ;;  %v15361_v16 = vld [vmem:[#allocation73_spill] sm:$0xff] }
 0x6ef   : > { %6538 = vadd.xlane.f32.xlu0 %v6537_v2  ;;  %v6693_v44 = vsel %vm3022_vm8, %v6692_v23, %v6688_v17  ;;  %v4850_v2 = vrot.slane %v13646_v45, %v15323_v57  ;;  %v6764_v17 = vrot.slane %v13812_v28, %v15321_v49  ;;  %v6894_v29 = vsel %vm3307_vm11, %v6639_v37, %v6893_v48  ;;  %v15362_v28 = vld [vmem:[#allocation12_spill] sm:$0xff]  ;;  %v15365_v37 = vld [vmem:[#allocation54_spill] sm:$0xff] }
 0x6f0   : > { %v14230_v18 = vpop.xlane.xlu0 %4733  ;;  %6535 = vadd.xlane.f32.xlu1 %v6534_v42  ;;  %v6899_v45 = vsel %vm3303_vm9, %v6693_v44, %v6684_v58  ;;  %v8234_v42 = vsel %vm373_vm0, %v15359_v61, 0.0  ;;  %v6895_v34 = vsel %vm3309_vm12, %v14070_v21, %v6894_v29  ;;  %v6755_v8 = vrot.slane %v15362_v28, %v15321_v49 }
 0x6f1   : > { %v14246_v50 = vpop.xlane.xlu1 %4730  ;;  %v6769_v58 = vrot.slane %v15363_v24, %v15323_v57  ;;  %v14303_v21 = vsel %vm3022_vm8, %v4854_v47, %v4850_v2  ;;  %v6751_v55 = vrot.slane %v15365_v37, %v15323_v57  ;;  %v6765_v48 = vsel %vm3022_vm8, %v6764_v17, %v6760_v3  ;;  %v15367_v2 = vld [vmem:[#allocation90_spill] sm:$0xff]  ;;  %v15368_v3 = vld [vmem:[#allocation75_spill] sm:$0xff]  ;;  %v15374_v37 = vld [vmem:[#allocation37_spill] sm:$0xff] }
 0x6f2   : > { %v6836_v47 = vrot.slane %v15367_v2, %v15321_v49  ;;  %v4926_v17 = vrot.slane %v15368_v3, %v15321_v49 }
 0x6f3   : > { %8187 = vadd.xlane.f32.xlu0 %v8186_v11  ;;  %v8231_v11 = vsel %vm373_vm0, %v15361_v16, 0.0  ;;  %v6774_v61 = vsel %vm3022_vm8, %v6773_v27, %v6769_v58  ;;  %v6756_v32 = vsel %vm3022_vm8, %v6755_v8, %v6751_v55  ;;  %v15372_v8 = vld [vmem:[#allocation45_spill] sm:$0xff]  ;;  %v15373_v58 = vld [vmem:[#allocation44_spill] sm:$0xff]  ;;  %v8315_v55 = vsel %vm373_vm0, %v15374_v37, 0.0 }
 0x6f4   : > { %v6383_v19 = vpop.xlane.xlu0 %6382  ;;  %8184 = vadd.xlane.f32.xlu1 %v8183_v60  ;;  %v8276_v60 = vsel %vm373_vm0, %v15364_v52, 0.0  ;;  %v4935_v24 = vrot.slane %v15372_v8, %v15321_v49  ;;  %v15381_v37 = vld [vmem:[#allocation81_spill] sm:$0xff] }
 0x6f5   : > { %v6656_v23 = vrot.slane %v6383_v19, %v15321_v49  ;;  %v6380_v6 = vpop.xlane.xlu1 %6379 }
 0x6f6   : > { %v6652_v9 = vrot.slane %v6380_v6, %v15323_v57 }
 0x6f7   : > { %8235 = vadd.xlane.f32.xlu0 %v8234_v42 }
 0x6f8   : > { %v6431_v43 = vpop.xlane.xlu0 %6430  ;;  %v6657_v44 = vsel %vm3022_vm8, %v6656_v23, %v6652_v9  ;;  %8232 = vadd.xlane.f32.xlu1 %v8231_v11  ;;  %v6900_v23 = vsel %vm3305_vm10, %v6702_v10, %v6899_v45  ;;  %v8273_v9 = vsel %vm373_vm0, %v15366_v33, 0.0 }
 0x6f9   : > { %v6728_v51 = vrot.slane %v6431_v43, %v15321_v49  ;;  %v6428_v19 = vpop.xlane.xlu1 %6427  ;;  %v14300_v22 = vsel %vm3311_vm13, %v6657_v44, %v6895_v34  ;;  %v6901_v6 = vsel %vm3307_vm11, %v6711_v38, %v6900_v23  ;;  %v15369_v43 = vld [vmem:[#allocation77_spill] sm:$0xff]  ;;  %v6906_v38 = vsel %vm3303_vm9, %v6765_v48, %v6756_v32  ;;  %v15371_v44 = vld [vmem:[#allocation68_spill] sm:$0xff] }
 0x6fa   : > { %v6724_v63 = vrot.slane %v6428_v19, %v15323_v57  ;;  %v6902_v29 = vsel %vm3309_vm12, %v14079_v30, %v6901_v6  ;;  %v8318_v16 = vsel %vm373_vm0, %v15369_v43, 0.0  ;;  %v15370_v30 = vld [vmem:[#allocation91_spill] sm:$0xff]  ;;  %v6823_v19 = vrot.slane %v15373_v58, %v15323_v57  ;;  %v15380_v58 = vld [vmem:[#allocation80_spill] sm:$0xff] }
 0x6fb   : > { %8277 = vadd.xlane.f32.xlu0 %v8276_v60  ;;  %v6832_v34 = vrot.slane %v15370_v30, %v15323_v57  ;;  %v6907_v52 = vsel %vm3305_vm10, %v6774_v61, %v6906_v38  ;;  %v15375_v61 = vld [vmem:[#allocation87_spill] sm:$0xff]  ;;  %v4953_v32 = vrot.slane %v14168_v53, %v15321_v49  ;;  %v4881_v53 = vrot.slane %v14141_v7, %v15321_v49 }
 0x6fc   : > { %v6473_v42 = vpop.xlane.xlu0 %6472  ;;  %v6729_v45 = vsel %vm3022_vm8, %v6728_v51, %v6724_v63  ;;  %8274 = vadd.xlane.f32.xlu1 %v8273_v9  ;;  %v6827_v51 = vrot.slane %v15371_v44, %v15321_v49  ;;  %v6908_v63 = vsel %vm3307_vm11, %v14088_v0, %v6907_v52  ;;  %v4859_v33 = vrot.slane %v15375_v61, %v15323_v57 }
 0x6fd   : > { %v6791_v10 = vrot.slane %v6473_v42, %v15321_v49  ;;  %v6470_v27 = vpop.xlane.xlu1 %6469  ;;  %v14326_v11 = vsel %vm3311_vm13, %v6729_v45, %v6902_v29  ;;  %v6837_v23 = vsel %vm3022_vm8, %v6836_v47, %v6832_v34  ;;  %v4927_v42 = vsel %vm3022_vm8, %v4926_v17, %v4922_v4  ;;  %v15376_v47 = vld [vmem:[#allocation78_spill] sm:$0xff] }
 0x6fe   : > { %v6787_v28 = vrot.slane %v6470_v27, %v15323_v57  ;;  %v8282_v0 = vsel %vm373_vm0, %v15376_v47, 0.0  ;;  %v15377_v29 = vld [vmem:[#allocation6_spill] sm:$0xff]  ;;  %v6828_v20 = vsel %vm3022_vm8, %v6827_v51, %v6823_v19  ;;  %v4949_v27 = vrot.slane %v14179_v26, %v15323_v57 }
 0x6ff   : > { %8319 = vadd.xlane.f32.xlu0 %v8318_v16  ;;  %v4931_v45 = vrot.slane %v15377_v29, %v15323_v57  ;;  %v6913_v17 = vsel %vm3303_vm9, %v6837_v23, %v6828_v20  ;;  %v15379_v16 = vld [vmem:[#allocation79_spill] sm:$0xff]  ;;  %v4877_v26 = vrot.slane %v14155_v59, %v15323_v57  ;;  %v5108_v19 = vsel %vm3307_vm11, %v14241_v1, %v14207_v40 }
 0x700   : > { %v6515_v60 = vpop.xlane.xlu0 %6514  ;;  %v6792_v48 = vsel %vm3022_vm8, %v6791_v10, %v6787_v28  ;;  %8316 = vadd.xlane.f32.xlu1 %v8315_v55  ;;  %v15378_v10 = vld [vmem:[#allocation49_spill] sm:$0xff]  ;;  %v8279_v38 = vsel %vm373_vm0, %v15379_v16, 0.0  ;;  %v6914_v34 = vsel %vm3305_vm10, %v14101_v15, %v6913_v17  ;;  %v5101_v15 = vsel %vm3307_vm11, %v14226_v12, %v14200_v13 }
 0x701   : > { %v6854_v6 = vrot.slane %v6515_v60, %v15321_v49  ;;  %v14353_v9 = vsel %vm3309_vm12, %v6792_v48, %v6908_v63  ;;  %v6512_v2 = vpop.xlane.xlu1 %6511  ;;  %v4863_v3 = vrot.slane %v15378_v10, %v15321_v49  ;;  %v4936_v30 = vsel %vm3022_vm8, %v4935_v24, %v4931_v45  ;;  %v15384_v17 = vld [vmem:[#allocation69_spill] sm:$0xff] }
 0x702   : > { %v6850_v4 = vrot.slane %v6512_v2, %v15323_v57  ;;  %v8324_v24 = vsel %vm373_vm0, %v15380_v58, 0.0  ;;  %v5109_v59 = vsel %vm3309_vm12, %v4927_v42, %v5108_v19  ;;  %v8321_v55 = vsel %vm373_vm0, %v15381_v37, 0.0  ;;  %v15391_v19 = vld [vmem:[#allocation43_spill] sm:$0xff] }
 0x703   : > { %8283 = vadd.xlane.f32.xlu0 %v8282_v0  ;;  %v4864_v52 = vsel %vm3022_vm8, %v4863_v3, %v4859_v33  ;;  %v4954_v23 = vsel %vm3022_vm8, %v4953_v32, %v4949_v27  ;;  %v5102_v13 = vsel %vm3309_vm12, %v14303_v21, %v5101_v15  ;;  %v5110_v1 = vsel %vm3311_vm13, %v4936_v30, %v5109_v59 }
 0x704   : > { %v8164_v43 = vpop.xlane.xlu0 %8163  ;;  %v6855_v44 = vsel %vm3022_vm8, %v6854_v6, %v6850_v4  ;;  %8280 = vadd.xlane.f32.xlu1 %v8279_v38  ;;  %v15382_v6 = vld [vmem:[#allocation82_spill] sm:$0xff]  ;;  %v5111_v61 = vsel %vm3313_vm14, %v14043_v62, %v5110_v1  ;;  %v4882_v21 = vsel %vm3022_vm8, %v4881_v53, %v4877_v26  ;;  %v5103_v47 = vsel %vm3311_vm13, %v4864_v52, %v5102_v13  ;;  %v15386_v38 = vld [vmem:[#allocation57_spill] sm:$0xff] }
 0x705   : > { %v8431_v51 = vrot.slane %v8164_v43, %v15321_v49  ;;  %v14380_v28 = vsel %vm3307_vm11, %v6855_v44, %v6914_v34  ;;  %v8161_v8 = vpop.xlane.xlu1 %8160  ;;  %v8330_v42 = vsel %vm373_vm0, %v15382_v6, 0.0  ;;  %v5112_v2 = vsel %vm3315_vm15, %v4954_v23, %v5111_v61  ;;  %v15385_v43 = vld [vmem:[#allocation11_spill] sm:$0xff]  ;;  %v15389_v26 = vld [vmem:[#allocation42_spill] sm:$0xff]  ;;  %v15392_v52 = vld [vmem:[#allocation85_spill] sm:$0xff] }
 0x706   : > { %v8427_v7 = vrot.slane %v8161_v8, %v15323_v57  ;;  %v5104_v45 = vsel %vm3313_vm14, %v14032_v39, %v5103_v47  ;;  %v5134_v4 = vsel %vm1762_vm4, %v5112_v2, 0.0  ;;  %v4971_v32 = vrot.slane %v15384_v17, %v15321_v49  ;;  %v15387_v34 = vld [vmem:[#allocation51_spill] sm:$0xff] }
 0x707   : > { %8325 = vadd.xlane.f32.xlu0 %v8324_v24  ;;  %v5105_v62 = vsel %vm3315_vm15, %v4882_v21, %v5104_v45  ;;  %v4967_v16 = vrot.slane %v15385_v43, %v15323_v57  ;;  %v4980_v30 = vrot.slane %v15386_v38, %v15321_v49  ;;  %v4962_v44 = vrot.slane %v15387_v34, %v15321_v49  ;;  %v15390_v24 = vld [vmem:[#allocation34_spill] sm:$0xff] }
 0x708   : > { %v8212_v60 = vpop.xlane.xlu0 %8211  ;;  %v8432_v12 = vsel %vm3022_vm8, %v8431_v51, %v8427_v7  ;;  %8322 = vadd.xlane.f32.xlu1 %v8321_v55  ;;  %v5131_v39 = vsel %vm1762_vm4, %v5105_v62, 0.0  ;;  %v15388_v51 = vld [vmem:[#allocation84_spill] sm:$0xff]  ;;  %v4958_v8 = vrot.slane %v15389_v26, %v15323_v57  ;;  %v4976_v15 = vrot.slane %v15390_v24, %v15323_v57 }
 0x709   : > { %v8503_v40 = vrot.slane %v8212_v60, %v15321_v49  ;;  %v14403_v63 = vsel %vm3307_vm11, %v8432_v12, %v14115_v25  ;;  %v8209_v48 = vpop.xlane.xlu1 %8208  ;;  %v15383_v25 = vld [vmem:[#allocation83_spill] sm:$0xff]  ;;  %v4989_v53 = vrot.slane %v15388_v51, %v15321_v49  ;;  %v4972_v58 = vsel %vm3022_vm8, %v4971_v32, %v4967_v16  ;;  %v15393_v12 = vld [vmem:[#allocation16_spill] sm:$0xff] }
 0x70a   : > { %v8499_v33 = vrot.slane %v8209_v48, %v15323_v57  ;;  %v8327_v29 = vsel %vm373_vm0, %v15383_v25, 0.0  ;;  %v4998_v7 = vrot.slane %v15391_v19, %v15321_v49  ;;  %v4985_v60 = vrot.slane %v15392_v52, %v15323_v57 }
 0x70b   : > { %8331 = vadd.xlane.f32.xlu0 %v8330_v42  ;;  %v4981_v13 = vsel %vm3022_vm8, %v4980_v30, %v4976_v15  ;;  %v5016_v1 = vrot.slane %v14192_v36, %v15321_v49  ;;  %v5012_v48 = vrot.slane %v14213_v56, %v15323_v57  ;;  %v4963_v42 = vsel %vm3022_vm8, %v4962_v44, %v4958_v8 }
 0x70c   : > { %v14413_v0 = vpop.xlane.xlu0 %8253  ;;  %v8504_v10 = vsel %vm3022_vm8, %v8503_v40, %v8499_v33  ;;  %8328 = vadd.xlane.f32.xlu1 %v8327_v29  ;;  %v4994_v40 = vrot.slane %v15393_v12, %v15323_v57  ;;  %v4990_v61 = vsel %vm3022_vm8, %v4989_v53, %v4985_v60  ;;  %v5113_v33 = vsel %vm3303_vm9, %v4972_v58, %v4963_v42 }
 0x70d   : > { %v14423_v3 = vsel %vm3307_vm11, %v8504_v10, %v14125_v31  ;;  %v14425_v20 = vpop.xlane.xlu1 %8250  ;;  %v5114_v25 = vsel %vm3305_vm10, %v4981_v13, %v5113_v33  ;;  %v5017_v10 = vsel %vm3022_vm8, %v5016_v1, %v5012_v48  ;;  %v10518_v44 = vmov 0   ;;  %v15394_v48 = vld [vmem:[#allocation4_spill] sm:$0xff] }
 0x70e   : > { %v4999_v2 = vsel %vm3022_vm8, %v4998_v7, %v4994_v40  ;;  %v5115_v45 = vsel %vm3307_vm11, %v4990_v61, %v5114_v25  ;;  %10094 = vset.pattern.permute.xlu1 %v10518_v44  ;;  %10095 = vset.pattern.permute.xlu0 %v10518_v44  ;;  %v8557_v13 = vrot.slane %v14131_v54, %v15321_v49 }
 0x70f   : > { %5135 = vadd.xlane.f32.xlu0 %v5134_v4  ;;  %v5116_v17 = vsel %vm3309_vm12, %v4999_v2, %v5115_v45  ;;  %v8553_v12 = vrot.slane %v14135_v41, %v15323_v57  ;;  %v8562_v42 = vrot.slane %v14425_v20, %v15323_v57  ;;  %v15395_v41 = vld [vmem:[#allocation27_spill] sm:$0xff]  ;;  %v8548_v33 = vrot.slane %v14119_v14, %v15321_v49 }
 0x710   : > { %v8290_v27 = vpop.xlane.xlu0 %8289  ;;  %5132 = vadd.xlane.f32.xlu1 %v5131_v39  ;;  %v5117_v39 = vsel %vm3311_vm13, %v14054_v5, %v5116_v17  ;;  %v8544_v2 = vrot.slane %v14127_v35, %v15323_v57  ;;  %v15397_v20 = vld [vmem:[#allocation39_spill] sm:$0xff]  ;;  %v15399_v35 = vld [vmem:[#allocation86_spill] sm:$0xff]  ;;  %v15400_v17 = vld [vmem:[#allocation13_spill] sm:$0xff] }
 0x711   : > { %v8287_v31 = vpop.xlane.xlu1 %8286  ;;  %v8620_v37 = vrot.slane %v8290_v27, %v15321_v49  ;;  %v5118_v16 = vsel %vm3313_vm14, %v5017_v10, %v5117_v39  ;;  %v8558_v45 = vsel %vm3022_vm8, %v8557_v13, %v8553_v12 }
 0x712   : > { %v8616_v55 = vrot.slane %v8287_v31, %v15323_v57  ;;  %v8549_v44 = vsel %vm3022_vm8, %v8548_v33, %v8544_v2 }
 0x714   : > { %v8296_v59 = vpop.xlane.xlu0 %8295  ;;  %v8621_v29 = vsel %vm3022_vm8, %v8620_v37, %v8616_v55 }
 0x715   : > { %v8629_v23 = vrot.slane %v8296_v59, %v15321_v49  ;;  %v8293_v6 = vpop.xlane.xlu1 %8292 }
 0x716   : > { %v8625_v21 = vrot.slane %v8293_v6, %v15323_v57  ;;  %v5034_v6 = vrot.slane %v15394_v48, %v15321_v49 }
 0x718   : > { %v4698_v47 = vpop.xlane.xlu0 %4697  ;;  %v8630_v36 = vsel %vm3022_vm8, %v8629_v23, %v8625_v21  ;;  %v5043_v21 = vrot.slane %v15395_v41, %v15321_v49 }
 0x719   : > { %v5025_v56 = vrot.slane %v4698_v47, %v15321_v49  ;;  %v14470_v62 = vsel %vm3303_vm9, %v8630_v36, %v8621_v29  ;;  %v4695_v4 = vpop.xlane.xlu1 %4694  ;;  %v5052_v29 = vrot.slane %v15397_v20, %v15321_v49  ;;  %v15398_v36 = vld [vmem:[#allocation10_spill] sm:$0xff] }
 0x71a   : > { %v5021_v32 = vrot.slane %v4695_v4, %v15323_v57  ;;  %v5048_v4 = vrot.slane %v15399_v35, %v15323_v57 }
 0x71c   : > { %v14474_v27 = vpop.xlane.xlu0 %4739  ;;  %v5026_v43 = vsel %vm3022_vm8, %v5025_v56, %v5021_v32  ;;  %v5039_v56 = vrot.slane %v15398_v36, %v15323_v57  ;;  %v5061_v32 = vrot.slane %v15400_v17, %v15321_v49 }
 0x71d   : > { %v14480_v38 = vpop.xlane.xlu1 %4736  ;;  %v5119_v30 = vsel %vm3315_vm15, %v5026_v43, %v5118_v16  ;;  %v5088_v12 = vrot.slane %v14474_v27, %v15321_v49 }
 0x71e   : > { %v5137_v31 = vsel %vm1762_vm4, %v5119_v30, 0.0 }
 0x71f   : > { %5138 = vadd.xlane.f32.xlu1 %v5137_v31  ;;  %v5044_v31 = vsel %vm3022_vm8, %v5043_v21, %v5039_v56 }
 0x720   : > { %v14484_v34 = vpop.xlane.xlu0 %6388 }
 0x721   : > { %v14486_v51 = vpop.xlane.xlu1 %6385  ;;  %v6665_v21 = vrot.slane %v14484_v34, %v15321_v49 }
 0x722   : > { %v6661_v33 = vrot.slane %v14486_v51, %v15323_v57 }
 0x724   : > { %v14488_v53 = vpop.xlane.xlu0 %6436  ;;  %v6666_v51 = vsel %vm3022_vm8, %v6665_v21, %v6661_v33 }
 0x725   : > { %v14490_v5 = vpop.xlane.xlu1 %6433 }
 0x726   : > { %v6733_v56 = vrot.slane %v14490_v5, %v15323_v57 }
 0x728   : > { %v14492_v26 = vpop.xlane.xlu0 %6478 }
 0x729   : > { %v14494_v8 = vpop.xlane.xlu1 %6475 }
 0x72c   : > { %v6521_v58 = vpop.xlane.xlu0 %6520 }
 0x72d   : > { %v6863_v24 = vrot.slane %v6521_v58, %v15321_v49  ;;  %v6518_v15 = vpop.xlane.xlu1 %6517 }
 0x72e   : > { %v6859_v19 = vrot.slane %v6518_v15, %v15323_v57  ;;  %v15401_v15 = vld [vmem:[#allocation7_spill] sm:$0xff] }
 0x730   : > { %v8170_v7 = vpop.xlane.xlu0 %8169  ;;  %v6864_v59 = vsel %vm3022_vm8, %v6863_v24, %v6859_v19  ;;  %v5053_v24 = vsel %vm3022_vm8, %v5052_v29, %v5048_v4  ;;  %v5057_v19 = vrot.slane %v15401_v15, %v15323_v57 }
 0x731   : > { %v8440_v52 = vrot.slane %v8170_v7, %v15321_v49  ;;  %v14502_v60 = vsel %vm3309_vm12, %v6864_v59, %v14380_v28  ;;  %v8167_v37 = vpop.xlane.xlu1 %8166  ;;  %v8566_v28 = vrot.slane %v14413_v0, %v15321_v49  ;;  %v15396_v0 = vld [vmem:[#allocation58_spill] sm:$0xff]  ;;  %v8699_v7 = vsel %vm3303_vm9, %v8558_v45, %v8549_v44 }
 0x732   : > { %v8436_v55 = vrot.slane %v8167_v37, %v15323_v57  ;;  %v5030_v25 = vrot.slane %v15396_v0, %v15323_v57  ;;  %v5062_v13 = vsel %vm3022_vm8, %v5061_v32, %v5057_v19  ;;  %v6897_v32 = vsel %vm3313_vm14, %v6666_v51, %v14300_v22 }
 0x733   : > { %v8567_v39 = vsel %vm3022_vm8, %v8566_v28, %v8562_v42 }
 0x734   : > { %v8218_v23 = vpop.xlane.xlu0 %8217  ;;  %v8441_v40 = vsel %vm3022_vm8, %v8440_v52, %v8436_v55  ;;  %v5035_v30 = vsel %vm3022_vm8, %v5034_v6, %v5030_v25  ;;  %v5075_v52 = vrot.slane %v14246_v50, %v15323_v57  ;;  %v8700_v37 = vsel %vm3305_vm10, %v8567_v39, %v8699_v7 }
 0x735   : > { %v8512_v1 = vrot.slane %v8218_v23, %v15321_v49  ;;  %v14519_v61 = vsel %vm3309_vm12, %v8441_v40, %v14403_v63  ;;  %v8215_v54 = vpop.xlane.xlu1 %8214  ;;  %v5084_v40 = vrot.slane %v14480_v38, %v15323_v57  ;;  %v5120_v50 = vsel %vm3303_vm9, %v5044_v31, %v5035_v30 }
 0x736   : > { %v8508_v47 = vrot.slane %v8215_v54, %v15323_v57  ;;  %v5121_v6 = vsel %vm3305_vm10, %v5053_v24, %v5120_v50 }
 0x737   : > { %v5122_v42 = vsel %vm3307_vm11, %v5062_v13, %v5121_v6  ;;  %v5089_v38 = vsel %vm3022_vm8, %v5088_v12, %v5084_v40  ;;  %v6796_v12 = vrot.slane %v14494_v8, %v15323_v57 }
 0x738   : > { %v8260_v63 = vpop.xlane.xlu0 %8259  ;;  %v8513_v10 = vsel %vm3022_vm8, %v8512_v1, %v8508_v47  ;;  %v5123_v0 = vsel %vm3309_vm12, %v14061_v46, %v5122_v42 }
 0x739   : > { %v8575_v14 = vrot.slane %v8260_v63, %v15321_v49  ;;  %v14544_v43 = vsel %vm3309_vm12, %v8513_v10, %v14423_v3  ;;  %v8257_v16 = vpop.xlane.xlu1 %8256  ;;  %v5079_v3 = vrot.slane %v14230_v18, %v15321_v49 }
 0x73a   : > { %v8571_v58 = vrot.slane %v8257_v16, %v15323_v57 }
 0x73b   : > { %v5080_v54 = vsel %vm3022_vm8, %v5079_v3, %v5075_v52 }
 0x73c   : > { %v8302_v59 = vpop.xlane.xlu0 %8301  ;;  %v8576_v55 = vsel %vm3022_vm8, %v8575_v14, %v8571_v58  ;;  %v5124_v29 = vsel %vm3311_vm13, %v5080_v54, %v5123_v0 }
 0x73d   : > { %v8638_v23 = vrot.slane %v8302_v59, %v15321_v49  ;;  %v14567_v18 = vsel %vm3307_vm11, %v8576_v55, %v8700_v37  ;;  %v8299_v1 = vpop.xlane.xlu1 %8298  ;;  %v5125_v36 = vsel %vm3313_vm14, %v5089_v38, %v5124_v29 }
 0x73e   : > { %v8634_v48 = vrot.slane %v8299_v1, %v15323_v57 }
 0x740   : > { %v4746_v28 = vpop.xlane.xlu0 %4745  ;;  %v8639_v27 = vsel %vm3022_vm8, %v8638_v23, %v8634_v48 }
 0x741   : > { %v5097_v41 = vrot.slane %v4746_v28, %v15321_v49  ;;  %v14583_v2 = vsel %vm3305_vm10, %v8639_v27, %v14470_v62  ;;  %v4743_v47 = vpop.xlane.xlu1 %4742  ;;  %v6737_v62 = vrot.slane %v14488_v53, %v15321_v49 }
 0x742   : > { %v5093_v25 = vrot.slane %v4743_v47, %v15323_v57 }
 0x743   : > { %v6738_v53 = vsel %vm3022_vm8, %v6737_v62, %v6733_v56 }
 0x744   : > { %v6395_v20 = vpop.xlane.xlu0 %6394  ;;  %v5098_v34 = vsel %vm3022_vm8, %v5097_v41, %v5093_v25  ;;  %v6904_v58 = vsel %vm3313_vm14, %v6738_v53, %v14326_v11  ;;  %v6800_v11 = vrot.slane %v14492_v26, %v15321_v49 }
 0x745   : > { %v6674_v63 = vrot.slane %v6395_v20, %v15321_v49  ;;  %v6392_v46 = vpop.xlane.xlu1 %6391  ;;  %v5126_v45 = vsel %vm3315_vm15, %v5098_v34, %v5125_v36 }
 0x746   : > { %v6670_v10 = vrot.slane %v6392_v46, %v15323_v57  ;;  %v5140_v14 = vsel %vm1762_vm4, %v5126_v45, 0.0  ;;  %v6801_v6 = vsel %vm3022_vm8, %v6800_v11, %v6796_v12 }
 0x747   : > { %5141 = vadd.xlane.f32.xlu0 %v5140_v14  ;;  %v6910_v8 = vsel %vm3311_vm13, %v6801_v6, %v14353_v9 }
 0x748   : > { %v6443_v35 = vpop.xlane.xlu0 %6442  ;;  %v6675_v17 = vsel %vm3022_vm8, %v6674_v63, %v6670_v10 }
 0x749   : > { %v6746_v4 = vrot.slane %v6443_v35, %v15321_v49  ;;  %v6440_v39 = vpop.xlane.xlu1 %6439  ;;  %v6898_v5 = vsel %vm3315_vm15, %v6675_v17, %v6897_v32 }
 0x74a   : > { %v6742_v16 = vrot.slane %v6440_v39, %v15323_v57  ;;  %v6924_v30 = vsel %vm1762_vm4, %v6898_v5, 0.0 }
 0x74b   : > { %6925 = vadd.xlane.f32.xlu1 %v6924_v30 }
 0x74c   : > { %v6485_v31 = vpop.xlane.xlu0 %6484  ;;  %v6747_v44 = vsel %vm3022_vm8, %v6746_v4, %v6742_v16 }
 0x74d   : > { %v6482_v24 = vpop.xlane.xlu1 %6481  ;;  %v6905_v15 = vsel %vm3315_vm15, %v6747_v44, %v6904_v58  ;;  %v6809_v40 = vrot.slane %v6485_v31, %v15321_v49 }
 0x74e   : > { %v6927_v22 = vsel %vm1762_vm4, %v6905_v15, 0.0  ;;  %v6805_v1 = vrot.slane %v6482_v24, %v15323_v57 }
 0x74f   : > { %6928 = vadd.xlane.f32.xlu0 %v6927_v22 }
 0x750   : > { %v6527_v19 = vpop.xlane.xlu0 %6526  ;;  %v6810_v42 = vsel %vm3022_vm8, %v6809_v40, %v6805_v1 }
 0x751   : > { %v6524_v7 = vpop.xlane.xlu1 %6523  ;;  %v6911_v38 = vsel %vm3313_vm14, %v6810_v42, %v6910_v8  ;;  %v6872_v9 = vrot.slane %v6527_v19, %v15321_v49 }
 0x752   : > { %v6868_v51 = vrot.slane %v6524_v7, %v15323_v57 }
 0x754   : > { %v8176_v3 = vpop.xlane.xlu0 %8175  ;;  %v6873_v35 = vsel %vm3022_vm8, %v6872_v9, %v6868_v51 }
 0x755   : > { %v8173_v59 = vpop.xlane.xlu1 %8172  ;;  %v8449_v45 = vrot.slane %v8176_v3, %v15321_v49  ;;  %v6917_v44 = vsel %vm3311_vm13, %v6873_v35, %v14502_v60 }
 0x756   : > { %v8445_v10 = vrot.slane %v8173_v59, %v15323_v57 }
 0x758   : > { %v14613_v52 = vpop.xlane.xlu0 %8223  ;;  %v8450_v16 = vsel %vm3022_vm8, %v8449_v45, %v8445_v10 }
 0x759   : > { %v14615_v37 = vpop.xlane.xlu1 %8220  ;;  %v8521_v30 = vrot.slane %v14613_v52, %v15321_v49  ;;  %v8689_v12 = vsel %vm3311_vm13, %v8450_v16, %v14519_v61 }
 0x75a   : > { %v8517_v58 = vrot.slane %v14615_v37, %v15323_v57 }
 0x75c   : > { %v14617_v55 = vpop.xlane.xlu0 %8265  ;;  %v8522_v40 = vsel %vm3022_vm8, %v8521_v30, %v8517_v58 }
 0x75d   : > { %v14619_v23 = vpop.xlane.xlu1 %8262  ;;  %v8696_v61 = vsel %vm3311_vm13, %v8522_v40, %v14544_v43 }
 0x760   : > { %v14621_v13 = vpop.xlane.xlu0 %8307 }
 0x761   : > { %v14629_v50 = vpop.xlane.xlu1 %8304 }
 0x762   : > { %v8643_v35 = vrot.slane %v14629_v50, %v15323_v57 }
 0x764   : > { %v6491_v48 = vpop.xlane.xlu0 %6490 }
 0x765   : > { %v6818_v28 = vrot.slane %v6491_v48, %v15321_v49  ;;  %v6488_v54 = vpop.xlane.xlu1 %6487 }
 0x766   : > { %v6814_v27 = vrot.slane %v6488_v54, %v15323_v57 }
 0x768   : > { %v6533_v26 = vpop.xlane.xlu0 %6532  ;;  %v6819_v41 = vsel %vm3022_vm8, %v6818_v28, %v6814_v27 }
 0x769   : > { %v6530_v21 = vpop.xlane.xlu1 %6529  ;;  %v6912_v33 = vsel %vm3315_vm15, %v6819_v41, %v6911_v38  ;;  %v6881_v62 = vrot.slane %v6533_v26, %v15321_v49 }
 0x76a   : > { %v6930_v47 = vsel %vm1762_vm4, %v6912_v33, 0.0  ;;  %v6877_v56 = vrot.slane %v6530_v21, %v15323_v57 }
 0x76b   : > { %6931 = vadd.xlane.f32.xlu1 %v6930_v47 }
 0x76c   : > { %v8182_v0 = vpop.xlane.xlu0 %8181  ;;  %v6882_v17 = vsel %vm3022_vm8, %v6881_v62, %v6877_v56 }
 0x76d   : > { %v8179_v25 = vpop.xlane.xlu1 %8178  ;;  %v8458_v32 = vrot.slane %v8182_v0, %v15321_v49  ;;  %v6918_v22 = vsel %vm3313_vm14, %v6882_v17, %v6917_v44  ;;  %v8584_v0 = vrot.slane %v14617_v55, %v15321_v49 }
 0x76e   : > { %v8454_v53 = vrot.slane %v8179_v25, %v15323_v57  ;;  %v8580_v25 = vrot.slane %v14619_v23, %v15323_v57 }
 0x770   : > { %v8230_v20 = vpop.xlane.xlu0 %8229  ;;  %v8459_v19 = vsel %vm3022_vm8, %v8458_v32, %v8454_v53  ;;  %v8585_v56 = vsel %vm3022_vm8, %v8584_v0, %v8580_v25 }
 0x771   : > { %v8227_v29 = vpop.xlane.xlu1 %8226  ;;  %v8530_v7 = vrot.slane %v8230_v20, %v15321_v49  ;;  %v8690_v6 = vsel %vm3313_vm14, %v8459_v19, %v8689_v12 }
 0x772   : > { %v8526_v3 = vrot.slane %v8227_v29, %v15323_v57 }
 0x774   : > { %v14641_v63 = vpop.xlane.xlu0 %8271  ;;  %v8531_v28 = vsel %vm3022_vm8, %v8530_v7, %v8526_v3 }
 0x775   : > { %v14643_v34 = vpop.xlane.xlu1 %8268  ;;  %v8697_v38 = vsel %vm3313_vm14, %v8531_v28, %v8696_v61  ;;  %v8593_v43 = vrot.slane %v14641_v63, %v15321_v49  ;;  %v8702_v63 = vsel %vm3309_vm12, %v8585_v56, %v14567_v18 }
 0x776   : > { %v8589_v29 = vrot.slane %v14643_v34, %v15323_v57  ;;  %v8647_v34 = vrot.slane %v14621_v13, %v15321_v49 }
 0x778   : > { %v14645_v36 = vpop.xlane.xlu0 %8313  ;;  %v8594_v55 = vsel %vm3022_vm8, %v8593_v43, %v8589_v29  ;;  %v15405_v43 = vld [vmem:[#allocation56_spill] sm:$0xff] }
 0x779   : > { %v14651_v46 = vpop.xlane.xlu1 %8310  ;;  %v8656_v17 = vrot.slane %v14645_v36, %v15321_v49  ;;  %v8648_v36 = vsel %vm3022_vm8, %v8647_v34, %v8643_v35 }
 0x77a   : > { %v8652_v32 = vrot.slane %v14651_v46, %v15323_v57  ;;  %v8708_v19 = vsel %vm3307_vm11, %v8648_v36, %v14583_v2  ;;  %v8733_v2 = vld [vmem:[%s14811_s4] sm:$0xf] }
 0x77b   : > { %v8914_v36 = vld [vmem:[%s14814_s7] sm:$0xff] }
 0x77c   : > { %v6539_v14 = vpop.xlane.xlu0 %6538  ;;  %v8657_v58 = vsel %vm3022_vm8, %v8656_v17, %v8652_v32 }
 0x77d   : > { %v6890_v4 = vrot.slane %v6539_v14, %v15321_v49  ;;  %v6536_v39 = vpop.xlane.xlu1 %6535 }
 0x77e   : > { %v6886_v5 = vrot.slane %v6536_v39, %v15323_v57  ;;  %v8703_v39 = vsel %vm3311_vm13, %v8594_v55, %v8702_v63 }
 0x780   : > { %v8188_v31 = vpop.xlane.xlu0 %8187  ;;  %v6891_v15 = vsel %vm3022_vm8, %v6890_v4, %v6886_v5 }
 0x781   : > { %v8467_v24 = vrot.slane %v8188_v31, %v15321_v49  ;;  %v8185_v59 = vpop.xlane.xlu1 %8184  ;;  %v6919_v52 = vsel %vm3315_vm15, %v6891_v15, %v6918_v22 }
 0x782   : > { %v8463_v60 = vrot.slane %v8185_v59, %v15323_v57  ;;  %v6933_v11 = vsel %vm1762_vm4, %v6919_v52, 0.0  ;;  %v8709_v59 = vsel %vm3309_vm12, %v8657_v58, %v8708_v19  ;;  %v8916_v58 = vld [vmem:[%s14814_s7 + $0x10] sm:$0xff] }
 0x783   : > { %6934 = vadd.xlane.f32.xlu0 %v6933_v11 }
 0x784   : > { %v8236_v37 = vpop.xlane.xlu0 %8235  ;;  %v8468_v48 = vsel %vm3022_vm8, %v8467_v24, %v8463_v60 }
 0x785   : > { %v8539_v1 = vrot.slane %v8236_v37, %v15321_v49  ;;  %v8233_v42 = vpop.xlane.xlu1 %8232  ;;  %v8691_v54 = vsel %vm3315_vm15, %v8468_v48, %v8690_v6 }
 0x786   : > { %v8535_v27 = vrot.slane %v8233_v42, %v15323_v57  ;;  %v8717_v26 = vsel %vm1762_vm4, %v8691_v54, 0.0 }
 0x787   : > { %8718 = vadd.xlane.f32.xlu1 %v8717_v26 }
 0x788   : > { %v8278_v8 = vpop.xlane.xlu0 %8277  ;;  %v8540_v41 = vsel %vm3022_vm8, %v8539_v1, %v8535_v27 }
 0x789   : > { %v8275_v21 = vpop.xlane.xlu1 %8274  ;;  %v8698_v33 = vsel %vm3315_vm15, %v8540_v41, %v8697_v38  ;;  %v8602_v9 = vrot.slane %v8278_v8, %v15321_v49  ;;  %v15402_v8 = vld [vmem:[#allocation71_spill] sm:$0xff]  ;;  %v15403_v38 = vld [vmem:[#allocation53_spill] sm:$0xff] }
 0x78a   : > { %v8720_v47 = vsel %vm1762_vm4, %v8698_v33, 0.0  ;;  %v8598_v51 = vrot.slane %v8275_v21, %v15323_v57  ;;  %v15404_v33 = vld [vmem:[#allocation28_spill] sm:$0xff] }
 0x78b   : > { %8721 = vadd.xlane.f32.xlu0 %v8720_v47 }
 0x78c   : > { %v8320_v20 = vpop.xlane.xlu0 %8319  ;;  %v8603_v10 = vsel %vm3022_vm8, %v8602_v9, %v8598_v51 }
 0x78d   : > { %v8317_v62 = vpop.xlane.xlu1 %8316  ;;  %v8665_v5 = vrot.slane %v8320_v20, %v15321_v49  ;;  %v8704_v16 = vsel %vm3313_vm14, %v8603_v10, %v8703_v39 }
 0x78e   : > { %v8661_v18 = vrot.slane %v8317_v62, %v15323_v57 }
 0x790   : > { %v8284_v45 = vpop.xlane.xlu0 %8283  ;;  %v8666_v15 = vsel %vm3022_vm8, %v8665_v5, %v8661_v18 }
 0x791   : > { %v8611_v23 = vrot.slane %v8284_v45, %v15321_v49  ;;  %v8281_v14 = vpop.xlane.xlu1 %8280  ;;  %v8710_v60 = vsel %vm3311_vm13, %v8666_v15, %v8709_v59  ;;  %v15406_v45 = vld [vmem:[#allocation18_spill] sm:$0xff] }
 0x792   : > { %v8607_v4 = vrot.slane %v8281_v14, %v15323_v57  ;;  %v15408_v14 = vld [vmem:[#allocation20_spill] sm:$0xff]  ;;  %v8955_v15 = vld [vmem:[#allocation2] sm:$0x1] }
 0x794   : > { %v8326_v53 = vpop.xlane.xlu0 %8325  ;;  %v8612_v13 = vsel %vm3022_vm8, %v8611_v23, %v8607_v4  ;;  %v15407_v23 = vld [vmem:[#allocation19_spill] sm:$0xff] }
 0x795   : > { %v8674_v50 = vrot.slane %v8326_v53, %v15321_v49  ;;  %v8323_v30 = vpop.xlane.xlu1 %8322  ;;  %v8705_v31 = vsel %vm3315_vm15, %v8612_v13, %v8704_v16  ;;  %v15409_v13 = vld [vmem:[#allocation21_spill] sm:$0xff] }
 0x796   : > { %v8670_v46 = vrot.slane %v8323_v30, %v15323_v57  ;;  %v8723_v44 = vsel %vm1762_vm4, %v8705_v31, 0.0 }
 0x797   : > { %8724 = vadd.xlane.f32.xlu1 %v8723_v44  ;;  %v8915_v44 = vld [vmem:[%s14814_s7 + $0x8] sm:$0xff] }
 0x798   : > { %v8332_v24 = vpop.xlane.xlu0 %8331  ;;  %v8675_v7 = vsel %vm3022_vm8, %v8674_v50, %v8670_v46  ;;  %v8766_v46 = vld [vmem:[%s14812_s5] sm:$0xff] }
 0x799   : > { %v8683_v22 = vrot.slane %v8332_v24, %v15321_v49  ;;  %v8329_v3 = vpop.xlane.xlu1 %8328  ;;  %v8711_v37 = vsel %vm3313_vm14, %v8675_v7, %v8710_v60  ;;  %v8917_v24 = vld [vmem:[%s14814_s7 + $0x18] sm:$0xff] }
 0x79a   : > { %v8679_v52 = vrot.slane %v8329_v3, %v15323_v57 }
 0x79c   : > { %v8684_v11 = vsel %vm3022_vm8, %v8683_v22, %v8679_v52  ;;  %v5136_v48 = vpop.xlane.xlu0 %5135  ;;  %vm8822_vm8 = vcmask 1043456  }
 0x79d   : > { %v8712_v12 = vsel %vm3315_vm15, %v8684_v11, %v8711_v37  ;;  %v5133_v40 = vpop.xlane.xlu1 %5132  ;;  %v5144_v21 = vadd.f32 %v5136_v48, %v15403_v38  ;;  %v8772_v38 = vld [vmem:[%s352_s29 + $0x10] sm:$0xff] }
 0x79e   : > { %v8726_v49 = vsel %vm1762_vm4, %v8712_v12, 0.0  ;;  %v5143_v61 = vadd.f32 %v5133_v40, %v15402_v8  ;;  %vm8809_vm4 = vcmask 31744   ;;  %v8768_v40 = vld [vmem:[%s14812_s5 + $0x10] sm:$0xff]  ;;  %v8773_v8 = vld [vmem:[%s352_s29 + $0x18] sm:$0xff] }
 0x79f   : > { %8727 = vadd.xlane.f32.xlu0 %v8726_v49  ;;  %9741 = vmatprep.mubr.msk.f32.mxu0 %vm8809_vm4, %v8766_v46 }
 0x7a8   : > { %8736 = vperm.xlu1 %10094, %v8733_v2   ;;  %v8767_v2 = vld [vmem:[%s14812_s5 + $0x8] sm:$0xff] }
 0x7ac   : > { %v5139_v1 = vpop.xlane.xlu1 %5138 }
 0x7ad   : > { %v5145_v47 = vadd.f32 %v5139_v1, %v15404_v33 }
 0x7d4   : > { %v5142_v28 = vpop.xlane.xlu0 %5141 }
 0x7d5   : > { %v5146_v29 = vadd.f32 %v5142_v28, %v15405_v43  ;;  %v8770_v28 = vld [vmem:[%s352_s29] sm:$0xff] }
 0x7d8   : > { %v6926_v6 = vpop.xlane.xlu1 %6925 }
 0x7d9   : > { %v6936_v0 = vadd.f32 %v6926_v6, %v5143_v61  ;;  %v8771_v6 = vld [vmem:[%s352_s29 + $0x8] sm:$0xff] }
 0x7dc   : > { %v6929_v54 = vpop.xlane.xlu0 %6928 }
 0x7dd   : > { %v6937_v20 = vadd.f32 %v6929_v54, %v5144_v21 }
 0x7f8   : > { %v6932_v42 = vpop.xlane.xlu1 %6931 }
 0x7f9   : > { %v6938_v9 = vadd.f32 %v6932_v42, %v5145_v47 }
 0x810   : > { %v6935_v26 = vpop.xlane.xlu0 %6934 }
 0x811   : > { %v6939_v34 = vadd.f32 %v6935_v26, %v5146_v29 }
 0x814   : > { %v8719_v27 = vpop.xlane.xlu1 %8718 }
 0x815   : > { %v8729_v51 = vadd.f32 %v8719_v27, %v6936_v0 }
 0x818   : > { %v8722_v25 = vpop.xlane.xlu0 %8721 }
 0x819   : > { %v8730_v56 = vadd.f32 %v8722_v25, %v6937_v20 }
 0x824   : > { %v8725_v41 = vpop.xlane.xlu1 %8724 }
 0x825   : > { %v8731_v35 = vadd.f32 %v8725_v41, %v6938_v9 }
 0x828   : > { %v8737_v62 = vpop.permute.xlu1 %8736 }
 0x829   : > { %v8741_v55 = vrot.slane %v8737_v62, %v15406_v45  ;;  %v8745_v10 = vrot.slane %v8737_v62, %v15407_v23  ;;  %v8749_v63 = vrot.slane %v8737_v62, %v15408_v14  ;;  %v8753_v16 = vrot.slane %v8737_v62, %v15409_v13 }
 0x82b   : > { %v8758_v4 = vadd.f32 %v8741_v55, %v8729_v51  ;;  %v8759_v17 = vadd.f32 %v8745_v10, %v8730_v56  ;;  %v8760_v53 = vadd.f32 %v8749_v63, %v8731_v35 }
 0x82c   : > { %v8728_v32 = vpop.xlane.xlu0 %8727 }
 0x82d   : > { %v8732_v39 = vadd.f32 %v8728_v32, %v6939_v34  ;;  %v8763_v5 = vmax.f32 %v8759_v17, 0.0  ;;  %v8762_v18 = vmax.f32 %v8758_v4, 0.0  ;;  %v8764_v30 = vmax.f32 %v8760_v53, 0.0 }
 0x82f   : > { %8782 = vperm.xlu1 %10094, %v8763_v5   ;;  %8779 = vperm.xlu0 %10095, %v8762_v18   ;;  %v8761_v50 = vadd.f32 %v8753_v16, %v8732_v39 }
 0x831   : > { %v8765_v31 = vmax.f32 %v8761_v50, 0.0 }
 0x833   : > { %8785 = vperm.xlu1 %10094, %v8764_v30  }
 0x837   : > { %8788 = vperm.xlu1 %10094, %v8765_v31  }
 0x83b   : > { %8920 = vperm.xlu1 %10094, %v8914_v36  }
 0x83f   : > { %8925 = vperm.xlu1 %10094, %v8915_v44  }
 0x843   : > { %8930 = vperm.xlu1 %10094, %v8916_v58  }
 0x847   : > { %8935 = vperm.xlu1 %10094, %v8917_v24  }
 0x84b   : > { %8958 = vperm.xlu1 %10094, %v8955_v15  }
 0x8ae   : > { %v8783_v22 = vpop.permute.xlu1 %8782  ;;  %v8780_v19 = vpop.permute.xlu0 %8779 }
 0x8af   : > { %v8797_v3 = vrot.slane %v8783_v22, %v15323_v57  ;;  %v8793_v59 = vrot.slane %v8780_v19, %v15323_v57 }
 0x8b1   : > { %v8806_v11 = vsel %vm3303_vm9, %v8797_v3, %v8793_v59  ;;  %vm8966_vm9 = vcmask 57344  }
 0x8b2   : > { %v8786_v7 = vpop.permute.xlu1 %8785 }
 0x8b3   : > { %v8801_v52 = vrot.slane %v8786_v7, %v15323_v57 }
 0x8b5   : > { %v8807_v12 = vsel %vm3305_vm10, %v8801_v52, %v8806_v11 }
 0x8b6   : > { %v8789_v60 = vpop.permute.xlu1 %8788 }
 0x8b7   : > { %v8805_v37 = vrot.slane %v8789_v60, %v15323_v57  ;;  %v8769_v57 = vld [vmem:[%s14812_s5 + $0x18] sm:$0xff] }
 0x8b9   : > { %v8808_v49 = vsel %vm3307_vm11, %v8805_v37, %v8807_v12 }
 0x8ba   : > { %9739 = vmatprep.subr.msk.mxu0 %vm8822_vm8, %v8808_v49  ;;  %v8921_v1 = vpop.permute.xlu1 %8920 }
 0x8bb   : > { %9740 = vmatpush3.msk.msra.mxu0 %vm8822_vm8, %v8808_v49 }
 0x8bc   : > { %9742 = vmatmul.mubr.msk.f32.vlgmr.msra.gmra.mrb[46].mxu0 %vm8809_vm4, %v8767_v2 }
 0x8bd   : > { %9744 = vmatprep.mubr.msk.f32.mxu0 %vm8809_vm4, %v8768_v40 }
 0x8be   : > { %v8926_v48 = vpop.permute.xlu1 %8925 }
 0x8c0   : > { %9745 = vmatmul.mubr.msk.f32.gmra.mrb[48].mxu0 %vm8809_vm4, %v8769_v57 }
 0x8c2   : > { %v8931_v61 = vpop.permute.xlu1 %8930 }
 0x8c6   : > { %v8936_v56 = vpop.permute.xlu1 %8935 }
 0x8ca   : > { %v8959_v39 = vpop.permute.xlu1 %8958 }
 0x8cb   : > { %v8964_v18 = vrot.slane %v8959_v39, %v15406_v45 }
 0x98f   : > { %v9743_v42 = vpop.f32.mrb[46].mxu0 }
 0x990   : > { %v8897_v54 = vadd.f32 %v9743_v42, %v8771_v6  ;;  %v8891_v27 = vpop.f32.mrb[47].mxu0 }
 0x991   : > { %v8892_v26 = vadd.f32 %v8891_v27, %v8770_v28 }
 0x992   : > { %v8911_v41 = vmax.f32 %v8897_v54, 0.0 }
 0x993   : > { %v8910_v21 = vmax.f32 %v8892_v26, 0.0  ;;  %v9746_v33 = vpop.f32.mrb[48].mxu0 }
 0x994   : > { %v8939_v47 = vmul.f32 %v8926_v48, %v8911_v41  ;;  %v8907_v0 = vadd.f32 %v9746_v33, %v8773_v8  ;;  %v8901_v25 = vpop.f32.mrb[49].mxu0 }
 0x995   : > { %v8938_v20 = vmul.f32 %v8921_v1, %v8910_v21  ;;  %v8902_v43 = vadd.f32 %v8901_v25, %v8772_v38 }
 0x996   : > { %v8943_v29 = vsel %vm373_vm0, %v8939_v47, 0.0  ;;  %v8913_v9 = vmax.f32 %v8907_v0, 0.0 }
 0x997   : > { %v8942_v51 = vsel %vm373_vm0, %v8938_v20, 0.0  ;;  %v8912_v62 = vmax.f32 %v8902_v43, 0.0 }
 0x998   : > { %v8944_v55 = vadd.f32 %v8943_v29, %v8942_v51  ;;  %v8941_v23 = vmul.f32 %v8936_v56, %v8913_v9 }
 0x999   : > { %v8940_v10 = vmul.f32 %v8931_v61, %v8912_v62 }
 0x99a   : > { %v8947_v34 = vsel %vm373_vm0, %v8941_v23, 0.0 }
 0x99b   : > { %v8945_v14 = vsel %vm373_vm0, %v8940_v10, 0.0 }
 0x99c   : > { %v8946_v63 = vadd.f32 %v8945_v14, %v8944_v55 }
 0x99e   : > { %v8948_v35 = vadd.f32 %v8947_v34, %v8946_v63 }
 0x9a0   : > { %v8949_v4 = vrot.slane %v8948_v35, 4 }
 0x9a2   : > { %v8950_v17 = vadd.f32 %v8949_v4, %v8948_v35 }
 0x9a4   : > { %v8951_v32 = vrot.slane %v8950_v17, 2 }
 0x9a6   : > { %v8952_v53 = vadd.f32 %v8951_v32, %v8950_v17 }
 0x9a8   : > { %v8953_v5 = vrot.slane %v8952_v53, 1 }
 0x9aa   : > { %v8954_v13 = vadd.f32 %v8953_v5, %v8952_v53 }
 0x9ac   : > { %v8965_v16 = vadd.f32 %v8964_v18, %v8954_v13 }
 0x9ae   : > { %8967 = vst.msk [vmem:[%s355_s13] sm:$0x1] %vm8966_vm9, %v8965_v16 }
 0x9af PF: > { %s21_s11 = sadd.s32 1, %s10506_s11  }
 0x9b0   : > { %p18_p5 = scmp.ge.s32.totalorder %s21_s11, 4  }
 0x9b2   :  { %20 = sbr.rel (!%p18_p5) target bundleno = 3 (0x3), region = 92 }

</bundles_post_ra>
